<compile_context>
chip_gen: v7x
topology: tpu7x:2x2x1
jax: 0.10.0
libtpu: 0.0.40
codegen_flags: <defaults>
</compile_context>

<pallas_src>
import jax
import jax.numpy as jnp
from jax.experimental import pallas as pl
from jax.experimental.pallas import tpu as pltpu

D_WORD_IN = 2304
D_HIDDEN = 1024
D_OUT = 768


def _make_kernel(word_dims):
    """Build a kernel for a given static tuple of word-modality widths."""
    n = len(word_dims)
    offsets = []
    off = 0
    for d in word_dims:
        offsets.append(off)
        off += d
    assert off == D_WORD_IN

    def kernel(*refs):
        word_refs = refs[:n]
        (video_ref, ww_ref, wb_ref, v1w_ref, v1b_ref, v2w_ref, v2b_ref,
         out_ref) = refs[n:]

        # ---- word branch: residual = cat(word_inputs) @ Ww + bw (concat fused)
        acc = None
        for o, d, wref in zip(offsets, word_dims, word_refs):
            x = wref[...].astype(jnp.bfloat16)          # bf16 operands,
            w = ww_ref[o:o + d, :]                      # static row-slice of Ww
            part = jnp.dot(x, w, preferred_element_type=jnp.float32)
            acc = part if acc is None else acc + part   # f32 accumulation
        residual = acc + wb_ref[...]                    # bias in f32
        word = jnp.tanh(residual)

        # ---- video branch: tanh(tanh(v @ W1 + b1) @ W2 + b2)
        v = video_ref[...].astype(jnp.bfloat16)
        h = jnp.tanh(jnp.dot(v, v1w_ref[...],
                             preferred_element_type=jnp.float32) + v1b_ref[...])
        video = jnp.tanh(jnp.dot(h.astype(jnp.bfloat16), v2w_ref[...],
                                 preferred_element_type=jnp.float32)
                         + v2b_ref[...])

        out_ref[...] = (residual + word * video).astype(out_ref.dtype)

    return kernel


def _pick_block_b(batch, max_block=256):
    """Largest power-of-two batch tile <= max_block that divides batch."""
    bb = min(batch, max_block)
    while bb > 8 and batch % bb:
        bb //= 2
    if batch % bb:
        # TODO(synk): pad ragged batches instead of one full-batch block.
        return batch
    return bb


def _as_bf16(x):
    return x if x.dtype == jnp.bfloat16 else x.astype(jnp.bfloat16)


@jax.jit
def multimodal_residual(word_inputs, video_inputs, params):
    """word_inputs: tuple of [B, d_i] arrays, sum(d_i) == 2304.
       video_inputs: [B, 2304]. Returns [B, 768] float32."""
    word_inputs = tuple(word_inputs)
    B = video_inputs.shape[0]
    word_dims = tuple(int(w.shape[1]) for w in word_inputs)
    assert sum(word_dims) == D_WORD_IN
    assert video_inputs.shape[1] == D_WORD_IN

    block_b = _pick_block_b(B)
    grid = (B // block_b,)

    ww = _as_bf16(params["word_w"])
    v1w = _as_bf16(params["vid1_w"])
    v2w = _as_bf16(params["vid2_w"])
    wb = params["word_b"].astype(jnp.float32)
    v1b = params["vid1_b"].astype(jnp.float32)
    v2b = params["vid2_b"].astype(jnp.float32)

    # Activations tiled over batch; weights/biases use a constant block index
    # (stay resident across grid steps) and are single-buffered.
    def act_spec(d):
        return pl.BlockSpec((block_b, d), lambda i: (i, 0))

    def resident(shape):
        return pl.BlockSpec(shape, lambda i: (0, 0),
                            pipeline_mode=pl.Buffered(1))

    in_specs = (
        [act_spec(d) for d in word_dims]        # word modalities (concat fused)
        + [
            act_spec(D_WORD_IN),                # video input
            resident((D_WORD_IN, D_OUT)),       # word_fc   weight^T (bf16)
            resident((1, D_OUT)),               # word_fc   bias     (f32)
            resident((D_WORD_IN, D_HIDDEN)),    # video_fc1 weight^T (bf16)
            resident((1, D_HIDDEN)),            # video_fc1 bias     (f32)
            resident((D_HIDDEN, D_OUT)),        # video_fc2 weight^T (bf16)
            resident((1, D_OUT)),               # video_fc2 bias     (f32)
        ]
    )
    out_spec = pl.BlockSpec((block_b, D_OUT), lambda i: (i, 0))

    return pl.pallas_call(
        _make_kernel(word_dims),
        out_shape=jax.ShapeDtypeStruct((B, D_OUT), jnp.float32),
        grid_spec=pl.GridSpec(grid=grid, in_specs=in_specs, out_specs=out_spec),
        compiler_params=pltpu.CompilerParams(
            dimension_semantics=("parallel",),       # batch rows independent
            vmem_limit_bytes=48 * 1024 * 1024,       # fits v7x's 64 MiB VMEM
        ),
    )(*word_inputs, video_inputs, ww, wb, v1w, v1b, v2w, v2b)


def _init_params(key):
    ks = jax.random.split(key, 6)
    scale = 0.02
    # Weights stored as (in_features, out_features) == PyTorch weight^T, bf16.
    return {
        "word_w": (scale * jax.random.normal(ks[0], (D_WORD_IN, D_OUT),
                                             jnp.float32)).astype(jnp.bfloat16),
        "word_b": scale * jax.random.normal(ks[1], (1, D_OUT), jnp.float32),
        "vid1_w": (scale * jax.random.normal(ks[2], (D_WORD_IN, D_HIDDEN),
                                             jnp.float32)).astype(jnp.bfloat16),
        "vid1_b": scale * jax.random.normal(ks[3], (1, D_HIDDEN), jnp.float32),
        "vid2_w": (scale * jax.random.normal(ks[4], (D_HIDDEN, D_OUT),
                                             jnp.float32)).astype(jnp.bfloat16),
        "vid2_b": scale * jax.random.normal(ks[5], (1, D_OUT), jnp.float32),
    }


def _reference(word_inputs, video_inputs, p):
    f32 = lambda a: a.astype(jnp.float32)
    x = jnp.concatenate(word_inputs, axis=1)
    residual = x @ f32(p["word_w"]) + f32(p["word_b"])
    word = jnp.tanh(residual)
    h = jnp.tanh(video_inputs @ f32(p["vid1_w"]) + f32(p["vid1_b"]))
    video = jnp.tanh(h @ f32(p["vid2_w"]) + f32(p["vid2_b"]))
    return residual + word * video


if __name__ == "__main__":
    key = jax.random.PRNGKey(0)
    kp, k1, k2, k3, kv = jax.random.split(key, 5)
    params = _init_params(kp)

    B = 8
    # Three word-modality features concatenating to 2304 (= 3 * 768).
    word_inputs = (
        jax.random.normal(k1, (B, 768), jnp.float32),
        jax.random.normal(k2, (B, 768), jnp.float32),
        jax.random.normal(k3, (B, 768), jnp.float32),
    )
    video_inputs = jax.random.normal(kv, (B, D_WORD_IN), jnp.float32)

    out = multimodal_residual(word_inputs, video_inputs, params)
    out = jax.block_until_ready(out)

    ref = _reference(word_inputs, video_inputs, params)
    assert out.shape == (B, D_OUT)
    max_err = float(jnp.max(jnp.abs(out - ref)))
    # bf16 MXU operands with f32 accumulation -> a few 1e-3 absolute error.
    assert jnp.allclose(out, ref, atol=2e-2, rtol=2e-2), (
        f"mismatch vs JAX reference, max abs err={max_err}")

    print("KERNEL_OK")
</pallas_src>

<mosaic_0001>
module attributes {stable_mosaic.version = 11 : i64} {
  func.func @kernel(%arg0: i32, %arg1: memref<8x768xf32, #tpu.memory_space<vmem>>, %arg2: memref<8x768xf32, #tpu.memory_space<vmem>>, %arg3: memref<8x768xf32, #tpu.memory_space<vmem>>, %arg4: memref<8x2304xf32, #tpu.memory_space<vmem>>, %arg5: memref<2304x768xbf16, #tpu.memory_space<vmem>>, %arg6: memref<1x768xf32, #tpu.memory_space<vmem>>, %arg7: memref<2304x1024xbf16, #tpu.memory_space<vmem>>, %arg8: memref<1x1024xf32, #tpu.memory_space<vmem>>, %arg9: memref<1024x768xbf16, #tpu.memory_space<vmem>>, %arg10: memref<1x768xf32, #tpu.memory_space<vmem>>, %arg11: memref<8x768xf32, #tpu.memory_space<vmem>>) attributes {dimension_semantics = [#tpu.dimension_semantics<parallel>], iteration_bounds = array<i64: 1>, scalar_prefetch = 0 : i64, scratch_operands = 0 : i64, tpu.core_type = #tpu.core_type<tc>, window_params = [{transform_indices = @transform_0, window_bounds = array<i64: 8, 768>}, {transform_indices = @transform_1, window_bounds = array<i64: 8, 768>}, {transform_indices = @transform_2, window_bounds = array<i64: 8, 768>}, {transform_indices = @transform_3, window_bounds = array<i64: 8, 2304>}, {pipeline_mode = #tpu.pipeline_mode<synchronous>, transform_indices = @transform_4, window_bounds = array<i64: 2304, 768>}, {pipeline_mode = #tpu.pipeline_mode<synchronous>, transform_indices = @transform_5, window_bounds = array<i64: 1, 768>}, {pipeline_mode = #tpu.pipeline_mode<synchronous>, transform_indices = @transform_6, window_bounds = array<i64: 2304, 1024>}, {pipeline_mode = #tpu.pipeline_mode<synchronous>, transform_indices = @transform_7, window_bounds = array<i64: 1, 1024>}, {pipeline_mode = #tpu.pipeline_mode<synchronous>, transform_indices = @transform_8, window_bounds = array<i64: 1024, 768>}, {pipeline_mode = #tpu.pipeline_mode<synchronous>, transform_indices = @transform_9, window_bounds = array<i64: 1, 768>}, {transform_indices = @transform_10, window_bounds = array<i64: 8, 768>}]} {
    %c0 = arith.constant 0 : index
    %c0_0 = arith.constant 0 : index
    %0 = vector.load %arg1[%c0, %c0_0] : memref<8x768xf32, #tpu.memory_space<vmem>>, vector<8x768xf32>
    %1 = arith.truncf %0 : vector<8x768xf32> to vector<8x768xbf16>
    %c0_1 = arith.constant 0 : index
    %c0_2 = arith.constant 0 : index
    %2 = vector.load %arg5[%c0_1, %c0_2] : memref<2304x768xbf16, #tpu.memory_space<vmem>>, vector<768x768xbf16>
    %cst = arith.constant dense<0.000000e+00> : vector<8x768xf32>
    %3 = tpu.matmul %1, %2, %cst {dimension_numbers = #tpu.dot_dimension_numbers<[1], [0], [0], [1], [0, 0, 1, 1], [], []>} : vector<8x768xbf16>, vector<768x768xbf16>, vector<8x768xf32> -> vector<8x768xf32>
    %c0_3 = arith.constant 0 : index
    %c0_4 = arith.constant 0 : index
    %4 = vector.load %arg2[%c0_3, %c0_4] : memref<8x768xf32, #tpu.memory_space<vmem>>, vector<8x768xf32>
    %5 = arith.truncf %4 : vector<8x768xf32> to vector<8x768xbf16>
    %c768 = arith.constant 768 : index
    %c0_5 = arith.constant 0 : index
    %6 = vector.load %arg5[%c768, %c0_5] : memref<2304x768xbf16, #tpu.memory_space<vmem>>, vector<768x768xbf16>
    %cst_6 = arith.constant dense<0.000000e+00> : vector<8x768xf32>
    %7 = tpu.matmul %5, %6, %cst_6 {dimension_numbers = #tpu.dot_dimension_numbers<[1], [0], [0], [1], [0, 0, 1, 1], [], []>} : vector<8x768xbf16>, vector<768x768xbf16>, vector<8x768xf32> -> vector<8x768xf32>
    %8 = arith.addf %3, %7 : vector<8x768xf32>
    %c0_7 = arith.constant 0 : index
    %c0_8 = arith.constant 0 : index
    %9 = vector.load %arg3[%c0_7, %c0_8] : memref<8x768xf32, #tpu.memory_space<vmem>>, vector<8x768xf32>
    %10 = arith.truncf %9 : vector<8x768xf32> to vector<8x768xbf16>
    %c1536 = arith.constant 1536 : index
    %c0_9 = arith.constant 0 : index
    %11 = vector.load %arg5[%c1536, %c0_9] : memref<2304x768xbf16, #tpu.memory_space<vmem>>, vector<768x768xbf16>
    %cst_10 = arith.constant dense<0.000000e+00> : vector<8x768xf32>
    %12 = tpu.matmul %10, %11, %cst_10 {dimension_numbers = #tpu.dot_dimension_numbers<[1], [0], [0], [1], [0, 0, 1, 1], [], []>} : vector<8x768xbf16>, vector<768x768xbf16>, vector<8x768xf32> -> vector<8x768xf32>
    %13 = arith.addf %8, %12 : vector<8x768xf32>
    %c0_11 = arith.constant 0 : index
    %c0_12 = arith.constant 0 : index
    %14 = vector.load %arg6[%c0_11, %c0_12] : memref<1x768xf32, #tpu.memory_space<vmem>>, vector<1x768xf32>
    %15 = vector.broadcast %14 : vector<1x768xf32> to vector<8x768xf32>
    %16 = arith.addf %13, %15 : vector<8x768xf32>
    %17 = math.tanh %16 : vector<8x768xf32>
    %c0_13 = arith.constant 0 : index
    %c0_14 = arith.constant 0 : index
    %18 = vector.load %arg4[%c0_13, %c0_14] : memref<8x2304xf32, #tpu.memory_space<vmem>>, vector<8x2304xf32>
    %19 = arith.truncf %18 : vector<8x2304xf32> to vector<8x2304xbf16>
    %c0_15 = arith.constant 0 : index
    %c0_16 = arith.constant 0 : index
    %20 = vector.load %arg7[%c0_15, %c0_16] : memref<2304x1024xbf16, #tpu.memory_space<vmem>>, vector<2304x1024xbf16>
    %cst_17 = arith.constant dense<0.000000e+00> : vector<8x1024xf32>
    %21 = tpu.matmul %19, %20, %cst_17 {dimension_numbers = #tpu.dot_dimension_numbers<[1], [0], [0], [1], [0, 0, 1, 1], [], []>} : vector<8x2304xbf16>, vector<2304x1024xbf16>, vector<8x1024xf32> -> vector<8x1024xf32>
    %c0_18 = arith.constant 0 : index
    %c0_19 = arith.constant 0 : index
    %22 = vector.load %arg8[%c0_18, %c0_19] : memref<1x1024xf32, #tpu.memory_space<vmem>>, vector<1x1024xf32>
    %23 = vector.broadcast %22 : vector<1x1024xf32> to vector<8x1024xf32>
    %24 = arith.addf %21, %23 : vector<8x1024xf32>
    %25 = math.tanh %24 : vector<8x1024xf32>
    %26 = arith.truncf %25 : vector<8x1024xf32> to vector<8x1024xbf16>
    %c0_20 = arith.constant 0 : index
    %c0_21 = arith.constant 0 : index
    %27 = vector.load %arg9[%c0_20, %c0_21] : memref<1024x768xbf16, #tpu.memory_space<vmem>>, vector<1024x768xbf16>
    %cst_22 = arith.constant dense<0.000000e+00> : vector<8x768xf32>
    %28 = tpu.matmul %26, %27, %cst_22 {dimension_numbers = #tpu.dot_dimension_numbers<[1], [0], [0], [1], [0, 0, 1, 1], [], []>} : vector<8x1024xbf16>, vector<1024x768xbf16>, vector<8x768xf32> -> vector<8x768xf32>
    %c0_23 = arith.constant 0 : index
    %c0_24 = arith.constant 0 : index
    %29 = vector.load %arg10[%c0_23, %c0_24] : memref<1x768xf32, #tpu.memory_space<vmem>>, vector<1x768xf32>
    %30 = vector.broadcast %29 : vector<1x768xf32> to vector<8x768xf32>
    %31 = arith.addf %28, %30 : vector<8x768xf32>
    %32 = math.tanh %31 : vector<8x768xf32>
    %33 = arith.mulf %17, %32 : vector<8x768xf32>
    %34 = arith.addf %16, %33 : vector<8x768xf32>
    %c0_25 = arith.constant 0 : index
    %c0_26 = arith.constant 0 : index
    %35 = vector.load %arg11[%c0_25, %c0_26] : memref<8x768xf32, #tpu.memory_space<vmem>>, vector<8x768xf32>
    tpu.vector_store %arg11[%c0_25, %c0_26], %34 {strides = array<i32>} : memref<8x768xf32, #tpu.memory_space<vmem>>, vector<8x768xf32>,
    return
  }
  func.func @transform_0(%arg0: i32) -> (i32, i32) {
    %c0_i32 = arith.constant 0 : i32
    %c0_i32_0 = arith.constant 0 : i32
    return %arg0, %c0_i32 : i32, i32
  }
  func.func @transform_1(%arg0: i32) -> (i32, i32) {
    %c0_i32 = arith.constant 0 : i32
    %c0_i32_0 = arith.constant 0 : i32
    return %arg0, %c0_i32 : i32, i32
  }
  func.func @transform_2(%arg0: i32) -> (i32, i32) {
    %c0_i32 = arith.constant 0 : i32
    %c0_i32_0 = arith.constant 0 : i32
    return %arg0, %c0_i32 : i32, i32
  }
  func.func @transform_3(%arg0: i32) -> (i32, i32) {
    %c0_i32 = arith.constant 0 : i32
    %c0_i32_0 = arith.constant 0 : i32
    return %arg0, %c0_i32 : i32, i32
  }
  func.func @transform_4(%arg0: i32) -> (i32, i32) {
    %c0_i32 = arith.constant 0 : i32
    %c0_i32_0 = arith.constant 0 : i32
    %c0_i32_1 = arith.constant 0 : i32
    return %c0_i32, %c0_i32_0 : i32, i32
  }
  func.func @transform_5(%arg0: i32) -> (i32, i32) {
    %c0_i32 = arith.constant 0 : i32
    %c0_i32_0 = arith.constant 0 : i32
    %c0_i32_1 = arith.constant 0 : i32
    return %c0_i32, %c0_i32_0 : i32, i32
  }
  func.func @transform_6(%arg0: i32) -> (i32, i32) {
    %c0_i32 = arith.constant 0 : i32
    %c0_i32_0 = arith.constant 0 : i32
    %c0_i32_1 = arith.constant 0 : i32
    return %c0_i32, %c0_i32_0 : i32, i32
  }
  func.func @transform_7(%arg0: i32) -> (i32, i32) {
    %c0_i32 = arith.constant 0 : i32
    %c0_i32_0 = arith.constant 0 : i32
    %c0_i32_1 = arith.constant 0 : i32
    return %c0_i32, %c0_i32_0 : i32, i32
  }
  func.func @transform_8(%arg0: i32) -> (i32, i32) {
    %c0_i32 = arith.constant 0 : i32
    %c0_i32_0 = arith.constant 0 : i32
    %c0_i32_1 = arith.constant 0 : i32
    return %c0_i32, %c0_i32_0 : i32, i32
  }
  func.func @transform_9(%arg0: i32) -> (i32, i32) {
    %c0_i32 = arith.constant 0 : i32
    %c0_i32_0 = arith.constant 0 : i32
    %c0_i32_1 = arith.constant 0 : i32
    return %c0_i32, %c0_i32_0 : i32, i32
  }
  func.func @transform_10(%arg0: i32) -> (i32, i32) {
    %c0_i32 = arith.constant 0 : i32
    %c0_i32_0 = arith.constant 0 : i32
    return %arg0, %c0_i32 : i32, i32
  }
}

</mosaic_0001>

<bundles_post_ra>
// kernel: multimodal_residual.1
= control target key start
LH: loop header
LB: loop body
LE: loop exit
PB: predicated region body
PF: predicated region fallthrough
CT: control target
= control target key end

     0   :  { %15 = vsyncpa [#allocation3], 0  ;;  %s23339_s0 = inlined_call_operand.hbm [shape: f32[8,768], index: 0, kind: input, shape index: {}]   ;;  %s23340_s1 = inlined_call_operand.hbm [shape: f32[8,768], index: 1, kind: input, shape index: {}]   ;;  %s23341_s2 = inlined_call_operand.hbm [shape: f32[8,768], index: 2, kind: input, shape index: {}]   ;;  %s23342_s3 = inlined_call_operand.hbm [shape: f32[8,2304], index: 3, kind: input, shape index: {}]   ;;  %s23343_s4 = inlined_call_operand.hbm [shape: bf16[2304,768], index: 4, kind: input, shape index: {}]   ;;  %s23344_s5 = inlined_call_operand.hbm [shape: f32[1,768], index: 5, kind: input, shape index: {}]   ;;  %s23345_s6 = inlined_call_operand.hbm [shape: bf16[2304,1024], index: 6, kind: input, shape index: {}]   ;;  %s23346_s7 = inlined_call_operand.hbm [shape: f32[1,1024], index: 7, kind: input, shape index: {}]   ;;  %s23347_s8 = inlined_call_operand.hbm [shape: bf16[1024,768], index: 8, kind: input, shape index: {}]   ;;  %s23348_s9 = inlined_call_operand.hbm [shape: f32[1,768], index: 9, kind: input, shape index: {}]   ;;  %s23349_s10 = inlined_call_operand.hbm [shape: f32[8,768], index: 10, kind: output, shape index: {}]  }
   0x1   :  { %16 = vsyncpa [#allocation6], 0 }
   0x2   :  { %17 = vsyncpa [#allocation9], 0 }
   0x3   :  { %18 = vsyncpa [#allocation12], 0 }
   0x4   :  { %19 = vsyncpa [#allocation15], 0 }
   0x5   :  { %20 = vsyncpa [#allocation18], 0 }
   0x6   :  { %21 = vsyncpa [#allocation4], 0  ;;  %s22651_s13 = smov [#allocation5]   ;;  %s22652_s15 = smov [#allocation8]  }
   0x7   :  { %s38_s14 = sshll.u32 %s22651_s13, 4  ;;  %s58_s16 = sshll.u32 %s22652_s15, 4  ;;  %s39_s14 = int_to_ptr.vmem [resolvable:$true] %s38_s14  ;;  %s59_s16 = int_to_ptr.vmem [resolvable:$true] %s58_s16 }
   0x8   :  { %s22395_s19 = scalar_lea.hbm %s23340_s1, 768 }
   0x9   :  { %p22396_p0 = scmp.ne.s32.totalorder %s23340_s1, %s22395_s19  ;;  %p22399_p1 = scmp.lt.u32.totalorder %s22395_s19, %s23340_s1 }
   0xb   :  { %p22401_p2 = pnand %p22399_p1, %p22396_p0 }
   0xd   :  { %22404 = shalt.err (!%p22401_p2)
}
   0xe   :  { %s22405_s24 = scalar_lea.vmem %s39_s14, 768  ;;  %p22410_p4 = scmp.lt.s32.totalorder %s39_s14, %s39_s14 }
   0xf   :  { %p22406_p3 = scmp.ne.s32.totalorder %s39_s14, %s22405_s24  ;;  %p22411_p5 = scmp.lt.s32.totalorder %s22405_s24, %s22405_s24 }
  0x11   :  { %p22412_p6 = por %p22411_p5, %p22410_p4 }
  0x13   :  { %p22413_p7 = pnand %p22412_p6, %p22406_p3 }
  0x15   :  { %22416 = shalt.err (!%p22413_p7)
}
  0x16   :  { %41 = dma.hbm_to_vmem [thread:$0]  %s23340_s1, 768, %s39_s14, [#allocation6]  }
  0x17   :  { %s22417_s29 = scalar_lea.hbm %s23342_s3, 2304 }
  0x18   :  { %p22418_p8 = scmp.ne.s32.totalorder %s23342_s3, %s22417_s29  ;;  %p22421_p9 = scmp.lt.u32.totalorder %s22417_s29, %s23342_s3 }
  0x1a   :  { %p22423_p10 = pnand %p22421_p9, %p22418_p8 }
  0x1c   :  { %22426 = shalt.err (!%p22423_p10)
}
  0x1d   :  { %s22427_s15 = scalar_lea.vmem %s59_s16, 2304  ;;  %p22432_p12 = scmp.lt.s32.totalorder %s59_s16, %s59_s16 }
  0x1e   :  { %p22428_p11 = scmp.ne.s32.totalorder %s59_s16, %s22427_s15  ;;  %p22433_p13 = scmp.lt.s32.totalorder %s22427_s15, %s22427_s15 }
  0x20   :  { %p22434_p0 = por %p22433_p13, %p22432_p12 }
  0x22   :  { %p22435_p1 = pnand %p22434_p0, %p22428_p11 }
  0x24   :  { %22438 = shalt.err (!%p22435_p1)
}
  0x25   :  { %61 = dma.hbm_to_vmem [thread:$0]  %s23342_s3, 2304, %s59_s16, [#allocation9]  }
  0x26   :  { %s22653_s17 = smov [#allocation11]   ;;  %s22654_s19 = smov [#allocation14]  }
  0x27   :  { %s80_s18 = sshll.u32 %s22653_s17, 4  ;;  %s102_s20 = sshll.u32 %s22654_s19, 4  ;;  %s81_s18 = int_to_ptr.vmem [resolvable:$true] %s80_s18  ;;  %s103_s20 = int_to_ptr.vmem [resolvable:$true] %s102_s20 }
  0x28   :  { %s22439_s23 = scalar_lea.hbm %s23344_s5, 96 }
  0x29   :  { %p22440_p2 = scmp.ne.s32.totalorder %s23344_s5, %s22439_s23  ;;  %p22443_p3 = scmp.lt.u32.totalorder %s22439_s23, %s23344_s5 }
  0x2b   :  { %p22445_p4 = pnand %p22443_p3, %p22440_p2 }
  0x2d   :  { %22448 = shalt.err (!%p22445_p4)
}
  0x2e   :  { %s22449_s3 = scalar_lea.vmem %s81_s18, 96  ;;  %p22454_p6 = scmp.lt.s32.totalorder %s81_s18, %s81_s18 }
  0x2f   :  { %p22450_p5 = scmp.ne.s32.totalorder %s81_s18, %s22449_s3  ;;  %p22455_p7 = scmp.lt.s32.totalorder %s22449_s3, %s22449_s3 }
  0x31   :  { %p22456_p8 = por %p22455_p7, %p22454_p6 }
  0x33   :  { %p22457_p9 = pnand %p22456_p8, %p22450_p5 }
  0x35   :  { %22460 = shalt.err (!%p22457_p9)
}
  0x36   :  { %83 = dma.hbm_to_vmem [thread:$0]  %s23344_s5, 96, %s81_s18, [#allocation12]  }
  0x37   :  { %s22461_s11 = scalar_lea.hbm %s23346_s7, 128 }
  0x38   :  { %p22462_p10 = scmp.ne.s32.totalorder %s23346_s7, %s22461_s11  ;;  %p22465_p11 = scmp.lt.u32.totalorder %s22461_s11, %s23346_s7 }
  0x3a   :  { %p22467_p12 = pnand %p22465_p11, %p22462_p10 }
  0x3c   :  { %22470 = shalt.err (!%p22467_p12)
}
  0x3d   :  { %s22471_s14 = scalar_lea.vmem %s103_s20, 128  ;;  %p22476_p0 = scmp.lt.s32.totalorder %s103_s20, %s103_s20 }
  0x3e   :  { %p22472_p13 = scmp.ne.s32.totalorder %s103_s20, %s22471_s14  ;;  %p22477_p1 = scmp.lt.s32.totalorder %s22471_s14, %s22471_s14 }
  0x40   :  { %p22478_p2 = por %p22477_p1, %p22476_p0 }
  0x42   :  { %p22479_p3 = pnand %p22478_p2, %p22472_p13 }
  0x44   :  { %22482 = shalt.err (!%p22479_p3)
}
  0x45   :  { %105 = dma.hbm_to_vmem [thread:$0]  %s23346_s7, 128, %s103_s20, [#allocation15]  }
  0x46   :  { %s22655_s18 = smov [#allocation2]   ;;  %s22656_s21 = smov [#allocation7]  }
  0x47   :  { %s28_s19 = sshll.u32 %s22655_s18, 4  ;;  %s48_s22 = sshll.u32 %s22656_s21, 4  ;;  %s29_s19 = int_to_ptr.vmem [resolvable:$true] %s28_s19  ;;  %s49_s22 = int_to_ptr.vmem [resolvable:$true] %s48_s22 }
  0x48   :  { %s22483_s25 = scalar_lea.hbm %s23339_s0, 768 }
  0x49   :  { %p22484_p4 = scmp.ne.s32.totalorder %s23339_s0, %s22483_s25  ;;  %p22487_p5 = scmp.lt.u32.totalorder %s22483_s25, %s23339_s0 }
  0x4b   :  { %p22489_p6 = pnand %p22487_p5, %p22484_p4 }
  0x4d   :  { %22492 = shalt.err (!%p22489_p6)
}
  0x4e   :  { %s22493_s7 = scalar_lea.vmem %s29_s19, 768  ;;  %p22498_p8 = scmp.lt.s32.totalorder %s29_s19, %s29_s19 }
  0x4f   :  { %p22494_p7 = scmp.ne.s32.totalorder %s29_s19, %s22493_s7  ;;  %p22499_p9 = scmp.lt.s32.totalorder %s22493_s7, %s22493_s7 }
  0x51   :  { %p22500_p10 = por %p22499_p9, %p22498_p8 }
  0x53   :  { %p22501_p11 = pnand %p22500_p10, %p22494_p7 }
  0x55   :  { %22504 = shalt.err (!%p22501_p11)
}
  0x56   :  { %31 = dma.hbm_to_vmem [thread:$0]  %s23339_s0, 768, %s29_s19, [#allocation3]  }
  0x57   :  { %s22505_s11 = scalar_lea.hbm %s23341_s2, 768 }
  0x58   :  { %p22506_p12 = scmp.ne.s32.totalorder %s23341_s2, %s22505_s11  ;;  %p22509_p13 = scmp.lt.u32.totalorder %s22505_s11, %s23341_s2 }
  0x5a   :  { %p22511_p0 = pnand %p22509_p13, %p22506_p12 }
  0x5c   :  { %22514 = shalt.err (!%p22511_p0)
}
  0x5d   :  { %s22515_s14 = scalar_lea.vmem %s49_s22, 768  ;;  %p22520_p2 = scmp.lt.s32.totalorder %s49_s22, %s49_s22 }
  0x5e   :  { %p22516_p1 = scmp.ne.s32.totalorder %s49_s22, %s22515_s14  ;;  %p22521_p3 = scmp.lt.s32.totalorder %s22515_s14, %s22515_s14 }
  0x60   :  { %p22522_p4 = por %p22521_p3, %p22520_p2 }
  0x62   :  { %p22523_p5 = pnand %p22522_p4, %p22516_p1 }
  0x64   :  { %22526 = shalt.err (!%p22523_p5)
}
  0x65   :  { %51 = dma.hbm_to_vmem [thread:$0]  %s23341_s2, 768, %s49_s22, [#allocation6]  }
  0x66   :  { %s22657_s17 = smov [#allocation10]   ;;  %s22527_s23 = scalar_lea.hbm %s23343_s4, 110592 }
  0x67   :  { %s67_s18 = sshll.u32 %s22657_s17, 4  ;;  %p22528_p6 = scmp.ne.s32.totalorder %s23343_s4, %s22527_s23  ;;  %s68_s18 = int_to_ptr.vmem [resolvable:$true] %s67_s18 }
  0x68   :  { %p22531_p7 = scmp.lt.u32.totalorder %s22527_s23, %s23343_s4 }
  0x6a   :  { %p22533_p8 = pnand %p22531_p7, %p22528_p6 }
  0x6c   :  { %22536 = shalt.err (!%p22533_p8)
}
  0x6d   :  { %s22537_s3 = scalar_lea.vmem %s68_s18, 110592  ;;  %p22542_p10 = scmp.lt.s32.totalorder %s68_s18, %s68_s18 }
  0x6e   :  { %p22538_p9 = scmp.ne.s32.totalorder %s68_s18, %s22537_s3  ;;  %p22543_p11 = scmp.lt.s32.totalorder %s22537_s3, %s22537_s3 }
  0x70   :  { %p22544_p12 = por %p22543_p11, %p22542_p10 }
  0x72   :  { %p22545_p13 = pnand %p22544_p12, %p22538_p9 }
  0x74   :  { %22548 = shalt.err (!%p22545_p13)
}
  0x75   :  { %s22658_s2 = smov 384   ;;  %s22659_s22 = smov 24  }
  0x76   :  { %73 = dma.hbm_to_vmem [thread:$0]  %s23343_s4, 110592, %s68_s18, [#allocation9], %s22658_s2, %s22658_s2, %s22659_s22  }
  0x77   :  { %s22660_s20 = smov [#allocation13]   ;;  %s22549_s11 = scalar_lea.hbm %s23345_s6, 147456 }
  0x78   :  { %s89_s28 = sshll.u32 %s22660_s20, 4  ;;  %p22550_p0 = scmp.ne.s32.totalorder %s23345_s6, %s22549_s11  ;;  %s90_s28 = int_to_ptr.vmem [resolvable:$true] %s89_s28 }
  0x79   :  { %p22553_p1 = scmp.lt.u32.totalorder %s22549_s11, %s23345_s6 }
  0x7b   :  { %p22555_p2 = pnand %p22553_p1, %p22550_p0 }
  0x7d   :  { %22558 = shalt.err (!%p22555_p2)
}
  0x7e   :  { %s22559_s14 = scalar_lea.vmem %s90_s28, 147456  ;;  %p22564_p4 = scmp.lt.s32.totalorder %s90_s28, %s90_s28 }
  0x7f   :  { %p22560_p3 = scmp.ne.s32.totalorder %s90_s28, %s22559_s14  ;;  %p22565_p5 = scmp.lt.s32.totalorder %s22559_s14, %s22559_s14 }
  0x81   :  { %p22566_p6 = por %p22565_p5, %p22564_p4 }
  0x83   :  { %p22567_p7 = pnand %p22566_p6, %p22560_p3 }
  0x85   :  { %22570 = shalt.err (!%p22567_p7)
}
  0x86   :  { %s22661_s4 = smov 512   ;;  %s22662_s0 = smov 32  }
  0x87   :  { %95 = dma.hbm_to_vmem [thread:$0]  %s23345_s6, 147456, %s90_s28, [#allocation12], %s22661_s4, %s22661_s4, %s22662_s0  }
  0x88   :  { %s22663_s18 = smov [#allocation16]   ;;  %s22664_s21 = smov [#allocation17]  }
  0x89   :  { %s111_s19 = sshll.u32 %s22663_s18, 4  ;;  %s124_s23 = sshll.u32 %s22664_s21, 4  ;;  %s112_s19 = int_to_ptr.vmem [resolvable:$true] %s111_s19  ;;  %s125_s23 = int_to_ptr.vmem [resolvable:$true] %s124_s23 }
  0x8a   :  { %s22571_s26 = scalar_lea.hbm %s23347_s8, 49152 }
  0x8b   :  { %p22572_p8 = scmp.ne.s32.totalorder %s23347_s8, %s22571_s26  ;;  %p22575_p9 = scmp.lt.u32.totalorder %s22571_s26, %s23347_s8 }
  0x8d   :  { %p22577_p10 = pnand %p22575_p9, %p22572_p8 }
  0x8f   :  { %22580 = shalt.err (!%p22577_p10)
}
  0x90   :  { %s22581_s6 = scalar_lea.vmem %s112_s19, 49152  ;;  %p22586_p12 = scmp.lt.s32.totalorder %s112_s19, %s112_s19 }
  0x91   :  { %p22582_p11 = scmp.ne.s32.totalorder %s112_s19, %s22581_s6  ;;  %p22587_p13 = scmp.lt.s32.totalorder %s22581_s6, %s22581_s6 }
  0x93   :  { %p22588_p0 = por %p22587_p13, %p22586_p12 }
  0x95   :  { %p22589_p1 = pnand %p22588_p0, %p22582_p11 }
  0x97   :  { %22592 = shalt.err (!%p22589_p1)
}
  0x98   :  { %117 = dma.hbm_to_vmem [thread:$0]  %s23347_s8, 49152, %s112_s19, [#allocation15], %s22658_s2, %s22658_s2, %s22659_s22  }
  0x99   :  { %s22593_s11 = scalar_lea.hbm %s23348_s9, 96 }
  0x9a   :  { %p22594_p2 = scmp.ne.s32.totalorder %s23348_s9, %s22593_s11  ;;  %p22597_p3 = scmp.lt.u32.totalorder %s22593_s11, %s23348_s9 }
  0x9c   :  { %p22599_p4 = pnand %p22597_p3, %p22594_p2 }
  0x9e   :  { %22602 = shalt.err (!%p22599_p4)
}
  0x9f   :  { %s22603_s14 = scalar_lea.vmem %s125_s23, 96  ;;  %p22608_p6 = scmp.lt.s32.totalorder %s125_s23, %s125_s23 }
  0xa0   :  { %p22604_p5 = scmp.ne.s32.totalorder %s125_s23, %s22603_s14  ;;  %p22609_p7 = scmp.lt.s32.totalorder %s22603_s14, %s22603_s14 }
  0xa2   :  { %p22610_p8 = por %p22609_p7, %p22608_p6 }
  0xa4   :  { %p22611_p9 = pnand %p22610_p8, %p22604_p5 }
  0xa6   :  { %22614 = shalt.err (!%p22611_p9)
}
  0xa7   :  { %127 = dma.hbm_to_vmem [thread:$0]  %s23348_s9, 96, %s125_s23, [#allocation18]  }
  0xa8   :  { %22637 = dma.done.wait [#allocation3], 768  }
  0xa9   :  { %22638 = vsyncadd [#allocation3], 4294966528 }
  0xaa   :  { %22639 = dma.done.wait [#allocation6], 1536  }
  0xab   :  { %22640 = vsyncadd [#allocation6], 4294965760 }
  0xac   :  { %22641 = dma.done.wait [#allocation9], 112896  }
  0xad   :  { %22642 = vsyncadd [#allocation9], 4294854400 }
  0xae   :  { %22643 = dma.done.wait [#allocation12], 147552  }
  0xaf   :  { %22644 = vsyncadd [#allocation12], 4294819744 }
  0xb0   :  { %22645 = dma.done.wait [#allocation15], 49280  }
  0xb1   :  { %22646 = vsyncadd [#allocation15], 4294918016 }
  0xb2   :  { %22647 = dma.done.wait [#allocation18], 96  }
  0xb3   :  { %22648 = vsyncadd [#allocation18], 4294967200  ;;  %v20482_v0 = vld [vmem:[#allocation10 + $0x904] ss:$24 sps:$4 sm:$0xff]   ;;  %v20486_v2 = vld [vmem:[#allocation10 + $0x900] ss:$24 sps:$4 sm:$0xff]  }
  0xb4   :  { %v20484_v1 = vld [vmem:[#allocation10 + $0x90c] ss:$24 sps:$4 sm:$0xff]   ;;  %2198 = vmatprep.subr.bf16.mxu0 %v20482_v0  ;;  %v20487_v3 = vld [vmem:[#allocation10 + $0x908] ss:$24 sps:$4 sm:$0xff]   ;;  %v20490_v5 = vld [vmem:[#allocation10 + $0x93c] ss:$24 sps:$4 sm:$0xff]  }
  0xb5   :  { %2321 = vmatprep.subr.bf16.mxu1 %v20484_v1  ;;  %v20488_v4 = vld [vmem:[#allocation10 + $0x934] ss:$24 sps:$4 sm:$0xff]   ;;  %2199 = vmatpush1.bf16.msra.mxu0 %v20486_v2  ;;  %v20492_v6 = vld [vmem:[#allocation10 + $0x930] ss:$24 sps:$4 sm:$0xff]   ;;  %v20494_v8 = vld [vmem:[#allocation10 + $0x964] ss:$24 sps:$4 sm:$0xff]  }
  0xb6   :  { %2322 = vmatpush1.bf16.msra.mxu1 %v20487_v3  ;;  %2200 = vmatprep.subr.bf16.mxu0 %v20488_v4  ;;  %v20493_v7 = vld [vmem:[#allocation10 + $0x938] ss:$24 sps:$4 sm:$0xff]   ;;  %v20496_v9 = vld [vmem:[#allocation10 + $0x96c] ss:$24 sps:$4 sm:$0xff]   ;;  %v20499_v11 = vld [vmem:[#allocation10 + $0x968] ss:$24 sps:$4 sm:$0xff]  }
  0xb7   :  { %2323 = vmatprep.subr.bf16.mxu1 %v20490_v5  ;;  %v20498_v10 = vld [vmem:[#allocation10 + $0x960] ss:$24 sps:$4 sm:$0xff]   ;;  %v20500_v12 = vld [vmem:[#allocation10 + $0x994] ss:$24 sps:$4 sm:$0xff]   ;;  %v20504_v14 = vld [vmem:[#allocation10 + $0x990] ss:$24 sps:$4 sm:$0xff]  }
  0xb8   :  { %v20502_v13 = vld [vmem:[#allocation10 + $0x99c] ss:$24 sps:$4 sm:$0xff]   ;;  %v20505_v15 = vld [vmem:[#allocation10 + $0x998] ss:$24 sps:$4 sm:$0xff]   ;;  %v20508_v17 = vld [vmem:[#allocation10 + $0x9cc] ss:$24 sps:$4 sm:$0xff]  }
  0xb9   :  { %2201 = vmatpush1.bf16.msra.mxu0 %v20492_v6  ;;  %v20506_v16 = vld [vmem:[#allocation10 + $0x9c4] ss:$24 sps:$4 sm:$0xff]   ;;  %v20510_v18 = vld [vmem:[#allocation10 + $0x9c0] ss:$24 sps:$4 sm:$0xff]   ;;  %v20512_v20 = vld [vmem:[#allocation10 + $0x9f4] ss:$24 sps:$4 sm:$0xff]  }
  0xba   :  { %2324 = vmatpush1.bf16.msra.mxu1 %v20493_v7  ;;  %2202 = vmatprep.subr.bf16.mxu0 %v20494_v8  ;;  %v20511_v19 = vld [vmem:[#allocation10 + $0x9c8] ss:$24 sps:$4 sm:$0xff]   ;;  %v20514_v21 = vld [vmem:[#allocation10 + $0x9fc] ss:$24 sps:$4 sm:$0xff]   ;;  %v20517_v23 = vld [vmem:[#allocation10 + $0x9f8] ss:$24 sps:$4 sm:$0xff]  }
  0xbb   :  { %2325 = vmatprep.subr.bf16.mxu1 %v20496_v9  ;;  %v20516_v22 = vld [vmem:[#allocation10 + $0x9f0] ss:$24 sps:$4 sm:$0xff]   ;;  %v20518_v24 = vld [vmem:[#allocation10 + $0xa24] ss:$24 sps:$4 sm:$0xff]   ;;  %v20522_v26 = vld [vmem:[#allocation10 + $0xa20] ss:$24 sps:$4 sm:$0xff]  }
  0xbc   :  { %v20520_v25 = vld [vmem:[#allocation10 + $0xa2c] ss:$24 sps:$4 sm:$0xff]   ;;  %v20523_v27 = vld [vmem:[#allocation10 + $0xa28] ss:$24 sps:$4 sm:$0xff]   ;;  %v20526_v29 = vld [vmem:[#allocation10 + $0xa5c] ss:$24 sps:$4 sm:$0xff]  }
  0xbd   :  { %2203 = vmatpush1.bf16.msra.mxu0 %v20498_v10  ;;  %v20524_v28 = vld [vmem:[#allocation10 + $0xa54] ss:$24 sps:$4 sm:$0xff]   ;;  %v20528_v30 = vld [vmem:[#allocation10 + $0xa50] ss:$24 sps:$4 sm:$0xff]   ;;  %v20530_v32 = vld [vmem:[#allocation10 + $0xa84] ss:$24 sps:$4 sm:$0xff]  }
  0xbe   :  { %2326 = vmatpush1.bf16.msra.mxu1 %v20499_v11  ;;  %2204 = vmatprep.subr.bf16.mxu0 %v20500_v12  ;;  %v20529_v31 = vld [vmem:[#allocation10 + $0xa58] ss:$24 sps:$4 sm:$0xff]   ;;  %v20532_v33 = vld [vmem:[#allocation10 + $0xa8c] ss:$24 sps:$4 sm:$0xff]   ;;  %v20535_v35 = vld [vmem:[#allocation10 + $0xa88] ss:$24 sps:$4 sm:$0xff]  }
  0xbf   :  { %2327 = vmatprep.subr.bf16.mxu1 %v20502_v13  ;;  %v20534_v34 = vld [vmem:[#allocation10 + $0xa80] ss:$24 sps:$4 sm:$0xff]   ;;  %v20536_v36 = vld [vmem:[#allocation10 + $0xab4] ss:$24 sps:$4 sm:$0xff]   ;;  %v20540_v38 = vld [vmem:[#allocation10 + $0xab0] ss:$24 sps:$4 sm:$0xff]  }
  0xc0   :  { %v20538_v37 = vld [vmem:[#allocation10 + $0xabc] ss:$24 sps:$4 sm:$0xff]   ;;  %v20541_v39 = vld [vmem:[#allocation10 + $0xab8] ss:$24 sps:$4 sm:$0xff]   ;;  %v20544_v41 = vld [vmem:[#allocation10 + $0xaec] ss:$24 sps:$4 sm:$0xff]  }
  0xc1   :  { %2205 = vmatpush1.bf16.msra.mxu0 %v20504_v14  ;;  %v20542_v40 = vld [vmem:[#allocation10 + $0xae4] ss:$24 sps:$4 sm:$0xff]   ;;  %v20546_v42 = vld [vmem:[#allocation10 + $0xae0] ss:$24 sps:$4 sm:$0xff]   ;;  %v20548_v44 = vld [vmem:[#allocation10 + $0xb14] ss:$24 sps:$4 sm:$0xff]  }
  0xc2   :  { %2328 = vmatpush1.bf16.msra.mxu1 %v20505_v15  ;;  %2206 = vmatprep.subr.bf16.mxu0 %v20506_v16  ;;  %v20547_v43 = vld [vmem:[#allocation10 + $0xae8] ss:$24 sps:$4 sm:$0xff]   ;;  %v20550_v45 = vld [vmem:[#allocation10 + $0xb1c] ss:$24 sps:$4 sm:$0xff]   ;;  %v20553_v49 = vld [vmem:[#allocation10 + $0xb18] ss:$24 sps:$4 sm:$0xff]  }
  0xc3   :  { %2329 = vmatprep.subr.bf16.mxu1 %v20508_v17  ;;  %v459_v46 = vld [vmem:[#allocation5 + $0x8] sm:$0xff]  ;;  %v20552_v48 = vld [vmem:[#allocation10 + $0xb10] ss:$24 sps:$4 sm:$0xff]   ;;  %v20556_v51 = vld [vmem:[#allocation10 + $0xb4c] ss:$24 sps:$4 sm:$0xff]   ;;  %s22665_s9 = smov [#allocation19]  }
  0xc4   :  { %v22847_v47 = vpack.c.bf16 %v459_v46, %v459_v46  ;;  %v20554_v50 = vld [vmem:[#allocation10 + $0xb44] ss:$24 sps:$4 sm:$0xff]   ;;  %v20558_v52 = vld [vmem:[#allocation10 + $0xb40] ss:$24 sps:$4 sm:$0xff]   ;;  %v20560_v54 = vld [vmem:[#allocation10 + $0xb74] ss:$24 sps:$4 sm:$0xff]  }
  0xc5   :  { %2207 = vmatpush1.bf16.msra.mxu0 %v20510_v18  ;;  %v20559_v53 = vld [vmem:[#allocation10 + $0xb48] ss:$24 sps:$4 sm:$0xff]   ;;  %v20562_v55 = vld [vmem:[#allocation10 + $0xb7c] ss:$24 sps:$4 sm:$0xff]   ;;  %v20565_v57 = vld [vmem:[#allocation10 + $0xb78] ss:$24 sps:$4 sm:$0xff]  }
  0xc6   :  { %2330 = vmatpush1.bf16.msra.mxu1 %v20511_v19  ;;  %2208 = vmatprep.subr.bf16.mxu0 %v20512_v20  ;;  %v20564_v56 = vld [vmem:[#allocation10 + $0xb70] ss:$24 sps:$4 sm:$0xff]   ;;  %v20566_v58 = vld [vmem:[#allocation10 + $0xba4] ss:$24 sps:$4 sm:$0xff]   ;;  %v20570_v60 = vld [vmem:[#allocation10 + $0xba0] ss:$24 sps:$4 sm:$0xff]  }
  0xc7   :  { %2331 = vmatprep.subr.bf16.mxu1 %v20514_v21  ;;  %2230 = vmatprep.mubr.bf16.mxu0 %v22847_v47  ;;  %v20568_v59 = vld [vmem:[#allocation10 + $0xbac] ss:$24 sps:$4 sm:$0xff]   ;;  %v20571_v61 = vld [vmem:[#allocation10 + $0xba8] ss:$24 sps:$4 sm:$0xff]   ;;  %v20574_v63 = vld [vmem:[#allocation10 + $0xbdc] ss:$24 sps:$4 sm:$0xff]  }
  0xc8   :  { %2353 = vmatprep.mubr.bf16.mxu1 %v22847_v47  ;;  %v20572_v62 = vld [vmem:[#allocation10 + $0xbd4] ss:$24 sps:$4 sm:$0xff]   ;;  %v20576_v0 = vld [vmem:[#allocation10 + $0xbd0] ss:$24 sps:$4 sm:$0xff]   ;;  %v20580_v3 = vld [vmem:[#allocation10 + $0xc04] ss:$24 sps:$4 sm:$0xff]  }
  0xc9   :  { %2209 = vmatpush1.bf16.msra.mxu0 %v20516_v22  ;;  %v20577_v1 = vld [vmem:[#allocation10 + $0xbd8] ss:$24 sps:$4 sm:$0xff]   ;;  %v20583_v4 = vld [vmem:[#allocation10 + $0xf0c] ss:$24 sps:$4 sm:$0xff]   ;;  %v20581_v7 = vld [vmem:[#allocation10 + $0xf08] ss:$24 sps:$4 sm:$0xff]  }
  0xca   :  { %2332 = vmatpush1.bf16.msra.mxu1 %v20517_v23  ;;  %2210 = vmatprep.subr.bf16.mxu0 %v20518_v24  ;;  %v458_v2 = vld [vmem:[#allocation5] sm:$0xff]  ;;  %v20578_v6 = vld [vmem:[#allocation10 + $0xc00] ss:$24 sps:$4 sm:$0xff]   ;;  %v20592_v12 = vld [vmem:[#allocation10 + $0xc64] ss:$24 sps:$4 sm:$0xff]   ;;  %s17875_s22 = sshll.u32 %s22665_s9, 4  ;;  %s17876_s22 = int_to_ptr.vmem [resolvable:$true] %s17875_s22 }
  0xcb   :  { %2333 = vmatprep.subr.bf16.mxu1 %v20520_v25  ;;  %v22851_v5 = vpack.c.bf16 %v458_v2, %v458_v2  ;;  %v20586_v8 = vld [vmem:[#allocation10 + $0xc34] ss:$24 sps:$4 sm:$0xff]   ;;  %v20584_v10 = vld [vmem:[#allocation10 + $0xc30] ss:$24 sps:$4 sm:$0xff]   ;;  %v20590_v14 = vld [vmem:[#allocation10 + $0xc60] ss:$24 sps:$4 sm:$0xff]   ;;  %p22620_p11 = scmp.lt.s32.totalorder %s17876_s22, %s17876_s22 }
  0xcc   :  { %v20589_v9 = vld [vmem:[#allocation10 + $0xf3c] ss:$24 sps:$4 sm:$0xff]   ;;  %v20587_v11 = vld [vmem:[#allocation10 + $0xf38] ss:$24 sps:$4 sm:$0xff]   ;;  %v20595_v13 = vld [vmem:[#allocation10 + $0xf6c] ss:$24 sps:$4 sm:$0xff]  }
  0xcd   :  { %2211 = vmatpush1.bf16.msra.mxu0 %v20522_v26  ;;  %v20593_v15 = vld [vmem:[#allocation10 + $0xf68] ss:$24 sps:$4 sm:$0xff]   ;;  %v20598_v16 = vld [vmem:[#allocation10 + $0xc94] ss:$24 sps:$4 sm:$0xff]   ;;  %v20599_v19 = vld [vmem:[#allocation10 + $0xf98] ss:$24 sps:$4 sm:$0xff]  }
  0xce   :  { %2334 = vmatpush1.bf16.msra.mxu1 %v20523_v27  ;;  %2212 = vmatprep.subr.bf16.mxu0 %v20524_v28  ;;  %v20601_v17 = vld [vmem:[#allocation10 + $0xf9c] ss:$24 sps:$4 sm:$0xff]   ;;  %v20596_v18 = vld [vmem:[#allocation10 + $0xc90] ss:$24 sps:$4 sm:$0xff]   ;;  %v20607_v21 = vld [vmem:[#allocation10 + $0xfcc] ss:$24 sps:$4 sm:$0xff]  }
  0xcf   :  { %2335 = vmatprep.subr.bf16.mxu1 %v20526_v29  ;;  %v20604_v20 = vld [vmem:[#allocation10 + $0xcc4] ss:$24 sps:$4 sm:$0xff]   ;;  %v20602_v22 = vld [vmem:[#allocation10 + $0xcc0] ss:$24 sps:$4 sm:$0xff]   ;;  %v20610_v24 = vld [vmem:[#allocation10 + $0xcf4] ss:$24 sps:$4 sm:$0xff]  }
  0xd0   :  { %v20605_v23 = vld [vmem:[#allocation10 + $0xfc8] ss:$24 sps:$4 sm:$0xff]   ;;  %v20613_v25 = vld [vmem:[#allocation10 + $0xffc] ss:$24 sps:$4 sm:$0xff]   ;;  %v20611_v27 = vld [vmem:[#allocation10 + $0xff8] ss:$24 sps:$4 sm:$0xff]  }
  0xd1   :  { %2213 = vmatpush1.bf16.msra.mxu0 %v20528_v30  ;;  %v20608_v26 = vld [vmem:[#allocation10 + $0xcf0] ss:$24 sps:$4 sm:$0xff]   ;;  %v20616_v28 = vld [vmem:[#allocation10 + $0xd24] ss:$24 sps:$4 sm:$0xff]   ;;  %s22615_s4 = scalar_lea.vmem %s17876_s22, 768 }
  0xd2   :  { %2336 = vmatpush1.bf16.msra.mxu1 %v20529_v31  ;;  %2214 = vmatprep.subr.bf16.mxu0 %v20530_v32  ;;  %v20619_v29 = vld [vmem:[#allocation10 + $0x102c] ss:$24 sps:$4 sm:$0xff]   ;;  %v20614_v31 = vld [vmem:[#allocation10 + $0xd20] ss:$24 sps:$4 sm:$0xff]   ;;  %v20632_v46 = vld [vmem:[#allocation10 + $0xdb0] ss:$24 sps:$4 sm:$0xff]   ;;  %p22616_p10 = scmp.ne.s32.totalorder %s17876_s22, %s22615_s4  ;;  %p22621_p12 = scmp.lt.s32.totalorder %s22615_s4, %s22615_s4 }
  0xd3   :  { %2337 = vmatprep.subr.bf16.mxu1 %v20532_v33  ;;  %v461_v30 = vld [vmem:[#allocation5 + $0x18] sm:$0xff] }
  0xd4   :  { %v20617_v32 = vld [vmem:[#allocation10 + $0x1028] ss:$24 sps:$4 sm:$0xff]   ;;  %v22855_v33 = vpack.c.bf16 %v461_v30, %v461_v30  ;;  %v20667_v2 = vld [vmem:[#allocation10 + $0x11ac] ss:$24 sps:$4 sm:$0xff]   ;;  %p22622_p13 = por %p22621_p12, %p22620_p11 }
  0xd5   :  { %2215 = vmatpush1.bf16.msra.mxu0 %v20534_v34  ;;  %v463_v34 = vld [vmem:[#allocation5 + $0x28] sm:$0xff] }
  0xd6   :  { %2338 = vmatpush1.bf16.msra.mxu1 %v20535_v35  ;;  %2216 = vmatprep.subr.bf16.mxu0 %v20536_v36  ;;  %v20622_v35 = vld [vmem:[#allocation10 + $0xd54] ss:$24 sps:$4 sm:$0xff]   ;;  %v20700_v30 = vld [vmem:[#allocation10 + $0xfc4] ss:$24 sps:$4 sm:$0xff]   ;;  %p22623_p0 = pnand %p22622_p13, %p22616_p10 }
  0xd7   :  { %2339 = vmatprep.subr.bf16.mxu1 %v20538_v37  ;;  %v20625_v36 = vld [vmem:[#allocation10 + $0x105c] ss:$24 sps:$4 sm:$0xff]   ;;  %v22857_v37 = vpack.c.bf16 %v463_v34, %v463_v34  ;;  %v20701_v34 = vld [vmem:[#allocation10 + $0xcd0] ss:$24 sps:$4 sm:$0xff]  }
  0xd9   :  { %2217 = vmatpush1.bf16.msra.mxu0 %v20540_v38  ;;  %v20620_v38 = vld [vmem:[#allocation10 + $0xd50] ss:$24 sps:$4 sm:$0xff]  }
  0xda   :  { %2340 = vmatpush1.bf16.msra.mxu1 %v20541_v39  ;;  %2218 = vmatprep.subr.bf16.mxu0 %v20542_v40  ;;  %v20623_v39 = vld [vmem:[#allocation10 + $0x1058] ss:$24 sps:$4 sm:$0xff]   ;;  %v20628_v40 = vld [vmem:[#allocation10 + $0xd84] ss:$24 sps:$4 sm:$0xff]  }
  0xdb   :  { %2341 = vmatprep.subr.bf16.mxu1 %v20544_v41  ;;  %v20631_v41 = vld [vmem:[#allocation10 + $0x108c] ss:$24 sps:$4 sm:$0xff]  }
  0xdd   :  { %2219 = vmatpush1.bf16.msra.mxu0 %v20546_v42  ;;  %v20626_v42 = vld [vmem:[#allocation10 + $0xd80] ss:$24 sps:$4 sm:$0xff]  }
  0xde   :  { %2342 = vmatpush1.bf16.msra.mxu1 %v20547_v43  ;;  %2220 = vmatprep.subr.bf16.mxu0 %v20548_v44  ;;  %v20629_v43 = vld [vmem:[#allocation10 + $0x1088] ss:$24 sps:$4 sm:$0xff]   ;;  %v20634_v44 = vld [vmem:[#allocation10 + $0xdb4] ss:$24 sps:$4 sm:$0xff]  }
  0xdf   :  { %2343 = vmatprep.subr.bf16.mxu1 %v20550_v45  ;;  %v20637_v45 = vld [vmem:[#allocation10 + $0x10bc] ss:$24 sps:$4 sm:$0xff]  }
  0xe1   :  { %2221 = vmatpush1.bf16.msra.mxu0 %v20552_v48  ;;  %v20635_v48 = vld [vmem:[#allocation10 + $0x10b8] ss:$24 sps:$4 sm:$0xff]  }
  0xe2   :  { %2344 = vmatpush1.bf16.msra.mxu1 %v20553_v49  ;;  %2222 = vmatprep.subr.bf16.mxu0 %v20554_v50  ;;  %v20640_v49 = vld [vmem:[#allocation10 + $0xde4] ss:$24 sps:$4 sm:$0xff]  }
  0xe3   :  { %2345 = vmatprep.subr.bf16.mxu1 %v20556_v51  ;;  %v20643_v50 = vld [vmem:[#allocation10 + $0x10ec] ss:$24 sps:$4 sm:$0xff]   ;;  %v20638_v51 = vld [vmem:[#allocation10 + $0xde0] ss:$24 sps:$4 sm:$0xff]  }
  0xe5   :  { %2223 = vmatpush1.bf16.msra.mxu0 %v20558_v52  ;;  %v20641_v52 = vld [vmem:[#allocation10 + $0x10e8] ss:$24 sps:$4 sm:$0xff]  }
  0xe6   :  { %2346 = vmatpush1.bf16.msra.mxu1 %v20559_v53  ;;  %2224 = vmatprep.subr.bf16.mxu0 %v20560_v54  ;;  %v20646_v53 = vld [vmem:[#allocation10 + $0xe14] ss:$24 sps:$4 sm:$0xff]  }
  0xe7   :  { %2347 = vmatprep.subr.bf16.mxu1 %v20562_v55  ;;  %v20649_v54 = vld [vmem:[#allocation10 + $0x111c] ss:$24 sps:$4 sm:$0xff]   ;;  %v20644_v55 = vld [vmem:[#allocation10 + $0xe10] ss:$24 sps:$4 sm:$0xff]  }
  0xe9   :  { %2225 = vmatpush1.bf16.msra.mxu0 %v20564_v56  ;;  %v20647_v56 = vld [vmem:[#allocation10 + $0x1118] ss:$24 sps:$4 sm:$0xff]  }
  0xea   :  { %2348 = vmatpush1.bf16.msra.mxu1 %v20565_v57  ;;  %2226 = vmatprep.subr.bf16.mxu0 %v20566_v58  ;;  %v20652_v57 = vld [vmem:[#allocation10 + $0xe44] ss:$24 sps:$4 sm:$0xff]  }
  0xeb   :  { %2349 = vmatprep.subr.bf16.mxu1 %v20568_v59  ;;  %v20655_v58 = vld [vmem:[#allocation10 + $0x114c] ss:$24 sps:$4 sm:$0xff]   ;;  %v20650_v59 = vld [vmem:[#allocation10 + $0xe40] ss:$24 sps:$4 sm:$0xff]  }
  0xed   :  { %2227 = vmatpush1.bf16.msra.mxu0 %v20570_v60  ;;  %v20653_v60 = vld [vmem:[#allocation10 + $0x1148] ss:$24 sps:$4 sm:$0xff]  }
  0xee   :  { %2350 = vmatpush1.bf16.msra.mxu1 %v20571_v61  ;;  %2228 = vmatprep.subr.bf16.mxu0 %v20572_v62  ;;  %v20658_v61 = vld [vmem:[#allocation10 + $0xe74] ss:$24 sps:$4 sm:$0xff]  }
  0xef   :  { %2351 = vmatprep.subr.bf16.mxu1 %v20574_v63  ;;  %v20661_v62 = vld [vmem:[#allocation10 + $0x117c] ss:$24 sps:$4 sm:$0xff]   ;;  %v20656_v63 = vld [vmem:[#allocation10 + $0xe70] ss:$24 sps:$4 sm:$0xff]  }
  0xf1   :  { %2229 = vmatpush1.bf16.msra.mxu0 %v20576_v0  ;;  %v20659_v0 = vld [vmem:[#allocation10 + $0x1178] ss:$24 sps:$4 sm:$0xff]  }
  0xf2   :  { %2352 = vmatpush1.bf16.msra.mxu1 %v20577_v1  ;;  %2239 = vmatprep.subr.bf16.mxu0 %v20580_v3  ;;  %v20664_v1 = vld [vmem:[#allocation10 + $0xea4] ss:$24 sps:$4 sm:$0xff]   ;;  %v20662_v3 = vld [vmem:[#allocation10 + $0xea0] ss:$24 sps:$4 sm:$0xff]  }
  0xf3   :  { %2403 = vmatprep.subr.bf16.mxu1 %v20583_v4  ;;  %v20665_v4 = vld [vmem:[#allocation10 + $0x11a8] ss:$24 sps:$4 sm:$0xff]  }
  0xf4   :  { %2231 = vmatmul.mubr.bf16.vlgmr.msra.gmra.mrb[0].mxu0 %v22851_v5 }
  0xf5   :  { %2354 = vmatmul.mubr.bf16.vlgmr.msra.gmra.mrb[0].mxu1 %v22851_v5  ;;  %2240 = vmatpush1.bf16.msra.mxu0 %v20578_v6  ;;  %v20670_v6 = vld [vmem:[#allocation10 + $0xed4] ss:$24 sps:$4 sm:$0xff]  }
  0xf6   :  { %2404 = vmatpush1.bf16.msra.mxu1 %v20581_v7  ;;  %2241 = vmatprep.subr.bf16.mxu0 %v20586_v8  ;;  %v20673_v7 = vld [vmem:[#allocation10 + $0x11dc] ss:$24 sps:$4 sm:$0xff]   ;;  %v20668_v8 = vld [vmem:[#allocation10 + $0xed0] ss:$24 sps:$4 sm:$0xff]  }
  0xf7   :  { %2405 = vmatprep.subr.bf16.mxu1 %v20589_v9  ;;  %2271 = vmatprep.mubr.bf16.mxu0 %v22855_v33  ;;  %v20671_v9 = vld [vmem:[#allocation10 + $0x11d8] ss:$24 sps:$4 sm:$0xff]  }
  0xf8   :  { %2435 = vmatprep.mubr.bf16.mxu1 %v22857_v37 }
  0xf9   :  { %2242 = vmatpush1.bf16.msra.mxu0 %v20584_v10  ;;  %v460_v10 = vld [vmem:[#allocation5 + $0x10] sm:$0xff] }
  0xfa   :  { %2406 = vmatpush1.bf16.msra.mxu1 %v20587_v11  ;;  %2243 = vmatprep.subr.bf16.mxu0 %v20592_v12  ;;  %v462_v11 = vld [vmem:[#allocation5 + $0x20] sm:$0xff]  ;;  %v20676_v12 = vld [vmem:[#allocation10 + $0xf04] ss:$24 sps:$4 sm:$0xff]  }
  0xfb   :  { %2407 = vmatprep.subr.bf16.mxu1 %v20595_v13  ;;  %v20679_v13 = vld [vmem:[#allocation10 + $0xc14] ss:$24 sps:$4 sm:$0xff]  }
  0xfd   :  { %2244 = vmatpush1.bf16.msra.mxu0 %v20590_v14  ;;  %v22861_v14 = vpack.c.bf16 %v460_v10, %v460_v10  ;;  %v20760_v10 = vld [vmem:[#allocation10 + $0x11a4] ss:$24 sps:$4 sm:$0xff]  }
  0xfe   :  { %2408 = vmatpush1.bf16.msra.mxu1 %v20593_v15  ;;  %2245 = vmatprep.subr.bf16.mxu0 %v20598_v16  ;;  %v22863_v15 = vpack.c.bf16 %v462_v11, %v462_v11  ;;  %v20674_v16 = vld [vmem:[#allocation10 + $0xf00] ss:$24 sps:$4 sm:$0xff]   ;;  %v20763_v11 = vld [vmem:[#allocation10 + $0xeb4] ss:$24 sps:$4 sm:$0xff]  }
  0xff   :  { %2409 = vmatprep.subr.bf16.mxu1 %v20601_v17  ;;  %v20677_v17 = vld [vmem:[#allocation10 + $0xc10] ss:$24 sps:$4 sm:$0xff]  }
 0x101   :  { %2246 = vmatpush1.bf16.msra.mxu0 %v20596_v18  ;;  %v20682_v18 = vld [vmem:[#allocation10 + $0xf34] ss:$24 sps:$4 sm:$0xff]  }
 0x102   :  { %2410 = vmatpush1.bf16.msra.mxu1 %v20599_v19  ;;  %2247 = vmatprep.subr.bf16.mxu0 %v20604_v20  ;;  %v20685_v19 = vld [vmem:[#allocation10 + $0xc44] ss:$24 sps:$4 sm:$0xff]   ;;  %v20680_v20 = vld [vmem:[#allocation10 + $0xf30] ss:$24 sps:$4 sm:$0xff]  }
 0x103   :  { %2411 = vmatprep.subr.bf16.mxu1 %v20607_v21  ;;  %v20683_v21 = vld [vmem:[#allocation10 + $0xc40] ss:$24 sps:$4 sm:$0xff]  }
 0x105   :  { %2248 = vmatpush1.bf16.msra.mxu0 %v20602_v22  ;;  %v20688_v22 = vld [vmem:[#allocation10 + $0xf64] ss:$24 sps:$4 sm:$0xff]  }
 0x106   :  { %2412 = vmatpush1.bf16.msra.mxu1 %v20605_v23  ;;  %2249 = vmatprep.subr.bf16.mxu0 %v20610_v24  ;;  %v20691_v23 = vld [vmem:[#allocation10 + $0xc74] ss:$24 sps:$4 sm:$0xff]   ;;  %v20686_v24 = vld [vmem:[#allocation10 + $0xf60] ss:$24 sps:$4 sm:$0xff]  }
 0x107   :  { %2413 = vmatprep.subr.bf16.mxu1 %v20613_v25  ;;  %v20689_v25 = vld [vmem:[#allocation10 + $0xc70] ss:$24 sps:$4 sm:$0xff]  }
 0x109   :  { %2250 = vmatpush1.bf16.msra.mxu0 %v20608_v26  ;;  %v20694_v26 = vld [vmem:[#allocation10 + $0xf94] ss:$24 sps:$4 sm:$0xff]  }
 0x10a   :  { %2414 = vmatpush1.bf16.msra.mxu1 %v20611_v27  ;;  %2251 = vmatprep.subr.bf16.mxu0 %v20616_v28  ;;  %v20697_v27 = vld [vmem:[#allocation10 + $0xca4] ss:$24 sps:$4 sm:$0xff]   ;;  %v20692_v28 = vld [vmem:[#allocation10 + $0xf90] ss:$24 sps:$4 sm:$0xff]  }
 0x10b   :  { %2415 = vmatprep.subr.bf16.mxu1 %v20619_v29  ;;  %v20695_v29 = vld [vmem:[#allocation10 + $0xca0] ss:$24 sps:$4 sm:$0xff]  }
 0x10d   :  { %2252 = vmatpush1.bf16.msra.mxu0 %v20614_v31  ;;  %v20703_v31 = vld [vmem:[#allocation10 + $0xcd4] ss:$24 sps:$4 sm:$0xff]  }
 0x10e   :  { %2416 = vmatpush1.bf16.msra.mxu1 %v20617_v32  ;;  %2253 = vmatprep.subr.bf16.mxu0 %v20622_v35  ;;  %v20698_v32 = vld [vmem:[#allocation10 + $0xfc0] ss:$24 sps:$4 sm:$0xff]   ;;  %v20706_v35 = vld [vmem:[#allocation10 + $0xff4] ss:$24 sps:$4 sm:$0xff]  }
 0x10f   :  { %2417 = vmatprep.subr.bf16.mxu1 %v20625_v36  ;;  %v20709_v36 = vld [vmem:[#allocation10 + $0xd04] ss:$24 sps:$4 sm:$0xff]  }
 0x111   :  { %2254 = vmatpush1.bf16.msra.mxu0 %v20620_v38  ;;  %v20704_v38 = vld [vmem:[#allocation10 + $0xff0] ss:$24 sps:$4 sm:$0xff]  }
 0x112   :  { %2418 = vmatpush1.bf16.msra.mxu1 %v20623_v39  ;;  %2255 = vmatprep.subr.bf16.mxu0 %v20628_v40  ;;  %v20707_v39 = vld [vmem:[#allocation10 + $0xd00] ss:$24 sps:$4 sm:$0xff]   ;;  %v20712_v40 = vld [vmem:[#allocation10 + $0x1024] ss:$24 sps:$4 sm:$0xff]  }
 0x113   :  { %2419 = vmatprep.subr.bf16.mxu1 %v20631_v41  ;;  %v20715_v41 = vld [vmem:[#allocation10 + $0xd34] ss:$24 sps:$4 sm:$0xff]  }
 0x115   :  { %2256 = vmatpush1.bf16.msra.mxu0 %v20626_v42  ;;  %v20710_v42 = vld [vmem:[#allocation10 + $0x1020] ss:$24 sps:$4 sm:$0xff]  }
 0x116   :  { %2420 = vmatpush1.bf16.msra.mxu1 %v20629_v43  ;;  %2257 = vmatprep.subr.bf16.mxu0 %v20634_v44  ;;  %v20713_v43 = vld [vmem:[#allocation10 + $0xd30] ss:$24 sps:$4 sm:$0xff]   ;;  %v20718_v44 = vld [vmem:[#allocation10 + $0x1054] ss:$24 sps:$4 sm:$0xff]  }
 0x117   :  { %2421 = vmatprep.subr.bf16.mxu1 %v20637_v45  ;;  %v20721_v45 = vld [vmem:[#allocation10 + $0xd64] ss:$24 sps:$4 sm:$0xff]  }
 0x119   :  { %2258 = vmatpush1.bf16.msra.mxu0 %v20632_v46  ;;  %v20716_v46 = vld [vmem:[#allocation10 + $0x1050] ss:$24 sps:$4 sm:$0xff]  }
 0x11a   :  { %2422 = vmatpush1.bf16.msra.mxu1 %v20635_v48  ;;  %2259 = vmatprep.subr.bf16.mxu0 %v20640_v49  ;;  %v20719_v48 = vld [vmem:[#allocation10 + $0xd60] ss:$24 sps:$4 sm:$0xff]   ;;  %v20724_v49 = vld [vmem:[#allocation10 + $0x1084] ss:$24 sps:$4 sm:$0xff]  }
 0x11b   :  { %2423 = vmatprep.subr.bf16.mxu1 %v20643_v50  ;;  %v20727_v50 = vld [vmem:[#allocation10 + $0xd94] ss:$24 sps:$4 sm:$0xff]  }
 0x11d   :  { %2260 = vmatpush1.bf16.msra.mxu0 %v20638_v51  ;;  %v20722_v51 = vld [vmem:[#allocation10 + $0x1080] ss:$24 sps:$4 sm:$0xff]  }
 0x11e   :  { %2424 = vmatpush1.bf16.msra.mxu1 %v20641_v52  ;;  %2261 = vmatprep.subr.bf16.mxu0 %v20646_v53  ;;  %v20725_v52 = vld [vmem:[#allocation10 + $0xd90] ss:$24 sps:$4 sm:$0xff]   ;;  %v20730_v53 = vld [vmem:[#allocation10 + $0x10b4] ss:$24 sps:$4 sm:$0xff]  }
 0x11f   :  { %2425 = vmatprep.subr.bf16.mxu1 %v20649_v54  ;;  %v20733_v54 = vld [vmem:[#allocation10 + $0xdc4] ss:$24 sps:$4 sm:$0xff]  }
 0x121   :  { %2262 = vmatpush1.bf16.msra.mxu0 %v20644_v55  ;;  %v20728_v55 = vld [vmem:[#allocation10 + $0x10b0] ss:$24 sps:$4 sm:$0xff]  }
 0x122   :  { %2426 = vmatpush1.bf16.msra.mxu1 %v20647_v56  ;;  %2263 = vmatprep.subr.bf16.mxu0 %v20652_v57  ;;  %v20731_v56 = vld [vmem:[#allocation10 + $0xdc0] ss:$24 sps:$4 sm:$0xff]   ;;  %v20736_v57 = vld [vmem:[#allocation10 + $0x10e4] ss:$24 sps:$4 sm:$0xff]  }
 0x123   :  { %2427 = vmatprep.subr.bf16.mxu1 %v20655_v58  ;;  %v20739_v58 = vld [vmem:[#allocation10 + $0xdf4] ss:$24 sps:$4 sm:$0xff]  }
 0x125   :  { %2264 = vmatpush1.bf16.msra.mxu0 %v20650_v59  ;;  %v20734_v59 = vld [vmem:[#allocation10 + $0x10e0] ss:$24 sps:$4 sm:$0xff]  }
 0x126   :  { %2428 = vmatpush1.bf16.msra.mxu1 %v20653_v60  ;;  %2265 = vmatprep.subr.bf16.mxu0 %v20658_v61  ;;  %v20737_v60 = vld [vmem:[#allocation10 + $0xdf0] ss:$24 sps:$4 sm:$0xff]   ;;  %v20742_v61 = vld [vmem:[#allocation10 + $0x1114] ss:$24 sps:$4 sm:$0xff]  }
 0x127   :  { %2429 = vmatprep.subr.bf16.mxu1 %v20661_v62  ;;  %v20745_v62 = vld [vmem:[#allocation10 + $0xe24] ss:$24 sps:$4 sm:$0xff]  }
 0x129   :  { %2266 = vmatpush1.bf16.msra.mxu0 %v20656_v63  ;;  %v20740_v63 = vld [vmem:[#allocation10 + $0x1110] ss:$24 sps:$4 sm:$0xff]  }
 0x12a   :  { %2430 = vmatpush1.bf16.msra.mxu1 %v20659_v0  ;;  %2267 = vmatprep.subr.bf16.mxu0 %v20664_v1  ;;  %v20743_v0 = vld [vmem:[#allocation10 + $0xe20] ss:$24 sps:$4 sm:$0xff]   ;;  %v20748_v1 = vld [vmem:[#allocation10 + $0x1144] ss:$24 sps:$4 sm:$0xff]  }
 0x12b   :  { %2431 = vmatprep.subr.bf16.mxu1 %v20667_v2  ;;  %v20751_v2 = vld [vmem:[#allocation10 + $0xe54] ss:$24 sps:$4 sm:$0xff]  }
 0x12d   :  { %2268 = vmatpush1.bf16.msra.mxu0 %v20662_v3  ;;  %v20746_v3 = vld [vmem:[#allocation10 + $0x1140] ss:$24 sps:$4 sm:$0xff]  }
 0x12e   :  { %2432 = vmatpush1.bf16.msra.mxu1 %v20665_v4  ;;  %2269 = vmatprep.subr.bf16.mxu0 %v20670_v6  ;;  %v20749_v4 = vld [vmem:[#allocation10 + $0xe50] ss:$24 sps:$4 sm:$0xff]   ;;  %v20754_v6 = vld [vmem:[#allocation10 + $0x1174] ss:$24 sps:$4 sm:$0xff]  }
 0x12f   :  { %2433 = vmatprep.subr.bf16.mxu1 %v20673_v7  ;;  %v20757_v7 = vld [vmem:[#allocation10 + $0xe84] ss:$24 sps:$4 sm:$0xff]  }
 0x131   :  { %2270 = vmatpush1.bf16.msra.mxu0 %v20668_v8  ;;  %v20752_v8 = vld [vmem:[#allocation10 + $0x1170] ss:$24 sps:$4 sm:$0xff]  }
 0x132   :  { %2434 = vmatpush1.bf16.msra.mxu1 %v20671_v9  ;;  %2280 = vmatprep.subr.bf16.mxu0 %v20676_v12  ;;  %v20755_v9 = vld [vmem:[#allocation10 + $0xe80] ss:$24 sps:$4 sm:$0xff]  }
 0x133   :  { %2485 = vmatprep.subr.bf16.mxu1 %v20679_v13  ;;  %v20758_v12 = vld [vmem:[#allocation10 + $0x11a0] ss:$24 sps:$4 sm:$0xff]   ;;  %v20761_v13 = vld [vmem:[#allocation10 + $0xeb0] ss:$24 sps:$4 sm:$0xff]  }
 0x134   :  { %2272 = vmatmul.mubr.bf16.vlgmr.msra.gmra.mrb[4].mxu0 %v22861_v14 }
 0x135   :  { %2436 = vmatmul.mubr.bf16.vlgmr.msra.gmra.mrb[4].mxu1 %v22863_v15  ;;  %2281 = vmatpush1.bf16.msra.mxu0 %v20674_v16  ;;  %v20766_v16 = vld [vmem:[#allocation10 + $0x11d4] ss:$24 sps:$4 sm:$0xff]  }
 0x136   :  { %2486 = vmatpush1.bf16.msra.mxu1 %v20677_v17  ;;  %2282 = vmatprep.subr.bf16.mxu0 %v20682_v18  ;;  %v20769_v17 = vld [vmem:[#allocation10 + $0xee4] ss:$24 sps:$4 sm:$0xff]   ;;  %v20764_v18 = vld [vmem:[#allocation10 + $0x11d0] ss:$24 sps:$4 sm:$0xff]  }
 0x137   :  { %2487 = vmatprep.subr.bf16.mxu1 %v20685_v19  ;;  %2312 = vmatprep.mubr.bf16.mxu0 %v22857_v37  ;;  %v20767_v19 = vld [vmem:[#allocation10 + $0xee0] ss:$24 sps:$4 sm:$0xff]  }
 0x138   :  { %2517 = vmatprep.mubr.bf16.mxu1 %v22855_v33 }
 0x139   :  { %2283 = vmatpush1.bf16.msra.mxu0 %v20680_v20  ;;  %v20772_v20 = vld [vmem:[#allocation10 + $0xc0c] ss:$24 sps:$4 sm:$0xff]  }
 0x13a   :  { %2488 = vmatpush1.bf16.msra.mxu1 %v20683_v21  ;;  %2284 = vmatprep.subr.bf16.mxu0 %v20688_v22  ;;  %v20775_v21 = vld [vmem:[#allocation10 + $0x4] ss:$24 sps:$4 sm:$0xff]   ;;  %v20770_v22 = vld [vmem:[#allocation10 + $0xc08] ss:$24 sps:$4 sm:$0xff]  }
 0x13b   :  { %2489 = vmatprep.subr.bf16.mxu1 %v20691_v23  ;;  %v20773_v23 = vld [vmem:[#allocation10] ss:$24 sps:$4 sm:$0xff]  }
 0x13d   :  { %2285 = vmatpush1.bf16.msra.mxu0 %v20686_v24  ;;  %v159_v24 = vld [vmem:[#allocation2 + $0x8] sm:$0xff] }
 0x13e   :  { %2490 = vmatpush1.bf16.msra.mxu1 %v20689_v25  ;;  %2286 = vmatprep.subr.bf16.mxu0 %v20694_v26  ;;  %v20778_v25 = vld [vmem:[#allocation10 + $0xc3c] ss:$24 sps:$4 sm:$0xff]  }
 0x13f   :  { %2491 = vmatprep.subr.bf16.mxu1 %v20697_v27  ;;  %v20781_v26 = vld [vmem:[#allocation10 + $0x34] ss:$24 sps:$4 sm:$0xff]   ;;  %v22869_v27 = vpack.c.bf16 %v159_v24, %v159_v24 }
 0x140   :  { %v20865_v24 = vld [vmem:[#allocation10 + $0x2d4] ss:$24 sps:$4 sm:$0xff]  }
 0x141   :  { %2287 = vmatpush1.bf16.msra.mxu0 %v20692_v28  ;;  %v20776_v28 = vld [vmem:[#allocation10 + $0xc38] ss:$24 sps:$4 sm:$0xff]  }
 0x142   :  { %2492 = vmatpush1.bf16.msra.mxu1 %v20695_v29  ;;  %2288 = vmatprep.subr.bf16.mxu0 %v20700_v30  ;;  %v20779_v29 = vld [vmem:[#allocation10 + $0x30] ss:$24 sps:$4 sm:$0xff]   ;;  %v20784_v30 = vld [vmem:[#allocation10 + $0xc6c] ss:$24 sps:$4 sm:$0xff]  }
 0x143   :  { %2493 = vmatprep.subr.bf16.mxu1 %v20703_v31  ;;  %v20787_v31 = vld [vmem:[#allocation10 + $0x64] ss:$24 sps:$4 sm:$0xff]  }
 0x145   :  { %2289 = vmatpush1.bf16.msra.mxu0 %v20698_v32  ;;  %v20782_v32 = vld [vmem:[#allocation10 + $0xc68] ss:$24 sps:$4 sm:$0xff]  }
 0x146   :  { %2494 = vmatpush1.bf16.msra.mxu1 %v20701_v34  ;;  %2290 = vmatprep.subr.bf16.mxu0 %v20706_v35  ;;  %v20785_v34 = vld [vmem:[#allocation10 + $0x60] ss:$24 sps:$4 sm:$0xff]   ;;  %v20790_v35 = vld [vmem:[#allocation10 + $0xc9c] ss:$24 sps:$4 sm:$0xff]  }
 0x147   :  { %2495 = vmatprep.subr.bf16.mxu1 %v20709_v36  ;;  %v20793_v36 = vld [vmem:[#allocation10 + $0x94] ss:$24 sps:$4 sm:$0xff]  }
 0x149   :  { %2291 = vmatpush1.bf16.msra.mxu0 %v20704_v38  ;;  %v20788_v38 = vld [vmem:[#allocation10 + $0xc98] ss:$24 sps:$4 sm:$0xff]  }
 0x14a   :  { %2496 = vmatpush1.bf16.msra.mxu1 %v20707_v39  ;;  %2292 = vmatprep.subr.bf16.mxu0 %v20712_v40  ;;  %v20791_v39 = vld [vmem:[#allocation10 + $0x90] ss:$24 sps:$4 sm:$0xff]   ;;  %v20796_v40 = vld [vmem:[#allocation10 + $0xccc] ss:$24 sps:$4 sm:$0xff]  }
 0x14b   :  { %2497 = vmatprep.subr.bf16.mxu1 %v20715_v41  ;;  %v20799_v41 = vld [vmem:[#allocation10 + $0xc4] ss:$24 sps:$4 sm:$0xff]  }
 0x14d   :  { %2293 = vmatpush1.bf16.msra.mxu0 %v20710_v42  ;;  %v20794_v42 = vld [vmem:[#allocation10 + $0xcc8] ss:$24 sps:$4 sm:$0xff]  }
 0x14e   :  { %2498 = vmatpush1.bf16.msra.mxu1 %v20713_v43  ;;  %2294 = vmatprep.subr.bf16.mxu0 %v20718_v44  ;;  %v20802_v43 = vld [vmem:[#allocation10 + $0xcfc] ss:$24 sps:$4 sm:$0xff]  }
 0x14f   :  { %2499 = vmatprep.subr.bf16.mxu1 %v20721_v45  ;;  %v20805_v44 = vld [vmem:[#allocation10 + $0xf4] ss:$24 sps:$4 sm:$0xff]   ;;  %v20800_v45 = vld [vmem:[#allocation10 + $0xcf8] ss:$24 sps:$4 sm:$0xff]  }
 0x151   :  { %2295 = vmatpush1.bf16.msra.mxu0 %v20716_v46  ;;  %v20803_v46 = vld [vmem:[#allocation10 + $0xf0] ss:$24 sps:$4 sm:$0xff]  }
 0x152   :  { %2500 = vmatpush1.bf16.msra.mxu1 %v20719_v48  ;;  %2296 = vmatprep.subr.bf16.mxu0 %v20724_v49  ;;  %v20808_v48 = vld [vmem:[#allocation10 + $0xd2c] ss:$24 sps:$4 sm:$0xff]  }
 0x153   :  { %2501 = vmatprep.subr.bf16.mxu1 %v20727_v50  ;;  %v20811_v49 = vld [vmem:[#allocation10 + $0x124] ss:$24 sps:$4 sm:$0xff]   ;;  %v20806_v50 = vld [vmem:[#allocation10 + $0xd28] ss:$24 sps:$4 sm:$0xff]  }
 0x155   :  { %2297 = vmatpush1.bf16.msra.mxu0 %v20722_v51  ;;  %v20809_v51 = vld [vmem:[#allocation10 + $0x120] ss:$24 sps:$4 sm:$0xff]  }
 0x156   :  { %2502 = vmatpush1.bf16.msra.mxu1 %v20725_v52  ;;  %2298 = vmatprep.subr.bf16.mxu0 %v20730_v53  ;;  %v20814_v52 = vld [vmem:[#allocation10 + $0xd5c] ss:$24 sps:$4 sm:$0xff]  }
 0x157   :  { %2503 = vmatprep.subr.bf16.mxu1 %v20733_v54  ;;  %v20817_v53 = vld [vmem:[#allocation10 + $0x154] ss:$24 sps:$4 sm:$0xff]   ;;  %v20812_v54 = vld [vmem:[#allocation10 + $0xd58] ss:$24 sps:$4 sm:$0xff]  }
 0x159   :  { %2299 = vmatpush1.bf16.msra.mxu0 %v20728_v55  ;;  %v20815_v55 = vld [vmem:[#allocation10 + $0x150] ss:$24 sps:$4 sm:$0xff]  }
 0x15a   :  { %2504 = vmatpush1.bf16.msra.mxu1 %v20731_v56  ;;  %2300 = vmatprep.subr.bf16.mxu0 %v20736_v57  ;;  %v20820_v56 = vld [vmem:[#allocation10 + $0xd8c] ss:$24 sps:$4 sm:$0xff]  }
 0x15b   :  { %2505 = vmatprep.subr.bf16.mxu1 %v20739_v58  ;;  %v20823_v57 = vld [vmem:[#allocation10 + $0x184] ss:$24 sps:$4 sm:$0xff]   ;;  %v20818_v58 = vld [vmem:[#allocation10 + $0xd88] ss:$24 sps:$4 sm:$0xff]  }
 0x15d   :  { %2301 = vmatpush1.bf16.msra.mxu0 %v20734_v59  ;;  %v20821_v59 = vld [vmem:[#allocation10 + $0x180] ss:$24 sps:$4 sm:$0xff]  }
 0x15e   :  { %2506 = vmatpush1.bf16.msra.mxu1 %v20737_v60  ;;  %2302 = vmatprep.subr.bf16.mxu0 %v20742_v61  ;;  %v20826_v60 = vld [vmem:[#allocation10 + $0xdbc] ss:$24 sps:$4 sm:$0xff]  }
 0x15f   :  { %2507 = vmatprep.subr.bf16.mxu1 %v20745_v62  ;;  %v20829_v61 = vld [vmem:[#allocation10 + $0x1b4] ss:$24 sps:$4 sm:$0xff]   ;;  %v20824_v62 = vld [vmem:[#allocation10 + $0xdb8] ss:$24 sps:$4 sm:$0xff]  }
 0x161   :  { %2303 = vmatpush1.bf16.msra.mxu0 %v20740_v63  ;;  %v20827_v63 = vld [vmem:[#allocation10 + $0x1b0] ss:$24 sps:$4 sm:$0xff]  }
 0x162   :  { %2508 = vmatpush1.bf16.msra.mxu1 %v20743_v0  ;;  %2304 = vmatprep.subr.bf16.mxu0 %v20748_v1  ;;  %v20832_v0 = vld [vmem:[#allocation10 + $0xdec] ss:$24 sps:$4 sm:$0xff]  }
 0x163   :  { %2509 = vmatprep.subr.bf16.mxu1 %v20751_v2  ;;  %v20835_v1 = vld [vmem:[#allocation10 + $0x1e4] ss:$24 sps:$4 sm:$0xff]   ;;  %v20830_v2 = vld [vmem:[#allocation10 + $0xde8] ss:$24 sps:$4 sm:$0xff]  }
 0x165   :  { %2305 = vmatpush1.bf16.msra.mxu0 %v20746_v3  ;;  %v20833_v3 = vld [vmem:[#allocation10 + $0x1e0] ss:$24 sps:$4 sm:$0xff]  }
 0x166   :  { %2510 = vmatpush1.bf16.msra.mxu1 %v20749_v4  ;;  %2306 = vmatprep.subr.bf16.mxu0 %v20754_v6  ;;  %v20838_v4 = vld [vmem:[#allocation10 + $0xe1c] ss:$24 sps:$4 sm:$0xff]  }
 0x167   :  { %2511 = vmatprep.subr.bf16.mxu1 %v20757_v7  ;;  %v20841_v6 = vld [vmem:[#allocation10 + $0x214] ss:$24 sps:$4 sm:$0xff]   ;;  %v20836_v7 = vld [vmem:[#allocation10 + $0xe18] ss:$24 sps:$4 sm:$0xff]  }
 0x169   :  { %2307 = vmatpush1.bf16.msra.mxu0 %v20752_v8  ;;  %v20839_v8 = vld [vmem:[#allocation10 + $0x210] ss:$24 sps:$4 sm:$0xff]  }
 0x16a   :  { %2512 = vmatpush1.bf16.msra.mxu1 %v20755_v9  ;;  %2308 = vmatprep.subr.bf16.mxu0 %v20760_v10  ;;  %v20844_v9 = vld [vmem:[#allocation10 + $0xe4c] ss:$24 sps:$4 sm:$0xff]  }
 0x16b   :  { %2513 = vmatprep.subr.bf16.mxu1 %v20763_v11  ;;  %v20847_v10 = vld [vmem:[#allocation10 + $0x244] ss:$24 sps:$4 sm:$0xff]   ;;  %v20842_v11 = vld [vmem:[#allocation10 + $0xe48] ss:$24 sps:$4 sm:$0xff]  }
 0x16d   :  { %2309 = vmatpush1.bf16.msra.mxu0 %v20758_v12  ;;  %v20845_v12 = vld [vmem:[#allocation10 + $0x240] ss:$24 sps:$4 sm:$0xff]  }
 0x16e   :  { %2514 = vmatpush1.bf16.msra.mxu1 %v20761_v13  ;;  %2310 = vmatprep.subr.bf16.mxu0 %v20766_v16  ;;  %v20850_v13 = vld [vmem:[#allocation10 + $0xe7c] ss:$24 sps:$4 sm:$0xff]  }
 0x16f   :  { %2515 = vmatprep.subr.bf16.mxu1 %v20769_v17  ;;  %v20853_v16 = vld [vmem:[#allocation10 + $0x274] ss:$24 sps:$4 sm:$0xff]   ;;  %v20848_v17 = vld [vmem:[#allocation10 + $0xe78] ss:$24 sps:$4 sm:$0xff]  }
 0x171   :  { %2311 = vmatpush1.bf16.msra.mxu0 %v20764_v18  ;;  %v20851_v18 = vld [vmem:[#allocation10 + $0x270] ss:$24 sps:$4 sm:$0xff]  }
 0x172   :  { %2516 = vmatpush1.bf16.msra.mxu1 %v20767_v19  ;;  %2362 = vmatprep.subr.bf16.mxu0 %v20772_v20  ;;  %v20856_v19 = vld [vmem:[#allocation10 + $0xeac] ss:$24 sps:$4 sm:$0xff]  }
 0x173   :  { %4007 = vmatprep.subr.bf16.mxu1 %v20775_v21  ;;  %v20859_v20 = vld [vmem:[#allocation10 + $0x2a4] ss:$24 sps:$4 sm:$0xff]   ;;  %v20854_v21 = vld [vmem:[#allocation10 + $0xea8] ss:$24 sps:$4 sm:$0xff]  }
 0x174   :  { %2313 = vmatmul.mubr.bf16.vlgmr.msra.gmra.mrb[8].mxu0 %v22863_v15 }
 0x175   :  { %2518 = vmatmul.mubr.bf16.vlgmr.msra.gmra.mrb[8].mxu1 %v22861_v14  ;;  %2363 = vmatpush1.bf16.msra.mxu0 %v20770_v22  ;;  %v20857_v22 = vld [vmem:[#allocation10 + $0x2a0] ss:$24 sps:$4 sm:$0xff]  }
 0x176   :  { %4008 = vmatpush1.bf16.msra.mxu1 %v20773_v23  ;;  %2364 = vmatprep.subr.bf16.mxu0 %v20778_v25  ;;  %v20862_v23 = vld [vmem:[#allocation10 + $0xedc] ss:$24 sps:$4 sm:$0xff]   ;;  %v20860_v25 = vld [vmem:[#allocation10 + $0xed8] ss:$24 sps:$4 sm:$0xff]  }
 0x177   :  { %4009 = vmatprep.subr.bf16.mxu1 %v20781_v26  ;;  %2394 = vmatprep.mubr.bf16.mxu0 %v22855_v33  ;;  %v20797_v33 = vld [vmem:[#allocation10 + $0xc0] ss:$24 sps:$4 sm:$0xff]   ;;  %v20863_v26 = vld [vmem:[#allocation10 + $0x2d0] ss:$24 sps:$4 sm:$0xff]  }
 0x178   :  { %4039 = vmatprep.mubr.bf16.mxu1 %v22869_v27 }
 0x179   :  { %2365 = vmatpush1.bf16.msra.mxu0 %v20776_v28  ;;  %v158_v28 = vld [vmem:[#allocation2] sm:$0xff] }
 0x17a   :  { %4010 = vmatpush1.bf16.msra.mxu1 %v20779_v29  ;;  %2366 = vmatprep.subr.bf16.mxu0 %v20784_v30  ;;  %v20868_v29 = vld [vmem:[#allocation10 + $0x914] ss:$24 sps:$4 sm:$0xff]   ;;  %v20871_v30 = vld [vmem:[#allocation10 + $0x604] ss:$24 sps:$4 sm:$0xff]  }
 0x17b   :  { %4011 = vmatprep.subr.bf16.mxu1 %v20787_v31  ;;  %v22875_v31 = vpack.c.bf16 %v158_v28, %v158_v28  ;;  %v20940_v28 = vld [vmem:[#allocation10 + $0xb54] ss:$24 sps:$4 sm:$0xff]  }
 0x17d   :  { %2367 = vmatpush1.bf16.msra.mxu0 %v20782_v32  ;;  %v163_v32 = vld [vmem:[#allocation2 + $0x28] sm:$0xff] }
 0x17e   :  { %4012 = vmatpush1.bf16.msra.mxu1 %v20785_v34  ;;  %2368 = vmatprep.subr.bf16.mxu0 %v20790_v35  ;;  %v20866_v34 = vld [vmem:[#allocation10 + $0x910] ss:$24 sps:$4 sm:$0xff]   ;;  %v20869_v35 = vld [vmem:[#allocation10 + $0x600] ss:$24 sps:$4 sm:$0xff]  }
 0x17f   :  { %4013 = vmatprep.subr.bf16.mxu1 %v20793_v36  ;;  %v20874_v36 = vld [vmem:[#allocation10 + $0x944] ss:$24 sps:$4 sm:$0xff]  }
 0x181   :  { %2369 = vmatpush1.bf16.msra.mxu0 %v20788_v38  ;;  %v20877_v38 = vld [vmem:[#allocation10 + $0x634] ss:$24 sps:$4 sm:$0xff]  }
 0x182   :  { %4014 = vmatpush1.bf16.msra.mxu1 %v20791_v39  ;;  %2370 = vmatprep.subr.bf16.mxu0 %v20796_v40  ;;  %v22877_v39 = vpack.c.bf16 %v163_v32, %v163_v32  ;;  %v20872_v40 = vld [vmem:[#allocation10 + $0x940] ss:$24 sps:$4 sm:$0xff]  }
 0x183   :  { %4015 = vmatprep.subr.bf16.mxu1 %v20799_v41  ;;  %v20875_v41 = vld [vmem:[#allocation10 + $0x630] ss:$24 sps:$4 sm:$0xff]   ;;  %v20941_v32 = vld [vmem:[#allocation10 + $0x840] ss:$24 sps:$4 sm:$0xff]  }
 0x185   :  { %2371 = vmatpush1.bf16.msra.mxu0 %v20794_v42  ;;  %v20880_v42 = vld [vmem:[#allocation10 + $0x974] ss:$24 sps:$4 sm:$0xff]  }
 0x186   :  { %4016 = vmatpush1.bf16.msra.mxu1 %v20797_v33  ;;  %2372 = vmatprep.subr.bf16.mxu0 %v20802_v43  ;;  %v20883_v33 = vld [vmem:[#allocation10 + $0x664] ss:$24 sps:$4 sm:$0xff]   ;;  %v20878_v43 = vld [vmem:[#allocation10 + $0x970] ss:$24 sps:$4 sm:$0xff]  }
 0x187   :  { %4017 = vmatprep.subr.bf16.mxu1 %v20805_v44  ;;  %v20881_v44 = vld [vmem:[#allocation10 + $0x660] ss:$24 sps:$4 sm:$0xff]  }
 0x189   :  { %2373 = vmatpush1.bf16.msra.mxu0 %v20800_v45  ;;  %v20886_v45 = vld [vmem:[#allocation10 + $0x9a4] ss:$24 sps:$4 sm:$0xff]  }
 0x18a   :  { %4018 = vmatpush1.bf16.msra.mxu1 %v20803_v46  ;;  %2374 = vmatprep.subr.bf16.mxu0 %v20808_v48  ;;  %v20884_v46 = vld [vmem:[#allocation10 + $0x9a0] ss:$24 sps:$4 sm:$0xff]   ;;  %v20887_v48 = vld [vmem:[#allocation10 + $0x690] ss:$24 sps:$4 sm:$0xff]  }
 0x18b   :  { %4019 = vmatprep.subr.bf16.mxu1 %v20811_v49  ;;  %v20892_v49 = vld [vmem:[#allocation10 + $0x9d4] ss:$24 sps:$4 sm:$0xff]  }
 0x18d   :  { %2375 = vmatpush1.bf16.msra.mxu0 %v20806_v50  ;;  %v20895_v50 = vld [vmem:[#allocation10 + $0x6c4] ss:$24 sps:$4 sm:$0xff]  }
 0x18e   :  { %4020 = vmatpush1.bf16.msra.mxu1 %v20809_v51  ;;  %2376 = vmatprep.subr.bf16.mxu0 %v20814_v52  ;;  %v20893_v51 = vld [vmem:[#allocation10 + $0x6c0] ss:$24 sps:$4 sm:$0xff]   ;;  %v20898_v52 = vld [vmem:[#allocation10 + $0xa04] ss:$24 sps:$4 sm:$0xff]  }
 0x18f   :  { %4021 = vmatprep.subr.bf16.mxu1 %v20817_v53  ;;  %v20901_v53 = vld [vmem:[#allocation10 + $0x6f4] ss:$24 sps:$4 sm:$0xff]  }
 0x191   :  { %2377 = vmatpush1.bf16.msra.mxu0 %v20812_v54  ;;  %v20896_v54 = vld [vmem:[#allocation10 + $0xa00] ss:$24 sps:$4 sm:$0xff]  }
 0x192   :  { %4022 = vmatpush1.bf16.msra.mxu1 %v20815_v55  ;;  %2378 = vmatprep.subr.bf16.mxu0 %v20820_v56  ;;  %v20899_v55 = vld [vmem:[#allocation10 + $0x6f0] ss:$24 sps:$4 sm:$0xff]   ;;  %v20904_v56 = vld [vmem:[#allocation10 + $0xa34] ss:$24 sps:$4 sm:$0xff]  }
 0x193   :  { %4023 = vmatprep.subr.bf16.mxu1 %v20823_v57  ;;  %v20907_v57 = vld [vmem:[#allocation10 + $0x724] ss:$24 sps:$4 sm:$0xff]  }
 0x195   :  { %2379 = vmatpush1.bf16.msra.mxu0 %v20818_v58 }
 0x196   :  { %4024 = vmatpush1.bf16.msra.mxu1 %v20821_v59  ;;  %2380 = vmatprep.subr.bf16.mxu0 %v20826_v60  ;;  %v20902_v59 = vld [vmem:[#allocation10 + $0xa30] ss:$24 sps:$4 sm:$0xff]   ;;  %v20905_v60 = vld [vmem:[#allocation10 + $0x720] ss:$24 sps:$4 sm:$0xff]  }
 0x197   :  { %4025 = vmatprep.subr.bf16.mxu1 %v20829_v61 }
 0x199   :  { %2381 = vmatpush1.bf16.msra.mxu0 %v20824_v62 }
 0x19a   :  { %4026 = vmatpush1.bf16.msra.mxu1 %v20827_v63  ;;  %2382 = vmatprep.subr.bf16.mxu0 %v20832_v0 }
 0x19b   :  { %4027 = vmatprep.subr.bf16.mxu1 %v20835_v1 }
 0x19d   :  { %2383 = vmatpush1.bf16.msra.mxu0 %v20830_v2 }
 0x19e   :  { %4028 = vmatpush1.bf16.msra.mxu1 %v20833_v3  ;;  %2384 = vmatprep.subr.bf16.mxu0 %v20838_v4  ;;  %v20910_v3 = vld [vmem:[#allocation10 + $0xa64] ss:$24 sps:$4 sm:$0xff]   ;;  %v20913_v4 = vld [vmem:[#allocation10 + $0x754] ss:$24 sps:$4 sm:$0xff]  }
 0x19f   :  { %4029 = vmatprep.subr.bf16.mxu1 %v20841_v6 }
 0x1a1   :  { %2385 = vmatpush1.bf16.msra.mxu0 %v20836_v7  ;;  %v20908_v7 = vld [vmem:[#allocation10 + $0xa60] ss:$24 sps:$4 sm:$0xff]  }
 0x1a2   :  { %4030 = vmatpush1.bf16.msra.mxu1 %v20839_v8  ;;  %2386 = vmatprep.subr.bf16.mxu0 %v20844_v9  ;;  %v20911_v8 = vld [vmem:[#allocation10 + $0x750] ss:$24 sps:$4 sm:$0xff]   ;;  %v20916_v9 = vld [vmem:[#allocation10 + $0xa94] ss:$24 sps:$4 sm:$0xff]  }
 0x1a3   :  { %4031 = vmatprep.subr.bf16.mxu1 %v20847_v10  ;;  %v20919_v10 = vld [vmem:[#allocation10 + $0x784] ss:$24 sps:$4 sm:$0xff]  }
 0x1a5   :  { %2387 = vmatpush1.bf16.msra.mxu0 %v20842_v11  ;;  %v20914_v11 = vld [vmem:[#allocation10 + $0xa90] ss:$24 sps:$4 sm:$0xff]  }
 0x1a6   :  { %4032 = vmatpush1.bf16.msra.mxu1 %v20845_v12  ;;  %2388 = vmatprep.subr.bf16.mxu0 %v20850_v13  ;;  %v20917_v12 = vld [vmem:[#allocation10 + $0x780] ss:$24 sps:$4 sm:$0xff]   ;;  %v20922_v13 = vld [vmem:[#allocation10 + $0xac4] ss:$24 sps:$4 sm:$0xff]  }
 0x1a7   :  { %4033 = vmatprep.subr.bf16.mxu1 %v20853_v16  ;;  %v20925_v16 = vld [vmem:[#allocation10 + $0x7b4] ss:$24 sps:$4 sm:$0xff]  }
 0x1a9   :  { %2389 = vmatpush1.bf16.msra.mxu0 %v20848_v17  ;;  %v20920_v17 = vld [vmem:[#allocation10 + $0xac0] ss:$24 sps:$4 sm:$0xff]  }
 0x1aa   :  { %4034 = vmatpush1.bf16.msra.mxu1 %v20851_v18  ;;  %2390 = vmatprep.subr.bf16.mxu0 %v20856_v19  ;;  %v20923_v18 = vld [vmem:[#allocation10 + $0x7b0] ss:$24 sps:$4 sm:$0xff]   ;;  %v20928_v19 = vld [vmem:[#allocation10 + $0xaf4] ss:$24 sps:$4 sm:$0xff]  }
 0x1ab   :  { %4035 = vmatprep.subr.bf16.mxu1 %v20859_v20  ;;  %v20931_v20 = vld [vmem:[#allocation10 + $0x7e4] ss:$24 sps:$4 sm:$0xff]  }
 0x1ad   :  { %2391 = vmatpush1.bf16.msra.mxu0 %v20854_v21  ;;  %v20926_v21 = vld [vmem:[#allocation10 + $0xaf0] ss:$24 sps:$4 sm:$0xff]  }
 0x1ae   :  { %4036 = vmatpush1.bf16.msra.mxu1 %v20857_v22  ;;  %2392 = vmatprep.subr.bf16.mxu0 %v20862_v23  ;;  %v20929_v22 = vld [vmem:[#allocation10 + $0x7e0] ss:$24 sps:$4 sm:$0xff]   ;;  %v20934_v23 = vld [vmem:[#allocation10 + $0xb24] ss:$24 sps:$4 sm:$0xff]  }
 0x1af   :  { %4037 = vmatprep.subr.bf16.mxu1 %v20865_v24  ;;  %v20937_v24 = vld [vmem:[#allocation10 + $0x814] ss:$24 sps:$4 sm:$0xff]  }
 0x1b1   :  { %2393 = vmatpush1.bf16.msra.mxu0 %v20860_v25  ;;  %v20932_v25 = vld [vmem:[#allocation10 + $0xb20] ss:$24 sps:$4 sm:$0xff]  }
 0x1b2   :  { %4038 = vmatpush1.bf16.msra.mxu1 %v20863_v26  ;;  %2444 = vmatprep.subr.bf16.mxu0 %v20868_v29  ;;  %v20935_v26 = vld [vmem:[#allocation10 + $0x810] ss:$24 sps:$4 sm:$0xff]   ;;  %v20943_v29 = vld [vmem:[#allocation10 + $0x844] ss:$24 sps:$4 sm:$0xff]  }
 0x1b3   :  { %4089 = vmatprep.subr.bf16.mxu1 %v20871_v30  ;;  %v20938_v30 = vld [vmem:[#allocation10 + $0xb50] ss:$24 sps:$4 sm:$0xff]  }
 0x1b4   :  { %2395 = vmatmul.mubr.bf16.vlgmr.msra.gmra.mrb[12].mxu0 %v22861_v14  ;;  %v20889_v14 = vld [vmem:[#allocation10 + $0x694] ss:$24 sps:$4 sm:$0xff]  }
 0x1b5   :  { %4040 = vmatmul.mubr.bf16.vlgmr.msra.gmra.mrb[12].mxu1 %v22875_v31  ;;  %2445 = vmatpush1.bf16.msra.mxu0 %v20866_v34  ;;  %v20946_v34 = vld [vmem:[#allocation10 + $0xb84] ss:$24 sps:$4 sm:$0xff]  }
 0x1b6   :  { %4090 = vmatpush1.bf16.msra.mxu1 %v20869_v35  ;;  %2446 = vmatprep.subr.bf16.mxu0 %v20874_v36  ;;  %v20949_v35 = vld [vmem:[#allocation10 + $0x874] ss:$24 sps:$4 sm:$0xff]   ;;  %v20944_v36 = vld [vmem:[#allocation10 + $0xb80] ss:$24 sps:$4 sm:$0xff]  }
 0x1b7   :  { %4091 = vmatprep.subr.bf16.mxu1 %v20877_v38  ;;  %2476 = vmatprep.mubr.bf16.mxu0 %v22847_v47  ;;  %v20890_v47 = vld [vmem:[#allocation10 + $0x9d0] ss:$24 sps:$4 sm:$0xff]  }
 0x1b8   :  { %4121 = vmatprep.mubr.bf16.mxu1 %v22877_v39  ;;  %v20947_v38 = vld [vmem:[#allocation10 + $0x870] ss:$24 sps:$4 sm:$0xff]  }
 0x1b9   :  { %2447 = vmatpush1.bf16.msra.mxu0 %v20872_v40  ;;  %v20952_v40 = vld [vmem:[#allocation10 + $0xbb4] ss:$24 sps:$4 sm:$0xff]  }
 0x1ba   :  { %4092 = vmatpush1.bf16.msra.mxu1 %v20875_v41  ;;  %2448 = vmatprep.subr.bf16.mxu0 %v20880_v42  ;;  %v20955_v41 = vld [vmem:[#allocation10 + $0x8a4] ss:$24 sps:$4 sm:$0xff]   ;;  %v20950_v42 = vld [vmem:[#allocation10 + $0xbb0] ss:$24 sps:$4 sm:$0xff]  }
 0x1bb   :  { %4093 = vmatprep.subr.bf16.mxu1 %v20883_v33  ;;  %v20953_v33 = vld [vmem:[#allocation10 + $0x8a0] ss:$24 sps:$4 sm:$0xff]  }
 0x1bd   :  { %2449 = vmatpush1.bf16.msra.mxu0 %v20878_v43  ;;  %v20958_v43 = vld [vmem:[#allocation10 + $0xbe4] ss:$24 sps:$4 sm:$0xff]  }
 0x1be   :  { %4094 = vmatpush1.bf16.msra.mxu1 %v20881_v44  ;;  %2450 = vmatprep.subr.bf16.mxu0 %v20886_v45  ;;  %v20961_v44 = vld [vmem:[#allocation10 + $0x8d4] ss:$24 sps:$4 sm:$0xff]   ;;  %v20956_v45 = vld [vmem:[#allocation10 + $0xbe0] ss:$24 sps:$4 sm:$0xff]  }
 0x1bf   :  { %4095 = vmatprep.subr.bf16.mxu1 %v20889_v14  ;;  %v20959_v14 = vld [vmem:[#allocation10 + $0x8d0] ss:$24 sps:$4 sm:$0xff]  }
 0x1c1   :  { %2451 = vmatpush1.bf16.msra.mxu0 %v20884_v46  ;;  %v20964_v46 = vld [vmem:[#allocation10 + $0xf14] ss:$24 sps:$4 sm:$0xff]  }
 0x1c2   :  { %4096 = vmatpush1.bf16.msra.mxu1 %v20887_v48  ;;  %2452 = vmatprep.subr.bf16.mxu0 %v20892_v49  ;;  %v162_v48 = vld [vmem:[#allocation2 + $0x20] sm:$0xff] }
 0x1c3   :  { %4097 = vmatprep.subr.bf16.mxu1 %v20895_v50  ;;  %v20967_v49 = vld [vmem:[#allocation10 + $0x30c] ss:$24 sps:$4 sm:$0xff]   ;;  %v161_v50 = vld [vmem:[#allocation2 + $0x18] sm:$0xff] }
 0x1c5   :  { %2453 = vmatpush1.bf16.msra.mxu0 %v20890_v47  ;;  %v20962_v47 = vld [vmem:[#allocation10 + $0xf10] ss:$24 sps:$4 sm:$0xff]  }
 0x1c6   :  { %4098 = vmatpush1.bf16.msra.mxu1 %v20893_v51  ;;  %2454 = vmatprep.subr.bf16.mxu0 %v20898_v52  ;;  %v20965_v51 = vld [vmem:[#allocation10 + $0x308] ss:$24 sps:$4 sm:$0xff]   ;;  %v22891_v52 = vpack.c.bf16 %v162_v48, %v162_v48  ;;  %v21033_v48 = vld [vmem:[#allocation10 + $0x51c] ss:$24 sps:$4 sm:$0xff]  }
 0x1c7   :  { %4099 = vmatprep.subr.bf16.mxu1 %v20901_v53  ;;  %v22883_v58 = vpop.f32.mrb[0].mxu0  ;;  %v20970_v53 = vld [vmem:[#allocation10 + $0xf44] ss:$24 sps:$4 sm:$0xff]  }
 0x1c8   :  { %v22885_v61 = vpop.f32.mrb[0].mxu1  ;;  %v22887_v62 = vpop.f32.mrb[1].mxu0 }
 0x1c9   :  { %v22889_v63 = vpop.f32.mrb[1].mxu1  ;;  %v2236_v0 = vpop.f32.mrb[2].mxu0  ;;  %2455 = vmatpush1.bf16.msra.mxu0 %v20896_v54  ;;  %v20973_v54 = vld [vmem:[#allocation10 + $0x33c] ss:$24 sps:$4 sm:$0xff]  }
 0x1ca   :  { %4100 = vmatpush1.bf16.msra.mxu1 %v20899_v55  ;;  %v2359_v1 = vpop.f32.mrb[2].mxu1  ;;  %v2237_v2 = vpop.f32.mrb[3].mxu0  ;;  %2456 = vmatprep.subr.bf16.mxu0 %v20904_v56  ;;  %v22893_v55 = vpack.c.bf16 %v161_v50, %v161_v50  ;;  %v20968_v56 = vld [vmem:[#allocation10 + $0xf40] ss:$24 sps:$4 sm:$0xff]   ;;  %v20974_v0 = vld [vmem:[#allocation10 + $0xf70] ss:$24 sps:$4 sm:$0xff]  }
 0x1cb   :  { %4101 = vmatprep.subr.bf16.mxu1 %v20907_v57  ;;  %v2360_v6 = vpop.f32.mrb[3].mxu1  ;;  %v20971_v57 = vld [vmem:[#allocation10 + $0x338] ss:$24 sps:$4 sm:$0xff]   ;;  %v20977_v1 = vld [vmem:[#allocation10 + $0x368] ss:$24 sps:$4 sm:$0xff]  }
 0x1cc   :  { %v20985_v2 = vld [vmem:[#allocation10 + $0x39c] ss:$24 sps:$4 sm:$0xff]   ;;  %v21031_v50 = vld [vmem:[#allocation10 + $0x518] ss:$24 sps:$4 sm:$0xff]  }
 0x1cd   :  { %2457 = vmatpush1.bf16.msra.mxu0 %v20902_v59  ;;  %v20976_v59 = vld [vmem:[#allocation10 + $0xf74] ss:$24 sps:$4 sm:$0xff]  }
 0x1ce   :  { %4102 = vmatpush1.bf16.msra.mxu1 %v20905_v60  ;;  %2458 = vmatprep.subr.bf16.mxu0 %v20910_v3  ;;  %v20979_v60 = vld [vmem:[#allocation10 + $0x36c] ss:$24 sps:$4 sm:$0xff]   ;;  %v20980_v3 = vld [vmem:[#allocation10 + $0xfa0] ss:$24 sps:$4 sm:$0xff]  }
 0x1cf   :  { %4103 = vmatprep.subr.bf16.mxu1 %v20913_v4  ;;  %v20983_v4 = vld [vmem:[#allocation10 + $0x398] ss:$24 sps:$4 sm:$0xff]   ;;  %v20988_v6 = vld [vmem:[#allocation10 + $0xfd4] ss:$24 sps:$4 sm:$0xff]  }
 0x1d1   :  { %2459 = vmatpush1.bf16.msra.mxu0 %v20908_v7  ;;  %v20991_v7 = vld [vmem:[#allocation10 + $0x3cc] ss:$24 sps:$4 sm:$0xff]  }
 0x1d2   :  { %4104 = vmatpush1.bf16.msra.mxu1 %v20911_v8  ;;  %2460 = vmatprep.subr.bf16.mxu0 %v20916_v9  ;;  %v20989_v8 = vld [vmem:[#allocation10 + $0x3c8] ss:$24 sps:$4 sm:$0xff]   ;;  %v20994_v9 = vld [vmem:[#allocation10 + $0x1004] ss:$24 sps:$4 sm:$0xff]  }
 0x1d3   :  { %4105 = vmatprep.subr.bf16.mxu1 %v20919_v10  ;;  %v20997_v10 = vld [vmem:[#allocation10 + $0x3fc] ss:$24 sps:$4 sm:$0xff]  }
 0x1d5   :  { %2461 = vmatpush1.bf16.msra.mxu0 %v20914_v11  ;;  %v20992_v11 = vld [vmem:[#allocation10 + $0x1000] ss:$24 sps:$4 sm:$0xff]  }
 0x1d6   :  { %4106 = vmatpush1.bf16.msra.mxu1 %v20917_v12  ;;  %2462 = vmatprep.subr.bf16.mxu0 %v20922_v13  ;;  %v20995_v12 = vld [vmem:[#allocation10 + $0x3f8] ss:$24 sps:$4 sm:$0xff]   ;;  %v21000_v13 = vld [vmem:[#allocation10 + $0x1034] ss:$24 sps:$4 sm:$0xff]  }
 0x1d7   :  { %4107 = vmatprep.subr.bf16.mxu1 %v20925_v16  ;;  %v21003_v16 = vld [vmem:[#allocation10 + $0x42c] ss:$24 sps:$4 sm:$0xff]  }
 0x1d9   :  { %2463 = vmatpush1.bf16.msra.mxu0 %v20920_v17 }
 0x1da   :  { %4108 = vmatpush1.bf16.msra.mxu1 %v20923_v18  ;;  %2464 = vmatprep.subr.bf16.mxu0 %v20928_v19  ;;  %v20998_v18 = vld [vmem:[#allocation10 + $0x1030] ss:$24 sps:$4 sm:$0xff]  }
 0x1db   :  { %4109 = vmatprep.subr.bf16.mxu1 %v20931_v20  ;;  %v21001_v19 = vld [vmem:[#allocation10 + $0x428] ss:$24 sps:$4 sm:$0xff]  }
 0x1dd   :  { %2465 = vmatpush1.bf16.msra.mxu0 %v20926_v21 }
 0x1de   :  { %4110 = vmatpush1.bf16.msra.mxu1 %v20929_v22  ;;  %2466 = vmatprep.subr.bf16.mxu0 %v20934_v23 }
 0x1df   :  { %4111 = vmatprep.subr.bf16.mxu1 %v20937_v24 }
 0x1e1   :  { %2467 = vmatpush1.bf16.msra.mxu0 %v20932_v25 }
 0x1e2   :  { %4112 = vmatpush1.bf16.msra.mxu1 %v20935_v26  ;;  %2468 = vmatprep.subr.bf16.mxu0 %v20940_v28 }
 0x1e3   :  { %4113 = vmatprep.subr.bf16.mxu1 %v20943_v29  ;;  %v21006_v29 = vld [vmem:[#allocation10 + $0x1064] ss:$24 sps:$4 sm:$0xff]  }
 0x1e5   :  { %2469 = vmatpush1.bf16.msra.mxu0 %v20938_v30  ;;  %v21009_v30 = vld [vmem:[#allocation10 + $0x45c] ss:$24 sps:$4 sm:$0xff]  }
 0x1e6   :  { %4114 = vmatpush1.bf16.msra.mxu1 %v20941_v32  ;;  %2470 = vmatprep.subr.bf16.mxu0 %v20946_v34  ;;  %v21007_v34 = vld [vmem:[#allocation10 + $0x458] ss:$24 sps:$4 sm:$0xff]  }
 0x1e7   :  { %4115 = vmatprep.subr.bf16.mxu1 %v20949_v35  ;;  %v21012_v35 = vld [vmem:[#allocation10 + $0x1094] ss:$24 sps:$4 sm:$0xff]  }
 0x1e9   :  { %2471 = vmatpush1.bf16.msra.mxu0 %v20944_v36  ;;  %v21015_v36 = vld [vmem:[#allocation10 + $0x48c] ss:$24 sps:$4 sm:$0xff]  }
 0x1ea   :  { %4116 = vmatpush1.bf16.msra.mxu1 %v20947_v38  ;;  %2472 = vmatprep.subr.bf16.mxu0 %v20952_v40  ;;  %v21013_v38 = vld [vmem:[#allocation10 + $0x488] ss:$24 sps:$4 sm:$0xff]   ;;  %v21018_v40 = vld [vmem:[#allocation10 + $0x10c4] ss:$24 sps:$4 sm:$0xff]  }
 0x1eb   :  { %4117 = vmatprep.subr.bf16.mxu1 %v20955_v41  ;;  %v21021_v41 = vld [vmem:[#allocation10 + $0x4bc] ss:$24 sps:$4 sm:$0xff]  }
 0x1ed   :  { %2473 = vmatpush1.bf16.msra.mxu0 %v20950_v42  ;;  %v21016_v42 = vld [vmem:[#allocation10 + $0x10c0] ss:$24 sps:$4 sm:$0xff]  }
 0x1ee   :  { %4118 = vmatpush1.bf16.msra.mxu1 %v20953_v33  ;;  %2474 = vmatprep.subr.bf16.mxu0 %v20958_v43  ;;  %v21019_v33 = vld [vmem:[#allocation10 + $0x4b8] ss:$24 sps:$4 sm:$0xff]   ;;  %v21024_v43 = vld [vmem:[#allocation10 + $0x10f4] ss:$24 sps:$4 sm:$0xff]  }
 0x1ef   :  { %4119 = vmatprep.subr.bf16.mxu1 %v20961_v44  ;;  %v21027_v44 = vld [vmem:[#allocation10 + $0x4ec] ss:$24 sps:$4 sm:$0xff]  }
 0x1f1   :  { %2475 = vmatpush1.bf16.msra.mxu0 %v20956_v45  ;;  %v21022_v45 = vld [vmem:[#allocation10 + $0x10f0] ss:$24 sps:$4 sm:$0xff]  }
 0x1f2   :  { %4120 = vmatpush1.bf16.msra.mxu1 %v20959_v14  ;;  %2526 = vmatprep.subr.bf16.mxu0 %v20964_v46  ;;  %v21025_v14 = vld [vmem:[#allocation10 + $0x4e8] ss:$24 sps:$4 sm:$0xff]   ;;  %v21030_v46 = vld [vmem:[#allocation10 + $0x1124] ss:$24 sps:$4 sm:$0xff]  }
 0x1f3   :  { %4171 = vmatprep.subr.bf16.mxu1 %v20967_v49  ;;  %v21028_v49 = vld [vmem:[#allocation10 + $0x1120] ss:$24 sps:$4 sm:$0xff]  }
 0x1f4   :  { %2477 = vmatmul.mubr.bf16.vlgmr.msra.gmra.mrb[16].mxu0 %v22851_v5  ;;  %v20982_v5 = vld [vmem:[#allocation10 + $0xfa4] ss:$24 sps:$4 sm:$0xff]  }
 0x1f5   :  { %4122 = vmatmul.mubr.bf16.vlgmr.msra.gmra.mrb[16].mxu1 %v22891_v52  ;;  %2527 = vmatpush1.bf16.msra.mxu0 %v20962_v47  ;;  %v21036_v47 = vld [vmem:[#allocation10 + $0x1154] ss:$24 sps:$4 sm:$0xff]  }
 0x1f6   :  { %4172 = vmatpush1.bf16.msra.mxu1 %v20965_v51  ;;  %2528 = vmatprep.subr.bf16.mxu0 %v20970_v53  ;;  %v21039_v51 = vld [vmem:[#allocation10 + $0x54c] ss:$24 sps:$4 sm:$0xff]   ;;  %v21034_v53 = vld [vmem:[#allocation10 + $0x1150] ss:$24 sps:$4 sm:$0xff]  }
 0x1f7   :  { %4173 = vmatprep.subr.bf16.mxu1 %v20973_v54  ;;  %2558 = vmatprep.mubr.bf16.mxu0 %v22857_v37  ;;  %v20986_v37 = vld [vmem:[#allocation10 + $0xfd0] ss:$24 sps:$4 sm:$0xff]  }
 0x1f8   :  { %4203 = vmatprep.mubr.bf16.mxu1 %v22893_v55  ;;  %v21037_v54 = vld [vmem:[#allocation10 + $0x548] ss:$24 sps:$4 sm:$0xff]  }
 0x1f9   :  { %2529 = vmatpush1.bf16.msra.mxu0 %v20968_v56  ;;  %v21042_v56 = vld [vmem:[#allocation10 + $0x1184] ss:$24 sps:$4 sm:$0xff]  }
 0x1fa   :  { %4174 = vmatpush1.bf16.msra.mxu1 %v20971_v57  ;;  %2530 = vmatprep.subr.bf16.mxu0 %v20976_v59  ;;  %v21045_v57 = vld [vmem:[#allocation10 + $0x57c] ss:$24 sps:$4 sm:$0xff]   ;;  %v21040_v59 = vld [vmem:[#allocation10 + $0x1180] ss:$24 sps:$4 sm:$0xff]  }
 0x1fb   :  { %4175 = vmatprep.subr.bf16.mxu1 %v20979_v60  ;;  %v21043_v60 = vld [vmem:[#allocation10 + $0x578] ss:$24 sps:$4 sm:$0xff]  }
 0x1fd   :  { %2531 = vmatpush1.bf16.msra.mxu0 %v20974_v0  ;;  %v21048_v0 = vld [vmem:[#allocation10 + $0x11b4] ss:$24 sps:$4 sm:$0xff]  }
 0x1fe   :  { %4176 = vmatpush1.bf16.msra.mxu1 %v20977_v1  ;;  %2532 = vmatprep.subr.bf16.mxu0 %v20982_v5  ;;  %v21051_v1 = vld [vmem:[#allocation10 + $0x5ac] ss:$24 sps:$4 sm:$0xff]   ;;  %v21046_v5 = vld [vmem:[#allocation10 + $0x11b0] ss:$24 sps:$4 sm:$0xff]  }
 0x1ff   :  { %4177 = vmatprep.subr.bf16.mxu1 %v20985_v2  ;;  %v21049_v2 = vld [vmem:[#allocation10 + $0x5a8] ss:$24 sps:$4 sm:$0xff]  }
 0x201   :  { %2533 = vmatpush1.bf16.msra.mxu0 %v20980_v3  ;;  %v21054_v3 = vld [vmem:[#allocation10 + $0x11e4] ss:$24 sps:$4 sm:$0xff]  }
 0x202   :  { %4178 = vmatpush1.bf16.msra.mxu1 %v20983_v4  ;;  %2534 = vmatprep.subr.bf16.mxu0 %v20988_v6  ;;  %v21057_v4 = vld [vmem:[#allocation10 + $0x5dc] ss:$24 sps:$4 sm:$0xff]   ;;  %v21052_v6 = vld [vmem:[#allocation10 + $0x11e0] ss:$24 sps:$4 sm:$0xff]  }
 0x203   :  { %4179 = vmatprep.subr.bf16.mxu1 %v20991_v7  ;;  %v21055_v7 = vld [vmem:[#allocation10 + $0x5d8] ss:$24 sps:$4 sm:$0xff]  }
 0x205   :  { %2535 = vmatpush1.bf16.msra.mxu0 %v20986_v37  ;;  %v160_v37 = vld [vmem:[#allocation2 + $0x10] sm:$0xff] }
 0x206   :  { %4180 = vmatpush1.bf16.msra.mxu1 %v20989_v8  ;;  %2536 = vmatprep.subr.bf16.mxu0 %v20994_v9  ;;  %v21060_v8 = vld [vmem:[#allocation10 + $0x304] ss:$24 sps:$4 sm:$0xff]   ;;  %v21063_v9 = vld [vmem:[#allocation10 + $0x14] ss:$24 sps:$4 sm:$0xff]  }
 0x207   :  { %4181 = vmatprep.subr.bf16.mxu1 %v20997_v10  ;;  %v2273_v17 = vpop.f32.mrb[4].mxu0  ;;  %v21058_v10 = vld [vmem:[#allocation10 + $0x300] ss:$24 sps:$4 sm:$0xff]  }
 0x208   :  { %v22899_v20 = vpop.f32.mrb[4].mxu1  ;;  %v22902_v21 = vadd.f32 %v2273_v17, %v22883_v58  ;;  %v2275_v22 = vpop.f32.mrb[5].mxu0  ;;  %v21004_v58 = vld [vmem:[#allocation10 + $0x1060] ss:$24 sps:$4 sm:$0xff]   ;;  %v21064_v17 = vld [vmem:[#allocation10 + $0x330] ss:$24 sps:$4 sm:$0xff]  }
 0x209   :  { %v22904_v23 = vpop.f32.mrb[5].mxu1  ;;  %v22907_v24 = vadd.f32 %v2275_v22, %v22887_v62  ;;  %v2277_v25 = vpop.f32.mrb[6].mxu0  ;;  %2537 = vmatpush1.bf16.msra.mxu0 %v20992_v11  ;;  %v21010_v62 = vld [vmem:[#allocation10 + $0x1090] ss:$24 sps:$4 sm:$0xff]   ;;  %v21075_v22 = vld [vmem:[#allocation10 + $0x74] ss:$24 sps:$4 sm:$0xff]  }
 0x20a   :  { %4182 = vmatpush1.bf16.msra.mxu1 %v20995_v12  ;;  %v2441_v26 = vpop.f32.mrb[6].mxu1  ;;  %v2278_v28 = vpop.f32.mrb[7].mxu0  ;;  %2538 = vmatprep.subr.bf16.mxu0 %v21000_v13  ;;  %v21061_v11 = vld [vmem:[#allocation10 + $0x10] ss:$24 sps:$4 sm:$0xff]   ;;  %v22909_v12 = vpack.c.bf16 %v160_v37, %v160_v37  ;;  %v21066_v13 = vld [vmem:[#allocation10 + $0x334] ss:$24 sps:$4 sm:$0xff]  }
 0x20b   :  { %4183 = vmatprep.subr.bf16.mxu1 %v21003_v16  ;;  %v2442_v32 = vpop.f32.mrb[7].mxu1  ;;  %v21069_v16 = vld [vmem:[#allocation10 + $0x44] ss:$24 sps:$4 sm:$0xff]   ;;  %v21070_v25 = vld [vmem:[#allocation10 + $0x360] ss:$24 sps:$4 sm:$0xff]  }
 0x20c   :  { %v21073_v26 = vld [vmem:[#allocation10 + $0x70] ss:$24 sps:$4 sm:$0xff]   ;;  %v21081_v28 = vld [vmem:[#allocation10 + $0xa4] ss:$24 sps:$4 sm:$0xff]  }
 0x20d   :  { %2539 = vmatpush1.bf16.msra.mxu0 %v20998_v18  ;;  %v21067_v18 = vld [vmem:[#allocation10 + $0x40] ss:$24 sps:$4 sm:$0xff]   ;;  %v21084_v32 = vld [vmem:[#allocation10 + $0x3c4] ss:$24 sps:$4 sm:$0xff]   ;;  %v21121_v37 = vld [vmem:[#allocation10 + $0x1f0] ss:$24 sps:$4 sm:$0xff]  }
 0x20e   :  { %4184 = vmatpush1.bf16.msra.mxu1 %v21001_v19  ;;  %2540 = vmatprep.subr.bf16.mxu0 %v21006_v29  ;;  %v21072_v19 = vld [vmem:[#allocation10 + $0x364] ss:$24 sps:$4 sm:$0xff]   ;;  %v21076_v29 = vld [vmem:[#allocation10 + $0x390] ss:$24 sps:$4 sm:$0xff]  }
 0x20f   :  { %4185 = vmatprep.subr.bf16.mxu1 %v21009_v30  ;;  %v21079_v30 = vld [vmem:[#allocation10 + $0xa0] ss:$24 sps:$4 sm:$0xff]  }
 0x211   :  { %2541 = vmatpush1.bf16.msra.mxu0 %v21004_v58  ;;  %v21087_v58 = vld [vmem:[#allocation10 + $0xd4] ss:$24 sps:$4 sm:$0xff]  }
 0x212   :  { %4186 = vmatpush1.bf16.msra.mxu1 %v21007_v34  ;;  %2542 = vmatprep.subr.bf16.mxu0 %v21012_v35  ;;  %v21082_v34 = vld [vmem:[#allocation10 + $0x3c0] ss:$24 sps:$4 sm:$0xff]   ;;  %v21085_v35 = vld [vmem:[#allocation10 + $0xd0] ss:$24 sps:$4 sm:$0xff]  }
 0x213   :  { %4187 = vmatprep.subr.bf16.mxu1 %v21015_v36  ;;  %v21090_v36 = vld [vmem:[#allocation10 + $0x3f4] ss:$24 sps:$4 sm:$0xff]  }
 0x215   :  { %2543 = vmatpush1.bf16.msra.mxu0 %v21010_v62  ;;  %v21093_v62 = vld [vmem:[#allocation10 + $0x104] ss:$24 sps:$4 sm:$0xff]  }
 0x216   :  { %4188 = vmatpush1.bf16.msra.mxu1 %v21013_v38  ;;  %2544 = vmatprep.subr.bf16.mxu0 %v21018_v40  ;;  %v21088_v38 = vld [vmem:[#allocation10 + $0x3f0] ss:$24 sps:$4 sm:$0xff]   ;;  %v21091_v40 = vld [vmem:[#allocation10 + $0x100] ss:$24 sps:$4 sm:$0xff]  }
 0x217   :  { %4189 = vmatprep.subr.bf16.mxu1 %v21021_v41  ;;  %v21096_v41 = vld [vmem:[#allocation10 + $0x424] ss:$24 sps:$4 sm:$0xff]  }
 0x219   :  { %2545 = vmatpush1.bf16.msra.mxu0 %v21016_v42  ;;  %v21099_v42 = vld [vmem:[#allocation10 + $0x134] ss:$24 sps:$4 sm:$0xff]  }
 0x21a   :  { %4190 = vmatpush1.bf16.msra.mxu1 %v21019_v33  ;;  %2546 = vmatprep.subr.bf16.mxu0 %v21024_v43  ;;  %v21094_v43 = vld [vmem:[#allocation10 + $0x420] ss:$24 sps:$4 sm:$0xff]  }
 0x21b   :  { %4191 = vmatprep.subr.bf16.mxu1 %v21027_v44  ;;  %v21097_v44 = vld [vmem:[#allocation10 + $0x130] ss:$24 sps:$4 sm:$0xff]  }
 0x21d   :  { %2547 = vmatpush1.bf16.msra.mxu0 %v21022_v45 }
 0x21e   :  { %4192 = vmatpush1.bf16.msra.mxu1 %v21025_v14  ;;  %2548 = vmatprep.subr.bf16.mxu0 %v21030_v46 }
 0x21f   :  { %4193 = vmatprep.subr.bf16.mxu1 %v21033_v48 }
 0x221   :  { %2549 = vmatpush1.bf16.msra.mxu0 %v21028_v49 }
 0x222   :  { %4194 = vmatpush1.bf16.msra.mxu1 %v21031_v50  ;;  %2550 = vmatprep.subr.bf16.mxu0 %v21036_v47 }
 0x223   :  { %4195 = vmatprep.subr.bf16.mxu1 %v21039_v51 }
 0x225   :  { %2551 = vmatpush1.bf16.msra.mxu0 %v21034_v53  ;;  %v21102_v53 = vld [vmem:[#allocation10 + $0x454] ss:$24 sps:$4 sm:$0xff]  }
 0x226   :  { %4196 = vmatpush1.bf16.msra.mxu1 %v21037_v54  ;;  %2552 = vmatprep.subr.bf16.mxu0 %v21042_v56  ;;  %v21105_v54 = vld [vmem:[#allocation10 + $0x164] ss:$24 sps:$4 sm:$0xff]  }
 0x227   :  { %4197 = vmatprep.subr.bf16.mxu1 %v21045_v57  ;;  %v21103_v57 = vld [vmem:[#allocation10 + $0x160] ss:$24 sps:$4 sm:$0xff]  }
 0x229   :  { %2553 = vmatpush1.bf16.msra.mxu0 %v21040_v59  ;;  %v21108_v59 = vld [vmem:[#allocation10 + $0x484] ss:$24 sps:$4 sm:$0xff]  }
 0x22a   :  { %4198 = vmatpush1.bf16.msra.mxu1 %v21043_v60  ;;  %2554 = vmatprep.subr.bf16.mxu0 %v21048_v0  ;;  %v21111_v60 = vld [vmem:[#allocation10 + $0x194] ss:$24 sps:$4 sm:$0xff]   ;;  %v21109_v0 = vld [vmem:[#allocation10 + $0x190] ss:$24 sps:$4 sm:$0xff]  }
 0x22b   :  { %4199 = vmatprep.subr.bf16.mxu1 %v21051_v1  ;;  %v21114_v1 = vld [vmem:[#allocation10 + $0x4b4] ss:$24 sps:$4 sm:$0xff]  }
 0x22d   :  { %2555 = vmatpush1.bf16.msra.mxu0 %v21046_v5  ;;  %v21117_v5 = vld [vmem:[#allocation10 + $0x1c4] ss:$24 sps:$4 sm:$0xff]  }
 0x22e   :  { %4200 = vmatpush1.bf16.msra.mxu1 %v21049_v2  ;;  %2556 = vmatprep.subr.bf16.mxu0 %v21054_v3  ;;  %v21112_v2 = vld [vmem:[#allocation10 + $0x4b0] ss:$24 sps:$4 sm:$0xff]   ;;  %v21115_v3 = vld [vmem:[#allocation10 + $0x1c0] ss:$24 sps:$4 sm:$0xff]  }
 0x22f   :  { %4201 = vmatprep.subr.bf16.mxu1 %v21057_v4  ;;  %v21120_v4 = vld [vmem:[#allocation10 + $0x4e4] ss:$24 sps:$4 sm:$0xff]  }
 0x231   :  { %2557 = vmatpush1.bf16.msra.mxu0 %v21052_v6  ;;  %v21123_v6 = vld [vmem:[#allocation10 + $0x1f4] ss:$24 sps:$4 sm:$0xff]  }
 0x232   :  { %4202 = vmatpush1.bf16.msra.mxu1 %v21055_v7  ;;  %4048 = vmatprep.subr.bf16.mxu0 %v21060_v8  ;;  %v21118_v7 = vld [vmem:[#allocation10 + $0x4e0] ss:$24 sps:$4 sm:$0xff]   ;;  %v21126_v8 = vld [vmem:[#allocation10 + $0x514] ss:$24 sps:$4 sm:$0xff]  }
 0x233   :  { %4253 = vmatprep.subr.bf16.mxu1 %v21063_v9  ;;  %v21129_v9 = vld [vmem:[#allocation10 + $0x224] ss:$24 sps:$4 sm:$0xff]  }
 0x234   :  { %2559 = vmatmul.mubr.bf16.vlgmr.msra.gmra.mrb[20].mxu0 %v22863_v15  ;;  %v21078_v15 = vld [vmem:[#allocation10 + $0x394] ss:$24 sps:$4 sm:$0xff]  }
 0x235   :  { %4204 = vmatmul.mubr.bf16.vlgmr.msra.gmra.mrb[20].mxu1 %v22909_v12  ;;  %4049 = vmatpush1.bf16.msra.mxu0 %v21058_v10  ;;  %v21124_v10 = vld [vmem:[#allocation10 + $0x510] ss:$24 sps:$4 sm:$0xff]  }
 0x236   :  { %4254 = vmatpush1.bf16.msra.mxu1 %v21061_v11  ;;  %4050 = vmatprep.subr.bf16.mxu0 %v21066_v13  ;;  %v21127_v11 = vld [vmem:[#allocation10 + $0x220] ss:$24 sps:$4 sm:$0xff]   ;;  %v21132_v13 = vld [vmem:[#allocation10 + $0x544] ss:$24 sps:$4 sm:$0xff]  }
 0x237   :  { %4255 = vmatprep.subr.bf16.mxu1 %v21069_v16  ;;  %4080 = vmatprep.mubr.bf16.mxu0 %v22893_v55  ;;  %v21135_v16 = vld [vmem:[#allocation10 + $0x254] ss:$24 sps:$4 sm:$0xff]  }
 0x238   :  { %4285 = vmatprep.mubr.bf16.mxu1 %v22869_v27 }
 0x239   :  { %4051 = vmatpush1.bf16.msra.mxu0 %v21064_v17  ;;  %v21130_v17 = vld [vmem:[#allocation10 + $0x540] ss:$24 sps:$4 sm:$0xff]  }
 0x23a   :  { %4256 = vmatpush1.bf16.msra.mxu1 %v21067_v18  ;;  %4052 = vmatprep.subr.bf16.mxu0 %v21072_v19  ;;  %v21133_v18 = vld [vmem:[#allocation10 + $0x250] ss:$24 sps:$4 sm:$0xff]   ;;  %v21138_v19 = vld [vmem:[#allocation10 + $0x574] ss:$24 sps:$4 sm:$0xff]  }
 0x23b   :  { %4257 = vmatprep.subr.bf16.mxu1 %v21075_v22  ;;  %v21141_v22 = vld [vmem:[#allocation10 + $0x284] ss:$24 sps:$4 sm:$0xff]  }
 0x23d   :  { %4053 = vmatpush1.bf16.msra.mxu0 %v21070_v25  ;;  %v21136_v25 = vld [vmem:[#allocation10 + $0x570] ss:$24 sps:$4 sm:$0xff]  }
 0x23e   :  { %4258 = vmatpush1.bf16.msra.mxu1 %v21073_v26  ;;  %4054 = vmatprep.subr.bf16.mxu0 %v21078_v15  ;;  %v21139_v26 = vld [vmem:[#allocation10 + $0x280] ss:$24 sps:$4 sm:$0xff]   ;;  %v21144_v15 = vld [vmem:[#allocation10 + $0x5a4] ss:$24 sps:$4 sm:$0xff]  }
 0x23f   :  { %4259 = vmatprep.subr.bf16.mxu1 %v21081_v28  ;;  %v21147_v28 = vld [vmem:[#allocation10 + $0x2b4] ss:$24 sps:$4 sm:$0xff]  }
 0x241   :  { %4055 = vmatpush1.bf16.msra.mxu0 %v21076_v29  ;;  %v21142_v29 = vld [vmem:[#allocation10 + $0x5a0] ss:$24 sps:$4 sm:$0xff]  }
 0x242   :  { %4260 = vmatpush1.bf16.msra.mxu1 %v21079_v30  ;;  %4056 = vmatprep.subr.bf16.mxu0 %v21084_v32  ;;  %v21145_v30 = vld [vmem:[#allocation10 + $0x2b0] ss:$24 sps:$4 sm:$0xff]   ;;  %v21150_v32 = vld [vmem:[#allocation10 + $0x5d4] ss:$24 sps:$4 sm:$0xff]  }
 0x243   :  { %4261 = vmatprep.subr.bf16.mxu1 %v21087_v58  ;;  %v21153_v58 = vld [vmem:[#allocation10 + $0x2e4] ss:$24 sps:$4 sm:$0xff]  }
 0x245   :  { %4057 = vmatpush1.bf16.msra.mxu0 %v21082_v34  ;;  %v21148_v34 = vld [vmem:[#allocation10 + $0x5d0] ss:$24 sps:$4 sm:$0xff]  }
 0x246   :  { %4262 = vmatpush1.bf16.msra.mxu1 %v21085_v35  ;;  %4058 = vmatprep.subr.bf16.mxu0 %v21090_v36  ;;  %v21151_v35 = vld [vmem:[#allocation10 + $0x2e0] ss:$24 sps:$4 sm:$0xff]   ;;  %v21156_v36 = vld [vmem:[#allocation10 + $0xc] ss:$24 sps:$4 sm:$0xff]  }
 0x247   :  { %4263 = vmatprep.subr.bf16.mxu1 %v21093_v62  ;;  %v2314_v33 = vpop.f32.mrb[8].mxu0  ;;  %v21159_v62 = vld [vmem:[#allocation10 + $0x614] ss:$24 sps:$4 sm:$0xff]  }
 0x248   :  { %v22915_v45 = vpop.f32.mrb[8].mxu1  ;;  %v22918_v14 = vadd.f32 %v2314_v33, %v22902_v21  ;;  %v2316_v46 = vpop.f32.mrb[9].mxu0  ;;  %v21100_v21 = vld [vmem:[#allocation10 + $0x450] ss:$24 sps:$4 sm:$0xff]  }
 0x249   :  { %v22920_v48 = vpop.f32.mrb[9].mxu1  ;;  %v22923_v49 = vadd.f32 %v2316_v46, %v22907_v24  ;;  %v2318_v50 = vpop.f32.mrb[10].mxu0  ;;  %4059 = vmatpush1.bf16.msra.mxu0 %v21088_v38  ;;  %v21106_v24 = vld [vmem:[#allocation10 + $0x480] ss:$24 sps:$4 sm:$0xff]   ;;  %v21171_v46 = vld [vmem:[#allocation10 + $0x674] ss:$24 sps:$4 sm:$0xff]  }
 0x24a   :  { %4264 = vmatpush1.bf16.msra.mxu1 %v21091_v40  ;;  %v2523_v47 = vpop.f32.mrb[10].mxu1  ;;  %v2319_v51 = vpop.f32.mrb[11].mxu0  ;;  %4060 = vmatprep.subr.bf16.mxu0 %v21096_v41  ;;  %v21154_v38 = vld [vmem:[#allocation10 + $0x8] ss:$24 sps:$4 sm:$0xff]   ;;  %v21162_v41 = vld [vmem:[#allocation10 + $0x3c] ss:$24 sps:$4 sm:$0xff]  }
 0x24b   :  { %4265 = vmatprep.subr.bf16.mxu1 %v21099_v42  ;;  %v2524_v56 = vpop.f32.mrb[11].mxu1  ;;  %v21157_v40 = vld [vmem:[#allocation10 + $0x610] ss:$24 sps:$4 sm:$0xff]   ;;  %v21165_v42 = vld [vmem:[#allocation10 + $0x644] ss:$24 sps:$4 sm:$0xff]  }
 0x24c   :  { %v21160_v33 = vld [vmem:[#allocation10 + $0x38] ss:$24 sps:$4 sm:$0xff]   ;;  %v21166_v50 = vld [vmem:[#allocation10 + $0x68] ss:$24 sps:$4 sm:$0xff]   ;;  %v21174_v51 = vld [vmem:[#allocation10 + $0x9c] ss:$24 sps:$4 sm:$0xff]  }
 0x24d   :  { %4061 = vmatpush1.bf16.msra.mxu0 %v21094_v43  ;;  %v21163_v43 = vld [vmem:[#allocation10 + $0x640] ss:$24 sps:$4 sm:$0xff]   ;;  %v21169_v47 = vld [vmem:[#allocation10 + $0x670] ss:$24 sps:$4 sm:$0xff]  }
 0x24e   :  { %4266 = vmatpush1.bf16.msra.mxu1 %v21097_v44  ;;  %4062 = vmatprep.subr.bf16.mxu0 %v21102_v53  ;;  %v21168_v44 = vld [vmem:[#allocation10 + $0x6c] ss:$24 sps:$4 sm:$0xff]   ;;  %v21175_v56 = vld [vmem:[#allocation10 + $0x6a0] ss:$24 sps:$4 sm:$0xff]  }
 0x24f   :  { %4267 = vmatprep.subr.bf16.mxu1 %v21105_v54  ;;  %v21177_v53 = vld [vmem:[#allocation10 + $0x6a4] ss:$24 sps:$4 sm:$0xff]   ;;  %v21172_v54 = vld [vmem:[#allocation10 + $0x98] ss:$24 sps:$4 sm:$0xff]  }
 0x251   :  { %4063 = vmatpush1.bf16.msra.mxu0 %v21100_v21  ;;  %v21180_v21 = vld [vmem:[#allocation10 + $0xcc] ss:$24 sps:$4 sm:$0xff]  }
 0x252   :  { %4268 = vmatpush1.bf16.msra.mxu1 %v21103_v57  ;;  %4064 = vmatprep.subr.bf16.mxu0 %v21108_v59  ;;  %v21183_v57 = vld [vmem:[#allocation10 + $0x6d4] ss:$24 sps:$4 sm:$0xff]   ;;  %v21181_v59 = vld [vmem:[#allocation10 + $0x6d0] ss:$24 sps:$4 sm:$0xff]  }
 0x253   :  { %4269 = vmatprep.subr.bf16.mxu1 %v21111_v60  ;;  %v21186_v60 = vld [vmem:[#allocation10 + $0xfc] ss:$24 sps:$4 sm:$0xff]  }
 0x255   :  { %4065 = vmatpush1.bf16.msra.mxu0 %v21106_v24  ;;  %v21189_v24 = vld [vmem:[#allocation10 + $0x704] ss:$24 sps:$4 sm:$0xff]  }
 0x256   :  { %4270 = vmatpush1.bf16.msra.mxu1 %v21109_v0  ;;  %4066 = vmatprep.subr.bf16.mxu0 %v21114_v1  ;;  %v21184_v0 = vld [vmem:[#allocation10 + $0xf8] ss:$24 sps:$4 sm:$0xff]  }
 0x257   :  { %4271 = vmatprep.subr.bf16.mxu1 %v21117_v5  ;;  %v21187_v1 = vld [vmem:[#allocation10 + $0x700] ss:$24 sps:$4 sm:$0xff]   ;;  %v21192_v5 = vld [vmem:[#allocation10 + $0x12c] ss:$24 sps:$4 sm:$0xff]  }
 0x259   :  { %4067 = vmatpush1.bf16.msra.mxu0 %v21112_v2  ;;  %v21195_v2 = vld [vmem:[#allocation10 + $0x734] ss:$24 sps:$4 sm:$0xff]  }
 0x25a   :  { %4272 = vmatpush1.bf16.msra.mxu1 %v21115_v3  ;;  %4068 = vmatprep.subr.bf16.mxu0 %v21120_v4 }
 0x25b   :  { %4273 = vmatprep.subr.bf16.mxu1 %v21123_v6  ;;  %v21190_v6 = vld [vmem:[#allocation10 + $0x128] ss:$24 sps:$4 sm:$0xff]  }
 0x25d   :  { %4069 = vmatpush1.bf16.msra.mxu0 %v21118_v7  ;;  %v21193_v7 = vld [vmem:[#allocation10 + $0x730] ss:$24 sps:$4 sm:$0xff]  }
 0x25e   :  { %4274 = vmatpush1.bf16.msra.mxu1 %v21121_v37  ;;  %4070 = vmatprep.subr.bf16.mxu0 %v21126_v8 }
 0x25f   :  { %4275 = vmatprep.subr.bf16.mxu1 %v21129_v9 }
 0x261   :  { %4071 = vmatpush1.bf16.msra.mxu0 %v21124_v10 }
 0x262   :  { %4276 = vmatpush1.bf16.msra.mxu1 %v21127_v11  ;;  %4072 = vmatprep.subr.bf16.mxu0 %v21132_v13 }
 0x263   :  { %4277 = vmatprep.subr.bf16.mxu1 %v21135_v16 }
 0x265   :  { %4073 = vmatpush1.bf16.msra.mxu0 %v21130_v17 }
 0x266   :  { %4278 = vmatpush1.bf16.msra.mxu1 %v21133_v18  ;;  %4074 = vmatprep.subr.bf16.mxu0 %v21138_v19  ;;  %v21198_v19 = vld [vmem:[#allocation10 + $0x15c] ss:$24 sps:$4 sm:$0xff]  }
 0x267   :  { %4279 = vmatprep.subr.bf16.mxu1 %v21141_v22  ;;  %v21201_v22 = vld [vmem:[#allocation10 + $0x764] ss:$24 sps:$4 sm:$0xff]  }
 0x269   :  { %4075 = vmatpush1.bf16.msra.mxu0 %v21136_v25 }
 0x26a   :  { %4280 = vmatpush1.bf16.msra.mxu1 %v21139_v26  ;;  %4076 = vmatprep.subr.bf16.mxu0 %v21144_v15  ;;  %v21204_v26 = vld [vmem:[#allocation10 + $0x18c] ss:$24 sps:$4 sm:$0xff]  }
 0x26b   :  { %4281 = vmatprep.subr.bf16.mxu1 %v21147_v28  ;;  %v21207_v15 = vld [vmem:[#allocation10 + $0x794] ss:$24 sps:$4 sm:$0xff]   ;;  %v21202_v28 = vld [vmem:[#allocation10 + $0x188] ss:$24 sps:$4 sm:$0xff]  }
 0x26d   :  { %4077 = vmatpush1.bf16.msra.mxu0 %v21142_v29  ;;  %v21205_v29 = vld [vmem:[#allocation10 + $0x790] ss:$24 sps:$4 sm:$0xff]  }
 0x26e   :  { %4282 = vmatpush1.bf16.msra.mxu1 %v21145_v30  ;;  %4078 = vmatprep.subr.bf16.mxu0 %v21150_v32  ;;  %v21210_v30 = vld [vmem:[#allocation10 + $0x1bc] ss:$24 sps:$4 sm:$0xff]   ;;  %v21211_v32 = vld [vmem:[#allocation10 + $0x7c0] ss:$24 sps:$4 sm:$0xff]  }
 0x26f   :  { %4283 = vmatprep.subr.bf16.mxu1 %v21153_v58  ;;  %v21216_v58 = vld [vmem:[#allocation10 + $0x1ec] ss:$24 sps:$4 sm:$0xff]  }
 0x271   :  { %4079 = vmatpush1.bf16.msra.mxu0 %v21148_v34  ;;  %v21219_v34 = vld [vmem:[#allocation10 + $0x7f4] ss:$24 sps:$4 sm:$0xff]  }
 0x272   :  { %4284 = vmatpush1.bf16.msra.mxu1 %v21151_v35  ;;  %4130 = vmatprep.subr.bf16.mxu0 %v21156_v36  ;;  %v21214_v35 = vld [vmem:[#allocation10 + $0x1e8] ss:$24 sps:$4 sm:$0xff]  }
 0x273   :  { %4335 = vmatprep.subr.bf16.mxu1 %v21159_v62  ;;  %v21217_v36 = vld [vmem:[#allocation10 + $0x7f0] ss:$24 sps:$4 sm:$0xff]   ;;  %v21222_v62 = vld [vmem:[#allocation10 + $0x21c] ss:$24 sps:$4 sm:$0xff]  }
 0x274   :  { %4081 = vmatmul.mubr.bf16.vlgmr.msra.gmra.mrb[24].mxu0 %v22909_v12 }
 0x275   :  { %4286 = vmatmul.mubr.bf16.vlgmr.msra.gmra.mrb[24].mxu1 %v22875_v31  ;;  %4131 = vmatpush1.bf16.msra.mxu0 %v21154_v38  ;;  %v21225_v38 = vld [vmem:[#allocation10 + $0x824] ss:$24 sps:$4 sm:$0xff]  }
 0x276   :  { %4336 = vmatpush1.bf16.msra.mxu1 %v21157_v40  ;;  %4132 = vmatprep.subr.bf16.mxu0 %v21162_v41  ;;  %v21220_v40 = vld [vmem:[#allocation10 + $0x218] ss:$24 sps:$4 sm:$0xff]  }
 0x277   :  { %4337 = vmatprep.subr.bf16.mxu1 %v21165_v42  ;;  %4162 = vmatprep.mubr.bf16.mxu0 %v22869_v27  ;;  %v21178_v27 = vld [vmem:[#allocation10 + $0xc8] ss:$24 sps:$4 sm:$0xff]   ;;  %v21228_v42 = vld [vmem:[#allocation10 + $0x24c] ss:$24 sps:$4 sm:$0xff]  }
 0x278   :  { %4367 = vmatprep.mubr.bf16.mxu1 %v22877_v39  ;;  %v21223_v41 = vld [vmem:[#allocation10 + $0x820] ss:$24 sps:$4 sm:$0xff]  }
 0x279   :  { %4133 = vmatpush1.bf16.msra.mxu0 %v21160_v33  ;;  %v21231_v33 = vld [vmem:[#allocation10 + $0x854] ss:$24 sps:$4 sm:$0xff]  }
 0x27a   :  { %4338 = vmatpush1.bf16.msra.mxu1 %v21163_v43  ;;  %4134 = vmatprep.subr.bf16.mxu0 %v21168_v44  ;;  %v21226_v43 = vld [vmem:[#allocation10 + $0x248] ss:$24 sps:$4 sm:$0xff]  }
 0x27b   :  { %4339 = vmatprep.subr.bf16.mxu1 %v21171_v46  ;;  %v21229_v44 = vld [vmem:[#allocation10 + $0x850] ss:$24 sps:$4 sm:$0xff]   ;;  %v21234_v46 = vld [vmem:[#allocation10 + $0x27c] ss:$24 sps:$4 sm:$0xff]  }
 0x27d   :  { %4135 = vmatpush1.bf16.msra.mxu0 %v21166_v50  ;;  %v21237_v50 = vld [vmem:[#allocation10 + $0x884] ss:$24 sps:$4 sm:$0xff]  }
 0x27e   :  { %4340 = vmatpush1.bf16.msra.mxu1 %v21169_v47  ;;  %4136 = vmatprep.subr.bf16.mxu0 %v21174_v51  ;;  %v21232_v47 = vld [vmem:[#allocation10 + $0x278] ss:$24 sps:$4 sm:$0xff]  }
 0x27f   :  { %4341 = vmatprep.subr.bf16.mxu1 %v21177_v53  ;;  %v21235_v51 = vld [vmem:[#allocation10 + $0x880] ss:$24 sps:$4 sm:$0xff]   ;;  %v21240_v53 = vld [vmem:[#allocation10 + $0x2ac] ss:$24 sps:$4 sm:$0xff]  }
 0x281   :  { %4137 = vmatpush1.bf16.msra.mxu0 %v21172_v54  ;;  %v21243_v54 = vld [vmem:[#allocation10 + $0x8b4] ss:$24 sps:$4 sm:$0xff]  }
 0x282   :  { %4342 = vmatpush1.bf16.msra.mxu1 %v21175_v56  ;;  %4138 = vmatprep.subr.bf16.mxu0 %v21180_v21  ;;  %v21238_v56 = vld [vmem:[#allocation10 + $0x2a8] ss:$24 sps:$4 sm:$0xff]  }
 0x283   :  { %4343 = vmatprep.subr.bf16.mxu1 %v21183_v57  ;;  %v21241_v21 = vld [vmem:[#allocation10 + $0x8b0] ss:$24 sps:$4 sm:$0xff]   ;;  %v21246_v57 = vld [vmem:[#allocation10 + $0x2dc] ss:$24 sps:$4 sm:$0xff]  }
 0x285   :  { %4139 = vmatpush1.bf16.msra.mxu0 %v21178_v27  ;;  %v21249_v27 = vld [vmem:[#allocation10 + $0x8e4] ss:$24 sps:$4 sm:$0xff]  }
 0x286   :  { %4344 = vmatpush1.bf16.msra.mxu1 %v21181_v59  ;;  %4140 = vmatprep.subr.bf16.mxu0 %v21186_v60  ;;  %v21244_v59 = vld [vmem:[#allocation10 + $0x2d8] ss:$24 sps:$4 sm:$0xff]  }
 0x287   :  { %4345 = vmatprep.subr.bf16.mxu1 %v21189_v24  ;;  %v2396_v3 = vpop.f32.mrb[12].mxu0  ;;  %v21247_v60 = vld [vmem:[#allocation10 + $0x8e0] ss:$24 sps:$4 sm:$0xff]   ;;  %v21252_v24 = vld [vmem:[#allocation10 + $0x60c] ss:$24 sps:$4 sm:$0xff]  }
 0x288   :  { %v4041_v4 = vpop.f32.mrb[12].mxu1  ;;  %v2397_v37 = vadd.f32 %v2396_v3, %v22885_v61  ;;  %v2398_v9 = vpop.f32.mrb[13].mxu0  ;;  %v21258_v3 = vld [vmem:[#allocation10 + $0x63c] ss:$24 sps:$4 sm:$0xff]  }
 0x289   :  { %v22931_v8 = vadd.f32 %v4041_v4, %v22918_v14  ;;  %v4043_v10 = vpop.f32.mrb[13].mxu1  ;;  %v2399_v11 = vadd.f32 %v2398_v9, %v22889_v63  ;;  %v2400_v16 = vpop.f32.mrb[14].mxu0  ;;  %4141 = vmatpush1.bf16.msra.mxu0 %v21184_v0  ;;  %v21196_v63 = vld [vmem:[#allocation10 + $0x158] ss:$24 sps:$4 sm:$0xff]   ;;  %v21255_v0 = vld [vmem:[#allocation10 + $0x1504] ss:$24 sps:$4 sm:$0xff]  }
 0x28a   :  { %v22935_v13 = vadd.f32 %v4043_v10, %v22923_v49  ;;  %4346 = vmatpush1.bf16.msra.mxu1 %v21187_v1  ;;  %v4045_v17 = vpop.f32.mrb[14].mxu1  ;;  %v2401_v18 = vpop.f32.mrb[15].mxu0  ;;  %4142 = vmatprep.subr.bf16.mxu0 %v21192_v5  ;;  %v22938_v14 = vadd.f32 %v22899_v20, %v2397_v37  ;;  %v21199_v49 = vld [vmem:[#allocation10 + $0x760] ss:$24 sps:$4 sm:$0xff]   ;;  %v21213_v20 = vld [vmem:[#allocation10 + $0x7c4] ss:$24 sps:$4 sm:$0xff]  }
 0x28b   :  { %4347 = vmatprep.subr.bf16.mxu1 %v21195_v2  ;;  %v4046_v61 = vpop.f32.mrb[15].mxu1  ;;  %v22941_v25 = vadd.f32 %v22904_v23, %v2399_v11  ;;  %v21208_v23 = vld [vmem:[#allocation10 + $0x1b8] ss:$24 sps:$4 sm:$0xff]   ;;  %v21250_v5 = vld [vmem:[#allocation10 + $0x608] ss:$24 sps:$4 sm:$0xff]  }
 0x28c   :  { %v4379_v1 = vld [vmem:[#allocation7 + $0x18] sm:$0xff]  ;;  %v21261_v4 = vld [vmem:[#allocation10 + $0x1534] ss:$24 sps:$4 sm:$0xff]   ;;  %v21259_v37 = vld [vmem:[#allocation10 + $0x1530] ss:$24 sps:$4 sm:$0xff]  }
 0x28d   :  { %4143 = vmatpush1.bf16.msra.mxu0 %v21190_v6  ;;  %v21253_v2 = vld [vmem:[#allocation10 + $0x1500] ss:$24 sps:$4 sm:$0xff]   ;;  %v22943_v6 = vpack.c.bf16 %v4379_v1, %v4379_v1  ;;  %v21264_v9 = vld [vmem:[#allocation10 + $0x66c] ss:$24 sps:$4 sm:$0xff]   ;;  %v21319_v1 = vld [vmem:[#allocation10 + $0x1710] ss:$24 sps:$4 sm:$0xff]  }
 0x28e   :  { %4348 = vmatpush1.bf16.msra.mxu1 %v21193_v7  ;;  %4144 = vmatprep.subr.bf16.mxu0 %v21198_v19  ;;  %v21256_v7 = vld [vmem:[#allocation10 + $0x638] ss:$24 sps:$4 sm:$0xff]   ;;  %v21267_v10 = vld [vmem:[#allocation10 + $0x1564] ss:$24 sps:$4 sm:$0xff]   ;;  %v21262_v11 = vld [vmem:[#allocation10 + $0x668] ss:$24 sps:$4 sm:$0xff]  }
 0x28f   :  { %4349 = vmatprep.subr.bf16.mxu1 %v21201_v22  ;;  %v21265_v16 = vld [vmem:[#allocation10 + $0x1560] ss:$24 sps:$4 sm:$0xff]   ;;  %v21273_v17 = vld [vmem:[#allocation10 + $0x1594] ss:$24 sps:$4 sm:$0xff]   ;;  %v21271_v19 = vld [vmem:[#allocation10 + $0x1590] ss:$24 sps:$4 sm:$0xff]  }
 0x290   :  { %v21268_v18 = vld [vmem:[#allocation10 + $0x698] ss:$24 sps:$4 sm:$0xff]   ;;  %v21276_v22 = vld [vmem:[#allocation10 + $0x6cc] ss:$24 sps:$4 sm:$0xff]  }
 0x291   :  { %4145 = vmatpush1.bf16.msra.mxu0 %v21196_v63  ;;  %v21279_v61 = vld [vmem:[#allocation10 + $0x15c4] ss:$24 sps:$4 sm:$0xff]   ;;  %v21277_v63 = vld [vmem:[#allocation10 + $0x15c0] ss:$24 sps:$4 sm:$0xff]  }
 0x292   :  { %4350 = vmatpush1.bf16.msra.mxu1 %v21199_v49  ;;  %4146 = vmatprep.subr.bf16.mxu0 %v21204_v26  ;;  %v21282_v49 = vld [vmem:[#allocation10 + $0x6fc] ss:$24 sps:$4 sm:$0xff]  }
 0x293   :  { %4351 = vmatprep.subr.bf16.mxu1 %v21207_v15  ;;  %v21285_v26 = vld [vmem:[#allocation10 + $0x15f4] ss:$24 sps:$4 sm:$0xff]   ;;  %v21280_v15 = vld [vmem:[#allocation10 + $0x6f8] ss:$24 sps:$4 sm:$0xff]  }
 0x295   :  { %4147 = vmatpush1.bf16.msra.mxu0 %v21202_v28  ;;  %v21283_v28 = vld [vmem:[#allocation10 + $0x15f0] ss:$24 sps:$4 sm:$0xff]  }
 0x296   :  { %4352 = vmatpush1.bf16.msra.mxu1 %v21205_v29  ;;  %4148 = vmatprep.subr.bf16.mxu0 %v21210_v30  ;;  %v21288_v29 = vld [vmem:[#allocation10 + $0x72c] ss:$24 sps:$4 sm:$0xff]  }
 0x297   :  { %4353 = vmatprep.subr.bf16.mxu1 %v21213_v20  ;;  %v21291_v30 = vld [vmem:[#allocation10 + $0x1624] ss:$24 sps:$4 sm:$0xff]  }
 0x299   :  { %4149 = vmatpush1.bf16.msra.mxu0 %v21208_v23  ;;  %v21286_v23 = vld [vmem:[#allocation10 + $0x728] ss:$24 sps:$4 sm:$0xff]  }
 0x29a   :  { %4354 = vmatpush1.bf16.msra.mxu1 %v21211_v32  ;;  %4150 = vmatprep.subr.bf16.mxu0 %v21216_v58  ;;  %v21289_v32 = vld [vmem:[#allocation10 + $0x1620] ss:$24 sps:$4 sm:$0xff]  }
 0x29b   :  { %4355 = vmatprep.subr.bf16.mxu1 %v21219_v34 }
 0x29d   :  { %4151 = vmatpush1.bf16.msra.mxu0 %v21214_v35 }
 0x29e   :  { %4356 = vmatpush1.bf16.msra.mxu1 %v21217_v36  ;;  %4152 = vmatprep.subr.bf16.mxu0 %v21222_v62 }
 0x29f   :  { %4357 = vmatprep.subr.bf16.mxu1 %v21225_v38 }
 0x2a1   :  { %4153 = vmatpush1.bf16.msra.mxu0 %v21220_v40 }
 0x2a2   :  { %4358 = vmatpush1.bf16.msra.mxu1 %v21223_v41  ;;  %4154 = vmatprep.subr.bf16.mxu0 %v21228_v42  ;;  %v21294_v42 = vld [vmem:[#allocation10 + $0x75c] ss:$24 sps:$4 sm:$0xff]  }
 0x2a3   :  { %4359 = vmatprep.subr.bf16.mxu1 %v21231_v33  ;;  %v21297_v33 = vld [vmem:[#allocation10 + $0x1654] ss:$24 sps:$4 sm:$0xff]  }
 0x2a5   :  { %4155 = vmatpush1.bf16.msra.mxu0 %v21226_v43 }
 0x2a6   :  { %4360 = vmatpush1.bf16.msra.mxu1 %v21229_v44  ;;  %4156 = vmatprep.subr.bf16.mxu0 %v21234_v46  ;;  %v21295_v44 = vld [vmem:[#allocation10 + $0x1650] ss:$24 sps:$4 sm:$0xff]   ;;  %v21300_v46 = vld [vmem:[#allocation10 + $0x78c] ss:$24 sps:$4 sm:$0xff]  }
 0x2a7   :  { %4361 = vmatprep.subr.bf16.mxu1 %v21237_v50  ;;  %v21303_v50 = vld [vmem:[#allocation10 + $0x1684] ss:$24 sps:$4 sm:$0xff]  }
 0x2a9   :  { %4157 = vmatpush1.bf16.msra.mxu0 %v21232_v47  ;;  %v21301_v47 = vld [vmem:[#allocation10 + $0x1680] ss:$24 sps:$4 sm:$0xff]  }
 0x2aa   :  { %4362 = vmatpush1.bf16.msra.mxu1 %v21235_v51  ;;  %4158 = vmatprep.subr.bf16.mxu0 %v21240_v53  ;;  %v21306_v51 = vld [vmem:[#allocation10 + $0x7bc] ss:$24 sps:$4 sm:$0xff]  }
 0x2ab   :  { %4363 = vmatprep.subr.bf16.mxu1 %v21243_v54  ;;  %v21309_v53 = vld [vmem:[#allocation10 + $0x16b4] ss:$24 sps:$4 sm:$0xff]   ;;  %v21304_v54 = vld [vmem:[#allocation10 + $0x7b8] ss:$24 sps:$4 sm:$0xff]  }
 0x2ad   :  { %4159 = vmatpush1.bf16.msra.mxu0 %v21238_v56  ;;  %v21307_v56 = vld [vmem:[#allocation10 + $0x16b0] ss:$24 sps:$4 sm:$0xff]  }
 0x2ae   :  { %4364 = vmatpush1.bf16.msra.mxu1 %v21241_v21  ;;  %4160 = vmatprep.subr.bf16.mxu0 %v21246_v57  ;;  %v21312_v21 = vld [vmem:[#allocation10 + $0x7ec] ss:$24 sps:$4 sm:$0xff]  }
 0x2af   :  { %4365 = vmatprep.subr.bf16.mxu1 %v21249_v27  ;;  %v21315_v57 = vld [vmem:[#allocation10 + $0x16e4] ss:$24 sps:$4 sm:$0xff]   ;;  %v21310_v27 = vld [vmem:[#allocation10 + $0x7e8] ss:$24 sps:$4 sm:$0xff]  }
 0x2b1   :  { %4161 = vmatpush1.bf16.msra.mxu0 %v21244_v59  ;;  %v21313_v59 = vld [vmem:[#allocation10 + $0x16e0] ss:$24 sps:$4 sm:$0xff]  }
 0x2b2   :  { %4366 = vmatpush1.bf16.msra.mxu1 %v21247_v60  ;;  %4212 = vmatprep.subr.bf16.mxu0 %v21252_v24  ;;  %v21318_v60 = vld [vmem:[#allocation10 + $0x81c] ss:$24 sps:$4 sm:$0xff]  }
 0x2b3   :  { %6157 = vmatprep.subr.bf16.mxu1 %v21255_v0  ;;  %v21321_v24 = vld [vmem:[#allocation10 + $0x1714] ss:$24 sps:$4 sm:$0xff]   ;;  %v21316_v0 = vld [vmem:[#allocation10 + $0x818] ss:$24 sps:$4 sm:$0xff]  }
 0x2b4   :  { %4163 = vmatmul.mubr.bf16.vlgmr.msra.gmra.mrb[28].mxu0 %v22875_v31  ;;  %v21270_v31 = vld [vmem:[#allocation10 + $0x69c] ss:$24 sps:$4 sm:$0xff]  }
 0x2b5   :  { %4368 = vmatmul.mubr.bf16.vlgmr.msra.gmra.mrb[28].mxu1 %v22891_v52  ;;  %4213 = vmatpush1.bf16.msra.mxu0 %v21250_v5  ;;  %v21324_v5 = vld [vmem:[#allocation10 + $0x84c] ss:$24 sps:$4 sm:$0xff]  }
 0x2b6   :  { %6158 = vmatpush1.bf16.msra.mxu1 %v21253_v2  ;;  %4214 = vmatprep.subr.bf16.mxu0 %v21258_v3  ;;  %v21327_v2 = vld [vmem:[#allocation10 + $0x1744] ss:$24 sps:$4 sm:$0xff]   ;;  %v21322_v3 = vld [vmem:[#allocation10 + $0x848] ss:$24 sps:$4 sm:$0xff]  }
 0x2b7   :  { %6159 = vmatprep.subr.bf16.mxu1 %v21261_v4  ;;  %4244 = vmatprep.mubr.bf16.mxu0 %v22877_v39  ;;  %v21274_v39 = vld [vmem:[#allocation10 + $0x6c8] ss:$24 sps:$4 sm:$0xff]  }
 0x2b8   :  { %6189 = vmatprep.mubr.bf16.mxu1 %v22943_v6  ;;  %v21325_v4 = vld [vmem:[#allocation10 + $0x1740] ss:$24 sps:$4 sm:$0xff]  }
 0x2b9   :  { %4215 = vmatpush1.bf16.msra.mxu0 %v21256_v7  ;;  %v21330_v7 = vld [vmem:[#allocation10 + $0x87c] ss:$24 sps:$4 sm:$0xff]  }
 0x2ba   :  { %6160 = vmatpush1.bf16.msra.mxu1 %v21259_v37  ;;  %4216 = vmatprep.subr.bf16.mxu0 %v21264_v9  ;;  %v21333_v37 = vld [vmem:[#allocation10 + $0x1774] ss:$24 sps:$4 sm:$0xff]   ;;  %v21328_v9 = vld [vmem:[#allocation10 + $0x878] ss:$24 sps:$4 sm:$0xff]  }
 0x2bb   :  { %6161 = vmatprep.subr.bf16.mxu1 %v21267_v10  ;;  %v21331_v10 = vld [vmem:[#allocation10 + $0x1770] ss:$24 sps:$4 sm:$0xff]  }
 0x2bd   :  { %4217 = vmatpush1.bf16.msra.mxu0 %v21262_v11  ;;  %v21336_v11 = vld [vmem:[#allocation10 + $0x8ac] ss:$24 sps:$4 sm:$0xff]  }
 0x2be   :  { %6162 = vmatpush1.bf16.msra.mxu1 %v21265_v16  ;;  %4218 = vmatprep.subr.bf16.mxu0 %v21270_v31  ;;  %v21339_v16 = vld [vmem:[#allocation10 + $0x17a4] ss:$24 sps:$4 sm:$0xff]   ;;  %v21334_v31 = vld [vmem:[#allocation10 + $0x8a8] ss:$24 sps:$4 sm:$0xff]  }
 0x2bf   :  { %6163 = vmatprep.subr.bf16.mxu1 %v21273_v17  ;;  %v21337_v17 = vld [vmem:[#allocation10 + $0x17a0] ss:$24 sps:$4 sm:$0xff]  }
 0x2c1   :  { %4219 = vmatpush1.bf16.msra.mxu0 %v21268_v18  ;;  %v21342_v18 = vld [vmem:[#allocation10 + $0x8dc] ss:$24 sps:$4 sm:$0xff]  }
 0x2c2   :  { %6164 = vmatpush1.bf16.msra.mxu1 %v21271_v19  ;;  %4220 = vmatprep.subr.bf16.mxu0 %v21276_v22  ;;  %v21345_v19 = vld [vmem:[#allocation10 + $0x17d4] ss:$24 sps:$4 sm:$0xff]   ;;  %v21340_v22 = vld [vmem:[#allocation10 + $0x8d8] ss:$24 sps:$4 sm:$0xff]  }
 0x2c3   :  { %6165 = vmatprep.subr.bf16.mxu1 %v21279_v61  ;;  %v21343_v61 = vld [vmem:[#allocation10 + $0x17d0] ss:$24 sps:$4 sm:$0xff]  }
 0x2c5   :  { %4221 = vmatpush1.bf16.msra.mxu0 %v21274_v39  ;;  %v21348_v39 = vld [vmem:[#allocation10 + $0x314] ss:$24 sps:$4 sm:$0xff]  }
 0x2c6   :  { %6166 = vmatpush1.bf16.msra.mxu1 %v21277_v63  ;;  %4222 = vmatprep.subr.bf16.mxu0 %v21282_v49  ;;  %v4378_v63 = vld [vmem:[#allocation7 + $0x10] sm:$0xff]  ;;  %v21351_v49 = vld [vmem:[#allocation10 + $0x120c] ss:$24 sps:$4 sm:$0xff]  }
 0x2c7   :  { %6167 = vmatprep.subr.bf16.mxu1 %v21285_v26  ;;  %v2478_v20 = vpop.f32.mrb[16].mxu0  ;;  %v4377_v26 = vld [vmem:[#allocation7 + $0x8] sm:$0xff] }
 0x2c8   :  { %v22949_v58 = vpop.f32.mrb[16].mxu1  ;;  %v22952_v34 = vadd.f32 %v22915_v45, %v2478_v20  ;;  %v2480_v35 = vpop.f32.mrb[17].mxu0  ;;  %v21292_v45 = vld [vmem:[#allocation10 + $0x758] ss:$24 sps:$4 sm:$0xff]   ;;  %v21357_v20 = vld [vmem:[#allocation10 + $0x123c] ss:$24 sps:$4 sm:$0xff]  }
 0x2c9   :  { %v22954_v36 = vpop.f32.mrb[17].mxu1  ;;  %v22957_v62 = vadd.f32 %v22920_v48, %v2480_v35  ;;  %v2482_v38 = vpop.f32.mrb[18].mxu0  ;;  %4223 = vmatpush1.bf16.msra.mxu0 %v21280_v15  ;;  %v21298_v48 = vld [vmem:[#allocation10 + $0x788] ss:$24 sps:$4 sm:$0xff]   ;;  %v21355_v35 = vld [vmem:[#allocation10 + $0x1238] ss:$24 sps:$4 sm:$0xff]  }
 0x2ca   :  { %6168 = vmatpush1.bf16.msra.mxu1 %v21283_v28  ;;  %v4127_v40 = vpop.f32.mrb[18].mxu1  ;;  %v2483_v41 = vpop.f32.mrb[19].mxu0  ;;  %4224 = vmatprep.subr.bf16.mxu0 %v21288_v29  ;;  %v21346_v15 = vld [vmem:[#allocation10 + $0x310] ss:$24 sps:$4 sm:$0xff]   ;;  %v22959_v28 = vpack.c.bf16 %v4378_v63, %v4378_v63  ;;  %v21360_v38 = vld [vmem:[#allocation10 + $0x374] ss:$24 sps:$4 sm:$0xff]  }
 0x2cb   :  { %6169 = vmatprep.subr.bf16.mxu1 %v21291_v30  ;;  %v4128_v43 = vpop.f32.mrb[19].mxu1  ;;  %v21349_v29 = vld [vmem:[#allocation10 + $0x1208] ss:$24 sps:$4 sm:$0xff]   ;;  %v21354_v30 = vld [vmem:[#allocation10 + $0x344] ss:$24 sps:$4 sm:$0xff]  }
 0x2cc   :  { %v21363_v40 = vld [vmem:[#allocation10 + $0x126c] ss:$24 sps:$4 sm:$0xff]   ;;  %v21358_v41 = vld [vmem:[#allocation10 + $0x370] ss:$24 sps:$4 sm:$0xff]   ;;  %v21364_v43 = vld [vmem:[#allocation10 + $0x3a0] ss:$24 sps:$4 sm:$0xff]  }
 0x2cd   :  { %4225 = vmatpush1.bf16.msra.mxu0 %v21286_v23  ;;  %v22961_v23 = vpack.c.bf16 %v4377_v26, %v4377_v26  ;;  %v21409_v63 = vld [vmem:[#allocation10 + $0x13e8] ss:$24 sps:$4 sm:$0xff]   ;;  %v21417_v26 = vld [vmem:[#allocation10 + $0x141c] ss:$24 sps:$4 sm:$0xff]  }
 0x2ce   :  { %6170 = vmatpush1.bf16.msra.mxu1 %v21289_v32  ;;  %4226 = vmatprep.subr.bf16.mxu0 %v21294_v42  ;;  %v21352_v32 = vld [vmem:[#allocation10 + $0x340] ss:$24 sps:$4 sm:$0xff]  }
 0x2cf   :  { %6171 = vmatprep.subr.bf16.mxu1 %v21297_v33  ;;  %v21361_v42 = vld [vmem:[#allocation10 + $0x1268] ss:$24 sps:$4 sm:$0xff]   ;;  %v21369_v33 = vld [vmem:[#allocation10 + $0x129c] ss:$24 sps:$4 sm:$0xff]  }
 0x2d1   :  { %4227 = vmatpush1.bf16.msra.mxu0 %v21292_v45  ;;  %v21367_v45 = vld [vmem:[#allocation10 + $0x1298] ss:$24 sps:$4 sm:$0xff]  }
 0x2d2   :  { %6172 = vmatpush1.bf16.msra.mxu1 %v21295_v44  ;;  %4228 = vmatprep.subr.bf16.mxu0 %v21300_v46  ;;  %v21372_v44 = vld [vmem:[#allocation10 + $0x3d4] ss:$24 sps:$4 sm:$0xff]  }
 0x2d3   :  { %6173 = vmatprep.subr.bf16.mxu1 %v21303_v50  ;;  %v21375_v46 = vld [vmem:[#allocation10 + $0x12cc] ss:$24 sps:$4 sm:$0xff]   ;;  %v21373_v50 = vld [vmem:[#allocation10 + $0x12c8] ss:$24 sps:$4 sm:$0xff]  }
 0x2d5   :  { %4229 = vmatpush1.bf16.msra.mxu0 %v21298_v48  ;;  %v21378_v48 = vld [vmem:[#allocation10 + $0x404] ss:$24 sps:$4 sm:$0xff]  }
 0x2d6   :  { %6174 = vmatpush1.bf16.msra.mxu1 %v21301_v47  ;;  %4230 = vmatprep.subr.bf16.mxu0 %v21306_v51  ;;  %v21381_v47 = vld [vmem:[#allocation10 + $0x12fc] ss:$24 sps:$4 sm:$0xff]   ;;  %v21376_v51 = vld [vmem:[#allocation10 + $0x400] ss:$24 sps:$4 sm:$0xff]  }
 0x2d7   :  { %6175 = vmatprep.subr.bf16.mxu1 %v21309_v53  ;;  %v21379_v53 = vld [vmem:[#allocation10 + $0x12f8] ss:$24 sps:$4 sm:$0xff]  }
 0x2d9   :  { %4231 = vmatpush1.bf16.msra.mxu0 %v21304_v54  ;;  %v21384_v54 = vld [vmem:[#allocation10 + $0x434] ss:$24 sps:$4 sm:$0xff]  }
 0x2da   :  { %6176 = vmatpush1.bf16.msra.mxu1 %v21307_v56  ;;  %4232 = vmatprep.subr.bf16.mxu0 %v21312_v21  ;;  %v21387_v56 = vld [vmem:[#allocation10 + $0x132c] ss:$24 sps:$4 sm:$0xff]  }
 0x2db   :  { %6177 = vmatprep.subr.bf16.mxu1 %v21315_v57  ;;  %v21382_v57 = vld [vmem:[#allocation10 + $0x430] ss:$24 sps:$4 sm:$0xff]  }
 0x2dd   :  { %4233 = vmatpush1.bf16.msra.mxu0 %v21310_v27  ;;  %v21385_v27 = vld [vmem:[#allocation10 + $0x1328] ss:$24 sps:$4 sm:$0xff]  }
 0x2de   :  { %6178 = vmatpush1.bf16.msra.mxu1 %v21313_v59  ;;  %4234 = vmatprep.subr.bf16.mxu0 %v21318_v60 }
 0x2df   :  { %6179 = vmatprep.subr.bf16.mxu1 %v21321_v24 }
 0x2e1   :  { %4235 = vmatpush1.bf16.msra.mxu0 %v21316_v0 }
 0x2e2   :  { %6180 = vmatpush1.bf16.msra.mxu1 %v21319_v1  ;;  %4236 = vmatprep.subr.bf16.mxu0 %v21324_v5 }
 0x2e3   :  { %6181 = vmatprep.subr.bf16.mxu1 %v21327_v2 }
 0x2e5   :  { %4237 = vmatpush1.bf16.msra.mxu0 %v21322_v3 }
 0x2e6   :  { %6182 = vmatpush1.bf16.msra.mxu1 %v21325_v4  ;;  %4238 = vmatprep.subr.bf16.mxu0 %v21330_v7  ;;  %v21390_v4 = vld [vmem:[#allocation10 + $0x464] ss:$24 sps:$4 sm:$0xff]  }
 0x2e7   :  { %6183 = vmatprep.subr.bf16.mxu1 %v21333_v37  ;;  %v21393_v7 = vld [vmem:[#allocation10 + $0x135c] ss:$24 sps:$4 sm:$0xff]  }
 0x2e9   :  { %4239 = vmatpush1.bf16.msra.mxu0 %v21328_v9  ;;  %v21391_v9 = vld [vmem:[#allocation10 + $0x1358] ss:$24 sps:$4 sm:$0xff]  }
 0x2ea   :  { %6184 = vmatpush1.bf16.msra.mxu1 %v21331_v10  ;;  %4240 = vmatprep.subr.bf16.mxu0 %v21336_v11  ;;  %v21396_v10 = vld [vmem:[#allocation10 + $0x494] ss:$24 sps:$4 sm:$0xff]  }
 0x2eb   :  { %6185 = vmatprep.subr.bf16.mxu1 %v21339_v16  ;;  %v21399_v11 = vld [vmem:[#allocation10 + $0x138c] ss:$24 sps:$4 sm:$0xff]   ;;  %v21397_v16 = vld [vmem:[#allocation10 + $0x1388] ss:$24 sps:$4 sm:$0xff]  }
 0x2ed   :  { %4241 = vmatpush1.bf16.msra.mxu0 %v21334_v31  ;;  %v21402_v31 = vld [vmem:[#allocation10 + $0x4c4] ss:$24 sps:$4 sm:$0xff]  }
 0x2ee   :  { %6186 = vmatpush1.bf16.msra.mxu1 %v21337_v17  ;;  %4242 = vmatprep.subr.bf16.mxu0 %v21342_v18  ;;  %v21405_v17 = vld [vmem:[#allocation10 + $0x13bc] ss:$24 sps:$4 sm:$0xff]   ;;  %v21400_v18 = vld [vmem:[#allocation10 + $0x4c0] ss:$24 sps:$4 sm:$0xff]  }
 0x2ef   :  { %6187 = vmatprep.subr.bf16.mxu1 %v21345_v19  ;;  %v21403_v19 = vld [vmem:[#allocation10 + $0x13b8] ss:$24 sps:$4 sm:$0xff]  }
 0x2f1   :  { %4243 = vmatpush1.bf16.msra.mxu0 %v21340_v22  ;;  %v21408_v22 = vld [vmem:[#allocation10 + $0x4f4] ss:$24 sps:$4 sm:$0xff]  }
 0x2f2   :  { %6188 = vmatpush1.bf16.msra.mxu1 %v21343_v61  ;;  %4294 = vmatprep.subr.bf16.mxu0 %v21348_v39  ;;  %v21411_v61 = vld [vmem:[#allocation10 + $0x13ec] ss:$24 sps:$4 sm:$0xff]   ;;  %v21406_v39 = vld [vmem:[#allocation10 + $0x4f0] ss:$24 sps:$4 sm:$0xff]  }
 0x2f3   :  { %6239 = vmatprep.subr.bf16.mxu1 %v21351_v49  ;;  %v21414_v49 = vld [vmem:[#allocation10 + $0x524] ss:$24 sps:$4 sm:$0xff]  }
 0x2f4   :  { %4245 = vmatmul.mubr.bf16.vlgmr.msra.gmra.mrb[32].mxu0 %v22891_v52  ;;  %v21366_v52 = vld [vmem:[#allocation10 + $0x3a4] ss:$24 sps:$4 sm:$0xff]  }
 0x2f5   :  { %6190 = vmatmul.mubr.bf16.vlgmr.msra.gmra.mrb[32].mxu1 %v22959_v28  ;;  %4295 = vmatpush1.bf16.msra.mxu0 %v21346_v15  ;;  %v21412_v15 = vld [vmem:[#allocation10 + $0x520] ss:$24 sps:$4 sm:$0xff]  }
 0x2f6   :  { %6240 = vmatpush1.bf16.msra.mxu1 %v21349_v29  ;;  %4296 = vmatprep.subr.bf16.mxu0 %v21354_v30  ;;  %v21415_v29 = vld [vmem:[#allocation10 + $0x1418] ss:$24 sps:$4 sm:$0xff]   ;;  %v21420_v30 = vld [vmem:[#allocation10 + $0x554] ss:$24 sps:$4 sm:$0xff]  }
 0x2f7   :  { %6241 = vmatprep.subr.bf16.mxu1 %v21357_v20  ;;  %4326 = vmatprep.mubr.bf16.mxu0 %v22893_v55  ;;  %v21370_v55 = vld [vmem:[#allocation10 + $0x3d0] ss:$24 sps:$4 sm:$0xff]   ;;  %v21423_v20 = vld [vmem:[#allocation10 + $0x144c] ss:$24 sps:$4 sm:$0xff]  }
 0x2f8   :  { %6271 = vmatprep.mubr.bf16.mxu1 %v22961_v23 }
 0x2f9   :  { %4297 = vmatpush1.bf16.msra.mxu0 %v21352_v32  ;;  %v21418_v32 = vld [vmem:[#allocation10 + $0x550] ss:$24 sps:$4 sm:$0xff]  }
 0x2fa   :  { %6242 = vmatpush1.bf16.msra.mxu1 %v21355_v35  ;;  %4298 = vmatprep.subr.bf16.mxu0 %v21360_v38  ;;  %v21421_v35 = vld [vmem:[#allocation10 + $0x1448] ss:$24 sps:$4 sm:$0xff]   ;;  %v21426_v38 = vld [vmem:[#allocation10 + $0x584] ss:$24 sps:$4 sm:$0xff]  }
 0x2fb   :  { %6243 = vmatprep.subr.bf16.mxu1 %v21363_v40  ;;  %v21429_v40 = vld [vmem:[#allocation10 + $0x147c] ss:$24 sps:$4 sm:$0xff]  }
 0x2fd   :  { %4299 = vmatpush1.bf16.msra.mxu0 %v21358_v41  ;;  %v21424_v41 = vld [vmem:[#allocation10 + $0x580] ss:$24 sps:$4 sm:$0xff]  }
 0x2fe   :  { %6244 = vmatpush1.bf16.msra.mxu1 %v21361_v42  ;;  %4300 = vmatprep.subr.bf16.mxu0 %v21366_v52  ;;  %v21427_v42 = vld [vmem:[#allocation10 + $0x1478] ss:$24 sps:$4 sm:$0xff]   ;;  %v21432_v52 = vld [vmem:[#allocation10 + $0x5b4] ss:$24 sps:$4 sm:$0xff]  }
 0x2ff   :  { %6245 = vmatprep.subr.bf16.mxu1 %v21369_v33  ;;  %v21435_v33 = vld [vmem:[#allocation10 + $0x14ac] ss:$24 sps:$4 sm:$0xff]  }
 0x301   :  { %4301 = vmatpush1.bf16.msra.mxu0 %v21364_v43  ;;  %v21430_v43 = vld [vmem:[#allocation10 + $0x5b0] ss:$24 sps:$4 sm:$0xff]  }
 0x302   :  { %6246 = vmatpush1.bf16.msra.mxu1 %v21367_v45  ;;  %4302 = vmatprep.subr.bf16.mxu0 %v21372_v44  ;;  %v21433_v45 = vld [vmem:[#allocation10 + $0x14a8] ss:$24 sps:$4 sm:$0xff]   ;;  %v21438_v44 = vld [vmem:[#allocation10 + $0x5e4] ss:$24 sps:$4 sm:$0xff]  }
 0x303   :  { %6247 = vmatprep.subr.bf16.mxu1 %v21375_v46  ;;  %v21441_v46 = vld [vmem:[#allocation10 + $0x14dc] ss:$24 sps:$4 sm:$0xff]  }
 0x305   :  { %4303 = vmatpush1.bf16.msra.mxu0 %v21370_v55  ;;  %v21436_v55 = vld [vmem:[#allocation10 + $0x5e0] ss:$24 sps:$4 sm:$0xff]  }
 0x306   :  { %6248 = vmatpush1.bf16.msra.mxu1 %v21373_v50  ;;  %4304 = vmatprep.subr.bf16.mxu0 %v21378_v48  ;;  %v21439_v50 = vld [vmem:[#allocation10 + $0x14d8] ss:$24 sps:$4 sm:$0xff]   ;;  %v21444_v48 = vld [vmem:[#allocation10 + $0x1204] ss:$24 sps:$4 sm:$0xff]  }
 0x307   :  { %6249 = vmatprep.subr.bf16.mxu1 %v21381_v47  ;;  %v2560_v21 = vpop.f32.mrb[20].mxu0  ;;  %v4376_v47 = vld [vmem:[#allocation7] sm:$0xff] }
 0x308   :  { %v22967_v59 = vpop.f32.mrb[20].mxu1  ;;  %v22970_v60 = vadd.f32 %v2560_v21, %v22952_v34  ;;  %v2562_v24 = vpop.f32.mrb[21].mxu0  ;;  %v21388_v34 = vld [vmem:[#allocation10 + $0x460] ss:$24 sps:$4 sm:$0xff]  }
 0x309   :  { %v22972_v0 = vpop.f32.mrb[21].mxu1  ;;  %v22975_v1 = vadd.f32 %v2562_v24, %v22957_v62  ;;  %v2564_v5 = vpop.f32.mrb[22].mxu0  ;;  %4305 = vmatpush1.bf16.msra.mxu0 %v21376_v51  ;;  %v21394_v62 = vld [vmem:[#allocation10 + $0x490] ss:$24 sps:$4 sm:$0xff]   ;;  %v21447_v51 = vld [vmem:[#allocation10 + $0x180c] ss:$24 sps:$4 sm:$0xff]  }
 0x30a   :  { %6250 = vmatpush1.bf16.msra.mxu1 %v21379_v53  ;;  %v4209_v2 = vpop.f32.mrb[22].mxu1  ;;  %v2565_v3 = vpop.f32.mrb[23].mxu0  ;;  %4306 = vmatprep.subr.bf16.mxu0 %v21384_v54  ;;  %v4381_v53 = vld [vmem:[#allocation7 + $0x28] sm:$0xff]  ;;  %v21442_v54 = vld [vmem:[#allocation10 + $0x1200] ss:$24 sps:$4 sm:$0xff]  }
 0x30b   :  { %6251 = vmatprep.subr.bf16.mxu1 %v21387_v56  ;;  %v4210_v37 = vpop.f32.mrb[23].mxu1  ;;  %v22977_v56 = vpack.c.bf16 %v4376_v47, %v4376_v47  ;;  %v21445_v21 = vld [vmem:[#allocation10 + $0x1808] ss:$24 sps:$4 sm:$0xff]   ;;  %v22979_v24 = vpack.c.bf16 %v4381_v53, %v4381_v53  ;;  %v21451_v2 = vld [vmem:[#allocation10 + $0x1838] ss:$24 sps:$4 sm:$0xff]  }
 0x30c   :  { %v21448_v5 = vld [vmem:[#allocation10 + $0x1230] ss:$24 sps:$4 sm:$0xff]   ;;  %v21456_v3 = vld [vmem:[#allocation10 + $0x1264] ss:$24 sps:$4 sm:$0xff]   ;;  %v21502_v53 = vld [vmem:[#allocation10 + $0x13e0] ss:$24 sps:$4 sm:$0xff]  }
 0x30d   :  { %4307 = vmatpush1.bf16.msra.mxu0 %v21382_v57  ;;  %v21450_v57 = vld [vmem:[#allocation10 + $0x1234] ss:$24 sps:$4 sm:$0xff]   ;;  %v21457_v37 = vld [vmem:[#allocation10 + $0x1868] ss:$24 sps:$4 sm:$0xff]   ;;  %v21504_v47 = vld [vmem:[#allocation10 + $0x13e4] ss:$24 sps:$4 sm:$0xff]  }
 0x30e   :  { %6252 = vmatpush1.bf16.msra.mxu1 %v21385_v27  ;;  %4308 = vmatprep.subr.bf16.mxu0 %v21390_v4  ;;  %v21453_v27 = vld [vmem:[#allocation10 + $0x183c] ss:$24 sps:$4 sm:$0xff]   ;;  %v21459_v4 = vld [vmem:[#allocation10 + $0x186c] ss:$24 sps:$4 sm:$0xff]  }
 0x30f   :  { %6253 = vmatprep.subr.bf16.mxu1 %v21393_v7  ;;  %v21454_v7 = vld [vmem:[#allocation10 + $0x1260] ss:$24 sps:$4 sm:$0xff]  }
 0x311   :  { %4309 = vmatpush1.bf16.msra.mxu0 %v21388_v34  ;;  %v21462_v34 = vld [vmem:[#allocation10 + $0x1294] ss:$24 sps:$4 sm:$0xff]  }
 0x312   :  { %6254 = vmatpush1.bf16.msra.mxu1 %v21391_v9  ;;  %4310 = vmatprep.subr.bf16.mxu0 %v21396_v10  ;;  %v21460_v9 = vld [vmem:[#allocation10 + $0x1290] ss:$24 sps:$4 sm:$0xff]  }
 0x313   :  { %6255 = vmatprep.subr.bf16.mxu1 %v21399_v11  ;;  %v21463_v10 = vld [vmem:[#allocation10 + $0x1898] ss:$24 sps:$4 sm:$0xff]   ;;  %v21468_v11 = vld [vmem:[#allocation10 + $0x12c4] ss:$24 sps:$4 sm:$0xff]  }
 0x315   :  { %4311 = vmatpush1.bf16.msra.mxu0 %v21394_v62  ;;  %v21471_v62 = vld [vmem:[#allocation10 + $0x18cc] ss:$24 sps:$4 sm:$0xff]  }
 0x316   :  { %6256 = vmatpush1.bf16.msra.mxu1 %v21397_v16  ;;  %4312 = vmatprep.subr.bf16.mxu0 %v21402_v31  ;;  %v21466_v16 = vld [vmem:[#allocation10 + $0x12c0] ss:$24 sps:$4 sm:$0xff]  }
 0x317   :  { %6257 = vmatprep.subr.bf16.mxu1 %v21405_v17  ;;  %v21469_v31 = vld [vmem:[#allocation10 + $0x18c8] ss:$24 sps:$4 sm:$0xff]   ;;  %v21474_v17 = vld [vmem:[#allocation10 + $0x12f4] ss:$24 sps:$4 sm:$0xff]  }
 0x319   :  { %4313 = vmatpush1.bf16.msra.mxu0 %v21400_v18  ;;  %v21477_v18 = vld [vmem:[#allocation10 + $0x18fc] ss:$24 sps:$4 sm:$0xff]  }
 0x31a   :  { %6258 = vmatpush1.bf16.msra.mxu1 %v21403_v19  ;;  %4314 = vmatprep.subr.bf16.mxu0 %v21408_v22  ;;  %v21472_v19 = vld [vmem:[#allocation10 + $0x12f0] ss:$24 sps:$4 sm:$0xff]  }
 0x31b   :  { %6259 = vmatprep.subr.bf16.mxu1 %v21411_v61  ;;  %v21475_v22 = vld [vmem:[#allocation10 + $0x18f8] ss:$24 sps:$4 sm:$0xff]   ;;  %v21480_v61 = vld [vmem:[#allocation10 + $0x1324] ss:$24 sps:$4 sm:$0xff]  }
 0x31d   :  { %4315 = vmatpush1.bf16.msra.mxu0 %v21406_v39  ;;  %v21483_v39 = vld [vmem:[#allocation10 + $0x192c] ss:$24 sps:$4 sm:$0xff]  }
 0x31e   :  { %6260 = vmatpush1.bf16.msra.mxu1 %v21409_v63  ;;  %4316 = vmatprep.subr.bf16.mxu0 %v21414_v49 }
 0x31f   :  { %6261 = vmatprep.subr.bf16.mxu1 %v21417_v26  ;;  %v21478_v26 = vld [vmem:[#allocation10 + $0x1320] ss:$24 sps:$4 sm:$0xff]  }
 0x321   :  { %4317 = vmatpush1.bf16.msra.mxu0 %v21412_v15 }
 0x322   :  { %6262 = vmatpush1.bf16.msra.mxu1 %v21415_v29  ;;  %4318 = vmatprep.subr.bf16.mxu0 %v21420_v30 }
 0x323   :  { %6263 = vmatprep.subr.bf16.mxu1 %v21423_v20 }
 0x325   :  { %4319 = vmatpush1.bf16.msra.mxu0 %v21418_v32 }
 0x326   :  { %6264 = vmatpush1.bf16.msra.mxu1 %v21421_v35  ;;  %4320 = vmatprep.subr.bf16.mxu0 %v21426_v38 }
 0x327   :  { %6265 = vmatprep.subr.bf16.mxu1 %v21429_v40  ;;  %v21481_v40 = vld [vmem:[#allocation10 + $0x1928] ss:$24 sps:$4 sm:$0xff]  }
 0x329   :  { %4321 = vmatpush1.bf16.msra.mxu0 %v21424_v41 }
 0x32a   :  { %6266 = vmatpush1.bf16.msra.mxu1 %v21427_v42  ;;  %4322 = vmatprep.subr.bf16.mxu0 %v21432_v52 }
 0x32b   :  { %6267 = vmatprep.subr.bf16.mxu1 %v21435_v33 }
 0x32d   :  { %4323 = vmatpush1.bf16.msra.mxu0 %v21430_v43 }
 0x32e   :  { %6268 = vmatpush1.bf16.msra.mxu1 %v21433_v45  ;;  %4324 = vmatprep.subr.bf16.mxu0 %v21438_v44  ;;  %v21492_v45 = vld [vmem:[#allocation10 + $0x1384] ss:$24 sps:$4 sm:$0xff]  }
 0x32f   :  { %6269 = vmatprep.subr.bf16.mxu1 %v21441_v46  ;;  %v21495_v44 = vld [vmem:[#allocation10 + $0x198c] ss:$24 sps:$4 sm:$0xff]   ;;  %v21493_v46 = vld [vmem:[#allocation10 + $0x1988] ss:$24 sps:$4 sm:$0xff]  }
 0x331   :  { %4325 = vmatpush1.bf16.msra.mxu0 %v21436_v55  ;;  %v21498_v55 = vld [vmem:[#allocation10 + $0x13b4] ss:$24 sps:$4 sm:$0xff]  }
 0x332   :  { %6270 = vmatpush1.bf16.msra.mxu1 %v21439_v50  ;;  %6116 = vmatprep.subr.bf16.mxu0 %v21444_v48  ;;  %v21501_v50 = vld [vmem:[#allocation10 + $0x19bc] ss:$24 sps:$4 sm:$0xff]   ;;  %v21499_v48 = vld [vmem:[#allocation10 + $0x19b8] ss:$24 sps:$4 sm:$0xff]  }
 0x333   :  { %6321 = vmatprep.subr.bf16.mxu1 %v21447_v51  ;;  %v21507_v51 = vld [vmem:[#allocation10 + $0x19ec] ss:$24 sps:$4 sm:$0xff]  }
 0x334   :  { %4327 = vmatmul.mubr.bf16.vlgmr.msra.gmra.mrb[36].mxu0 %v22909_v12  ;;  %v21465_v12 = vld [vmem:[#allocation10 + $0x189c] ss:$24 sps:$4 sm:$0xff]  }
 0x335   :  { %6272 = vmatmul.mubr.bf16.vlgmr.msra.gmra.mrb[36].mxu1 %v22977_v56  ;;  %6117 = vmatpush1.bf16.msra.mxu0 %v21442_v54  ;;  %v21505_v54 = vld [vmem:[#allocation10 + $0x19e8] ss:$24 sps:$4 sm:$0xff]  }
 0x336   :  { %6322 = vmatpush1.bf16.msra.mxu1 %v21445_v21  ;;  %6118 = vmatprep.subr.bf16.mxu0 %v21450_v57  ;;  %v21510_v21 = vld [vmem:[#allocation10 + $0x1414] ss:$24 sps:$4 sm:$0xff]  }
 0x337   :  { %6323 = vmatprep.subr.bf16.mxu1 %v21453_v27  ;;  %6148 = vmatprep.mubr.bf16.mxu0 %v22961_v23  ;;  %v21513_v57 = vld [vmem:[#allocation10 + $0x1a1c] ss:$24 sps:$4 sm:$0xff]   ;;  %v21508_v27 = vld [vmem:[#allocation10 + $0x1410] ss:$24 sps:$4 sm:$0xff]  }
 0x338   :  { %6353 = vmatprep.mubr.bf16.mxu1 %v22979_v24 }
 0x339   :  { %6119 = vmatpush1.bf16.msra.mxu0 %v21448_v5  ;;  %v21511_v5 = vld [vmem:[#allocation10 + $0x1a18] ss:$24 sps:$4 sm:$0xff]  }
 0x33a   :  { %6324 = vmatpush1.bf16.msra.mxu1 %v21451_v2  ;;  %6120 = vmatprep.subr.bf16.mxu0 %v21456_v3  ;;  %v21516_v2 = vld [vmem:[#allocation10 + $0x1444] ss:$24 sps:$4 sm:$0xff]  }
 0x33b   :  { %6325 = vmatprep.subr.bf16.mxu1 %v21459_v4  ;;  %v21519_v3 = vld [vmem:[#allocation10 + $0x1a4c] ss:$24 sps:$4 sm:$0xff]   ;;  %v21514_v4 = vld [vmem:[#allocation10 + $0x1440] ss:$24 sps:$4 sm:$0xff]  }
 0x33d   :  { %6121 = vmatpush1.bf16.msra.mxu0 %v21454_v7  ;;  %v21517_v7 = vld [vmem:[#allocation10 + $0x1a48] ss:$24 sps:$4 sm:$0xff]  }
 0x33e   :  { %6326 = vmatpush1.bf16.msra.mxu1 %v21457_v37  ;;  %6122 = vmatprep.subr.bf16.mxu0 %v21462_v34  ;;  %v21522_v37 = vld [vmem:[#allocation10 + $0x1474] ss:$24 sps:$4 sm:$0xff]  }
 0x33f   :  { %6327 = vmatprep.subr.bf16.mxu1 %v21465_v12  ;;  %v21525_v34 = vld [vmem:[#allocation10 + $0x1a7c] ss:$24 sps:$4 sm:$0xff]   ;;  %v21520_v12 = vld [vmem:[#allocation10 + $0x1470] ss:$24 sps:$4 sm:$0xff]  }
 0x341   :  { %6123 = vmatpush1.bf16.msra.mxu0 %v21460_v9  ;;  %v21523_v9 = vld [vmem:[#allocation10 + $0x1a78] ss:$24 sps:$4 sm:$0xff]  }
 0x342   :  { %6328 = vmatpush1.bf16.msra.mxu1 %v21463_v10  ;;  %6124 = vmatprep.subr.bf16.mxu0 %v21468_v11  ;;  %v21528_v10 = vld [vmem:[#allocation10 + $0x14a4] ss:$24 sps:$4 sm:$0xff]  }
 0x343   :  { %6329 = vmatprep.subr.bf16.mxu1 %v21471_v62  ;;  %v21531_v11 = vld [vmem:[#allocation10 + $0x1aac] ss:$24 sps:$4 sm:$0xff]   ;;  %v21526_v62 = vld [vmem:[#allocation10 + $0x14a0] ss:$24 sps:$4 sm:$0xff]  }
 0x345   :  { %6125 = vmatpush1.bf16.msra.mxu0 %v21466_v16  ;;  %v21529_v16 = vld [vmem:[#allocation10 + $0x1aa8] ss:$24 sps:$4 sm:$0xff]  }
 0x346   :  { %6330 = vmatpush1.bf16.msra.mxu1 %v21469_v31  ;;  %6126 = vmatprep.subr.bf16.mxu0 %v21474_v17  ;;  %v21534_v31 = vld [vmem:[#allocation10 + $0x14d4] ss:$24 sps:$4 sm:$0xff]  }
 0x347   :  { %6331 = vmatprep.subr.bf16.mxu1 %v21477_v18  ;;  %v4082_v63 = vpop.f32.mrb[24].mxu0  ;;  %v21537_v17 = vld [vmem:[#allocation10 + $0x1adc] ss:$24 sps:$4 sm:$0xff]   ;;  %v21532_v18 = vld [vmem:[#allocation10 + $0x14d0] ss:$24 sps:$4 sm:$0xff]  }
 0x348   :  { %v4287_v49 = vpop.f32.mrb[24].mxu1  ;;  %v4083_v15 = vadd.f32 %v4082_v63, %v22931_v8  ;;  %v4084_v30 = vpop.f32.mrb[25].mxu0  ;;  %v21486_v8 = vld [vmem:[#allocation10 + $0x1354] ss:$24 sps:$4 sm:$0xff]  }
 0x349   :  { %v22987_v29 = vadd.f32 %v4287_v49, %v22970_v60  ;;  %v4289_v20 = vpop.f32.mrb[25].mxu1  ;;  %v4085_v32 = vadd.f32 %v4084_v30, %v22935_v13  ;;  %v4086_v38 = vpop.f32.mrb[26].mxu0  ;;  %6127 = vmatpush1.bf16.msra.mxu0 %v21472_v19  ;;  %v21489_v60 = vld [vmem:[#allocation10 + $0x195c] ss:$24 sps:$4 sm:$0xff]   ;;  %v21484_v13 = vld [vmem:[#allocation10 + $0x1350] ss:$24 sps:$4 sm:$0xff]  }
 0x34a   :  { %v22991_v35 = vadd.f32 %v4289_v20, %v22975_v1  ;;  %6332 = vmatpush1.bf16.msra.mxu1 %v21475_v22  ;;  %v4291_v41 = vpop.f32.mrb[26].mxu1  ;;  %v22994_v42 = vadd.f32 %v22949_v58, %v4083_v15  ;;  %v4087_v52 = vpop.f32.mrb[27].mxu0  ;;  %6128 = vmatprep.subr.bf16.mxu0 %v21480_v61  ;;  %v21487_v1 = vld [vmem:[#allocation10 + $0x1958] ss:$24 sps:$4 sm:$0xff]   ;;  %v21540_v22 = vld [vmem:[#allocation10 + $0x1804] ss:$24 sps:$4 sm:$0xff]  }
 0x34b   :  { %6333 = vmatprep.subr.bf16.mxu1 %v21483_v39  ;;  %v4292_v33 = vpop.f32.mrb[27].mxu1  ;;  %v22997_v43 = vadd.f32 %v22954_v36, %v4085_v32  ;;  %v21490_v58 = vld [vmem:[#allocation10 + $0x1380] ss:$24 sps:$4 sm:$0xff]   ;;  %v21496_v36 = vld [vmem:[#allocation10 + $0x13b0] ss:$24 sps:$4 sm:$0xff]  }
 0x34c   :  { %v21535_v19 = vld [vmem:[#allocation10 + $0x1ad8] ss:$24 sps:$4 sm:$0xff]   ;;  %v4380_v61 = vld [vmem:[#allocation7 + $0x20] sm:$0xff]  ;;  %v21543_v39 = vld [vmem:[#allocation10 + $0x1514] ss:$24 sps:$4 sm:$0xff]  }
 0x34d   :  { %6129 = vmatpush1.bf16.msra.mxu0 %v21478_v26  ;;  %v22999_v63 = vpack.c.bf16 %v4380_v61, %v4380_v61  ;;  %v21538_v49 = vld [vmem:[#allocation10 + $0x1800] ss:$24 sps:$4 sm:$0xff]   ;;  %v21541_v26 = vld [vmem:[#allocation10 + $0x1510] ss:$24 sps:$4 sm:$0xff]   ;;  %v21546_v15 = vld [vmem:[#allocation10 + $0x1834] ss:$24 sps:$4 sm:$0xff]  }
 0x34e   :  { %6334 = vmatpush1.bf16.msra.mxu1 %v21481_v40  ;;  %6130 = vmatprep.subr.bf16.mxu0 %v21486_v8  ;;  %v21549_v30 = vld [vmem:[#allocation10 + $0x1544] ss:$24 sps:$4 sm:$0xff]   ;;  %v21544_v20 = vld [vmem:[#allocation10 + $0x1830] ss:$24 sps:$4 sm:$0xff]   ;;  %v21547_v32 = vld [vmem:[#allocation10 + $0x1540] ss:$24 sps:$4 sm:$0xff]  }
 0x34f   :  { %6335 = vmatprep.subr.bf16.mxu1 %v21489_v60  ;;  %v21552_v38 = vld [vmem:[#allocation10 + $0x1864] ss:$24 sps:$4 sm:$0xff]   ;;  %v21555_v40 = vld [vmem:[#allocation10 + $0x1574] ss:$24 sps:$4 sm:$0xff]   ;;  %v21550_v41 = vld [vmem:[#allocation10 + $0x1860] ss:$24 sps:$4 sm:$0xff]  }
 0x350   :  { %v21553_v52 = vld [vmem:[#allocation10 + $0x1570] ss:$24 sps:$4 sm:$0xff]   ;;  %v21558_v8 = vld [vmem:[#allocation10 + $0x1894] ss:$24 sps:$4 sm:$0xff]   ;;  %v21561_v60 = vld [vmem:[#allocation10 + $0x15a4] ss:$24 sps:$4 sm:$0xff]  }
 0x351   :  { %6131 = vmatpush1.bf16.msra.mxu0 %v21484_v13  ;;  %v21556_v33 = vld [vmem:[#allocation10 + $0x1890] ss:$24 sps:$4 sm:$0xff]   ;;  %v21559_v13 = vld [vmem:[#allocation10 + $0x15a0] ss:$24 sps:$4 sm:$0xff]  }
 0x352   :  { %6336 = vmatpush1.bf16.msra.mxu1 %v21487_v1  ;;  %6132 = vmatprep.subr.bf16.mxu0 %v21492_v45  ;;  %v21564_v1 = vld [vmem:[#allocation10 + $0x18c4] ss:$24 sps:$4 sm:$0xff]   ;;  %v21567_v45 = vld [vmem:[#allocation10 + $0x15d4] ss:$24 sps:$4 sm:$0xff]   ;;  %v21598_v61 = vld [vmem:[#allocation10 + $0x19e0] ss:$24 sps:$4 sm:$0xff]  }
 0x353   :  { %6337 = vmatprep.subr.bf16.mxu1 %v21495_v44  ;;  %v21562_v44 = vld [vmem:[#allocation10 + $0x18c0] ss:$24 sps:$4 sm:$0xff]  }
 0x355   :  { %6133 = vmatpush1.bf16.msra.mxu0 %v21490_v58  ;;  %v21565_v58 = vld [vmem:[#allocation10 + $0x15d0] ss:$24 sps:$4 sm:$0xff]  }
 0x356   :  { %6338 = vmatpush1.bf16.msra.mxu1 %v21493_v46  ;;  %6134 = vmatprep.subr.bf16.mxu0 %v21498_v55  ;;  %v21570_v46 = vld [vmem:[#allocation10 + $0x18f4] ss:$24 sps:$4 sm:$0xff]   ;;  %v21573_v55 = vld [vmem:[#allocation10 + $0x1604] ss:$24 sps:$4 sm:$0xff]  }
 0x357   :  { %6339 = vmatprep.subr.bf16.mxu1 %v21501_v50  ;;  %v21568_v50 = vld [vmem:[#allocation10 + $0x18f0] ss:$24 sps:$4 sm:$0xff]  }
 0x359   :  { %6135 = vmatpush1.bf16.msra.mxu0 %v21496_v36  ;;  %v21571_v36 = vld [vmem:[#allocation10 + $0x1600] ss:$24 sps:$4 sm:$0xff]  }
 0x35a   :  { %6340 = vmatpush1.bf16.msra.mxu1 %v21499_v48  ;;  %6136 = vmatprep.subr.bf16.mxu0 %v21504_v47  ;;  %v21576_v48 = vld [vmem:[#allocation10 + $0x1924] ss:$24 sps:$4 sm:$0xff]   ;;  %v21579_v47 = vld [vmem:[#allocation10 + $0x1634] ss:$24 sps:$4 sm:$0xff]  }
 0x35b   :  { %6341 = vmatprep.subr.bf16.mxu1 %v21507_v51 }
 0x35d   :  { %6137 = vmatpush1.bf16.msra.mxu0 %v21502_v53 }
 0x35e   :  { %6342 = vmatpush1.bf16.msra.mxu1 %v21505_v54  ;;  %6138 = vmatprep.subr.bf16.mxu0 %v21510_v21 }
 0x35f   :  { %6343 = vmatprep.subr.bf16.mxu1 %v21513_v57 }
 0x361   :  { %6139 = vmatpush1.bf16.msra.mxu0 %v21508_v27 }
 0x362   :  { %6344 = vmatpush1.bf16.msra.mxu1 %v21511_v5  ;;  %6140 = vmatprep.subr.bf16.mxu0 %v21516_v2  ;;  %v21574_v2 = vld [vmem:[#allocation10 + $0x1920] ss:$24 sps:$4 sm:$0xff]  }
 0x363   :  { %6345 = vmatprep.subr.bf16.mxu1 %v21519_v3  ;;  %v21577_v3 = vld [vmem:[#allocation10 + $0x1630] ss:$24 sps:$4 sm:$0xff]  }
 0x365   :  { %6141 = vmatpush1.bf16.msra.mxu0 %v21514_v4 }
 0x366   :  { %6346 = vmatpush1.bf16.msra.mxu1 %v21517_v7  ;;  %6142 = vmatprep.subr.bf16.mxu0 %v21522_v37  ;;  %v21582_v37 = vld [vmem:[#allocation10 + $0x1954] ss:$24 sps:$4 sm:$0xff]  }
 0x367   :  { %6347 = vmatprep.subr.bf16.mxu1 %v21525_v34  ;;  %v21585_v34 = vld [vmem:[#allocation10 + $0x1664] ss:$24 sps:$4 sm:$0xff]  }
 0x369   :  { %6143 = vmatpush1.bf16.msra.mxu0 %v21520_v12 }
 0x36a   :  { %6348 = vmatpush1.bf16.msra.mxu1 %v21523_v9  ;;  %6144 = vmatprep.subr.bf16.mxu0 %v21528_v10  ;;  %v21583_v10 = vld [vmem:[#allocation10 + $0x1660] ss:$24 sps:$4 sm:$0xff]  }
 0x36b   :  { %6349 = vmatprep.subr.bf16.mxu1 %v21531_v11  ;;  %v21588_v11 = vld [vmem:[#allocation10 + $0x1984] ss:$24 sps:$4 sm:$0xff]  }
 0x36d   :  { %6145 = vmatpush1.bf16.msra.mxu0 %v21526_v62  ;;  %v21591_v62 = vld [vmem:[#allocation10 + $0x1694] ss:$24 sps:$4 sm:$0xff]  }
 0x36e   :  { %6350 = vmatpush1.bf16.msra.mxu1 %v21529_v16  ;;  %6146 = vmatprep.subr.bf16.mxu0 %v21534_v31  ;;  %v21586_v16 = vld [vmem:[#allocation10 + $0x1980] ss:$24 sps:$4 sm:$0xff]   ;;  %v21589_v31 = vld [vmem:[#allocation10 + $0x1690] ss:$24 sps:$4 sm:$0xff]  }
 0x36f   :  { %6351 = vmatprep.subr.bf16.mxu1 %v21537_v17  ;;  %v21597_v17 = vld [vmem:[#allocation10 + $0x16c4] ss:$24 sps:$4 sm:$0xff]  }
 0x371   :  { %6147 = vmatpush1.bf16.msra.mxu0 %v21532_v18  ;;  %v21595_v18 = vld [vmem:[#allocation10 + $0x16c0] ss:$24 sps:$4 sm:$0xff]  }
 0x372   :  { %6352 = vmatpush1.bf16.msra.mxu1 %v21535_v19  ;;  %6198 = vmatprep.subr.bf16.mxu0 %v21540_v22  ;;  %v21600_v19 = vld [vmem:[#allocation10 + $0x19e4] ss:$24 sps:$4 sm:$0xff]   ;;  %v21603_v22 = vld [vmem:[#allocation10 + $0x16f4] ss:$24 sps:$4 sm:$0xff]  }
 0x373   :  { %6403 = vmatprep.subr.bf16.mxu1 %v21543_v39  ;;  %v21601_v39 = vld [vmem:[#allocation10 + $0x16f0] ss:$24 sps:$4 sm:$0xff]  }
 0x374   :  { %6149 = vmatmul.mubr.bf16.vlgmr.msra.gmra.mrb[40].mxu0 %v22977_v56 }
 0x375   :  { %6354 = vmatmul.mubr.bf16.vlgmr.msra.gmra.mrb[40].mxu1 %v22999_v63  ;;  %6199 = vmatpush1.bf16.msra.mxu0 %v21538_v49  ;;  %v21606_v49 = vld [vmem:[#allocation10 + $0x1a14] ss:$24 sps:$4 sm:$0xff]  }
 0x376   :  { %6404 = vmatpush1.bf16.msra.mxu1 %v21541_v26  ;;  %6200 = vmatprep.subr.bf16.mxu0 %v21546_v15  ;;  %v21609_v26 = vld [vmem:[#allocation10 + $0x1724] ss:$24 sps:$4 sm:$0xff]   ;;  %v21604_v15 = vld [vmem:[#allocation10 + $0x1a10] ss:$24 sps:$4 sm:$0xff]  }
 0x377   :  { %6405 = vmatprep.subr.bf16.mxu1 %v21549_v30  ;;  %6230 = vmatprep.mubr.bf16.mxu0 %v22979_v24  ;;  %v21607_v30 = vld [vmem:[#allocation10 + $0x1720] ss:$24 sps:$4 sm:$0xff]  }
 0x378   :  { %6435 = vmatprep.mubr.bf16.mxu1 %v22943_v6 }
 0x379   :  { %6201 = vmatpush1.bf16.msra.mxu0 %v21544_v20  ;;  %v21612_v20 = vld [vmem:[#allocation10 + $0x1a44] ss:$24 sps:$4 sm:$0xff]  }
 0x37a   :  { %6406 = vmatpush1.bf16.msra.mxu1 %v21547_v32  ;;  %6202 = vmatprep.subr.bf16.mxu0 %v21552_v38  ;;  %v21615_v32 = vld [vmem:[#allocation10 + $0x1754] ss:$24 sps:$4 sm:$0xff]   ;;  %v21610_v38 = vld [vmem:[#allocation10 + $0x1a40] ss:$24 sps:$4 sm:$0xff]  }
 0x37b   :  { %6407 = vmatprep.subr.bf16.mxu1 %v21555_v40  ;;  %v21613_v40 = vld [vmem:[#allocation10 + $0x1750] ss:$24 sps:$4 sm:$0xff]  }
 0x37d   :  { %6203 = vmatpush1.bf16.msra.mxu0 %v21550_v41  ;;  %v21618_v41 = vld [vmem:[#allocation10 + $0x1a74] ss:$24 sps:$4 sm:$0xff]  }
 0x37e   :  { %6408 = vmatpush1.bf16.msra.mxu1 %v21553_v52  ;;  %6204 = vmatprep.subr.bf16.mxu0 %v21558_v8  ;;  %v21621_v52 = vld [vmem:[#allocation10 + $0x1784] ss:$24 sps:$4 sm:$0xff]   ;;  %v21616_v8 = vld [vmem:[#allocation10 + $0x1a70] ss:$24 sps:$4 sm:$0xff]  }
 0x37f   :  { %6409 = vmatprep.subr.bf16.mxu1 %v21561_v60  ;;  %v21619_v60 = vld [vmem:[#allocation10 + $0x1780] ss:$24 sps:$4 sm:$0xff]  }
 0x381   :  { %6205 = vmatpush1.bf16.msra.mxu0 %v21556_v33  ;;  %v21624_v33 = vld [vmem:[#allocation10 + $0x1aa4] ss:$24 sps:$4 sm:$0xff]  }
 0x382   :  { %6410 = vmatpush1.bf16.msra.mxu1 %v21559_v13  ;;  %6206 = vmatprep.subr.bf16.mxu0 %v21564_v1  ;;  %v21627_v13 = vld [vmem:[#allocation10 + $0x17b4] ss:$24 sps:$4 sm:$0xff]   ;;  %v21622_v1 = vld [vmem:[#allocation10 + $0x1aa0] ss:$24 sps:$4 sm:$0xff]  }
 0x383   :  { %6411 = vmatprep.subr.bf16.mxu1 %v21567_v45  ;;  %v21625_v45 = vld [vmem:[#allocation10 + $0x17b0] ss:$24 sps:$4 sm:$0xff]  }
 0x385   :  { %6207 = vmatpush1.bf16.msra.mxu0 %v21562_v44  ;;  %v21630_v44 = vld [vmem:[#allocation10 + $0x1ad4] ss:$24 sps:$4 sm:$0xff]  }
 0x386   :  { %6412 = vmatpush1.bf16.msra.mxu1 %v21565_v58  ;;  %6208 = vmatprep.subr.bf16.mxu0 %v21570_v46  ;;  %v21633_v58 = vld [vmem:[#allocation10 + $0x17e4] ss:$24 sps:$4 sm:$0xff]  }
 0x387   :  { %6413 = vmatprep.subr.bf16.mxu1 %v21573_v55  ;;  %v4164_v51 = vpop.f32.mrb[28].mxu0  ;;  %v6571_v46 = vld [vmem:[#allocation13] sm:$0xff] }
 0x388   :  { %v23005_v53 = vpop.f32.mrb[28].mxu1  ;;  %v4165_v54 = vadd.f32 %v4164_v51, %v22938_v14  ;;  %v4166_v21 = vpop.f32.mrb[29].mxu0  ;;  %v6575_v55 = vld [vmem:[#allocation13 + $0x20] sm:$0xff] }
 0x389   :  { %v23008_v57 = vpop.f32.mrb[29].mxu1  ;;  %v4167_v27 = vadd.f32 %v4166_v21, %v22941_v25  ;;  %v4168_v5 = vpop.f32.mrb[30].mxu0  ;;  %6209 = vmatpush1.bf16.msra.mxu0 %v21568_v50  ;;  %v21580_v25 = vld [vmem:[#allocation10 + $0x1950] ss:$24 sps:$4 sm:$0xff]   ;;  %v6536_v21 = vld [vmem:[#allocation8 + $0x8] sm:$0xff] }
 0x38a   :  { %6414 = vmatpush1.bf16.msra.mxu1 %v21571_v36  ;;  %v4373_v4 = vpop.f32.mrb[30].mxu1  ;;  %v4169_v7 = vpop.f32.mrb[31].mxu0  ;;  %6210 = vmatprep.subr.bf16.mxu0 %v21576_v48  ;;  %v23012_v12 = vadd.f32 %v22967_v59, %v4165_v54  ;;  %v21594_v59 = vld [vmem:[#allocation10 + $0x19b4] ss:$24 sps:$4 sm:$0xff]   ;;  %v21628_v50 = vld [vmem:[#allocation10 + $0x1ad0] ss:$24 sps:$4 sm:$0xff]   ;;  %v18753_v5 = vcombine.low %v6571_v46, %v6575_v55 }
 0x38b   :  { %6415 = vmatprep.subr.bf16.mxu1 %v21579_v47  ;;  %v4374_v14 = vpop.f32.mrb[31].mxu1  ;;  %v23015_v9 = vadd.f32 %v22972_v0, %v4167_v27  ;;  %v21592_v0 = vld [vmem:[#allocation10 + $0x19b0] ss:$24 sps:$4 sm:$0xff]   ;;  %v21631_v36 = vld [vmem:[#allocation10 + $0x17e0] ss:$24 sps:$4 sm:$0xff]   ;;  %v18754_v47 = vcombine.high %v6571_v46, %v6575_v55 }
 0x38c   :  { %v21636_v48 = vld [vmem:[#allocation10 + $0x150c] ss:$24 sps:$4 sm:$0xff]   ;;  %v21634_v27 = vld [vmem:[#allocation10 + $0x1508] ss:$24 sps:$4 sm:$0xff]  }
 0x38d   :  { %6211 = vmatpush1.bf16.msra.mxu0 %v21574_v2  ;;  %v6579_v51 = vld [vmem:[#allocation13 + $0x40] sm:$0xff]  ;;  %v21639_v2 = vld [vmem:[#allocation10 + $0x153c] ss:$24 sps:$4 sm:$0xff]  }
 0x38e   :  { %6416 = vmatpush1.bf16.msra.mxu1 %v21577_v3  ;;  %6212 = vmatprep.subr.bf16.mxu0 %v21582_v37  ;;  %v6583_v54 = vld [vmem:[#allocation13 + $0x60] sm:$0xff]  ;;  %v23017_v37 = vpack.c.bf16 %v6536_v21, %v6536_v21 }
 0x38f   :  { %6417 = vmatprep.subr.bf16.mxu1 %v21585_v34  ;;  %v18762_v3 = vcombine.high %v6579_v51, %v6583_v54  ;;  %v6587_v4 = vld [vmem:[#allocation13 + $0x80] sm:$0xff]  ;;  %v21637_v34 = vld [vmem:[#allocation10 + $0x1538] ss:$24 sps:$4 sm:$0xff]   ;;  %v18761_v14 = vcombine.low %v6579_v51, %v6583_v54  ;;  %v21657_v51 = vld [vmem:[#allocation10 + $0x165c] ss:$24 sps:$4 sm:$0xff]  }
 0x390   :  { %v6591_v7 = vld [vmem:[#allocation13 + $0xa0] sm:$0xff] }
 0x391   :  { %6213 = vmatpush1.bf16.msra.mxu0 %v21580_v25  ;;  %v21642_v25 = vld [vmem:[#allocation10 + $0x156c] ss:$24 sps:$4 sm:$0xff]  }
 0x392   :  { %6418 = vmatpush1.bf16.msra.mxu1 %v21583_v10  ;;  %6214 = vmatprep.subr.bf16.mxu0 %v21588_v11  ;;  %v18770_v10 = vcombine.high %v6587_v4, %v6591_v7  ;;  %v6595_v11 = vld [vmem:[#allocation13 + $0xc0] sm:$0xff] }
 0x393   :  { %6419 = vmatprep.subr.bf16.mxu1 %v21591_v62  ;;  %v6599_v62 = vld [vmem:[#allocation13 + $0xe0] sm:$0xff] }
 0x395   :  { %6215 = vmatpush1.bf16.msra.mxu0 %v21586_v16  ;;  %v21640_v16 = vld [vmem:[#allocation10 + $0x1568] ss:$24 sps:$4 sm:$0xff]  }
 0x396   :  { %6420 = vmatpush1.bf16.msra.mxu1 %v21589_v31  ;;  %6216 = vmatprep.subr.bf16.mxu0 %v21594_v59  ;;  %v18769_v31 = vcombine.low %v6587_v4, %v6591_v7  ;;  %v21645_v59 = vld [vmem:[#allocation10 + $0x159c] ss:$24 sps:$4 sm:$0xff]   ;;  %v6643_v4 = vld [vmem:[#allocation13 + $0x240] sm:$0xff] }
 0x397   :  { %6421 = vmatprep.subr.bf16.mxu1 %v21597_v17  ;;  %v18778_v17 = vcombine.high %v6595_v11, %v6599_v62  ;;  %v6647_v7 = vld [vmem:[#allocation13 + $0x260] sm:$0xff] }
 0x399   :  { %6217 = vmatpush1.bf16.msra.mxu0 %v21592_v0  ;;  %v6603_v0 = vld [vmem:[#allocation13 + $0x100] sm:$0xff] }
 0x39a   :  { %6422 = vmatpush1.bf16.msra.mxu1 %v21595_v18  ;;  %6218 = vmatprep.subr.bf16.mxu0 %v21600_v19  ;;  %v6607_v18 = vld [vmem:[#allocation13 + $0x120] sm:$0xff]  ;;  %v21643_v19 = vld [vmem:[#allocation10 + $0x1598] ss:$24 sps:$4 sm:$0xff]  }
 0x39b   :  { %6423 = vmatprep.subr.bf16.mxu1 %v21603_v22  ;;  %v18777_v22 = vcombine.low %v6595_v11, %v6599_v62  ;;  %v6651_v11 = vld [vmem:[#allocation13 + $0x280] sm:$0xff] }
 0x39c   :  { %v6655_v62 = vld [vmem:[#allocation13 + $0x2a0] sm:$0xff] }
 0x39d   :  { %6219 = vmatpush1.bf16.msra.mxu0 %v21598_v61  ;;  %v21648_v61 = vld [vmem:[#allocation10 + $0x15cc] ss:$24 sps:$4 sm:$0xff]  }
 0x39e   :  { %6424 = vmatpush1.bf16.msra.mxu1 %v21601_v39  ;;  %6220 = vmatprep.subr.bf16.mxu0 %v21606_v49  ;;  %v6611_v39 = vld [vmem:[#allocation13 + $0x140] sm:$0xff] }
 0x39f   :  { %6425 = vmatprep.subr.bf16.mxu1 %v21609_v26  ;;  %v6615_v49 = vld [vmem:[#allocation13 + $0x160] sm:$0xff] }
 0x3a0   :  { %v21646_v26 = vld [vmem:[#allocation10 + $0x15c8] ss:$24 sps:$4 sm:$0xff]  }
 0x3a1   :  { %6221 = vmatpush1.bf16.msra.mxu0 %v21604_v15  ;;  %v18785_v15 = vcombine.low %v6603_v0, %v6607_v18 }
 0x3a2   :  { %6426 = vmatpush1.bf16.msra.mxu1 %v21607_v30  ;;  %6222 = vmatprep.subr.bf16.mxu0 %v21612_v20  ;;  %v21651_v30 = vld [vmem:[#allocation10 + $0x15fc] ss:$24 sps:$4 sm:$0xff]   ;;  %v18794_v20 = vcombine.high %v6611_v39, %v6615_v49 }
 0x3a3   :  { %6427 = vmatprep.subr.bf16.mxu1 %v21615_v32  ;;  %v6619_v32 = vld [vmem:[#allocation13 + $0x180] sm:$0xff] }
 0x3a5   :  { %6223 = vmatpush1.bf16.msra.mxu0 %v21610_v38  ;;  %v6623_v38 = vld [vmem:[#allocation13 + $0x1a0] sm:$0xff] }
 0x3a6   :  { %6428 = vmatpush1.bf16.msra.mxu1 %v21613_v40  ;;  %6224 = vmatprep.subr.bf16.mxu0 %v21618_v41  ;;  %v21649_v40 = vld [vmem:[#allocation10 + $0x15f8] ss:$24 sps:$4 sm:$0xff]   ;;  %v18793_v41 = vcombine.low %v6611_v39, %v6615_v49  ;;  %v6667_v39 = vld [vmem:[#allocation13 + $0x300] sm:$0xff] }
 0x3a7   :  { %6429 = vmatprep.subr.bf16.mxu1 %v21621_v52  ;;  %v21654_v52 = vld [vmem:[#allocation10 + $0x162c] ss:$24 sps:$4 sm:$0xff]  }
 0x3a8   :  { %v6671_v49 = vld [vmem:[#allocation13 + $0x320] sm:$0xff] }
 0x3a9   :  { %6225 = vmatpush1.bf16.msra.mxu0 %v21616_v8  ;;  %v18802_v8 = vcombine.high %v6619_v32, %v6623_v38 }
 0x3aa   :  { %6430 = vmatpush1.bf16.msra.mxu1 %v21619_v60  ;;  %6226 = vmatprep.subr.bf16.mxu0 %v21624_v33  ;;  %v6627_v33 = vld [vmem:[#allocation13 + $0x1c0] sm:$0xff] }
 0x3ab   :  { %6431 = vmatprep.subr.bf16.mxu1 %v21627_v13  ;;  %v6631_v13 = vld [vmem:[#allocation13 + $0x1e0] sm:$0xff] }
 0x3ac   :  { %v18810_v54 = vcombine.high %v6627_v33, %v6631_v13 }
 0x3ad   :  { %6227 = vmatpush1.bf16.msra.mxu0 %v21622_v1 }
 0x3ae   :  { %6432 = vmatpush1.bf16.msra.mxu1 %v21625_v45  ;;  %6228 = vmatprep.subr.bf16.mxu0 %v21630_v44 }
 0x3af   :  { %6433 = vmatprep.subr.bf16.mxu1 %v21633_v58 }
 0x3b1   :  { %6229 = vmatpush1.bf16.msra.mxu0 %v21628_v50  ;;  %v21652_v50 = vld [vmem:[#allocation10 + $0x1628] ss:$24 sps:$4 sm:$0xff]  }
 0x3b2   :  { %6434 = vmatpush1.bf16.msra.mxu1 %v21631_v36  ;;  %6280 = vmatprep.subr.bf16.mxu0 %v21636_v48  ;;  %v18801_v36 = vcombine.low %v6619_v32, %v6623_v38  ;;  %v6675_v32 = vld [vmem:[#allocation13 + $0x340] sm:$0xff] }
 0x3b3   :  { %13525 = vmatprep.subr.bf16.mxu1 %v18754_v47  ;;  %v6679_v38 = vld [vmem:[#allocation13 + $0x360] sm:$0xff] }
 0x3b4   :  { %6231 = vmatmul.mubr.bf16.vlgmr.msra.gmra.mrb[44].mxu0 %v22999_v63 }
 0x3b5   :  { %6436 = vmatmul.mubr.bf16.vlgmr.msra.gmra.mrb[44].mxu1 %v22959_v28  ;;  %6281 = vmatpush1.bf16.msra.mxu0 %v21634_v27  ;;  %v6639_v27 = vld [vmem:[#allocation13 + $0x220] sm:$0xff] }
 0x3b6   :  { %13526 = vmatpush1.bf16.msra.mxu1 %v18753_v5  ;;  %6282 = vmatprep.subr.bf16.mxu0 %v21639_v2  ;;  %v21655_v5 = vld [vmem:[#allocation10 + $0x1658] ss:$24 sps:$4 sm:$0xff]   ;;  %v18809_v2 = vcombine.low %v6627_v33, %v6631_v13  ;;  %v6687_v33 = vld [vmem:[#allocation13 + $0x3a0] sm:$0xff] }
 0x3b7   :  { %13527 = vmatprep.subr.bf16.mxu1 %v18762_v3  ;;  %6312 = vmatprep.mubr.bf16.mxu0 %v22943_v6  ;;  %v18786_v6 = vcombine.high %v6603_v0, %v6607_v18  ;;  %v6659_v0 = vld [vmem:[#allocation13 + $0x2c0] sm:$0xff]  ;;  %v21673_v13 = vld [vmem:[#allocation10 + $0x1778] ss:$24 sps:$4 sm:$0xff]  }
 0x3b8   :  { %13557 = vmatprep.mubr.bf16.mxu1 %v23017_v37  ;;  %v6663_v18 = vld [vmem:[#allocation13 + $0x2e0] sm:$0xff] }
 0x3b9   :  { %6283 = vmatpush1.bf16.msra.mxu0 %v21637_v34  ;;  %v21658_v34 = vld [vmem:[#allocation10 + $0x1688] ss:$24 sps:$4 sm:$0xff]  }
 0x3ba   :  { %13528 = vmatpush1.bf16.msra.mxu1 %v18761_v14  ;;  %6284 = vmatprep.subr.bf16.mxu0 %v21642_v25  ;;  %v21663_v25 = vld [vmem:[#allocation10 + $0x16bc] ss:$24 sps:$4 sm:$0xff]  }
 0x3bb   :  { %13529 = vmatprep.subr.bf16.mxu1 %v18770_v10  ;;  %v18826_v10 = vcombine.high %v6643_v4, %v6647_v7 }
 0x3bd   :  { %6285 = vmatpush1.bf16.msra.mxu0 %v21640_v16  ;;  %v21661_v16 = vld [vmem:[#allocation10 + $0x16b8] ss:$24 sps:$4 sm:$0xff]  }
 0x3be   :  { %13530 = vmatpush1.bf16.msra.mxu1 %v18769_v31  ;;  %6286 = vmatprep.subr.bf16.mxu0 %v21645_v59  ;;  %v18825_v31 = vcombine.low %v6643_v4, %v6647_v7  ;;  %v21666_v59 = vld [vmem:[#allocation10 + $0x16ec] ss:$24 sps:$4 sm:$0xff]  }
 0x3bf   :  { %13531 = vmatprep.subr.bf16.mxu1 %v18778_v17  ;;  %v18834_v17 = vcombine.high %v6651_v11, %v6655_v62  ;;  %v6707_v7 = vld [vmem:[#allocation13 + $0x440] sm:$0xff] }
 0x3c1   :  { %6287 = vmatpush1.bf16.msra.mxu0 %v21643_v19  ;;  %v21664_v19 = vld [vmem:[#allocation10 + $0x16e8] ss:$24 sps:$4 sm:$0xff]  }
 0x3c2   :  { %13532 = vmatpush1.bf16.msra.mxu1 %v18777_v22  ;;  %6288 = vmatprep.subr.bf16.mxu0 %v21648_v61  ;;  %v18833_v22 = vcombine.low %v6651_v11, %v6655_v62  ;;  %v21669_v61 = vld [vmem:[#allocation10 + $0x171c] ss:$24 sps:$4 sm:$0xff]  }
 0x3c3   :  { %13533 = vmatprep.subr.bf16.mxu1 %v18786_v6  ;;  %v18842_v6 = vcombine.high %v6659_v0, %v6663_v18  ;;  %v21687_v62 = vld [vmem:[#allocation10 + $0x1244] ss:$24 sps:$4 sm:$0xff]  }
 0x3c5   :  { %6289 = vmatpush1.bf16.msra.mxu0 %v21646_v26  ;;  %v21667_v26 = vld [vmem:[#allocation10 + $0x1718] ss:$24 sps:$4 sm:$0xff]  }
 0x3c6   :  { %13534 = vmatpush1.bf16.msra.mxu1 %v18785_v15  ;;  %6290 = vmatprep.subr.bf16.mxu0 %v21651_v30  ;;  %v18841_v15 = vcombine.low %v6659_v0, %v6663_v18  ;;  %v21672_v30 = vld [vmem:[#allocation10 + $0x174c] ss:$24 sps:$4 sm:$0xff]   ;;  %v21685_v0 = vld [vmem:[#allocation10 + $0x1240] ss:$24 sps:$4 sm:$0xff]  }
 0x3c7   :  { %13535 = vmatprep.subr.bf16.mxu1 %v18794_v20  ;;  %v4246_v60 = vpop.f32.mrb[32].mxu0  ;;  %v18850_v20 = vcombine.high %v6667_v39, %v6671_v49 }
 0x3c8   :  { %v23023_v1 = vpop.f32.mrb[32].mxu1  ;;  %v23026_v45 = vadd.f32 %v4246_v60, %v23012_v12  ;;  %v4248_v44 = vpop.f32.mrb[33].mxu0  ;;  %v6635_v12 = vld [vmem:[#allocation13 + $0x200] sm:$0xff] }
 0x3c9   :  { %v23028_v58 = vpop.f32.mrb[33].mxu1  ;;  %v23031_v46 = vadd.f32 %v4248_v44, %v23015_v9  ;;  %v4250_v55 = vpop.f32.mrb[34].mxu0  ;;  %6291 = vmatpush1.bf16.msra.mxu0 %v21649_v40  ;;  %v21660_v9 = vld [vmem:[#allocation10 + $0x168c] ss:$24 sps:$4 sm:$0xff]   ;;  %v18818_v3 = vcombine.high %v6635_v12, %v6639_v27  ;;  %v18817_v14 = vcombine.low %v6635_v12, %v6639_v27  ;;  %v21670_v40 = vld [vmem:[#allocation10 + $0x1748] ss:$24 sps:$4 sm:$0xff]   ;;  %v18857_v44 = vcombine.low %v6675_v32, %v6679_v38 }
 0x3ca   :  { %13536 = vmatpush1.bf16.msra.mxu1 %v18793_v41  ;;  %v6195_v48 = vpop.f32.mrb[34].mxu1  ;;  %v4251_v47 = vpop.f32.mrb[35].mxu0  ;;  %6292 = vmatprep.subr.bf16.mxu0 %v21654_v52  ;;  %v18849_v41 = vcombine.low %v6667_v39, %v6671_v49  ;;  %v21675_v52 = vld [vmem:[#allocation10 + $0x177c] ss:$24 sps:$4 sm:$0xff]   ;;  %v6683_v60 = vld [vmem:[#allocation13 + $0x380] sm:$0xff] }
 0x3cb   :  { %13537 = vmatprep.subr.bf16.mxu1 %v18802_v8  ;;  %v6196_v21 = vpop.f32.mrb[35].mxu1  ;;  %v18858_v8 = vcombine.high %v6675_v32, %v6679_v38  ;;  %v21678_v55 = vld [vmem:[#allocation10 + $0x17ac] ss:$24 sps:$4 sm:$0xff]   ;;  %v21676_v47 = vld [vmem:[#allocation10 + $0x17a8] ss:$24 sps:$4 sm:$0xff]  }
 0x3cc   :  { %v6695_v48 = vld [vmem:[#allocation13 + $0x3e0] sm:$0xff] }
 0x3cd   :  { %6293 = vmatpush1.bf16.msra.mxu0 %v21652_v50  ;;  %v18866_v50 = vcombine.high %v6683_v60, %v6687_v33  ;;  %v6699_v12 = vld [vmem:[#allocation13 + $0x400] sm:$0xff] }
 0x3ce   :  { %13538 = vmatpush1.bf16.msra.mxu1 %v18801_v36  ;;  %6294 = vmatprep.subr.bf16.mxu0 %v21657_v51  ;;  %v6691_v36 = vld [vmem:[#allocation13 + $0x3c0] sm:$0xff]  ;;  %v18865_v51 = vcombine.low %v6683_v60, %v6687_v33 }
 0x3cf   :  { %13539 = vmatprep.subr.bf16.mxu1 %v18810_v54  ;;  %v21681_v54 = vld [vmem:[#allocation10 + $0x17dc] ss:$24 sps:$4 sm:$0xff]   ;;  %v18874_v21 = vcombine.high %v6691_v36, %v6695_v48  ;;  %v6703_v27 = vld [vmem:[#allocation13 + $0x420] sm:$0xff] }
 0x3d0   :  { %v18882_v4 = vcombine.high %v6699_v12, %v6703_v27  ;;  %v18881_v11 = vcombine.low %v6699_v12, %v6703_v27  ;;  %v21688_v39 = vld [vmem:[#allocation10 + $0x1270] ss:$24 sps:$4 sm:$0xff]   ;;  %v21693_v49 = vld [vmem:[#allocation10 + $0x12a4] ss:$24 sps:$4 sm:$0xff]   ;;  %v21696_v38 = vld [vmem:[#allocation10 + $0x12d4] ss:$24 sps:$4 sm:$0xff]  }
 0x3d1   :  { %6295 = vmatpush1.bf16.msra.mxu0 %v21655_v5  ;;  %v21679_v5 = vld [vmem:[#allocation10 + $0x17d8] ss:$24 sps:$4 sm:$0xff]   ;;  %v21699_v60 = vld [vmem:[#allocation10 + $0x1304] ss:$24 sps:$4 sm:$0xff]  }
 0x3d2   :  { %13540 = vmatpush1.bf16.msra.mxu1 %v18809_v2  ;;  %6296 = vmatprep.subr.bf16.mxu0 %v21660_v9  ;;  %v18873_v2 = vcombine.low %v6691_v36, %v6695_v48  ;;  %v6535_v9 = vld [vmem:[#allocation8] sm:$0xff] }
 0x3d3   :  { %13541 = vmatprep.subr.bf16.mxu1 %v18818_v3  ;;  %v21684_v3 = vld [vmem:[#allocation10 + $0x1214] ss:$24 sps:$4 sm:$0xff]  }
 0x3d4   :  { %v21702_v36 = vld [vmem:[#allocation10 + $0x1334] ss:$24 sps:$4 sm:$0xff]  }
 0x3d5   :  { %6297 = vmatpush1.bf16.msra.mxu0 %v21658_v34  ;;  %v6711_v34 = vld [vmem:[#allocation13 + $0x460] sm:$0xff] }
 0x3d6   :  { %13542 = vmatpush1.bf16.msra.mxu1 %v18817_v14  ;;  %6298 = vmatprep.subr.bf16.mxu0 %v21663_v25  ;;  %v23033_v14 = vpack.c.bf16 %v6535_v9, %v6535_v9  ;;  %v6538_v25 = vld [vmem:[#allocation8 + $0x18] sm:$0xff]  ;;  %v18889_v18 = vcombine.low %v6707_v7, %v6711_v34 }
 0x3d7   :  { %13543 = vmatprep.subr.bf16.mxu1 %v18826_v10  ;;  %v21682_v10 = vld [vmem:[#allocation10 + $0x1210] ss:$24 sps:$4 sm:$0xff]  }
 0x3d9   :  { %6299 = vmatpush1.bf16.msra.mxu0 %v21661_v16  ;;  %v18890_v16 = vcombine.high %v6707_v7, %v6711_v34 }
 0x3da   :  { %13544 = vmatpush1.bf16.msra.mxu1 %v18825_v31  ;;  %6300 = vmatprep.subr.bf16.mxu0 %v21666_v59  ;;  %v6715_v31 = vld [vmem:[#allocation13 + $0x480] sm:$0xff] }
 0x3db   :  { %13545 = vmatprep.subr.bf16.mxu1 %v18834_v17  ;;  %v6719_v59 = vld [vmem:[#allocation13 + $0x4a0] sm:$0xff]  ;;  %v23035_v17 = vpack.c.bf16 %v6538_v25, %v6538_v25 }
 0x3dd   :  { %6301 = vmatpush1.bf16.msra.mxu0 %v21664_v19  ;;  %v21690_v19 = vld [vmem:[#allocation10 + $0x1274] ss:$24 sps:$4 sm:$0xff]  }
 0x3de   :  { %13546 = vmatpush1.bf16.msra.mxu1 %v18833_v22  ;;  %6302 = vmatprep.subr.bf16.mxu0 %v21669_v61  ;;  %v18898_v22 = vcombine.high %v6715_v31, %v6719_v59  ;;  %v6723_v61 = vld [vmem:[#allocation13 + $0x4c0] sm:$0xff] }
 0x3df   :  { %13547 = vmatprep.subr.bf16.mxu1 %v18842_v6  ;;  %v6727_v6 = vld [vmem:[#allocation13 + $0x4e0] sm:$0xff] }
 0x3e0   :  { %v18905_v32 = vcombine.low %v6723_v61, %v6727_v6 }
 0x3e1   :  { %6303 = vmatpush1.bf16.msra.mxu0 %v21667_v26  ;;  %v18906_v26 = vcombine.high %v6723_v61, %v6727_v6 }
 0x3e2   :  { %13548 = vmatpush1.bf16.msra.mxu1 %v18841_v15  ;;  %6304 = vmatprep.subr.bf16.mxu0 %v21672_v30  ;;  %v6731_v15 = vld [vmem:[#allocation13 + $0x500] sm:$0xff] }
 0x3e3   :  { %13549 = vmatprep.subr.bf16.mxu1 %v18850_v20  ;;  %v6735_v30 = vld [vmem:[#allocation13 + $0x520] sm:$0xff]  ;;  %v21691_v20 = vld [vmem:[#allocation10 + $0x12a0] ss:$24 sps:$4 sm:$0xff]  }
 0x3e5   :  { %6305 = vmatpush1.bf16.msra.mxu0 %v21670_v40  ;;  %v6739_v40 = vld [vmem:[#allocation13 + $0x540] sm:$0xff] }
 0x3e6   :  { %13550 = vmatpush1.bf16.msra.mxu1 %v18849_v41  ;;  %6306 = vmatprep.subr.bf16.mxu0 %v21675_v52  ;;  %v6743_v41 = vld [vmem:[#allocation13 + $0x560] sm:$0xff] }
 0x3e7   :  { %13551 = vmatprep.subr.bf16.mxu1 %v18858_v8  ;;  %v21694_v52 = vld [vmem:[#allocation10 + $0x12d0] ss:$24 sps:$4 sm:$0xff]   ;;  %v18913_v8 = vcombine.low %v6731_v15, %v6735_v30  ;;  %v18922_v33 = vcombine.high %v6739_v40, %v6743_v41 }
 0x3e9   :  { %6307 = vmatpush1.bf16.msra.mxu0 %v21673_v13  ;;  %v6747_v13 = vld [vmem:[#allocation13 + $0x580] sm:$0xff] }
 0x3ea   :  { %13552 = vmatpush1.bf16.msra.mxu1 %v18857_v44  ;;  %6308 = vmatprep.subr.bf16.mxu0 %v21678_v55  ;;  %v6751_v44 = vld [vmem:[#allocation13 + $0x5a0] sm:$0xff]  ;;  %v21697_v55 = vld [vmem:[#allocation10 + $0x1300] ss:$24 sps:$4 sm:$0xff]  }
 0x3eb   :  { %13553 = vmatprep.subr.bf16.mxu1 %v18866_v50  ;;  %v18921_v50 = vcombine.low %v6739_v40, %v6743_v41  ;;  %v18930_v48 = vcombine.high %v6747_v13, %v6751_v44  ;;  %v21717_v40 = vld [vmem:[#allocation10 + $0x1424] ss:$24 sps:$4 sm:$0xff]  }
 0x3ed   :  { %6309 = vmatpush1.bf16.msra.mxu0 %v21676_v47 }
 0x3ee   :  { %13554 = vmatpush1.bf16.msra.mxu1 %v18865_v51  ;;  %6310 = vmatprep.subr.bf16.mxu0 %v21681_v54  ;;  %v6755_v51 = vld [vmem:[#allocation13 + $0x5c0] sm:$0xff] }
 0x3ef   :  { %13555 = vmatprep.subr.bf16.mxu1 %v18874_v21  ;;  %v6759_v54 = vld [vmem:[#allocation13 + $0x5e0] sm:$0xff] }
 0x3f1   :  { %6311 = vmatpush1.bf16.msra.mxu0 %v21679_v5 }
 0x3f2   :  { %13556 = vmatpush1.bf16.msra.mxu1 %v18873_v2  ;;  %6362 = vmatprep.subr.bf16.mxu0 %v21684_v3  ;;  %v21700_v3 = vld [vmem:[#allocation10 + $0x1330] ss:$24 sps:$4 sm:$0xff]  }
 0x3f3   :  { %13566 = vmatprep.subr.bf16.mxu1 %v18882_v4  ;;  %v18929_v4 = vcombine.low %v6747_v13, %v6751_v44  ;;  %v21720_v13 = vld [vmem:[#allocation10 + $0x1454] ss:$24 sps:$4 sm:$0xff]  }
 0x3f4   :  { %6313 = vmatmul.mubr.bf16.vlgmr.msra.gmra.mrb[48].mxu0 %v22959_v28  ;;  %v18897_v28 = vcombine.low %v6715_v31, %v6719_v59  ;;  %v21703_v31 = vld [vmem:[#allocation10 + $0x1360] ss:$24 sps:$4 sm:$0xff]   ;;  %v18937_v59 = vcombine.low %v6755_v51, %v6759_v54 }
 0x3f5   :  { %13558 = vmatmul.mubr.bf16.vlgmr.msra.gmra.mrb[48].mxu1 %v23033_v14  ;;  %6363 = vmatpush1.bf16.msra.mxu0 %v21682_v10  ;;  %v21705_v10 = vld [vmem:[#allocation10 + $0x1364] ss:$24 sps:$4 sm:$0xff]  }
 0x3f6   :  { %13567 = vmatpush1.bf16.msra.mxu1 %v18881_v11  ;;  %6364 = vmatprep.subr.bf16.mxu0 %v21687_v62  ;;  %v18938_v11 = vcombine.high %v6755_v51, %v6759_v54  ;;  %v6811_v54 = vld [vmem:[#allocation13 + $0x780] sm:$0xff] }
 0x3f7   :  { %13568 = vmatprep.subr.bf16.mxu1 %v18890_v16  ;;  %6394 = vmatprep.mubr.bf16.mxu0 %v22961_v23  ;;  %v18914_v23 = vcombine.high %v6731_v15, %v6735_v30  ;;  %v6763_v16 = vld [vmem:[#allocation13 + $0x600] sm:$0xff] }
 0x3f8   :  { %13598 = vmatprep.mubr.bf16.mxu1 %v23035_v17  ;;  %v21714_v15 = vld [vmem:[#allocation10 + $0x13f4] ss:$24 sps:$4 sm:$0xff]  }
 0x3f9   :  { %6365 = vmatpush1.bf16.msra.mxu0 %v21685_v0  ;;  %v21708_v0 = vld [vmem:[#allocation10 + $0x1394] ss:$24 sps:$4 sm:$0xff]  }
 0x3fa   :  { %13569 = vmatpush1.bf16.msra.mxu1 %v18889_v18  ;;  %6366 = vmatprep.subr.bf16.mxu0 %v21690_v19  ;;  %v6771_v18 = vld [vmem:[#allocation13 + $0x640] sm:$0xff] }
 0x3fb   :  { %13570 = vmatprep.subr.bf16.mxu1 %v18898_v22  ;;  %v6775_v19 = vld [vmem:[#allocation13 + $0x660] sm:$0xff] }
 0x3fc   :  { %v21706_v22 = vld [vmem:[#allocation10 + $0x1390] ss:$24 sps:$4 sm:$0xff]   ;;  %v18954_v6 = vcombine.high %v6771_v18, %v6775_v19 }
 0x3fd   :  { %6367 = vmatpush1.bf16.msra.mxu0 %v21688_v39  ;;  %v6779_v39 = vld [vmem:[#allocation13 + $0x680] sm:$0xff] }
 0x3fe   :  { %13571 = vmatpush1.bf16.msra.mxu1 %v18897_v28  ;;  %6368 = vmatprep.subr.bf16.mxu0 %v21693_v49  ;;  %v6783_v28 = vld [vmem:[#allocation13 + $0x6a0] sm:$0xff]  ;;  %v21709_v49 = vld [vmem:[#allocation10 + $0x13c0] ss:$24 sps:$4 sm:$0xff]  }
 0x3ff   :  { %13572 = vmatprep.subr.bf16.mxu1 %v18906_v26  ;;  %v18953_v26 = vcombine.low %v6771_v18, %v6775_v19  ;;  %v18962_v30 = vcombine.high %v6779_v39, %v6783_v28  ;;  %v6835_v19 = vld [vmem:[#allocation13 + $0x840] sm:$0xff] }
 0x401   :  { %6369 = vmatpush1.bf16.msra.mxu0 %v21691_v20  ;;  %v6787_v20 = vld [vmem:[#allocation13 + $0x6c0] sm:$0xff] }
 0x402   :  { %13573 = vmatpush1.bf16.msra.mxu1 %v18905_v32  ;;  %6370 = vmatprep.subr.bf16.mxu0 %v21696_v38  ;;  %v6791_v32 = vld [vmem:[#allocation13 + $0x6e0] sm:$0xff] }
 0x403   :  { %13574 = vmatprep.subr.bf16.mxu1 %v18914_v23  ;;  %v21712_v38 = vld [vmem:[#allocation10 + $0x13f0] ss:$24 sps:$4 sm:$0xff]   ;;  %v18961_v23 = vcombine.low %v6779_v39, %v6783_v28  ;;  %v18970_v41 = vcombine.high %v6787_v20, %v6791_v32  ;;  %v21735_v28 = vld [vmem:[#allocation10 + $0x1844] ss:$24 sps:$4 sm:$0xff]  }
 0x405   :  { %6371 = vmatpush1.bf16.msra.mxu0 %v21694_v52  ;;  %v6795_v52 = vld [vmem:[#allocation13 + $0x700] sm:$0xff] }
 0x406   :  { %13575 = vmatpush1.bf16.msra.mxu1 %v18913_v8  ;;  %6372 = vmatprep.subr.bf16.mxu0 %v21699_v60  ;;  %v6799_v8 = vld [vmem:[#allocation13 + $0x720] sm:$0xff]  ;;  %v21715_v60 = vld [vmem:[#allocation10 + $0x1420] ss:$24 sps:$4 sm:$0xff]  }
 0x407   :  { %13576 = vmatprep.subr.bf16.mxu1 %v18922_v33  ;;  %v4328_v47 = vpop.f32.mrb[36].mxu0  ;;  %v18969_v33 = vcombine.low %v6787_v20, %v6791_v32  ;;  %v18978_v44 = vcombine.high %v6795_v52, %v6799_v8  ;;  %v21733_v20 = vld [vmem:[#allocation10 + $0x1840] ss:$24 sps:$4 sm:$0xff]  }
 0x408   :  { %v23041_v21 = vpop.f32.mrb[36].mxu1  ;;  %v4329_v12 = vadd.f32 %v4328_v47, %v22987_v29  ;;  %v4330_v27 = vpop.f32.mrb[37].mxu0  ;;  %v21723_v47 = vld [vmem:[#allocation10 + $0x1484] ss:$24 sps:$4 sm:$0xff]  }
 0x409   :  { %v23044_v5 = vpop.f32.mrb[37].mxu1  ;;  %v4331_v2 = vadd.f32 %v4330_v27, %v22991_v35  ;;  %v4332_v9 = vpop.f32.mrb[38].mxu0  ;;  %6373 = vmatpush1.bf16.msra.mxu0 %v21697_v55  ;;  %v6767_v35 = vld [vmem:[#allocation13 + $0x620] sm:$0xff]  ;;  %v21721_v27 = vld [vmem:[#allocation10 + $0x1480] ss:$24 sps:$4 sm:$0xff]  }
 0x40a   :  { %13577 = vmatpush1.bf16.msra.mxu1 %v18921_v50  ;;  %v6277_v7 = vpop.f32.mrb[38].mxu1  ;;  %v23048_v34 = vadd.f32 %v23005_v53, %v4329_v12  ;;  %v4333_v25 = vpop.f32.mrb[39].mxu0  ;;  %6374 = vmatprep.subr.bf16.mxu0 %v21702_v36  ;;  %v18946_v53 = vcombine.high %v6763_v16, %v6767_v35  ;;  %v18945_v61 = vcombine.low %v6763_v16, %v6767_v35  ;;  %v6803_v55 = vld [vmem:[#allocation13 + $0x740] sm:$0xff] }
 0x40b   :  { %13578 = vmatprep.subr.bf16.mxu1 %v18930_v48  ;;  %v6278_v29 = vpop.f32.mrb[39].mxu1  ;;  %v23051_v62 = vadd.f32 %v23008_v57, %v4331_v2  ;;  %v21711_v57 = vld [vmem:[#allocation10 + $0x13c4] ss:$24 sps:$4 sm:$0xff]   ;;  %v21718_v36 = vld [vmem:[#allocation10 + $0x1450] ss:$24 sps:$4 sm:$0xff]   ;;  %v18977_v48 = vcombine.low %v6795_v52, %v6799_v8 }
 0x40c   :  { %v6807_v50 = vld [vmem:[#allocation13 + $0x760] sm:$0xff] }
 0x40d   :  { %6375 = vmatpush1.bf16.msra.mxu0 %v21700_v3  ;;  %v18986_v51 = vcombine.high %v6803_v55, %v6807_v50  ;;  %v6815_v12 = vld [vmem:[#allocation13 + $0x7a0] sm:$0xff]  ;;  %v18985_v2 = vcombine.low %v6803_v55, %v6807_v50 }
 0x40e   :  { %13579 = vmatpush1.bf16.msra.mxu1 %v18929_v4  ;;  %6376 = vmatprep.subr.bf16.mxu0 %v21705_v10  ;;  %v21726_v9 = vld [vmem:[#allocation10 + $0x14b4] ss:$24 sps:$4 sm:$0xff]   ;;  %v18994_v3 = vcombine.high %v6811_v54, %v6815_v12  ;;  %v21724_v25 = vld [vmem:[#allocation10 + $0x14b0] ss:$24 sps:$4 sm:$0xff]   ;;  %v18993_v10 = vcombine.low %v6811_v54, %v6815_v12  ;;  %v21741_v8 = vld [vmem:[#allocation10 + $0x18a4] ss:$24 sps:$4 sm:$0xff]  }
 0x40f   :  { %13580 = vmatprep.subr.bf16.mxu1 %v18938_v11  ;;  %v6819_v4 = vld [vmem:[#allocation13 + $0x7c0] sm:$0xff] }
 0x410   :  { %v6823_v7 = vld [vmem:[#allocation13 + $0x7e0] sm:$0xff] }
 0x411   :  { %6377 = vmatpush1.bf16.msra.mxu0 %v21703_v31  ;;  %v21729_v11 = vld [vmem:[#allocation10 + $0x14e4] ss:$24 sps:$4 sm:$0xff]   ;;  %v19002_v29 = vcombine.high %v6819_v4, %v6823_v7  ;;  %v21727_v31 = vld [vmem:[#allocation10 + $0x14e0] ss:$24 sps:$4 sm:$0xff]   ;;  %v21736_v52 = vld [vmem:[#allocation10 + $0x1870] ss:$24 sps:$4 sm:$0xff]  }
 0x412   :  { %13581 = vmatpush1.bf16.msra.mxu1 %v18937_v59  ;;  %6378 = vmatprep.subr.bf16.mxu0 %v21708_v0  ;;  %v6827_v16 = vld [vmem:[#allocation13 + $0x800] sm:$0xff]  ;;  %v19001_v59 = vcombine.low %v6819_v4, %v6823_v7 }
 0x413   :  { %13582 = vmatprep.subr.bf16.mxu1 %v18946_v53  ;;  %v6831_v35 = vld [vmem:[#allocation13 + $0x820] sm:$0xff] }
 0x414   :  { %v6537_v0 = vld [vmem:[#allocation8 + $0x10] sm:$0xff]  ;;  %v21732_v53 = vld [vmem:[#allocation10 + $0x1814] ss:$24 sps:$4 sm:$0xff]   ;;  %v19010_v18 = vcombine.high %v6827_v16, %v6831_v35  ;;  %v19009_v39 = vcombine.low %v6827_v16, %v6831_v35 }
 0x415   :  { %6379 = vmatpush1.bf16.msra.mxu0 %v21706_v22  ;;  %v6839_v22 = vld [vmem:[#allocation13 + $0x860] sm:$0xff] }
 0x416   :  { %13583 = vmatpush1.bf16.msra.mxu1 %v18945_v61  ;;  %6380 = vmatprep.subr.bf16.mxu0 %v21711_v57  ;;  %v23053_v61 = vpack.c.bf16 %v6537_v0, %v6537_v0  ;;  %v6540_v57 = vld [vmem:[#allocation8 + $0x28] sm:$0xff]  ;;  %v19017_v32 = vcombine.low %v6835_v19, %v6839_v22  ;;  %v21744_v50 = vld [vmem:[#allocation10 + $0x18d4] ss:$24 sps:$4 sm:$0xff]  }
 0x417   :  { %13584 = vmatprep.subr.bf16.mxu1 %v18954_v6  ;;  %v21730_v6 = vld [vmem:[#allocation10 + $0x1810] ss:$24 sps:$4 sm:$0xff]   ;;  %v21747_v54 = vld [vmem:[#allocation10 + $0x1904] ss:$24 sps:$4 sm:$0xff]   ;;  %v21750_v4 = vld [vmem:[#allocation10 + $0x1934] ss:$24 sps:$4 sm:$0xff]  }
 0x419   :  { %6381 = vmatpush1.bf16.msra.mxu0 %v21709_v49  ;;  %v19018_v49 = vcombine.high %v6835_v19, %v6839_v22 }
 0x41a   :  { %13585 = vmatpush1.bf16.msra.mxu1 %v18953_v26  ;;  %6382 = vmatprep.subr.bf16.mxu0 %v21714_v15  ;;  %v6843_v26 = vld [vmem:[#allocation13 + $0x880] sm:$0xff] }
 0x41b   :  { %13586 = vmatprep.subr.bf16.mxu1 %v18962_v30  ;;  %v6847_v15 = vld [vmem:[#allocation13 + $0x8a0] sm:$0xff]  ;;  %v23055_v30 = vpack.c.bf16 %v6540_v57, %v6540_v57 }
 0x41c   :  { %v21753_v57 = vld [vmem:[#allocation10 + $0x1964] ss:$24 sps:$4 sm:$0xff]  }
 0x41d   :  { %6383 = vmatpush1.bf16.msra.mxu0 %v21712_v38  ;;  %v21738_v38 = vld [vmem:[#allocation10 + $0x1874] ss:$24 sps:$4 sm:$0xff]  }
 0x41e   :  { %13587 = vmatpush1.bf16.msra.mxu1 %v18961_v23  ;;  %6384 = vmatprep.subr.bf16.mxu0 %v21717_v40  ;;  %v19026_v23 = vcombine.high %v6843_v26, %v6847_v15  ;;  %v6851_v40 = vld [vmem:[#allocation13 + $0x8c0] sm:$0xff] }
 0x41f   :  { %13588 = vmatprep.subr.bf16.mxu1 %v18970_v41  ;;  %v6855_v41 = vld [vmem:[#allocation13 + $0x8e0] sm:$0xff] }
 0x420   :  { %v19033_v55 = vcombine.low %v6851_v40, %v6855_v41 }
 0x421   :  { %6385 = vmatpush1.bf16.msra.mxu0 %v21715_v60  ;;  %v19034_v60 = vcombine.high %v6851_v40, %v6855_v41  ;;  %v21759_v40 = vld [vmem:[#allocation10 + $0x19c4] ss:$24 sps:$4 sm:$0xff]  }
 0x422   :  { %13589 = vmatpush1.bf16.msra.mxu1 %v18969_v33  ;;  %6386 = vmatprep.subr.bf16.mxu0 %v21720_v13  ;;  %v6859_v33 = vld [vmem:[#allocation13 + $0x900] sm:$0xff] }
 0x423   :  { %13590 = vmatprep.subr.bf16.mxu1 %v18978_v44  ;;  %v6863_v13 = vld [vmem:[#allocation13 + $0x920] sm:$0xff]  ;;  %v21739_v44 = vld [vmem:[#allocation10 + $0x18a0] ss:$24 sps:$4 sm:$0xff]  }
 0x425   :  { %6387 = vmatpush1.bf16.msra.mxu0 %v21718_v36  ;;  %v6867_v36 = vld [vmem:[#allocation13 + $0x940] sm:$0xff] }
 0x426   :  { %13591 = vmatpush1.bf16.msra.mxu1 %v18977_v48  ;;  %6388 = vmatprep.subr.bf16.mxu0 %v21723_v47  ;;  %v6871_v48 = vld [vmem:[#allocation13 + $0x960] sm:$0xff] }
 0x427   :  { %13592 = vmatprep.subr.bf16.mxu1 %v18986_v51  ;;  %v21742_v47 = vld [vmem:[#allocation10 + $0x18d0] ss:$24 sps:$4 sm:$0xff]   ;;  %v19041_v51 = vcombine.low %v6859_v33, %v6863_v13  ;;  %v19050_v12 = vcombine.high %v6867_v36, %v6871_v48 }
 0x429   :  { %6389 = vmatpush1.bf16.msra.mxu0 %v21721_v27  ;;  %v6875_v27 = vld [vmem:[#allocation13 + $0x980] sm:$0xff] }
 0x42a   :  { %13593 = vmatpush1.bf16.msra.mxu1 %v18985_v2  ;;  %6390 = vmatprep.subr.bf16.mxu0 %v21726_v9  ;;  %v6879_v2 = vld [vmem:[#allocation13 + $0x9a0] sm:$0xff]  ;;  %v21745_v9 = vld [vmem:[#allocation10 + $0x1900] ss:$24 sps:$4 sm:$0xff]  }
 0x42b   :  { %13594 = vmatprep.subr.bf16.mxu1 %v18994_v3  ;;  %v19049_v3 = vcombine.low %v6867_v36, %v6871_v48  ;;  %v19058_v7 = vcombine.high %v6875_v27, %v6879_v2  ;;  %v21765_v36 = vld [vmem:[#allocation10 + $0x1a24] ss:$24 sps:$4 sm:$0xff]  }
 0x42d   :  { %6391 = vmatpush1.bf16.msra.mxu0 %v21724_v25 }
 0x42e   :  { %13595 = vmatpush1.bf16.msra.mxu1 %v18993_v10  ;;  %6392 = vmatprep.subr.bf16.mxu0 %v21729_v11  ;;  %v6883_v10 = vld [vmem:[#allocation13 + $0x9c0] sm:$0xff] }
 0x42f   :  { %13596 = vmatprep.subr.bf16.mxu1 %v19002_v29  ;;  %v6887_v11 = vld [vmem:[#allocation13 + $0x9e0] sm:$0xff] }
 0x431   :  { %6393 = vmatpush1.bf16.msra.mxu0 %v21727_v31 }
 0x432   :  { %13597 = vmatpush1.bf16.msra.mxu1 %v19001_v59  ;;  %6444 = vmatprep.subr.bf16.mxu0 %v21732_v53  ;;  %v21748_v53 = vld [vmem:[#allocation10 + $0x1930] ss:$24 sps:$4 sm:$0xff]  }
 0x433   :  { %13607 = vmatprep.subr.bf16.mxu1 %v19010_v18  ;;  %v19057_v18 = vcombine.low %v6875_v27, %v6879_v2  ;;  %v21768_v27 = vld [vmem:[#allocation10 + $0x1a54] ss:$24 sps:$4 sm:$0xff]  }
 0x434   :  { %6395 = vmatmul.mubr.bf16.vlgmr.msra.gmra.mrb[52].mxu0 %v22977_v56  ;;  %v19025_v56 = vcombine.low %v6843_v26, %v6847_v15  ;;  %v19065_v26 = vcombine.low %v6883_v10, %v6887_v11 }
 0x435   :  { %13599 = vmatmul.mubr.bf16.vlgmr.msra.gmra.mrb[48].mxu1 %v23053_v61  ;;  %6445 = vmatpush1.bf16.msra.mxu0 %v21730_v6  ;;  %v19066_v6 = vcombine.high %v6883_v10, %v6887_v11  ;;  %v6939_v11 = vld [vmem:[#allocation13 + $0xb80] sm:$0xff] }
 0x436   :  { %13608 = vmatpush1.bf16.msra.mxu1 %v19009_v39  ;;  %6446 = vmatprep.subr.bf16.mxu0 %v21735_v28  ;;  %v6895_v28 = vld [vmem:[#allocation13 + $0xa20] sm:$0xff] }
 0x437   :  { %13609 = vmatprep.subr.bf16.mxu1 %v19018_v49  ;;  %6476 = vmatprep.mubr.bf16.mxu0 %v22979_v24  ;;  %v19042_v24 = vcombine.high %v6859_v33, %v6863_v13  ;;  %v21751_v49 = vld [vmem:[#allocation10 + $0x1960] ss:$24 sps:$4 sm:$0xff]   ;;  %v21762_v33 = vld [vmem:[#allocation10 + $0x19f4] ss:$24 sps:$4 sm:$0xff]  }
 0x438   :  { %13639 = vmatprep.mubr.bf16.mxu1 %v23055_v30 }
 0x439   :  { %6447 = vmatpush1.bf16.msra.mxu0 %v21733_v20  ;;  %v6899_v20 = vld [vmem:[#allocation13 + $0xa40] sm:$0xff] }
 0x43a   :  { %13610 = vmatpush1.bf16.msra.mxu1 %v19017_v32  ;;  %6448 = vmatprep.subr.bf16.mxu0 %v21738_v38  ;;  %v6903_v32 = vld [vmem:[#allocation13 + $0xa60] sm:$0xff] }
 0x43b   :  { %13611 = vmatprep.subr.bf16.mxu1 %v19026_v23  ;;  %v21754_v38 = vld [vmem:[#allocation10 + $0x1990] ss:$24 sps:$4 sm:$0xff]   ;;  %v19082_v41 = vcombine.high %v6899_v20, %v6903_v32 }
 0x43d   :  { %6449 = vmatpush1.bf16.msra.mxu0 %v21736_v52  ;;  %v6907_v52 = vld [vmem:[#allocation13 + $0xa80] sm:$0xff] }
 0x43e   :  { %13612 = vmatpush1.bf16.msra.mxu1 %v19025_v56  ;;  %6450 = vmatprep.subr.bf16.mxu0 %v21741_v8  ;;  %v6911_v56 = vld [vmem:[#allocation13 + $0xaa0] sm:$0xff]  ;;  %v21757_v8 = vld [vmem:[#allocation10 + $0x19c0] ss:$24 sps:$4 sm:$0xff]  }
 0x43f   :  { %13613 = vmatprep.subr.bf16.mxu1 %v19034_v60  ;;  %v19081_v60 = vcombine.low %v6899_v20, %v6903_v32  ;;  %v19090_v13 = vcombine.high %v6907_v52, %v6911_v56  ;;  %v21775_v20 = vld [vmem:[#allocation10 + $0x1ae0] ss:$24 sps:$4 sm:$0xff]  }
 0x441   :  { %6451 = vmatpush1.bf16.msra.mxu0 %v21739_v44  ;;  %v6915_v44 = vld [vmem:[#allocation13 + $0xac0] sm:$0xff] }
 0x442   :  { %13614 = vmatpush1.bf16.msra.mxu1 %v19033_v55  ;;  %6452 = vmatprep.subr.bf16.mxu0 %v21744_v50  ;;  %v6919_v55 = vld [vmem:[#allocation13 + $0xae0] sm:$0xff] }
 0x443   :  { %13615 = vmatprep.subr.bf16.mxu1 %v19042_v24  ;;  %v21760_v50 = vld [vmem:[#allocation10 + $0x19f0] ss:$24 sps:$4 sm:$0xff]   ;;  %v19089_v24 = vcombine.low %v6907_v52, %v6911_v56  ;;  %v19098_v48 = vcombine.high %v6915_v44, %v6919_v55 }
 0x444   :  { %v6967_v52 = vld [vmem:[#allocation13 + $0xc60] sm:$0xff]  ;;  %v6580_v56 = vld [vmem:[#allocation13 + $0x48] sm:$0xff] }
 0x445   :  { %6453 = vmatpush1.bf16.msra.mxu0 %v21742_v47  ;;  %v6923_v47 = vld [vmem:[#allocation13 + $0xb00] sm:$0xff] }
 0x446   :  { %13616 = vmatpush1.bf16.msra.mxu1 %v19041_v51  ;;  %6454 = vmatprep.subr.bf16.mxu0 %v21747_v54  ;;  %v6927_v51 = vld [vmem:[#allocation13 + $0xb20] sm:$0xff]  ;;  %v21763_v54 = vld [vmem:[#allocation10 + $0x1a20] ss:$24 sps:$4 sm:$0xff]  }
 0x447   :  { %13617 = vmatprep.subr.bf16.mxu1 %v19050_v12  ;;  %v6150_v25 = vpop.f32.mrb[40].mxu0  ;;  %v19097_v12 = vcombine.low %v6915_v44, %v6919_v55  ;;  %v19106_v2 = vcombine.high %v6923_v47, %v6927_v51 }
 0x448   :  { %v23061_v29 = vpop.f32.mrb[40].mxu1  ;;  %v23064_v16 = vadd.f32 %v23023_v1, %v6150_v25  ;;  %v6152_v35 = vpop.f32.mrb[41].mxu0  ;;  %v6891_v1 = vld [vmem:[#allocation13 + $0xa00] sm:$0xff] }
 0x449   :  { %v23066_v31 = vpop.f32.mrb[41].mxu1  ;;  %v23069_v59 = vadd.f32 %v23028_v58, %v6152_v35  ;;  %v6154_v0 = vpop.f32.mrb[42].mxu0  ;;  %6455 = vmatpush1.bf16.msra.mxu0 %v21745_v9  ;;  %v21756_v58 = vld [vmem:[#allocation10 + $0x1994] ss:$24 sps:$4 sm:$0xff]   ;;  %v19074_v15 = vcombine.high %v6891_v1, %v6895_v28  ;;  %v19073_v23 = vcombine.low %v6891_v1, %v6895_v28  ;;  %v21771_v25 = vld [vmem:[#allocation10 + $0x1a84] ss:$24 sps:$4 sm:$0xff]  }
 0x44a   :  { %13618 = vmatpush1.bf16.msra.mxu1 %v19049_v3  ;;  %v6359_v19 = vpop.f32.mrb[42].mxu1  ;;  %v6155_v22 = vpop.f32.mrb[43].mxu0  ;;  %6456 = vmatprep.subr.bf16.mxu0 %v21750_v4  ;;  %v6931_v9 = vld [vmem:[#allocation13 + $0xb40] sm:$0xff]  ;;  %v21769_v0 = vld [vmem:[#allocation10 + $0x1a80] ss:$24 sps:$4 sm:$0xff]  }
 0x44b   :  { %13619 = vmatprep.subr.bf16.mxu1 %v19058_v7  ;;  %v6360_v39 = vpop.f32.mrb[43].mxu1  ;;  %v6935_v3 = vld [vmem:[#allocation13 + $0xb60] sm:$0xff]  ;;  %v19105_v7 = vcombine.low %v6923_v47, %v6927_v51  ;;  %v6592_v47 = vld [vmem:[#allocation13 + $0xa8] sm:$0xff] }
 0x44c   :  { %v21766_v4 = vld [vmem:[#allocation10 + $0x1a50] ss:$24 sps:$4 sm:$0xff]   ;;  %v19114_v10 = vcombine.high %v6931_v9, %v6935_v3  ;;  %v21777_v1 = vld [vmem:[#allocation10 + $0x1ae4] ss:$24 sps:$4 sm:$0xff]  }
 0x44d   :  { %6457 = vmatpush1.bf16.msra.mxu0 %v21748_v53  ;;  %v6943_v35 = vld [vmem:[#allocation13 + $0xba0] sm:$0xff]  ;;  %v19113_v53 = vcombine.low %v6931_v9, %v6935_v3 }
 0x44e   :  { %13620 = vmatpush1.bf16.msra.mxu1 %v19057_v18  ;;  %6458 = vmatprep.subr.bf16.mxu0 %v21753_v57  ;;  %v21774_v18 = vld [vmem:[#allocation10 + $0x1ab4] ss:$24 sps:$4 sm:$0xff]   ;;  %v19122_v19 = vcombine.high %v6939_v11, %v6943_v35  ;;  %v19121_v39 = vcombine.low %v6939_v11, %v6943_v35 }
 0x44f   :  { %13621 = vmatprep.subr.bf16.mxu1 %v19066_v6  ;;  %v6947_v22 = vld [vmem:[#allocation13 + $0xbc0] sm:$0xff] }
 0x450   :  { %v6951_v57 = vld [vmem:[#allocation13 + $0xbe0] sm:$0xff] }
 0x451   :  { %6459 = vmatpush1.bf16.msra.mxu0 %v21751_v49  ;;  %v21772_v6 = vld [vmem:[#allocation10 + $0x1ab0] ss:$24 sps:$4 sm:$0xff]   ;;  %v19130_v28 = vcombine.high %v6947_v22, %v6951_v57  ;;  %v19129_v32 = vcombine.low %v6947_v22, %v6951_v57 }
 0x452   :  { %13622 = vmatpush1.bf16.msra.mxu1 %v19065_v26  ;;  %6460 = vmatprep.subr.bf16.mxu0 %v21756_v58  ;;  %v6955_v49 = vld [vmem:[#allocation13 + $0xc00] sm:$0xff]  ;;  %v6572_v58 = vld [vmem:[#allocation13 + $0x8] sm:$0xff] }
 0x453   :  { %13623 = vmatprep.subr.bf16.mxu1 %v19074_v15  ;;  %v6959_v26 = vld [vmem:[#allocation13 + $0xc20] sm:$0xff]  ;;  %v6576_v15 = vld [vmem:[#allocation13 + $0x28] sm:$0xff] }
 0x454   :  { %v18755_v44 = vcombine.low %v6572_v58, %v6576_v15  ;;  %v6979_v9 = vld [vmem:[#allocation13 + $0xcc0] sm:$0xff] }
 0x455   :  { %6461 = vmatpush1.bf16.msra.mxu0 %v21754_v38  ;;  %v6539_v38 = vld [vmem:[#allocation8 + $0x20] sm:$0xff]  ;;  %v6983_v3 = vld [vmem:[#allocation13 + $0xce0] sm:$0xff] }
 0x456   :  { %13624 = vmatpush1.bf16.msra.mxu1 %v19073_v23  ;;  %6462 = vmatprep.subr.bf16.mxu0 %v21759_v40  ;;  %v19138_v23 = vcombine.high %v6955_v49, %v6959_v26  ;;  %v18756_v40 = vcombine.high %v6572_v58, %v6576_v15  ;;  %v6987_v35 = vld [vmem:[#allocation13 + $0xd00] sm:$0xff] }
 0x457   :  { %13625 = vmatprep.subr.bf16.mxu1 %v19082_v41  ;;  %v6963_v41 = vld [vmem:[#allocation13 + $0xc40] sm:$0xff] }
 0x458   :  { %v19146_v55 = vcombine.high %v6963_v41, %v6967_v52 }
 0x459   :  { %6463 = vmatpush1.bf16.msra.mxu0 %v21757_v8  ;;  %v6584_v8 = vld [vmem:[#allocation13 + $0x68] sm:$0xff] }
 0x45a   :  { %13626 = vmatpush1.bf16.msra.mxu1 %v19081_v60  ;;  %6464 = vmatprep.subr.bf16.mxu0 %v21762_v33  ;;  %v23071_v60 = vpack.c.bf16 %v6539_v38, %v6539_v38  ;;  %v6542_v33 = vld [vmem:[#allocation8 + $0x38] sm:$0xff] }
 0x45b   :  { %13627 = vmatprep.subr.bf16.mxu1 %v19090_v13  ;;  %v19137_v13 = vcombine.low %v6955_v49, %v6959_v26  ;;  %v23073_v51 = vpack.c.bf16 %v6542_v33, %v6542_v33  ;;  %v6616_v49 = vld [vmem:[#allocation13 + $0x168] sm:$0xff]  ;;  %v7007_v38 = vld [vmem:[#allocation13 + $0xda0] sm:$0xff] }
 0x45c   :  { %v7011_v33 = vld [vmem:[#allocation13 + $0xdc0] sm:$0xff] }
 0x45d   :  { %6465 = vmatpush1.bf16.msra.mxu0 %v21760_v50  ;;  %v18764_v50 = vcombine.high %v6580_v56, %v6584_v8 }
 0x45e   :  { %13628 = vmatpush1.bf16.msra.mxu1 %v19089_v24  ;;  %6466 = vmatprep.subr.bf16.mxu0 %v21765_v36  ;;  %v6971_v24 = vld [vmem:[#allocation13 + $0xc80] sm:$0xff] }
 0x45f   :  { %13629 = vmatprep.subr.bf16.mxu1 %v19098_v48  ;;  %v6975_v36 = vld [vmem:[#allocation13 + $0xca0] sm:$0xff]  ;;  %v6588_v48 = vld [vmem:[#allocation13 + $0x88] sm:$0xff] }
 0x461   :  { %6467 = vmatpush1.bf16.msra.mxu0 %v21763_v54  ;;  %v19145_v54 = vcombine.low %v6963_v41, %v6967_v52 }
 0x462   :  { %13630 = vmatpush1.bf16.msra.mxu1 %v19097_v12  ;;  %6468 = vmatprep.subr.bf16.mxu0 %v21768_v27  ;;  %v18763_v12 = vcombine.low %v6580_v56, %v6584_v8  ;;  %v19154_v27 = vcombine.high %v6971_v24, %v6975_v36 }
 0x463   :  { %13631 = vmatprep.subr.bf16.mxu1 %v19106_v2  ;;  %v18772_v2 = vcombine.high %v6588_v48, %v6592_v47 }
 0x465   :  { %6469 = vmatpush1.bf16.msra.mxu0 %v21766_v4  ;;  %v6596_v4 = vld [vmem:[#allocation13 + $0xc8] sm:$0xff] }
 0x466   :  { %13632 = vmatpush1.bf16.msra.mxu1 %v19105_v7  ;;  %6470 = vmatprep.subr.bf16.mxu0 %v21771_v25  ;;  %v6600_v7 = vld [vmem:[#allocation13 + $0xe8] sm:$0xff]  ;;  %v18771_v25 = vcombine.low %v6588_v48, %v6592_v47 }
 0x467   :  { %13633 = vmatprep.subr.bf16.mxu1 %v19114_v10  ;;  %v19162_v10 = vcombine.high %v6979_v9, %v6983_v3  ;;  %v18780_v11 = vcombine.high %v6596_v4, %v6600_v7  ;;  %v18779_v22 = vcombine.low %v6596_v4, %v6600_v7 }
 0x469   :  { %6471 = vmatpush1.bf16.msra.mxu0 %v21769_v0  ;;  %v6991_v0 = vld [vmem:[#allocation13 + $0xd20] sm:$0xff] }
 0x46a   :  { %13634 = vmatpush1.bf16.msra.mxu1 %v19113_v53  ;;  %6472 = vmatprep.subr.bf16.mxu0 %v21774_v18  ;;  %v6604_v53 = vld [vmem:[#allocation13 + $0x108] sm:$0xff]  ;;  %v19170_v57 = vcombine.high %v6987_v35, %v6991_v0  ;;  %v19169_v26 = vcombine.low %v6987_v35, %v6991_v0 }
 0x46b   :  { %13635 = vmatprep.subr.bf16.mxu1 %v19122_v19  ;;  %v6608_v18 = vld [vmem:[#allocation13 + $0x128] sm:$0xff]  ;;  %v19161_v19 = vcombine.low %v6979_v9, %v6983_v3 }
 0x46c   :  { %v18787_v58 = vcombine.low %v6604_v53, %v6608_v18  ;;  %v6640_v35 = vld [vmem:[#allocation13 + $0x228] sm:$0xff] }
 0x46d   :  { %6473 = vmatpush1.bf16.msra.mxu0 %v21772_v6  ;;  %v18788_v6 = vcombine.high %v6604_v53, %v6608_v18 }
 0x46e   :  { %13636 = vmatpush1.bf16.msra.mxu1 %v19121_v39  ;;  %6474 = vmatprep.subr.bf16.mxu0 %v21777_v1  ;;  %v6995_v39 = vld [vmem:[#allocation13 + $0xd40] sm:$0xff] }
 0x46f   :  { %13637 = vmatprep.subr.bf16.mxu1 %v19130_v28  ;;  %v6999_v1 = vld [vmem:[#allocation13 + $0xd60] sm:$0xff]  ;;  %v6612_v28 = vld [vmem:[#allocation13 + $0x148] sm:$0xff] }
 0x470   :  { %v19178_v15 = vcombine.high %v6995_v39, %v6999_v1  ;;  %v19177_v41 = vcombine.low %v6995_v39, %v6999_v1  ;;  %v18795_v52 = vcombine.low %v6612_v28, %v6616_v49 }
 0x471   :  { %6475 = vmatpush1.bf16.msra.mxu0 %v21775_v20  ;;  %v18796_v20 = vcombine.high %v6612_v28, %v6616_v49  ;;  %v7035_v49 = vld [vmem:[#allocation13 + $0xe80] sm:$0xff] }
 0x472   :  { %13638 = vmatpush1.bf16.msra.mxu1 %v19129_v32  ;;  %13894 = vmatprep.subr.bf16.mxu0 %v18756_v40  ;;  %v7003_v32 = vld [vmem:[#allocation13 + $0xd80] sm:$0xff]  ;;  %v6624_v40 = vld [vmem:[#allocation13 + $0x1a8] sm:$0xff] }
 0x473   :  { %13648 = vmatprep.subr.bf16.mxu1 %v19138_v23  ;;  %v6620_v23 = vld [vmem:[#allocation13 + $0x188] sm:$0xff]  ;;  %v19186_v56 = vcombine.high %v7003_v32, %v7007_v38 }
 0x474   :  { %6477 = vmatmul.mubr.bf16.vlgmr.msra.gmra.mrb[56].mxu0 %v22999_v63  ;;  %v19153_v63 = vcombine.low %v6971_v24, %v6975_v36  ;;  %v18804_v8 = vcombine.high %v6620_v23, %v6624_v40 }
 0x475   :  { %13640 = vmatmul.mubr.bf16.vlgmr.msra.gmra.mrb[48].mxu1 %v23071_v60  ;;  %13895 = vmatpush1.bf16.msra.mxu0 %v18755_v44  ;;  %v7015_v44 = vld [vmem:[#allocation13 + $0xde0] sm:$0xff] }
 0x476   :  { %13649 = vmatpush1.bf16.msra.mxu1 %v19137_v13  ;;  %13896 = vmatprep.subr.bf16.mxu0 %v18764_v50  ;;  %v6632_v50 = vld [vmem:[#allocation13 + $0x1e8] sm:$0xff]  ;;  %v19194_v7 = vcombine.high %v7011_v33, %v7015_v44  ;;  %v19193_v0 = vcombine.low %v7011_v33, %v7015_v44 }
 0x477   :  { %13650 = vmatprep.subr.bf16.mxu1 %v19146_v55  ;;  %13680 = vmatprep.mubr.bf16.mxu1 %v23073_v51  ;;  %v6628_v55 = vld [vmem:[#allocation13 + $0x1c8] sm:$0xff] }
 0x478   :  { %13926 = vmatprep.mubr.bf16.mxu0 %v23017_v37  ;;  %v18811_v53 = vcombine.low %v6628_v55, %v6632_v50 }
 0x479   :  { %13897 = vmatpush1.bf16.msra.mxu0 %v18763_v12 }
 0x47a   :  { %13651 = vmatpush1.bf16.msra.mxu1 %v19145_v54  ;;  %13898 = vmatprep.subr.bf16.mxu0 %v18772_v2  ;;  %v18803_v2 = vcombine.low %v6620_v23, %v6624_v40  ;;  %v7043_v40 = vld [vmem:[#allocation13 + $0xec0] sm:$0xff] }
 0x47b   :  { %13652 = vmatprep.subr.bf16.mxu1 %v19154_v27  ;;  %v19185_v27 = vcombine.low %v7003_v32, %v7007_v38 }
 0x47d   :  { %13899 = vmatpush1.bf16.msra.mxu0 %v18771_v25 }
 0x47e   :  { %13653 = vmatpush1.bf16.msra.mxu1 %v19153_v63  ;;  %13900 = vmatprep.subr.bf16.mxu0 %v18780_v11  ;;  %v18812_v63 = vcombine.high %v6628_v55, %v6632_v50  ;;  %v6636_v11 = vld [vmem:[#allocation13 + $0x208] sm:$0xff]  ;;  %v7051_v55 = vld [vmem:[#allocation13 + $0xf00] sm:$0xff] }
 0x47f   :  { %13654 = vmatprep.subr.bf16.mxu1 %v19162_v10  ;;  %v18820_v18 = vcombine.high %v6636_v11, %v6640_v35  ;;  %v7055_v50 = vld [vmem:[#allocation13 + $0xf20] sm:$0xff] }
 0x481   :  { %13901 = vmatpush1.bf16.msra.mxu0 %v18779_v22  ;;  %v7031_v22 = vld [vmem:[#allocation13 + $0xe60] sm:$0xff] }
 0x482   :  { %13655 = vmatpush1.bf16.msra.mxu1 %v19161_v19  ;;  %13902 = vmatprep.subr.bf16.mxu0 %v18788_v6  ;;  %v7027_v19 = vld [vmem:[#allocation13 + $0xe40] sm:$0xff]  ;;  %v6648_v6 = vld [vmem:[#allocation13 + $0x268] sm:$0xff] }
 0x483   :  { %13656 = vmatprep.subr.bf16.mxu1 %v19170_v57  ;;  %v6644_v57 = vld [vmem:[#allocation13 + $0x248] sm:$0xff]  ;;  %v19210_v1 = vcombine.high %v7027_v19, %v7031_v22 }
 0x484   :  { %v18828_v28 = vcombine.high %v6644_v57, %v6648_v6  ;;  %v18827_v32 = vcombine.low %v6644_v57, %v6648_v6  ;;  %v7075_v6 = vld [vmem:[#allocation13 + $0xfc0] sm:$0xff] }
 0x485   :  { %13903 = vmatpush1.bf16.msra.mxu0 %v18787_v58  ;;  %v6652_v58 = vld [vmem:[#allocation13 + $0x288] sm:$0xff] }
 0x486   :  { %13657 = vmatpush1.bf16.msra.mxu1 %v19169_v26  ;;  %13904 = vmatprep.subr.bf16.mxu0 %v18796_v20  ;;  %v7039_v26 = vld [vmem:[#allocation13 + $0xea0] sm:$0xff]  ;;  %v19209_v20 = vcombine.low %v7027_v19, %v7031_v22 }
 0x487   :  { %13658 = vmatprep.subr.bf16.mxu1 %v19178_v15  ;;  %v6232_v13 = vpop.f32.mrb[44].mxu0  ;;  %v6656_v15 = vld [vmem:[#allocation13 + $0x2a8] sm:$0xff]  ;;  %v19218_v38 = vcombine.high %v7035_v49, %v7039_v26 }
 0x488   :  { %v23079_v24 = vpop.f32.mrb[44].mxu1  ;;  %v6233_v36 = vadd.f32 %v6232_v13, %v23064_v16  ;;  %v6234_v48 = vpop.f32.mrb[45].mxu0  ;;  %v7019_v16 = vld [vmem:[#allocation13 + $0xe00] sm:$0xff]  ;;  %v18836_v23 = vcombine.high %v6652_v58, %v6656_v15  ;;  %v18835_v33 = vcombine.low %v6652_v58, %v6656_v15 }
 0x489   :  { %v23082_v47 = vpop.f32.mrb[45].mxu1  ;;  %v6235_v54 = vadd.f32 %v6234_v48, %v23069_v59  ;;  %v6236_v12 = vpop.f32.mrb[46].mxu0  ;;  %13905 = vmatpush1.bf16.msra.mxu0 %v18795_v52  ;;  %v7023_v59 = vld [vmem:[#allocation13 + $0xe20] sm:$0xff]  ;;  %v6660_v52 = vld [vmem:[#allocation13 + $0x2c8] sm:$0xff] }
 0x48a   :  { %13659 = vmatpush1.bf16.msra.mxu1 %v19177_v41  ;;  %v6441_v9 = vpop.f32.mrb[46].mxu1  ;;  %v23086_v3 = vadd.f32 %v6233_v36, %v22994_v42  ;;  %v6237_v4 = vpop.f32.mrb[47].mxu0  ;;  %13906 = vmatprep.subr.bf16.mxu0 %v18804_v8  ;;  %v19202_v42 = vcombine.high %v7019_v16, %v7023_v59  ;;  %v19201_v39 = vcombine.low %v7019_v16, %v7023_v59  ;;  %v7047_v41 = vld [vmem:[#allocation13 + $0xee0] sm:$0xff]  ;;  %v6668_v36 = vld [vmem:[#allocation13 + $0x308] sm:$0xff] }
 0x48b   :  { %13660 = vmatprep.subr.bf16.mxu1 %v19186_v56  ;;  %v6442_v25 = vpop.f32.mrb[47].mxu1  ;;  %v23089_v10 = vadd.f32 %v6235_v54, %v22997_v43  ;;  %v18819_v43 = vcombine.low %v6636_v11, %v6640_v35  ;;  %v6664_v56 = vld [vmem:[#allocation13 + $0x2e8] sm:$0xff]  ;;  %v19217_v8 = vcombine.low %v7035_v49, %v7039_v26  ;;  %v19226_v13 = vcombine.high %v7043_v40, %v7047_v41  ;;  %v7059_v9 = vld [vmem:[#allocation13 + $0xf40] sm:$0xff] }
 0x48c   :  { %v18844_v44 = vcombine.high %v6660_v52, %v6664_v56  ;;  %v6672_v48 = vld [vmem:[#allocation13 + $0x328] sm:$0xff]  ;;  %v19225_v54 = vcombine.low %v7043_v40, %v7047_v41  ;;  %v18843_v12 = vcombine.low %v6660_v52, %v6664_v56  ;;  %v7063_v4 = vld [vmem:[#allocation13 + $0xf60] sm:$0xff]  ;;  %v19233_v16 = vcombine.low %v7051_v55, %v7055_v50 }
 0x48d   :  { %13907 = vmatpush1.bf16.msra.mxu0 %v18803_v2  ;;  %v18852_v2 = vcombine.high %v6668_v36, %v6672_v48  ;;  %v18851_v25 = vcombine.low %v6668_v36, %v6672_v48  ;;  %v19242_v59 = vcombine.high %v7059_v9, %v7063_v4  ;;  %v7067_v35 = vld [vmem:[#allocation13 + $0xf80] sm:$0xff] }
 0x48e   :  { %13661 = vmatpush1.bf16.msra.mxu1 %v19185_v27  ;;  %13908 = vmatprep.subr.bf16.mxu0 %v18812_v63  ;;  %v19234_v27 = vcombine.high %v7051_v55, %v7055_v50  ;;  %v6680_v63 = vld [vmem:[#allocation13 + $0x368] sm:$0xff]  ;;  %v7083_v15 = vld [vmem:[#allocation13 + $0x1000] sm:$0xff]  ;;  %v6544_v50 = vld [vmem:[#allocation8 + $0x48] sm:$0xff] }
 0x48f   :  { %13662 = vmatprep.subr.bf16.mxu1 %v19194_v7  ;;  %v6676_v7 = vld [vmem:[#allocation13 + $0x348] sm:$0xff]  ;;  %v6541_v41 = vld [vmem:[#allocation8 + $0x30] sm:$0xff] }
 0x490   :  { %v18860_v11 = vcombine.high %v6676_v7, %v6680_v63  ;;  %v18859_v19 = vcombine.low %v6676_v7, %v6680_v63  ;;  %v23091_v55 = vpack.c.bf16 %v6541_v41, %v6541_v41  ;;  %v23093_v7 = vpack.c.bf16 %v6544_v50, %v6544_v50 }
 0x491   :  { %13909 = vmatpush1.bf16.msra.mxu0 %v18811_v53  ;;  %v6684_v53 = vld [vmem:[#allocation13 + $0x388] sm:$0xff] }
 0x492   :  { %13663 = vmatpush1.bf16.msra.mxu1 %v19193_v0  ;;  %13910 = vmatprep.subr.bf16.mxu0 %v18820_v18  ;;  %v7071_v0 = vld [vmem:[#allocation13 + $0xfa0] sm:$0xff]  ;;  %v19241_v18 = vcombine.low %v7059_v9, %v7063_v4  ;;  %v6716_v9 = vld [vmem:[#allocation13 + $0x488] sm:$0xff] }
 0x493   :  { %13664 = vmatprep.subr.bf16.mxu1 %v19202_v42  ;;  %v6688_v42 = vld [vmem:[#allocation13 + $0x3a8] sm:$0xff]  ;;  %v19250_v22 = vcombine.high %v7067_v35, %v7071_v0 }
 0x494   :  { %v18868_v57 = vcombine.high %v6684_v53, %v6688_v42  ;;  %v18867_v49 = vcombine.low %v6684_v53, %v6688_v42  ;;  %v6720_v4 = vld [vmem:[#allocation13 + $0x4a8] sm:$0xff] }
 0x495   :  { %13911 = vmatpush1.bf16.msra.mxu0 %v18819_v43  ;;  %v6692_v43 = vld [vmem:[#allocation13 + $0x3c8] sm:$0xff] }
 0x496   :  { %13665 = vmatpush1.bf16.msra.mxu1 %v19201_v39  ;;  %13912 = vmatprep.subr.bf16.mxu0 %v18828_v28  ;;  %v7079_v39 = vld [vmem:[#allocation13 + $0xfe0] sm:$0xff]  ;;  %v19249_v28 = vcombine.low %v7067_v35, %v7071_v0  ;;  %v6724_v0 = vld [vmem:[#allocation13 + $0x4c8] sm:$0xff] }
 0x497   :  { %13666 = vmatprep.subr.bf16.mxu1 %v19210_v1  ;;  %v6696_v1 = vld [vmem:[#allocation13 + $0x3e8] sm:$0xff]  ;;  %v19258_v26 = vcombine.high %v7075_v6, %v7079_v39  ;;  %v7111_v35 = vld [vmem:[#allocation13 + $0x10e0] sm:$0xff] }
 0x498   :  { %v18876_v58 = vcombine.high %v6692_v43, %v6696_v1  ;;  %v18875_v40 = vcombine.low %v6692_v43, %v6696_v1  ;;  %v6728_v53 = vld [vmem:[#allocation13 + $0x4e8] sm:$0xff] }
 0x499   :  { %13913 = vmatpush1.bf16.msra.mxu0 %v18827_v32  ;;  %v6700_v32 = vld [vmem:[#allocation13 + $0x408] sm:$0xff] }
 0x49a   :  { %13667 = vmatpush1.bf16.msra.mxu1 %v19209_v20  ;;  %13914 = vmatprep.subr.bf16.mxu0 %v18836_v23  ;;  %v7087_v20 = vld [vmem:[#allocation13 + $0x1020] sm:$0xff]  ;;  %v19257_v23 = vcombine.low %v7075_v6, %v7079_v39  ;;  %v6732_v39 = vld [vmem:[#allocation13 + $0x508] sm:$0xff] }
 0x49b   :  { %13668 = vmatprep.subr.bf16.mxu1 %v19218_v38  ;;  %v6704_v38 = vld [vmem:[#allocation13 + $0x428] sm:$0xff]  ;;  %v19266_v52 = vcombine.high %v7083_v15, %v7087_v20  ;;  %v19265_v36 = vcombine.low %v7083_v15, %v7087_v20  ;;  %v7119_v6 = vld [vmem:[#allocation13 + $0x1120] sm:$0xff] }
 0x49c   :  { %v18884_v56 = vcombine.high %v6700_v32, %v6704_v38  ;;  %v18883_v48 = vcombine.low %v6700_v32, %v6704_v38  ;;  %v6736_v43 = vld [vmem:[#allocation13 + $0x528] sm:$0xff]  ;;  %v7127_v15 = vld [vmem:[#allocation13 + $0x1160] sm:$0xff] }
 0x49d   :  { %13915 = vmatpush1.bf16.msra.mxu0 %v18835_v33  ;;  %v7095_v33 = vld [vmem:[#allocation13 + $0x1060] sm:$0xff]  ;;  %v6740_v20 = vld [vmem:[#allocation13 + $0x548] sm:$0xff] }
 0x49e   :  { %13669 = vmatpush1.bf16.msra.mxu1 %v19217_v8  ;;  %13916 = vmatprep.subr.bf16.mxu0 %v18844_v44  ;;  %v7091_v8 = vld [vmem:[#allocation13 + $0x1040] sm:$0xff]  ;;  %v6712_v44 = vld [vmem:[#allocation13 + $0x468] sm:$0xff] }
 0x49f   :  { %13670 = vmatprep.subr.bf16.mxu1 %v19226_v13  ;;  %v6708_v13 = vld [vmem:[#allocation13 + $0x448] sm:$0xff]  ;;  %v19273_v63 = vcombine.low %v7091_v8, %v7095_v33 }
 0x4a0   :  { %v6744_v32 = vld [vmem:[#allocation13 + $0x568] sm:$0xff] }
 0x4a1   :  { %13917 = vmatpush1.bf16.msra.mxu0 %v18843_v12  ;;  %v18892_v12 = vcombine.high %v6708_v13, %v6712_v44  ;;  %v18924_v41 = vcombine.high %v6740_v20, %v6744_v32 }
 0x4a2   :  { %13671 = vmatpush1.bf16.msra.mxu1 %v19225_v54  ;;  %13918 = vmatprep.subr.bf16.mxu0 %v18852_v2  ;;  %v19274_v54 = vcombine.high %v7091_v8, %v7095_v33  ;;  %v7103_v2 = vld [vmem:[#allocation13 + $0x10a0] sm:$0xff]  ;;  %v6748_v8 = vld [vmem:[#allocation13 + $0x588] sm:$0xff] }
 0x4a3   :  { %13672 = vmatprep.subr.bf16.mxu1 %v19234_v27  ;;  %v7099_v27 = vld [vmem:[#allocation13 + $0x1080] sm:$0xff]  ;;  %v6752_v33 = vld [vmem:[#allocation13 + $0x5a8] sm:$0xff] }
 0x4a4   :  { %v19281_v42 = vcombine.low %v7099_v27, %v7103_v2 }
 0x4a5   :  { %13919 = vmatpush1.bf16.msra.mxu0 %v18851_v25  ;;  %v19282_v25 = vcombine.high %v7099_v27, %v7103_v2  ;;  %v6756_v27 = vld [vmem:[#allocation13 + $0x5c8] sm:$0xff] }
 0x4a6   :  { %13673 = vmatpush1.bf16.msra.mxu1 %v19233_v16  ;;  %13920 = vmatprep.subr.bf16.mxu0 %v18860_v11  ;;  %v18891_v16 = vcombine.low %v6708_v13, %v6712_v44  ;;  %v7107_v11 = vld [vmem:[#allocation13 + $0x10c0] sm:$0xff]  ;;  %v18923_v44 = vcombine.low %v6740_v20, %v6744_v32  ;;  %v6760_v2 = vld [vmem:[#allocation13 + $0x5e8] sm:$0xff] }
 0x4a7   :  { %13674 = vmatprep.subr.bf16.mxu1 %v19242_v59  ;;  %v18900_v59 = vcombine.high %v6716_v9, %v6720_v4  ;;  %v19289_v1 = vcombine.low %v7107_v11, %v7111_v35  ;;  %v7167_v20 = vld [vmem:[#allocation13 + $0x12a0] sm:$0xff]  ;;  %v6780_v32 = vld [vmem:[#allocation13 + $0x688] sm:$0xff] }
 0x4a9   :  { %13921 = vmatpush1.bf16.msra.mxu0 %v18859_v19  ;;  %v19290_v19 = vcombine.high %v7107_v11, %v7111_v35 }
 0x4aa   :  { %13675 = vmatpush1.bf16.msra.mxu1 %v19241_v18  ;;  %13922 = vmatprep.subr.bf16.mxu0 %v18868_v57  ;;  %v18899_v18 = vcombine.low %v6716_v9, %v6720_v4  ;;  %v7115_v57 = vld [vmem:[#allocation13 + $0x1100] sm:$0xff] }
 0x4ab   :  { %13676 = vmatprep.subr.bf16.mxu1 %v19250_v22  ;;  %v18908_v22 = vcombine.high %v6724_v0, %v6728_v53  ;;  %v19297_v38 = vcombine.low %v7115_v57, %v7119_v6 }
 0x4ad   :  { %13923 = vmatpush1.bf16.msra.mxu0 %v18867_v49  ;;  %v19298_v49 = vcombine.high %v7115_v57, %v7119_v6  ;;  %v18939_v6 = vcombine.low %v6756_v27, %v6760_v2 }
 0x4ae   :  { %13677 = vmatpush1.bf16.msra.mxu1 %v19249_v28  ;;  %13924 = vmatprep.subr.bf16.mxu0 %v18876_v58  ;;  %v18907_v28 = vcombine.low %v6724_v0, %v6728_v53  ;;  %v7123_v58 = vld [vmem:[#allocation13 + $0x1140] sm:$0xff]  ;;  %v18940_v53 = vcombine.high %v6756_v27, %v6760_v2  ;;  %v6796_v27 = vld [vmem:[#allocation13 + $0x708] sm:$0xff] }
 0x4af   :  { %13678 = vmatprep.subr.bf16.mxu1 %v19258_v26  ;;  %v18916_v26 = vcombine.high %v6732_v39, %v6736_v43  ;;  %v19305_v13 = vcombine.low %v7123_v58, %v7127_v15  ;;  %v6800_v2 = vld [vmem:[#allocation13 + $0x728] sm:$0xff] }
 0x4b1   :  { %13925 = vmatpush1.bf16.msra.mxu0 %v18875_v40  ;;  %v19306_v40 = vcombine.high %v7123_v58, %v7127_v15  ;;  %v7163_v15 = vld [vmem:[#allocation13 + $0x1280] sm:$0xff] }
 0x4b2   :  { %13679 = vmatpush1.bf16.msra.mxu1 %v19257_v23  ;;  %13935 = vmatprep.subr.bf16.mxu0 %v18884_v56  ;;  %v18915_v23 = vcombine.low %v6732_v39, %v6736_v43  ;;  %v7135_v56 = vld [vmem:[#allocation13 + $0x11a0] sm:$0xff] }
 0x4b3   :  { %13689 = vmatprep.subr.bf16.mxu1 %v19266_v52  ;;  %v7131_v52 = vld [vmem:[#allocation13 + $0x1180] sm:$0xff] }
 0x4b4   :  { %13927 = vmatmul.mubr.bf16.vlgmr.msra.gmra.mrb[60].mxu0 %v23033_v14  ;;  %v19314_v50 = vcombine.high %v7131_v52, %v7135_v56 }
 0x4b5   :  { %13681 = vmatmul.mubr.bf16.vlgmr.msra.gmra.mrb[48].mxu1 %v23091_v55  ;;  %13936 = vmatpush1.bf16.msra.mxu0 %v18883_v48  ;;  %v7139_v48 = vld [vmem:[#allocation13 + $0x11c0] sm:$0xff] }
 0x4b6   :  { %13690 = vmatpush1.bf16.msra.mxu1 %v19265_v36  ;;  %13937 = vmatprep.subr.bf16.mxu0 %v18892_v12  ;;  %v18932_v36 = vcombine.high %v6748_v8, %v6752_v33  ;;  %v7143_v12 = vld [vmem:[#allocation13 + $0x11e0] sm:$0xff] }
 0x4b7   :  { %13691 = vmatprep.subr.bf16.mxu1 %v19274_v54  ;;  %13721 = vmatprep.mubr.bf16.mxu1 %v23093_v7  ;;  %v19322_v0 = vcombine.high %v7139_v48, %v7143_v12 }
 0x4b8   :  { %13967 = vmatprep.mubr.bf16.mxu0 %v23035_v17 }
 0x4b9   :  { %13938 = vmatpush1.bf16.msra.mxu0 %v18891_v16 }
 0x4ba   :  { %13692 = vmatpush1.bf16.msra.mxu1 %v19273_v63  ;;  %13939 = vmatprep.subr.bf16.mxu0 %v18900_v59  ;;  %v18931_v59 = vcombine.low %v6748_v8, %v6752_v33  ;;  %v7175_v8 = vld [vmem:[#allocation13 + $0x12e0] sm:$0xff]  ;;  %v6788_v33 = vld [vmem:[#allocation13 + $0x6c8] sm:$0xff] }
 0x4bb   :  { %13693 = vmatprep.subr.bf16.mxu1 %v19282_v25  ;;  %v19313_v25 = vcombine.low %v7131_v52, %v7135_v56  ;;  %v7171_v56 = vld [vmem:[#allocation13 + $0x12c0] sm:$0xff] }
 0x4bd   :  { %13940 = vmatpush1.bf16.msra.mxu0 %v18899_v18 }
 0x4be   :  { %13694 = vmatpush1.bf16.msra.mxu1 %v19281_v42  ;;  %13941 = vmatprep.subr.bf16.mxu0 %v18908_v22  ;;  %v7147_v42 = vld [vmem:[#allocation13 + $0x1200] sm:$0xff]  ;;  %v6768_v22 = vld [vmem:[#allocation13 + $0x628] sm:$0xff] }
 0x4bf   :  { %13695 = vmatprep.subr.bf16.mxu1 %v19290_v19  ;;  %v7151_v19 = vld [vmem:[#allocation13 + $0x1220] sm:$0xff] }
 0x4c0   :  { %v19330_v39 = vcombine.high %v7147_v42, %v7151_v19 }
 0x4c1   :  { %13942 = vmatpush1.bf16.msra.mxu0 %v18907_v28  ;;  %v7159_v28 = vld [vmem:[#allocation13 + $0x1260] sm:$0xff] }
 0x4c2   :  { %13696 = vmatpush1.bf16.msra.mxu1 %v19289_v1  ;;  %13943 = vmatprep.subr.bf16.mxu0 %v18916_v26  ;;  %v7155_v1 = vld [vmem:[#allocation13 + $0x1240] sm:$0xff]  ;;  %v19329_v26 = vcombine.low %v7147_v42, %v7151_v19 }
 0x4c3   :  { %13697 = vmatprep.subr.bf16.mxu1 %v19298_v49  ;;  %v6776_v49 = vld [vmem:[#allocation13 + $0x668] sm:$0xff]  ;;  %v7195_v19 = vld [vmem:[#allocation13 + $0x1380] sm:$0xff] }
 0x4c5   :  { %13944 = vmatpush1.bf16.msra.mxu0 %v18915_v23  ;;  %v19337_v23 = vcombine.low %v7155_v1, %v7159_v28 }
 0x4c6   :  { %13698 = vmatpush1.bf16.msra.mxu1 %v19297_v38  ;;  %13945 = vmatprep.subr.bf16.mxu0 %v18924_v41  ;;  %v6784_v38 = vld [vmem:[#allocation13 + $0x6a8] sm:$0xff]  ;;  %v19346_v41 = vcombine.high %v7163_v15, %v7167_v20 }
 0x4c7   :  { %13699 = vmatprep.subr.bf16.mxu1 %v19306_v40  ;;  %v6314_v54 = vpop.f32.mrb[48].mxu0  ;;  %v18964_v52 = vcombine.high %v6780_v32, %v6784_v38 }
 0x4c8   :  { %v6315_v9 = vadd.f32 %v6314_v54, %v23041_v21  ;;  %v6316_v4 = vpop.f32.mrb[49].mxu0  ;;  %v6764_v21 = vld [vmem:[#allocation13 + $0x608] sm:$0xff]  ;;  %v7179_v54 = vld [vmem:[#allocation13 + $0x1300] sm:$0xff] }
 0x4c9   :  { %v6317_v63 = vadd.f32 %v6316_v4, %v23044_v5  ;;  %v6318_v16 = vpop.f32.mrb[50].mxu0  ;;  %13946 = vmatpush1.bf16.msra.mxu0 %v18923_v44  ;;  %v18948_v43 = vcombine.high %v6764_v21, %v6768_v22  ;;  %v19345_v44 = vcombine.low %v7163_v15, %v7167_v20  ;;  %v7211_v20 = vld [vmem:[#allocation13 + $0x1400] sm:$0xff] }
 0x4ca   :  { %13700 = vmatpush1.bf16.msra.mxu1 %v19305_v13  ;;  %v6356_v11 = vadd.f32 %v23061_v29, %v6315_v9  ;;  %v6319_v35 = vpop.f32.mrb[51].mxu0  ;;  %13947 = vmatprep.subr.bf16.mxu0 %v18932_v36  ;;  %v19321_v29 = vcombine.low %v7139_v48, %v7143_v12  ;;  %v6792_v13 = vld [vmem:[#allocation13 + $0x6e8] sm:$0xff]  ;;  %v19354_v36 = vcombine.high %v7171_v56, %v7175_v8  ;;  %v7183_v12 = vld [vmem:[#allocation13 + $0x1320] sm:$0xff] }
 0x4cb   :  { %13701 = vmatprep.subr.bf16.mxu1 %v19314_v50  ;;  %v6358_v18 = vadd.f32 %v23066_v31, %v6317_v63  ;;  %v6772_v31 = vld [vmem:[#allocation13 + $0x648] sm:$0xff]  ;;  %v18963_v50 = vcombine.low %v6780_v32, %v6784_v38  ;;  %v18972_v48 = vcombine.high %v6788_v33, %v6792_v13  ;;  %v19353_v9 = vcombine.low %v7171_v56, %v7175_v8  ;;  %v7215_v32 = vld [vmem:[#allocation13 + $0x1420] sm:$0xff] }
 0x4cc   :  { %v23104_v5 = vadd.f32 %v6356_v11, %v23026_v45  ;;  %v18947_v45 = vcombine.low %v6764_v21, %v6768_v22  ;;  %v18956_v58 = vcombine.high %v6772_v31, %v6776_v49  ;;  %v18955_v40 = vcombine.low %v6772_v31, %v6776_v49  ;;  %v6804_v11 = vld [vmem:[#allocation13 + $0x748] sm:$0xff]  ;;  %v7199_v21 = vld [vmem:[#allocation13 + $0x13a0] sm:$0xff] }
 0x4cd   :  { %v23107_v57 = vadd.f32 %v6358_v18, %v23031_v46  ;;  %13948 = vmatpush1.bf16.msra.mxu0 %v18931_v59  ;;  %v19338_v46 = vcombine.high %v7155_v1, %v7159_v28  ;;  %v18971_v4 = vcombine.low %v6788_v33, %v6792_v13  ;;  %v19362_v63 = vcombine.high %v7179_v54, %v7183_v12  ;;  %v7191_v59 = vld [vmem:[#allocation13 + $0x1360] sm:$0xff]  ;;  %v6808_v35 = vld [vmem:[#allocation13 + $0x768] sm:$0xff] }
 0x4ce   :  { %13702 = vmatpush1.bf16.msra.mxu1 %v19313_v25  ;;  %13949 = vmatprep.subr.bf16.mxu0 %v18940_v53  ;;  %v18980_v16 = vcombine.high %v6796_v27, %v6800_v2  ;;  %v7187_v25 = vld [vmem:[#allocation13 + $0x1340] sm:$0xff]  ;;  %v18979_v53 = vcombine.low %v6796_v27, %v6800_v2  ;;  %v18988_v18 = vcombine.high %v6804_v11, %v6808_v35  ;;  %v6812_v22 = vld [vmem:[#allocation13 + $0x788] sm:$0xff] }
 0x4cf   :  { %13703 = vmatprep.subr.bf16.mxu1 %v19322_v0  ;;  %v19361_v0 = vcombine.low %v7179_v54, %v7183_v12  ;;  %v19370_v42 = vcombine.high %v7187_v25, %v7191_v59  ;;  %v7203_v28 = vld [vmem:[#allocation13 + $0x13c0] sm:$0xff]  ;;  %v6820_v49 = vld [vmem:[#allocation13 + $0x7c8] sm:$0xff]  ;;  %v19394_v56 = vcombine.high %v7211_v20, %v7215_v32  ;;  %v19393_v54 = vcombine.low %v7211_v20, %v7215_v32 }
 0x4d0   :  { %v7207_v31 = vld [vmem:[#allocation13 + $0x13e0] sm:$0xff]  ;;  %v6828_v38 = vld [vmem:[#allocation13 + $0x808] sm:$0xff] }
 0x4d1   :  { %13950 = vmatpush1.bf16.msra.mxu0 %v18939_v6  ;;  %v19369_v6 = vcombine.low %v7187_v25, %v7191_v59  ;;  %v7219_v33 = vld [vmem:[#allocation13 + $0x1440] sm:$0xff]  ;;  %v6872_v20 = vld [vmem:[#allocation13 + $0x968] sm:$0xff] }
 0x4d2   :  { %13704 = vmatpush1.bf16.msra.mxu1 %v19321_v29  ;;  %13951 = vmatprep.subr.bf16.mxu0 %v18948_v43  ;;  %v6816_v29 = vld [vmem:[#allocation13 + $0x7a8] sm:$0xff]  ;;  %v19378_v43 = vcombine.high %v7195_v19, %v7199_v21  ;;  %v7223_v13 = vld [vmem:[#allocation13 + $0x1460] sm:$0xff] }
 0x4d3   :  { %13705 = vmatprep.subr.bf16.mxu1 %v19330_v39  ;;  %v18987_v39 = vcombine.low %v6804_v11, %v6808_v35  ;;  %v18996_v1 = vcombine.high %v6812_v22, %v6816_v29  ;;  %v19402_v27 = vcombine.high %v7219_v33, %v7223_v13  ;;  %v19401_v59 = vcombine.low %v7219_v33, %v7223_v13 }
 0x4d5   :  { %13952 = vmatpush1.bf16.msra.mxu0 %v18947_v45  ;;  %v19377_v45 = vcombine.low %v7195_v19, %v7199_v21  ;;  %v6856_v19 = vld [vmem:[#allocation13 + $0x8e8] sm:$0xff] }
 0x4d6   :  { %13706 = vmatpush1.bf16.msra.mxu1 %v19329_v26  ;;  %13953 = vmatprep.subr.bf16.mxu0 %v18956_v58  ;;  %v6824_v26 = vld [vmem:[#allocation13 + $0x7e8] sm:$0xff]  ;;  %v19386_v58 = vcombine.high %v7203_v28, %v7207_v31 }
 0x4d7   :  { %13707 = vmatprep.subr.bf16.mxu1 %v19338_v46  ;;  %v18995_v46 = vcombine.low %v6812_v22, %v6816_v29  ;;  %v19004_v15 = vcombine.high %v6820_v49, %v6824_v26 }
 0x4d9   :  { %13954 = vmatpush1.bf16.msra.mxu0 %v18955_v40  ;;  %v19385_v40 = vcombine.low %v7203_v28, %v7207_v31  ;;  %v6864_v28 = vld [vmem:[#allocation13 + $0x928] sm:$0xff] }
 0x4da   :  { %13708 = vmatpush1.bf16.msra.mxu1 %v19337_v23  ;;  %13955 = vmatprep.subr.bf16.mxu0 %v18964_v52  ;;  %v6832_v23 = vld [vmem:[#allocation13 + $0x828] sm:$0xff] }
 0x4db   :  { %13709 = vmatprep.subr.bf16.mxu1 %v19346_v41  ;;  %v19003_v41 = vcombine.low %v6820_v49, %v6824_v26  ;;  %v6543_v52 = vld [vmem:[#allocation8 + $0x40] sm:$0xff]  ;;  %v19012_v8 = vcombine.high %v6828_v38, %v6832_v23  ;;  %v19011_v12 = vcombine.low %v6828_v38, %v6832_v23 }
 0x4dd   :  { %13956 = vmatpush1.bf16.msra.mxu0 %v18963_v50  ;;  %v6840_v50 = vld [vmem:[#allocation13 + $0x868] sm:$0xff] }
 0x4de   :  { %13710 = vmatpush1.bf16.msra.mxu1 %v19345_v44  ;;  %13957 = vmatprep.subr.bf16.mxu0 %v18972_v48  ;;  %v6836_v44 = vld [vmem:[#allocation13 + $0x848] sm:$0xff] }
 0x4df   :  { %13711 = vmatprep.subr.bf16.mxu1 %v19354_v36  ;;  %v23109_v36 = vpack.c.bf16 %v6543_v52, %v6543_v52  ;;  %v6546_v48 = vld [vmem:[#allocation8 + $0x58] sm:$0xff]  ;;  %v19020_v2 = vcombine.high %v6836_v44, %v6840_v50  ;;  %v19019_v11 = vcombine.low %v6836_v44, %v6840_v50 }
 0x4e0   :  { %v23111_v25 = vpack.c.bf16 %v6546_v48, %v6546_v48  ;;  %v7263_v52 = vld [vmem:[#allocation13 + $0x15a0] sm:$0xff] }
 0x4e1   :  { %13958 = vmatpush1.bf16.msra.mxu0 %v18971_v4  ;;  %v7231_v4 = vld [vmem:[#allocation13 + $0x14a0] sm:$0xff] }
 0x4e2   :  { %13712 = vmatpush1.bf16.msra.mxu1 %v19353_v9  ;;  %13959 = vmatprep.subr.bf16.mxu0 %v18980_v16  ;;  %v7227_v9 = vld [vmem:[#allocation13 + $0x1480] sm:$0xff]  ;;  %v6848_v16 = vld [vmem:[#allocation13 + $0x8a8] sm:$0xff] }
 0x4e3   :  { %13713 = vmatprep.subr.bf16.mxu1 %v19362_v63  ;;  %v6844_v63 = vld [vmem:[#allocation13 + $0x888] sm:$0xff]  ;;  %v19410_v35 = vcombine.high %v7227_v9, %v7231_v4  ;;  %v19409_v21 = vcombine.low %v7227_v9, %v7231_v4  ;;  %v7267_v48 = vld [vmem:[#allocation13 + $0x15c0] sm:$0xff] }
 0x4e4   :  { %v19027_v22 = vcombine.low %v6844_v63, %v6848_v16 }
 0x4e5   :  { %13960 = vmatpush1.bf16.msra.mxu0 %v18979_v53  ;;  %v7235_v53 = vld [vmem:[#allocation13 + $0x14c0] sm:$0xff] }
 0x4e6   :  { %13714 = vmatpush1.bf16.msra.mxu1 %v19361_v0  ;;  %13961 = vmatprep.subr.bf16.mxu0 %v18988_v18  ;;  %v19028_v0 = vcombine.high %v6844_v63, %v6848_v16  ;;  %v6852_v18 = vld [vmem:[#allocation13 + $0x8c8] sm:$0xff] }
 0x4e7   :  { %13715 = vmatprep.subr.bf16.mxu1 %v19370_v42  ;;  %v7239_v42 = vld [vmem:[#allocation13 + $0x14e0] sm:$0xff]  ;;  %v19035_v49 = vcombine.low %v6852_v18, %v6856_v19 }
 0x4e8   :  { %v19418_v29 = vcombine.high %v7235_v53, %v7239_v42  ;;  %v19417_v31 = vcombine.low %v7235_v53, %v7239_v42  ;;  %v7275_v42 = vld [vmem:[#allocation13 + $0x1600] sm:$0xff] }
 0x4e9   :  { %13962 = vmatpush1.bf16.msra.mxu0 %v18987_v39  ;;  %v7243_v39 = vld [vmem:[#allocation13 + $0x1500] sm:$0xff] }
 0x4ea   :  { %13716 = vmatpush1.bf16.msra.mxu1 %v19369_v6  ;;  %13963 = vmatprep.subr.bf16.mxu0 %v18996_v1  ;;  %v19036_v6 = vcombine.high %v6852_v18, %v6856_v19  ;;  %v6860_v1 = vld [vmem:[#allocation13 + $0x908] sm:$0xff]  ;;  %v7279_v18 = vld [vmem:[#allocation13 + $0x1620] sm:$0xff] }
 0x4eb   :  { %13717 = vmatprep.subr.bf16.mxu1 %v19378_v43  ;;  %v7247_v43 = vld [vmem:[#allocation13 + $0x1520] sm:$0xff]  ;;  %v19043_v38 = vcombine.low %v6860_v1, %v6864_v28  ;;  %v6892_v19 = vld [vmem:[#allocation13 + $0xa08] sm:$0xff] }
 0x4ec   :  { %v19426_v26 = vcombine.high %v7243_v39, %v7247_v43  ;;  %v19425_v32 = vcombine.low %v7243_v39, %v7247_v43  ;;  %v7287_v39 = vld [vmem:[#allocation13 + $0x1660] sm:$0xff]  ;;  %v6900_v43 = vld [vmem:[#allocation13 + $0xa48] sm:$0xff] }
 0x4ed   :  { %13964 = vmatpush1.bf16.msra.mxu0 %v18995_v46  ;;  %v7251_v46 = vld [vmem:[#allocation13 + $0x1540] sm:$0xff] }
 0x4ee   :  { %13718 = vmatpush1.bf16.msra.mxu1 %v19377_v45  ;;  %13965 = vmatprep.subr.bf16.mxu0 %v19004_v15  ;;  %v19044_v45 = vcombine.high %v6860_v1, %v6864_v28  ;;  %v6868_v15 = vld [vmem:[#allocation13 + $0x948] sm:$0xff]  ;;  %v19457_v28 = vcombine.low %v7275_v42, %v7279_v18 }
 0x4ef   :  { %13719 = vmatprep.subr.bf16.mxu1 %v19386_v58  ;;  %v7255_v58 = vld [vmem:[#allocation13 + $0x1560] sm:$0xff]  ;;  %v19051_v13 = vcombine.low %v6868_v15, %v6872_v20  ;;  %v6904_v1 = vld [vmem:[#allocation13 + $0xa68] sm:$0xff] }
 0x4f0   :  { %v19434_v23 = vcombine.high %v7251_v46, %v7255_v58  ;;  %v19433_v33 = vcombine.low %v7251_v46, %v7255_v58  ;;  %v7295_v46 = vld [vmem:[#allocation13 + $0x16a0] sm:$0xff]  ;;  %v6908_v58 = vld [vmem:[#allocation13 + $0xa88] sm:$0xff] }
 0x4f1   :  { %13966 = vmatpush1.bf16.msra.mxu0 %v19003_v41  ;;  %v7259_v41 = vld [vmem:[#allocation13 + $0x1580] sm:$0xff] }
 0x4f2   :  { %13720 = vmatpush1.bf16.msra.mxu1 %v19385_v40  ;;  %13976 = vmatprep.subr.bf16.mxu0 %v19012_v8  ;;  %v19052_v40 = vcombine.high %v6868_v15, %v6872_v20  ;;  %v6880_v8 = vld [vmem:[#allocation13 + $0x9a8] sm:$0xff]  ;;  %v19442_v44 = vcombine.high %v7259_v41, %v7263_v52 }
 0x4f3   :  { %13730 = vmatprep.subr.bf16.mxu1 %v19394_v56  ;;  %v6876_v56 = vld [vmem:[#allocation13 + $0x988] sm:$0xff] }
 0x4f4   :  { %13968 = vmatmul.mubr.bf16.vlgmr.msra.gmra.mrb[60].mxu0 %v23053_v61  ;;  %v19060_v50 = vcombine.high %v6876_v56, %v6880_v8  ;;  %v6912_v15 = vld [vmem:[#allocation13 + $0xaa8] sm:$0xff] }
 0x4f5   :  { %13722 = vmatmul.mubr.bf16.vlgmr.msra.gmra.mrb[48].mxu1 %v23109_v36  ;;  %13977 = vmatpush1.bf16.msra.mxu0 %v19011_v12  ;;  %v7271_v12 = vld [vmem:[#allocation13 + $0x15e0] sm:$0xff] }
 0x4f6   :  { %13731 = vmatpush1.bf16.msra.mxu1 %v19393_v54  ;;  %13978 = vmatprep.subr.bf16.mxu0 %v19020_v2  ;;  %v6888_v2 = vld [vmem:[#allocation13 + $0x9e8] sm:$0xff] }
 0x4f7   :  { %13732 = vmatprep.subr.bf16.mxu1 %v19402_v27  ;;  %13762 = vmatprep.mubr.bf16.mxu1 %v23111_v25  ;;  %v6884_v27 = vld [vmem:[#allocation13 + $0x9c8] sm:$0xff] }
 0x4f8   :  { %14008 = vmatprep.mubr.bf16.mxu0 %v23055_v30  ;;  %v19068_v53 = vcombine.high %v6884_v27, %v6888_v2 }
 0x4f9   :  { %13979 = vmatpush1.bf16.msra.mxu0 %v19019_v11  ;;  %v19059_v11 = vcombine.low %v6876_v56, %v6880_v8  ;;  %v6920_v56 = vld [vmem:[#allocation13 + $0xae8] sm:$0xff] }
 0x4fa   :  { %13733 = vmatpush1.bf16.msra.mxu1 %v19401_v59  ;;  %13980 = vmatprep.subr.bf16.mxu0 %v19028_v0  ;;  %v19441_v59 = vcombine.low %v7259_v41, %v7263_v52  ;;  %v19450_v0 = vcombine.high %v7267_v48, %v7271_v12  ;;  %v7303_v41 = vld [vmem:[#allocation13 + $0x16e0] sm:$0xff]  ;;  %v6916_v52 = vld [vmem:[#allocation13 + $0xac8] sm:$0xff] }
 0x4fb   :  { %13734 = vmatprep.subr.bf16.mxu1 %v19410_v35 }
 0x4fd   :  { %13981 = vmatpush1.bf16.msra.mxu0 %v19027_v22  ;;  %v19067_v22 = vcombine.low %v6884_v27, %v6888_v2  ;;  %v19099_v2 = vcombine.low %v6916_v52, %v6920_v56 }
 0x4fe   :  { %13735 = vmatpush1.bf16.msra.mxu1 %v19409_v21  ;;  %13982 = vmatprep.subr.bf16.mxu0 %v19036_v6  ;;  %v6896_v21 = vld [vmem:[#allocation13 + $0xa28] sm:$0xff]  ;;  %v7283_v6 = vld [vmem:[#allocation13 + $0x1640] sm:$0xff] }
 0x4ff   :  { %13736 = vmatprep.subr.bf16.mxu1 %v19418_v29  ;;  %v19076_v29 = vcombine.high %v6892_v19, %v6896_v21  ;;  %v19465_v20 = vcombine.low %v7283_v6, %v7287_v39 }
 0x501   :  { %13983 = vmatpush1.bf16.msra.mxu0 %v19035_v49  ;;  %v19466_v49 = vcombine.high %v7283_v6, %v7287_v39 }
 0x502   :  { %13737 = vmatpush1.bf16.msra.mxu1 %v19417_v31  ;;  %13984 = vmatprep.subr.bf16.mxu0 %v19044_v45  ;;  %v19075_v31 = vcombine.low %v6892_v19, %v6896_v21  ;;  %v7291_v45 = vld [vmem:[#allocation13 + $0x1680] sm:$0xff] }
 0x503   :  { %13738 = vmatprep.subr.bf16.mxu1 %v19426_v26  ;;  %v19084_v26 = vcombine.high %v6900_v43, %v6904_v1  ;;  %v19473_v8 = vcombine.low %v7291_v45, %v7295_v46  ;;  %v7323_v21 = vld [vmem:[#allocation13 + $0x1780] sm:$0xff] }
 0x505   :  { %13985 = vmatpush1.bf16.msra.mxu0 %v19043_v38  ;;  %v19474_v38 = vcombine.high %v7291_v45, %v7295_v46 }
 0x506   :  { %13739 = vmatpush1.bf16.msra.mxu1 %v19425_v32  ;;  %13986 = vmatprep.subr.bf16.mxu0 %v19052_v40  ;;  %v19083_v32 = vcombine.low %v6900_v43, %v6904_v1  ;;  %v7299_v40 = vld [vmem:[#allocation13 + $0x16c0] sm:$0xff] }
 0x507   :  { %13740 = vmatprep.subr.bf16.mxu1 %v19434_v23  ;;  %v6396_v54 = vpop.f32.mrb[52].mxu0  ;;  %v19092_v23 = vcombine.high %v6908_v58, %v6912_v15  ;;  %v19481_v27 = vcombine.low %v7299_v40, %v7303_v41  ;;  %v7331_v1 = vld [vmem:[#allocation13 + $0x17c0] sm:$0xff] }
 0x508   :  { %v23118_v9 = vadd.f32 %v23079_v24, %v6396_v54  ;;  %v6398_v4 = vpop.f32.mrb[53].mxu0  ;;  %v19449_v24 = vcombine.low %v7267_v48, %v7271_v12  ;;  %v7311_v48 = vld [vmem:[#allocation13 + $0x1720] sm:$0xff]  ;;  %v6924_v54 = vld [vmem:[#allocation13 + $0xb08] sm:$0xff] }
 0x509   :  { %v23121_v63 = vadd.f32 %v23082_v47, %v6398_v4  ;;  %v6400_v16 = vpop.f32.mrb[54].mxu0  ;;  %13987 = vmatpush1.bf16.msra.mxu0 %v19051_v13  ;;  %v19458_v47 = vcombine.high %v7275_v42, %v7279_v18  ;;  %v19482_v13 = vcombine.high %v7299_v40, %v7303_v41  ;;  %v6928_v12 = vld [vmem:[#allocation13 + $0xb28] sm:$0xff]  ;;  %v6545_v41 = vld [vmem:[#allocation8 + $0x50] sm:$0xff] }
 0x50a   :  { %13741 = vmatpush1.bf16.msra.mxu1 %v19433_v33  ;;  %v6401_v35 = vpop.f32.mrb[55].mxu0  ;;  %13988 = vmatprep.subr.bf16.mxu0 %v19060_v50  ;;  %v19091_v33 = vcombine.low %v6908_v58, %v6912_v15  ;;  %v7307_v50 = vld [vmem:[#allocation13 + $0x1700] sm:$0xff]  ;;  %v19108_v16 = vcombine.high %v6924_v54, %v6928_v12  ;;  %v19107_v42 = vcombine.low %v6924_v54, %v6928_v12 }
 0x50b   :  { %13742 = vmatprep.subr.bf16.mxu1 %v19442_v44  ;;  %v19100_v44 = vcombine.high %v6916_v52, %v6920_v56  ;;  %v19490_v4 = vcombine.high %v7307_v50, %v7311_v48  ;;  %v6932_v35 = vld [vmem:[#allocation13 + $0xb48] sm:$0xff]  ;;  %v7339_v15 = vld [vmem:[#allocation13 + $0x1800] sm:$0xff] }
 0x50d   :  { %13989 = vmatpush1.bf16.msra.mxu0 %v19059_v11  ;;  %v7319_v11 = vld [vmem:[#allocation13 + $0x1760] sm:$0xff] }
 0x50e   :  { %13743 = vmatpush1.bf16.msra.mxu1 %v19441_v59  ;;  %13990 = vmatprep.subr.bf16.mxu0 %v19068_v53  ;;  %v7315_v59 = vld [vmem:[#allocation13 + $0x1740] sm:$0xff]  ;;  %v19489_v53 = vcombine.low %v7307_v50, %v7311_v48  ;;  %v23123_v50 = vpack.c.bf16 %v6545_v41, %v6545_v41  ;;  %v6548_v48 = vld [vmem:[#allocation8 + $0x68] sm:$0xff] }
 0x50f   :  { %13744 = vmatprep.subr.bf16.mxu1 %v19450_v0  ;;  %v6936_v0 = vld [vmem:[#allocation13 + $0xb68] sm:$0xff]  ;;  %v19498_v18 = vcombine.high %v7315_v59, %v7319_v11 }
 0x510   :  { %v19116_v19 = vcombine.high %v6932_v35, %v6936_v0  ;;  %v19115_v6 = vcombine.low %v6932_v35, %v6936_v0  ;;  %v23125_v35 = vpack.c.bf16 %v6548_v48, %v6548_v48 }
 0x511   :  { %13991 = vmatpush1.bf16.msra.mxu0 %v19067_v22  ;;  %v6940_v22 = vld [vmem:[#allocation13 + $0xb88] sm:$0xff] }
 0x512   :  { %13745 = vmatpush1.bf16.msra.mxu1 %v19449_v24  ;;  %13992 = vmatprep.subr.bf16.mxu0 %v19076_v29  ;;  %v7327_v24 = vld [vmem:[#allocation13 + $0x17a0] sm:$0xff]  ;;  %v19497_v29 = vcombine.low %v7315_v59, %v7319_v11  ;;  %v6972_v59 = vld [vmem:[#allocation13 + $0xc88] sm:$0xff] }
 0x513   :  { %13746 = vmatprep.subr.bf16.mxu1 %v19458_v47  ;;  %v6944_v47 = vld [vmem:[#allocation13 + $0xba8] sm:$0xff]  ;;  %v19506_v39 = vcombine.high %v7323_v21, %v7327_v24 }
 0x514   :  { %v19124_v43 = vcombine.high %v6940_v22, %v6944_v47  ;;  %v19123_v45 = vcombine.low %v6940_v22, %v6944_v47  ;;  %v6976_v11 = vld [vmem:[#allocation13 + $0xca8] sm:$0xff] }
 0x515   :  { %13993 = vmatpush1.bf16.msra.mxu0 %v19075_v31  ;;  %v6948_v31 = vld [vmem:[#allocation13 + $0xbc8] sm:$0xff] }
 0x516   :  { %13747 = vmatpush1.bf16.msra.mxu1 %v19457_v28  ;;  %13994 = vmatprep.subr.bf16.mxu0 %v19084_v26  ;;  %v7335_v28 = vld [vmem:[#allocation13 + $0x17e0] sm:$0xff]  ;;  %v19505_v26 = vcombine.low %v7323_v21, %v7327_v24  ;;  %v6980_v24 = vld [vmem:[#allocation13 + $0xcc8] sm:$0xff] }
 0x517   :  { %13748 = vmatprep.subr.bf16.mxu1 %v19466_v49  ;;  %v6952_v49 = vld [vmem:[#allocation13 + $0xbe8] sm:$0xff]  ;;  %v19514_v46 = vcombine.high %v7331_v1, %v7335_v28  ;;  %v7367_v21 = vld [vmem:[#allocation13 + $0x18e0] sm:$0xff] }
 0x518   :  { %v19132_v58 = vcombine.high %v6948_v31, %v6952_v49  ;;  %v19131_v40 = vcombine.low %v6948_v31, %v6952_v49  ;;  %v6984_v22 = vld [vmem:[#allocation13 + $0xce8] sm:$0xff] }
 0x519   :  { %13995 = vmatpush1.bf16.msra.mxu0 %v19083_v32  ;;  %v6956_v32 = vld [vmem:[#allocation13 + $0xc08] sm:$0xff] }
 0x51a   :  { %13749 = vmatpush1.bf16.msra.mxu1 %v19465_v20  ;;  %13996 = vmatprep.subr.bf16.mxu0 %v19092_v23  ;;  %v7343_v20 = vld [vmem:[#allocation13 + $0x1820] sm:$0xff]  ;;  %v19513_v23 = vcombine.low %v7331_v1, %v7335_v28  ;;  %v6988_v28 = vld [vmem:[#allocation13 + $0xd08] sm:$0xff] }
 0x51b   :  { %13750 = vmatprep.subr.bf16.mxu1 %v19474_v38  ;;  %v6960_v38 = vld [vmem:[#allocation13 + $0xc28] sm:$0xff]  ;;  %v19522_v52 = vcombine.high %v7339_v15, %v7343_v20  ;;  %v19521_v54 = vcombine.low %v7339_v15, %v7343_v20  ;;  %v7375_v1 = vld [vmem:[#allocation13 + $0x1920] sm:$0xff] }
 0x51c   :  { %v19140_v56 = vcombine.high %v6956_v32, %v6960_v38  ;;  %v19139_v12 = vcombine.low %v6956_v32, %v6960_v38  ;;  %v6992_v31 = vld [vmem:[#allocation13 + $0xd28] sm:$0xff]  ;;  %v7383_v15 = vld [vmem:[#allocation13 + $0x1960] sm:$0xff] }
 0x51d   :  { %13997 = vmatpush1.bf16.msra.mxu0 %v19091_v33  ;;  %v7351_v33 = vld [vmem:[#allocation13 + $0x1860] sm:$0xff]  ;;  %v6996_v20 = vld [vmem:[#allocation13 + $0xd48] sm:$0xff] }
 0x51e   :  { %13751 = vmatpush1.bf16.msra.mxu1 %v19473_v8  ;;  %13998 = vmatprep.subr.bf16.mxu0 %v19100_v44  ;;  %v7347_v8 = vld [vmem:[#allocation13 + $0x1840] sm:$0xff]  ;;  %v6968_v44 = vld [vmem:[#allocation13 + $0xc68] sm:$0xff] }
 0x51f   :  { %13752 = vmatprep.subr.bf16.mxu1 %v19482_v13  ;;  %v6964_v13 = vld [vmem:[#allocation13 + $0xc48] sm:$0xff]  ;;  %v19529_v0 = vcombine.low %v7347_v8, %v7351_v33 }
 0x520   :  { %v7000_v32 = vld [vmem:[#allocation13 + $0xd68] sm:$0xff] }
 0x521   :  { %13999 = vmatpush1.bf16.msra.mxu0 %v19099_v2  ;;  %v19148_v2 = vcombine.high %v6964_v13, %v6968_v44  ;;  %v19180_v41 = vcombine.high %v6996_v20, %v7000_v32 }
 0x522   :  { %13753 = vmatpush1.bf16.msra.mxu1 %v19481_v27  ;;  %14000 = vmatprep.subr.bf16.mxu0 %v19108_v16  ;;  %v19530_v27 = vcombine.high %v7347_v8, %v7351_v33  ;;  %v7359_v16 = vld [vmem:[#allocation13 + $0x18a0] sm:$0xff]  ;;  %v7004_v8 = vld [vmem:[#allocation13 + $0xd88] sm:$0xff] }
 0x523   :  { %13754 = vmatprep.subr.bf16.mxu1 %v19490_v4  ;;  %v7355_v4 = vld [vmem:[#allocation13 + $0x1880] sm:$0xff]  ;;  %v7008_v33 = vld [vmem:[#allocation13 + $0xda8] sm:$0xff] }
 0x524   :  { %v19537_v47 = vcombine.low %v7355_v4, %v7359_v16 }
 0x525   :  { %14001 = vmatpush1.bf16.msra.mxu0 %v19107_v42  ;;  %v19538_v42 = vcombine.high %v7355_v4, %v7359_v16  ;;  %v7012_v4 = vld [vmem:[#allocation13 + $0xdc8] sm:$0xff] }
 0x526   :  { %13755 = vmatpush1.bf16.msra.mxu1 %v19489_v53  ;;  %14002 = vmatprep.subr.bf16.mxu0 %v19116_v19  ;;  %v19147_v53 = vcombine.low %v6964_v13, %v6968_v44  ;;  %v7363_v19 = vld [vmem:[#allocation13 + $0x18c0] sm:$0xff]  ;;  %v19179_v44 = vcombine.low %v6996_v20, %v7000_v32  ;;  %v7016_v16 = vld [vmem:[#allocation13 + $0xde8] sm:$0xff] }
 0x527   :  { %13756 = vmatprep.subr.bf16.mxu1 %v19498_v18  ;;  %v19156_v18 = vcombine.high %v6972_v59, %v6976_v11  ;;  %v19545_v49 = vcombine.low %v7363_v19, %v7367_v21  ;;  %v7423_v20 = vld [vmem:[#allocation13 + $0x1aa0] sm:$0xff]  ;;  %v7036_v32 = vld [vmem:[#allocation13 + $0xe88] sm:$0xff] }
 0x529   :  { %14003 = vmatpush1.bf16.msra.mxu0 %v19115_v6  ;;  %v19546_v6 = vcombine.high %v7363_v19, %v7367_v21 }
 0x52a   :  { %13757 = vmatpush1.bf16.msra.mxu1 %v19497_v29  ;;  %14004 = vmatprep.subr.bf16.mxu0 %v19124_v43  ;;  %v19155_v29 = vcombine.low %v6972_v59, %v6976_v11  ;;  %v7371_v43 = vld [vmem:[#allocation13 + $0x1900] sm:$0xff] }
 0x52b   :  { %13758 = vmatprep.subr.bf16.mxu1 %v19506_v39  ;;  %v19164_v39 = vcombine.high %v6980_v24, %v6984_v22  ;;  %v19553_v38 = vcombine.low %v7371_v43, %v7375_v1 }
 0x52d   :  { %14005 = vmatpush1.bf16.msra.mxu0 %v19123_v45  ;;  %v19554_v45 = vcombine.high %v7371_v43, %v7375_v1  ;;  %v19195_v43 = vcombine.low %v7012_v4, %v7016_v16 }
 0x52e   :  { %13759 = vmatpush1.bf16.msra.mxu1 %v19505_v26  ;;  %14006 = vmatprep.subr.bf16.mxu0 %v19132_v58  ;;  %v19163_v26 = vcombine.low %v6980_v24, %v6984_v22  ;;  %v7379_v58 = vld [vmem:[#allocation13 + $0x1940] sm:$0xff]  ;;  %v19196_v22 = vcombine.high %v7012_v4, %v7016_v16  ;;  %v7052_v4 = vld [vmem:[#allocation13 + $0xf08] sm:$0xff] }
 0x52f   :  { %13760 = vmatprep.subr.bf16.mxu1 %v19514_v46  ;;  %v19172_v46 = vcombine.high %v6988_v28, %v6992_v31  ;;  %v19561_v13 = vcombine.low %v7379_v58, %v7383_v15  ;;  %v7056_v16 = vld [vmem:[#allocation13 + $0xf28] sm:$0xff] }
 0x531   :  { %14007 = vmatpush1.bf16.msra.mxu0 %v19131_v40  ;;  %v19562_v40 = vcombine.high %v7379_v58, %v7383_v15  ;;  %v7419_v15 = vld [vmem:[#allocation13 + $0x1a80] sm:$0xff] }
 0x532   :  { %13761 = vmatpush1.bf16.msra.mxu1 %v19513_v23  ;;  %14017 = vmatprep.subr.bf16.mxu0 %v19140_v56  ;;  %v19171_v23 = vcombine.low %v6988_v28, %v6992_v31  ;;  %v7391_v56 = vld [vmem:[#allocation13 + $0x19a0] sm:$0xff] }
 0x533   :  { %13771 = vmatprep.subr.bf16.mxu1 %v19522_v52  ;;  %v7387_v52 = vld [vmem:[#allocation13 + $0x1980] sm:$0xff] }
 0x534   :  { %14009 = vmatmul.mubr.bf16.vlgmr.msra.gmra.mrb[60].mxu0 %v23071_v60  ;;  %v19570_v48 = vcombine.high %v7387_v52, %v7391_v56  ;;  %v7411_v28 = vld [vmem:[#allocation13 + $0x1a40] sm:$0xff] }
 0x535   :  { %13763 = vmatmul.mubr.bf16.vlgmr.msra.gmra.mrb[48].mxu1 %v23123_v50  ;;  %14018 = vmatpush1.bf16.msra.mxu0 %v19139_v12  ;;  %v7395_v12 = vld [vmem:[#allocation13 + $0x19c0] sm:$0xff] }
 0x536   :  { %13772 = vmatpush1.bf16.msra.mxu1 %v19521_v54  ;;  %14019 = vmatprep.subr.bf16.mxu0 %v19148_v2  ;;  %v19188_v54 = vcombine.high %v7004_v8, %v7008_v33  ;;  %v7399_v2 = vld [vmem:[#allocation13 + $0x19e0] sm:$0xff] }
 0x537   :  { %13773 = vmatprep.subr.bf16.mxu1 %v19530_v27  ;;  %13803 = vmatprep.mubr.bf16.mxu1 %v23125_v35  ;;  %v19578_v24 = vcombine.high %v7395_v12, %v7399_v2  ;;  %v7415_v31 = vld [vmem:[#allocation13 + $0x1a60] sm:$0xff] }
 0x538   :  { %14049 = vmatprep.mubr.bf16.mxu0 %v23073_v51 }
 0x539   :  { %14020 = vmatpush1.bf16.msra.mxu0 %v19147_v53 }
 0x53a   :  { %13774 = vmatpush1.bf16.msra.mxu1 %v19529_v0  ;;  %14021 = vmatprep.subr.bf16.mxu0 %v19156_v18  ;;  %v19187_v18 = vcombine.low %v7004_v8, %v7008_v33  ;;  %v7431_v8 = vld [vmem:[#allocation13 + $0x1ae0] sm:$0xff]  ;;  %v7044_v33 = vld [vmem:[#allocation13 + $0xec8] sm:$0xff] }
 0x53b   :  { %13775 = vmatprep.subr.bf16.mxu1 %v19538_v42  ;;  %v19569_v42 = vcombine.low %v7387_v52, %v7391_v56  ;;  %v7427_v56 = vld [vmem:[#allocation13 + $0x1ac0] sm:$0xff] }
 0x53d   :  { %14022 = vmatpush1.bf16.msra.mxu0 %v19155_v29 }
 0x53e   :  { %13776 = vmatpush1.bf16.msra.mxu1 %v19537_v47  ;;  %14023 = vmatprep.subr.bf16.mxu0 %v19164_v39  ;;  %v7403_v47 = vld [vmem:[#allocation13 + $0x1a00] sm:$0xff]  ;;  %v19577_v39 = vcombine.low %v7395_v12, %v7399_v2 }
 0x53f   :  { %13777 = vmatprep.subr.bf16.mxu1 %v19546_v6  ;;  %v7020_v6 = vld [vmem:[#allocation13 + $0xe08] sm:$0xff]  ;;  %v7439_v2 = vld [vmem:[#allocation13 + $0x1b20] sm:$0xff] }
 0x541   :  { %14024 = vmatpush1.bf16.msra.mxu0 %v19163_v26  ;;  %v7032_v26 = vld [vmem:[#allocation13 + $0xe68] sm:$0xff] }
 0x542   :  { %13778 = vmatpush1.bf16.msra.mxu1 %v19545_v49  ;;  %14025 = vmatprep.subr.bf16.mxu0 %v19172_v46  ;;  %v7028_v49 = vld [vmem:[#allocation13 + $0xe48] sm:$0xff]  ;;  %v19594_v46 = vcombine.high %v7411_v28, %v7415_v31 }
 0x543   :  { %13779 = vmatprep.subr.bf16.mxu1 %v19554_v45  ;;  %v19212_v58 = vcombine.high %v7028_v49, %v7032_v26 }
 0x545   :  { %14026 = vmatpush1.bf16.msra.mxu0 %v19171_v23  ;;  %v19593_v23 = vcombine.low %v7411_v28, %v7415_v31 }
 0x546   :  { %13780 = vmatpush1.bf16.msra.mxu1 %v19553_v38  ;;  %14027 = vmatprep.subr.bf16.mxu0 %v19180_v41  ;;  %v7040_v38 = vld [vmem:[#allocation13 + $0xea8] sm:$0xff]  ;;  %v19602_v41 = vcombine.high %v7419_v15, %v7423_v20 }
 0x547   :  { %13781 = vmatprep.subr.bf16.mxu1 %v19562_v40  ;;  %v6478_v27 = vpop.f32.mrb[56].mxu0  ;;  %v19211_v40 = vcombine.low %v7028_v49, %v7032_v26  ;;  %v19220_v52 = vcombine.high %v7036_v32, %v7040_v38  ;;  %v7459_v26 = vld [vmem:[#allocation13 + $0x1bc0] sm:$0xff] }
 0x548   :  { %v6479_v59 = vadd.f32 %v6478_v27, %v23118_v9  ;;  %v6480_v11 = vpop.f32.mrb[57].mxu0  ;;  %v7407_v9 = vld [vmem:[#allocation13 + $0x1a20] sm:$0xff] }
 0x549   :  { %v6481_v0 = vadd.f32 %v6480_v11, %v23121_v63  ;;  %v6482_v53 = vpop.f32.mrb[58].mxu0  ;;  %14028 = vmatpush1.bf16.msra.mxu0 %v19179_v44  ;;  %v7024_v63 = vld [vmem:[#allocation13 + $0xe28] sm:$0xff]  ;;  %v19585_v45 = vcombine.low %v7403_v47, %v7407_v9  ;;  %v19601_v44 = vcombine.low %v7419_v15, %v7423_v20  ;;  %v7435_v27 = vld [vmem:[#allocation13 + $0x1b00] sm:$0xff] }
 0x54a   :  { %13782 = vmatpush1.bf16.msra.mxu1 %v19561_v13  ;;  %v23134_v19 = vadd.f32 %v6479_v59, %v23048_v34  ;;  %v6483_v21 = vpop.f32.mrb[59].mxu0  ;;  %14029 = vmatprep.subr.bf16.mxu0 %v19188_v54  ;;  %v19586_v34 = vcombine.high %v7403_v47, %v7407_v9  ;;  %v19204_v1 = vcombine.high %v7020_v6, %v7024_v63  ;;  %v7048_v13 = vld [vmem:[#allocation13 + $0xee8] sm:$0xff] }
 0x54b   :  { %13783 = vmatprep.subr.bf16.mxu1 %v19570_v48  ;;  %v23137_v29 = vadd.f32 %v6481_v0, %v23051_v62  ;;  %v19203_v62 = vcombine.low %v7020_v6, %v7024_v63  ;;  %v19219_v48 = vcombine.low %v7036_v32, %v7040_v38  ;;  %v19610_v54 = vcombine.high %v7427_v56, %v7431_v8  ;;  %v7060_v21 = vld [vmem:[#allocation13 + $0xf48] sm:$0xff]  ;;  %v7451_v63 = vld [vmem:[#allocation13 + $0x1b80] sm:$0xff] }
 0x54c   :  { %v19228_v12 = vcombine.high %v7044_v33, %v7048_v13  ;;  %v19609_v59 = vcombine.low %v7427_v56, %v7431_v8  ;;  %v19227_v11 = vcombine.low %v7044_v33, %v7048_v13  ;;  %v19618_v0 = vcombine.high %v7435_v27, %v7439_v2  ;;  %v7467_v38 = vld [vmem:[#allocation13 + $0x1c00] sm:$0xff]  ;;  %v6547_v8 = vld [vmem:[#allocation8 + $0x60] sm:$0xff] }
 0x54d   :  { %14030 = vmatpush1.bf16.msra.mxu0 %v19187_v18  ;;  %v19236_v53 = vcombine.high %v7052_v4, %v7056_v16  ;;  %v7447_v18 = vld [vmem:[#allocation13 + $0x1b60] sm:$0xff]  ;;  %v19235_v47 = vcombine.low %v7052_v4, %v7056_v16 }
 0x54e   :  { %13784 = vmatpush1.bf16.msra.mxu1 %v19569_v42  ;;  %14031 = vmatprep.subr.bf16.mxu0 %v19196_v22  ;;  %v7443_v42 = vld [vmem:[#allocation13 + $0x1b40] sm:$0xff]  ;;  %v19617_v22 = vcombine.low %v7435_v27, %v7439_v2  ;;  %v23139_v27 = vpack.c.bf16 %v6547_v8, %v6547_v8 }
 0x54f   :  { %13785 = vmatprep.subr.bf16.mxu1 %v19578_v24  ;;  %v7064_v24 = vld [vmem:[#allocation13 + $0xf68] sm:$0xff]  ;;  %v19626_v9 = vcombine.high %v7443_v42, %v7447_v18 }
 0x550   :  { %v19244_v6 = vcombine.high %v7060_v21, %v7064_v24  ;;  %v19243_v28 = vcombine.low %v7060_v21, %v7064_v24  ;;  %v6550_v2 = vld [vmem:[#allocation8 + $0x78] sm:$0xff] }
 0x551   :  { %14032 = vmatpush1.bf16.msra.mxu0 %v19195_v43  ;;  %v7068_v43 = vld [vmem:[#allocation13 + $0xf88] sm:$0xff]  ;;  %v23141_v21 = vpack.c.bf16 %v6550_v2, %v6550_v2 }
 0x552   :  { %13786 = vmatpush1.bf16.msra.mxu1 %v19577_v39  ;;  %14033 = vmatprep.subr.bf16.mxu0 %v19204_v1  ;;  %v7455_v39 = vld [vmem:[#allocation13 + $0x1ba0] sm:$0xff]  ;;  %v19625_v1 = vcombine.low %v7443_v42, %v7447_v18  ;;  %v7100_v42 = vld [vmem:[#allocation13 + $0x1088] sm:$0xff] }
 0x553   :  { %13787 = vmatprep.subr.bf16.mxu1 %v19586_v34  ;;  %v7072_v34 = vld [vmem:[#allocation13 + $0xfa8] sm:$0xff]  ;;  %v19634_v31 = vcombine.high %v7451_v63, %v7455_v39 }
 0x554   :  { %v19252_v49 = vcombine.high %v7068_v43, %v7072_v34  ;;  %v19251_v15 = vcombine.low %v7068_v43, %v7072_v34  ;;  %v7104_v18 = vld [vmem:[#allocation13 + $0x10a8] sm:$0xff] }
 0x555   :  { %14034 = vmatpush1.bf16.msra.mxu0 %v19203_v62  ;;  %v7076_v62 = vld [vmem:[#allocation13 + $0xfc8] sm:$0xff] }
 0x556   :  { %13788 = vmatpush1.bf16.msra.mxu1 %v19585_v45  ;;  %14035 = vmatprep.subr.bf16.mxu0 %v19212_v58  ;;  %v7463_v45 = vld [vmem:[#allocation13 + $0x1be0] sm:$0xff]  ;;  %v19633_v58 = vcombine.low %v7451_v63, %v7455_v39  ;;  %v7108_v39 = vld [vmem:[#allocation13 + $0x10c8] sm:$0xff] }
 0x557   :  { %13789 = vmatprep.subr.bf16.mxu1 %v19594_v46  ;;  %v7080_v46 = vld [vmem:[#allocation13 + $0xfe8] sm:$0xff]  ;;  %v19642_v20 = vcombine.high %v7459_v26, %v7463_v45  ;;  %v7495_v63 = vld [vmem:[#allocation13 + $0x1ce0] sm:$0xff] }
 0x558   :  { %v19260_v32 = vcombine.high %v7076_v62, %v7080_v46  ;;  %v19259_v56 = vcombine.low %v7076_v62, %v7080_v46  ;;  %v7112_v43 = vld [vmem:[#allocation13 + $0x10e8] sm:$0xff] }
 0x559   :  { %14036 = vmatpush1.bf16.msra.mxu0 %v19211_v40  ;;  %v7084_v40 = vld [vmem:[#allocation13 + $0x1008] sm:$0xff] }
 0x55a   :  { %13790 = vmatpush1.bf16.msra.mxu1 %v19593_v23  ;;  %14037 = vmatprep.subr.bf16.mxu0 %v19220_v52  ;;  %v7471_v23 = vld [vmem:[#allocation13 + $0x1c20] sm:$0xff]  ;;  %v19641_v52 = vcombine.low %v7459_v26, %v7463_v45  ;;  %v7116_v45 = vld [vmem:[#allocation13 + $0x1108] sm:$0xff] }
 0x55b   :  { %13791 = vmatprep.subr.bf16.mxu1 %v19602_v41  ;;  %v7088_v41 = vld [vmem:[#allocation13 + $0x1028] sm:$0xff]  ;;  %v19650_v33 = vcombine.high %v7467_v38, %v7471_v23  ;;  %v19649_v4 = vcombine.low %v7467_v38, %v7471_v23  ;;  %v7503_v26 = vld [vmem:[#allocation13 + $0x1d20] sm:$0xff] }
 0x55c   :  { %v19268_v13 = vcombine.high %v7084_v40, %v7088_v41  ;;  %v19267_v16 = vcombine.low %v7084_v40, %v7088_v41  ;;  %v7120_v62 = vld [vmem:[#allocation13 + $0x1128] sm:$0xff]  ;;  %v7511_v38 = vld [vmem:[#allocation13 + $0x1d60] sm:$0xff] }
 0x55d   :  { %14038 = vmatpush1.bf16.msra.mxu0 %v19219_v48  ;;  %v7479_v48 = vld [vmem:[#allocation13 + $0x1c60] sm:$0xff]  ;;  %v7124_v23 = vld [vmem:[#allocation13 + $0x1148] sm:$0xff] }
 0x55e   :  { %13792 = vmatpush1.bf16.msra.mxu1 %v19601_v44  ;;  %14039 = vmatprep.subr.bf16.mxu0 %v19228_v12  ;;  %v7475_v44 = vld [vmem:[#allocation13 + $0x1c40] sm:$0xff]  ;;  %v7096_v12 = vld [vmem:[#allocation13 + $0x1068] sm:$0xff] }
 0x55f   :  { %13793 = vmatprep.subr.bf16.mxu1 %v19610_v54  ;;  %v7092_v54 = vld [vmem:[#allocation13 + $0x1048] sm:$0xff]  ;;  %v19657_v24 = vcombine.low %v7475_v44, %v7479_v48 }
 0x560   :  { %v7128_v40 = vld [vmem:[#allocation13 + $0x1168] sm:$0xff] }
 0x561   :  { %14040 = vmatpush1.bf16.msra.mxu0 %v19227_v11  ;;  %v19276_v11 = vcombine.high %v7092_v54, %v7096_v12  ;;  %v19308_v8 = vcombine.high %v7124_v23, %v7128_v40 }
 0x562   :  { %13794 = vmatpush1.bf16.msra.mxu1 %v19609_v59  ;;  %14041 = vmatprep.subr.bf16.mxu0 %v19236_v53  ;;  %v19658_v59 = vcombine.high %v7475_v44, %v7479_v48  ;;  %v7487_v53 = vld [vmem:[#allocation13 + $0x1ca0] sm:$0xff]  ;;  %v7132_v44 = vld [vmem:[#allocation13 + $0x1188] sm:$0xff] }
 0x563   :  { %13795 = vmatprep.subr.bf16.mxu1 %v19618_v0  ;;  %v7483_v0 = vld [vmem:[#allocation13 + $0x1c80] sm:$0xff]  ;;  %v7136_v48 = vld [vmem:[#allocation13 + $0x11a8] sm:$0xff] }
 0x564   :  { %v19665_v34 = vcombine.low %v7483_v0, %v7487_v53 }
 0x565   :  { %14042 = vmatpush1.bf16.msra.mxu0 %v19235_v47  ;;  %v19666_v47 = vcombine.high %v7483_v0, %v7487_v53  ;;  %v7144_v0 = vld [vmem:[#allocation13 + $0x11e8] sm:$0xff] }
 0x566   :  { %13796 = vmatpush1.bf16.msra.mxu1 %v19617_v22  ;;  %14043 = vmatprep.subr.bf16.mxu0 %v19244_v6  ;;  %v19275_v22 = vcombine.low %v7092_v54, %v7096_v12  ;;  %v7491_v6 = vld [vmem:[#allocation13 + $0x1cc0] sm:$0xff]  ;;  %v19307_v12 = vcombine.low %v7124_v23, %v7128_v40 }
 0x567   :  { %13797 = vmatprep.subr.bf16.mxu1 %v19626_v9  ;;  %v19284_v9 = vcombine.high %v7100_v42, %v7104_v18  ;;  %v19673_v46 = vcombine.low %v7491_v6, %v7495_v63 }
 0x569   :  { %14044 = vmatpush1.bf16.msra.mxu0 %v19243_v28  ;;  %v19674_v28 = vcombine.high %v7491_v6, %v7495_v63  ;;  %v7152_v6 = vld [vmem:[#allocation13 + $0x1228] sm:$0xff] }
 0x56a   :  { %13798 = vmatpush1.bf16.msra.mxu1 %v19625_v1  ;;  %14045 = vmatprep.subr.bf16.mxu0 %v19252_v49  ;;  %v19283_v1 = vcombine.low %v7100_v42, %v7104_v18  ;;  %v7499_v49 = vld [vmem:[#allocation13 + $0x1d00] sm:$0xff]  ;;  %v19315_v42 = vcombine.low %v7132_v44, %v7136_v48 }
 0x56b   :  { %13799 = vmatprep.subr.bf16.mxu1 %v19634_v31  ;;  %v19292_v31 = vcombine.high %v7108_v39, %v7112_v43  ;;  %v19681_v41 = vcombine.low %v7499_v49, %v7503_v26 }
 0x56d   :  { %14046 = vmatpush1.bf16.msra.mxu0 %v19251_v15  ;;  %v19682_v15 = vcombine.high %v7499_v49, %v7503_v26  ;;  %v7160_v49 = vld [vmem:[#allocation13 + $0x1268] sm:$0xff] }
 0x56e   :  { %13800 = vmatpush1.bf16.msra.mxu1 %v19633_v58  ;;  %14047 = vmatprep.subr.bf16.mxu0 %v19260_v32  ;;  %v19291_v58 = vcombine.low %v7108_v39, %v7112_v43  ;;  %v7507_v32 = vld [vmem:[#allocation13 + $0x1d40] sm:$0xff] }
 0x56f   :  { %13801 = vmatprep.subr.bf16.mxu1 %v19642_v20  ;;  %v19300_v20 = vcombine.high %v7116_v45, %v7120_v62  ;;  %v19689_v54 = vcombine.low %v7507_v32, %v7511_v38 }
 0x571   :  { %14048 = vmatpush1.bf16.msra.mxu0 %v19259_v56  ;;  %v19690_v56 = vcombine.high %v7507_v32, %v7511_v38  ;;  %v7168_v32 = vld [vmem:[#allocation13 + $0x12a8] sm:$0xff] }
 0x572   :  { %13802 = vmatpush1.bf16.msra.mxu1 %v19641_v52  ;;  %14058 = vmatprep.subr.bf16.mxu0 %v19268_v13  ;;  %v19299_v52 = vcombine.low %v7116_v45, %v7120_v62  ;;  %v7519_v13 = vld [vmem:[#allocation13 + $0x1da0] sm:$0xff] }
 0x573   :  { %13812 = vmatprep.subr.bf16.mxu1 %v19650_v33  ;;  %v7515_v33 = vld [vmem:[#allocation13 + $0x1d80] sm:$0xff] }
 0x574   :  { %14050 = vmatmul.mubr.bf16.vlgmr.msra.gmra.mrb[60].mxu0 %v23091_v55  ;;  %v19698_v2 = vcombine.high %v7515_v33, %v7519_v13  ;;  %v19697_v53 = vcombine.low %v7515_v33, %v7519_v13  ;;  %v7176_v33 = vld [vmem:[#allocation13 + $0x12e8] sm:$0xff] }
 0x575   :  { %13804 = vmatmul.mubr.bf16.vlgmr.msra.gmra.mrb[48].mxu1 %v23139_v27  ;;  %14059 = vmatpush1.bf16.msra.mxu0 %v19267_v16  ;;  %v7523_v16 = vld [vmem:[#allocation13 + $0x1dc0] sm:$0xff] }
 0x576   :  { %13813 = vmatpush1.bf16.msra.mxu1 %v19649_v4  ;;  %14060 = vmatprep.subr.bf16.mxu0 %v19276_v11  ;;  %v19316_v4 = vcombine.high %v7132_v44, %v7136_v48  ;;  %v7140_v11 = vld [vmem:[#allocation13 + $0x11c8] sm:$0xff] }
 0x577   :  { %13814 = vmatprep.subr.bf16.mxu1 %v19658_v59  ;;  %13844 = vmatprep.mubr.bf16.mxu1 %v23141_v21  ;;  %v7527_v59 = vld [vmem:[#allocation13 + $0x1de0] sm:$0xff]  ;;  %v19323_v39 = vcombine.low %v7140_v11, %v7144_v0 }
 0x578   :  { %14090 = vmatprep.mubr.bf16.mxu0 %v23093_v7  ;;  %v19706_v18 = vcombine.high %v7523_v16, %v7527_v59  ;;  %v19705_v63 = vcombine.low %v7523_v16, %v7527_v59  ;;  %v7184_v16 = vld [vmem:[#allocation13 + $0x1328] sm:$0xff] }
 0x579   :  { %14061 = vmatpush1.bf16.msra.mxu0 %v19275_v22  ;;  %v7531_v22 = vld [vmem:[#allocation13 + $0x1e00] sm:$0xff] }
 0x57a   :  { %13815 = vmatpush1.bf16.msra.mxu1 %v19657_v24  ;;  %14062 = vmatprep.subr.bf16.mxu0 %v19284_v9  ;;  %v19324_v24 = vcombine.high %v7140_v11, %v7144_v0  ;;  %v7148_v9 = vld [vmem:[#allocation13 + $0x1208] sm:$0xff] }
 0x57b   :  { %13816 = vmatprep.subr.bf16.mxu1 %v19666_v47  ;;  %v7535_v47 = vld [vmem:[#allocation13 + $0x1e20] sm:$0xff]  ;;  %v19331_v45 = vcombine.low %v7148_v9, %v7152_v6 }
 0x57c   :  { %v19714_v43 = vcombine.high %v7531_v22, %v7535_v47  ;;  %v19713_v26 = vcombine.low %v7531_v22, %v7535_v47  ;;  %v7192_v22 = vld [vmem:[#allocation13 + $0x1368] sm:$0xff] }
 0x57d   :  { %14063 = vmatpush1.bf16.msra.mxu0 %v19283_v1  ;;  %v7539_v1 = vld [vmem:[#allocation13 + $0x1e40] sm:$0xff] }
 0x57e   :  { %13817 = vmatpush1.bf16.msra.mxu1 %v19665_v34  ;;  %14064 = vmatprep.subr.bf16.mxu0 %v19292_v31  ;;  %v19332_v34 = vcombine.high %v7148_v9, %v7152_v6  ;;  %v7156_v31 = vld [vmem:[#allocation13 + $0x1248] sm:$0xff] }
 0x57f   :  { %13818 = vmatprep.subr.bf16.mxu1 %v19674_v28  ;;  %v7543_v28 = vld [vmem:[#allocation13 + $0x1e60] sm:$0xff]  ;;  %v19339_v23 = vcombine.low %v7156_v31, %v7160_v49 }
 0x580   :  { %v19722_v62 = vcombine.high %v7539_v1, %v7543_v28  ;;  %v19721_v38 = vcombine.low %v7539_v1, %v7543_v28  ;;  %v7200_v1 = vld [vmem:[#allocation13 + $0x13a8] sm:$0xff] }
 0x581   :  { %14065 = vmatpush1.bf16.msra.mxu0 %v19291_v58  ;;  %v7547_v58 = vld [vmem:[#allocation13 + $0x1e80] sm:$0xff] }
 0x582   :  { %13819 = vmatpush1.bf16.msra.mxu1 %v19673_v46  ;;  %14066 = vmatprep.subr.bf16.mxu0 %v19300_v20  ;;  %v19340_v46 = vcombine.high %v7156_v31, %v7160_v49  ;;  %v7164_v20 = vld [vmem:[#allocation13 + $0x1288] sm:$0xff] }
 0x583   :  { %13820 = vmatprep.subr.bf16.mxu1 %v19682_v15  ;;  %v7551_v15 = vld [vmem:[#allocation13 + $0x1ea0] sm:$0xff]  ;;  %v19347_v44 = vcombine.low %v7164_v20, %v7168_v32 }
 0x584   :  { %v19730_v40 = vcombine.high %v7547_v58, %v7551_v15  ;;  %v19729_v13 = vcombine.low %v7547_v58, %v7551_v15  ;;  %v7208_v58 = vld [vmem:[#allocation13 + $0x13e8] sm:$0xff] }
 0x585   :  { %14067 = vmatpush1.bf16.msra.mxu0 %v19299_v52  ;;  %v7555_v52 = vld [vmem:[#allocation13 + $0x1ec0] sm:$0xff] }
 0x586   :  { %13821 = vmatpush1.bf16.msra.mxu1 %v19681_v41  ;;  %14068 = vmatprep.subr.bf16.mxu0 %v19308_v8  ;;  %v19348_v41 = vcombine.high %v7164_v20, %v7168_v32  ;;  %v7172_v8 = vld [vmem:[#allocation13 + $0x12c8] sm:$0xff] }
 0x587   :  { %13822 = vmatprep.subr.bf16.mxu1 %v19690_v56  ;;  %v7559_v56 = vld [vmem:[#allocation13 + $0x1ee0] sm:$0xff]  ;;  %v19355_v11 = vcombine.low %v7172_v8, %v7176_v33 }
 0x588   :  { %v19738_v48 = vcombine.high %v7555_v52, %v7559_v56  ;;  %v19737_v59 = vcombine.low %v7555_v52, %v7559_v56  ;;  %v7216_v52 = vld [vmem:[#allocation13 + $0x1428] sm:$0xff] }
 0x589   :  { %14069 = vmatpush1.bf16.msra.mxu0 %v19307_v12  ;;  %v7563_v12 = vld [vmem:[#allocation13 + $0x1f00] sm:$0xff] }
 0x58a   :  { %13823 = vmatpush1.bf16.msra.mxu1 %v19689_v54  ;;  %14070 = vmatprep.subr.bf16.mxu0 %v19316_v4  ;;  %v19356_v54 = vcombine.high %v7172_v8, %v7176_v33  ;;  %v7180_v4 = vld [vmem:[#allocation13 + $0x1308] sm:$0xff]  ;;  %v6549_v33 = vld [vmem:[#allocation8 + $0x70] sm:$0xff] }
 0x58b   :  { %13824 = vmatprep.subr.bf16.mxu1 %v19698_v2  ;;  %v7567_v2 = vld [vmem:[#allocation13 + $0x1f20] sm:$0xff]  ;;  %v19363_v9 = vcombine.low %v7180_v4, %v7184_v16 }
 0x58c   :  { %v19746_v0 = vcombine.high %v7563_v12, %v7567_v2  ;;  %v19745_v47 = vcombine.low %v7563_v12, %v7567_v2  ;;  %v7220_v12 = vld [vmem:[#allocation13 + $0x1448] sm:$0xff] }
 0x58d   :  { %14071 = vmatpush1.bf16.msra.mxu0 %v19315_v42  ;;  %v7571_v42 = vld [vmem:[#allocation13 + $0x1f40] sm:$0xff]  ;;  %v7224_v2 = vld [vmem:[#allocation13 + $0x1468] sm:$0xff] }
 0x58e   :  { %13825 = vmatpush1.bf16.msra.mxu1 %v19697_v53  ;;  %14072 = vmatprep.subr.bf16.mxu0 %v19324_v24  ;;  %v19364_v53 = vcombine.high %v7180_v4, %v7184_v16  ;;  %v7188_v24 = vld [vmem:[#allocation13 + $0x1348] sm:$0xff]  ;;  %v23147_v4 = vpack.c.bf16 %v6549_v33, %v6549_v33  ;;  %v6552_v16 = vld [vmem:[#allocation8 + $0x88] sm:$0xff] }
 0x58f   :  { %13826 = vmatprep.subr.bf16.mxu1 %v19706_v18  ;;  %v7575_v18 = vld [vmem:[#allocation13 + $0x1f60] sm:$0xff]  ;;  %v19371_v31 = vcombine.low %v7188_v24, %v7192_v22 }
 0x590   :  { %v19754_v6 = vcombine.high %v7571_v42, %v7575_v18  ;;  %v19753_v28 = vcombine.low %v7571_v42, %v7575_v18  ;;  %v7611_v42 = vld [vmem:[#allocation13 + $0x2080] sm:$0xff] }
 0x591   :  { %14073 = vmatpush1.bf16.msra.mxu0 %v19323_v39  ;;  %v7579_v39 = vld [vmem:[#allocation13 + $0x1f80] sm:$0xff] }
 0x592   :  { %13827 = vmatpush1.bf16.msra.mxu1 %v19705_v63  ;;  %14074 = vmatprep.subr.bf16.mxu0 %v19332_v34  ;;  %v19372_v63 = vcombine.high %v7188_v24, %v7192_v22  ;;  %v7196_v34 = vld [vmem:[#allocation13 + $0x1388] sm:$0xff]  ;;  %v7615_v18 = vld [vmem:[#allocation13 + $0x20a0] sm:$0xff] }
 0x593   :  { %13828 = vmatprep.subr.bf16.mxu1 %v19714_v43  ;;  %v7583_v43 = vld [vmem:[#allocation13 + $0x1fa0] sm:$0xff]  ;;  %v19379_v20 = vcombine.low %v7196_v34, %v7200_v1  ;;  %v7228_v24 = vld [vmem:[#allocation13 + $0x1488] sm:$0xff] }
 0x594   :  { %v19762_v49 = vcombine.high %v7579_v39, %v7583_v43  ;;  %v19761_v15 = vcombine.low %v7579_v39, %v7583_v43  ;;  %v7232_v22 = vld [vmem:[#allocation13 + $0x14a8] sm:$0xff]  ;;  %v7619_v43 = vld [vmem:[#allocation13 + $0x20c0] sm:$0xff] }
 0x595   :  { %14075 = vmatpush1.bf16.msra.mxu0 %v19331_v45  ;;  %v7587_v45 = vld [vmem:[#allocation13 + $0x1fc0] sm:$0xff]  ;;  %v19412_v39 = vcombine.high %v7228_v24, %v7232_v22 }
 0x596   :  { %13829 = vmatpush1.bf16.msra.mxu1 %v19713_v26  ;;  %14076 = vmatprep.subr.bf16.mxu0 %v19340_v46  ;;  %v19380_v26 = vcombine.high %v7196_v34, %v7200_v1  ;;  %v7204_v46 = vld [vmem:[#allocation13 + $0x13c8] sm:$0xff]  ;;  %v7623_v34 = vld [vmem:[#allocation13 + $0x20e0] sm:$0xff] }
 0x597   :  { %13830 = vmatprep.subr.bf16.mxu1 %v19722_v62  ;;  %v7591_v62 = vld [vmem:[#allocation13 + $0x1fe0] sm:$0xff]  ;;  %v19387_v8 = vcombine.low %v7204_v46, %v7208_v58  ;;  %v7236_v1 = vld [vmem:[#allocation13 + $0x14c8] sm:$0xff] }
 0x598   :  { %v19770_v32 = vcombine.high %v7587_v45, %v7591_v62  ;;  %v19769_v56 = vcombine.low %v7587_v45, %v7591_v62  ;;  %v7627_v62 = vld [vmem:[#allocation13 + $0x2100] sm:$0xff] }
 0x599   :  { %14077 = vmatpush1.bf16.msra.mxu0 %v19339_v23  ;;  %v7595_v23 = vld [vmem:[#allocation13 + $0x2000] sm:$0xff] }
 0x59a   :  { %13831 = vmatpush1.bf16.msra.mxu1 %v19721_v38  ;;  %14078 = vmatprep.subr.bf16.mxu0 %v19348_v41  ;;  %v19388_v38 = vcombine.high %v7204_v46, %v7208_v58  ;;  %v7212_v41 = vld [vmem:[#allocation13 + $0x1408] sm:$0xff]  ;;  %v7631_v46 = vld [vmem:[#allocation13 + $0x2120] sm:$0xff] }
 0x59b   :  { %13832 = vmatprep.subr.bf16.mxu1 %v19730_v40  ;;  %v7599_v40 = vld [vmem:[#allocation13 + $0x2020] sm:$0xff]  ;;  %v7244_v58 = vld [vmem:[#allocation13 + $0x1508] sm:$0xff] }
 0x59d   :  { %14079 = vmatpush1.bf16.msra.mxu0 %v19347_v44  ;;  %v19396_v44 = vcombine.high %v7212_v41, %v7216_v52 }
 0x59e   :  { %13833 = vmatpush1.bf16.msra.mxu1 %v19729_v13  ;;  %14080 = vmatprep.subr.bf16.mxu0 %v19356_v54  ;;  %v19778_v13 = vcombine.high %v7595_v23, %v7599_v40  ;;  %v7607_v54 = vld [vmem:[#allocation13 + $0x2060] sm:$0xff] }
 0x59f   :  { %13834 = vmatprep.subr.bf16.mxu1 %v19738_v48  ;;  %v7603_v48 = vld [vmem:[#allocation13 + $0x2040] sm:$0xff] }
 0x5a1   :  { %14081 = vmatpush1.bf16.msra.mxu0 %v19355_v11  ;;  %v19395_v11 = vcombine.low %v7212_v41, %v7216_v52  ;;  %v7639_v41 = vld [vmem:[#allocation13 + $0x2160] sm:$0xff]  ;;  %v7252_v52 = vld [vmem:[#allocation13 + $0x1548] sm:$0xff] }
 0x5a2   :  { %13835 = vmatpush1.bf16.msra.mxu1 %v19737_v59  ;;  %14082 = vmatprep.subr.bf16.mxu0 %v19364_v53  ;;  %v19777_v59 = vcombine.low %v7595_v23, %v7599_v40  ;;  %v19404_v53 = vcombine.high %v7220_v12, %v7224_v2  ;;  %v7635_v40 = vld [vmem:[#allocation13 + $0x2140] sm:$0xff] }
 0x5a3   :  { %13836 = vmatprep.subr.bf16.mxu1 %v19746_v0  ;;  %v19786_v0 = vcombine.high %v7603_v48, %v7607_v54 }
 0x5a5   :  { %14083 = vmatpush1.bf16.msra.mxu0 %v19363_v9  ;;  %v19785_v9 = vcombine.low %v7603_v48, %v7607_v54  ;;  %v7643_v48 = vld [vmem:[#allocation13 + $0x2180] sm:$0xff] }
 0x5a6   :  { %13837 = vmatpush1.bf16.msra.mxu1 %v19745_v47  ;;  %14084 = vmatprep.subr.bf16.mxu0 %v19372_v63  ;;  %v23149_v47 = vpack.c.bf16 %v6552_v16, %v6552_v16  ;;  %v19794_v63 = vcombine.high %v7611_v42, %v7615_v18  ;;  %v7647_v54 = vld [vmem:[#allocation13 + $0x21a0] sm:$0xff]  ;;  %v19817_v16 = vcombine.low %v7635_v40, %v7639_v41 }
 0x5a7   :  { %13838 = vmatprep.subr.bf16.mxu1 %v19754_v6  ;;  %v19403_v6 = vcombine.low %v7220_v12, %v7224_v2  ;;  %v7260_v12 = vld [vmem:[#allocation13 + $0x1588] sm:$0xff] }
 0x5a8   :  { %v7264_v2 = vld [vmem:[#allocation13 + $0x15a8] sm:$0xff] }
 0x5a9   :  { %14085 = vmatpush1.bf16.msra.mxu0 %v19371_v31  ;;  %v19793_v31 = vcombine.low %v7611_v42, %v7615_v18  ;;  %v7655_v42 = vld [vmem:[#allocation13 + $0x21e0] sm:$0xff]  ;;  %v7268_v18 = vld [vmem:[#allocation13 + $0x15c8] sm:$0xff] }
 0x5aa   :  { %13839 = vmatpush1.bf16.msra.mxu1 %v19753_v28  ;;  %14086 = vmatprep.subr.bf16.mxu0 %v19380_v26  ;;  %v7240_v28 = vld [vmem:[#allocation13 + $0x14e8] sm:$0xff]  ;;  %v19802_v26 = vcombine.high %v7619_v43, %v7623_v34 }
 0x5ab   :  { %13840 = vmatprep.subr.bf16.mxu1 %v19762_v49  ;;  %v19411_v49 = vcombine.low %v7228_v24, %v7232_v22  ;;  %v19420_v45 = vcombine.high %v7236_v1, %v7240_v28  ;;  %v7272_v24 = vld [vmem:[#allocation13 + $0x15e8] sm:$0xff]  ;;  %v19825_v22 = vcombine.low %v7643_v48, %v7647_v54 }
 0x5ad   :  { %14087 = vmatpush1.bf16.msra.mxu0 %v19379_v20  ;;  %v19801_v20 = vcombine.low %v7619_v43, %v7623_v34  ;;  %v7663_v43 = vld [vmem:[#allocation13 + $0x2220] sm:$0xff]  ;;  %v7276_v34 = vld [vmem:[#allocation13 + $0x1608] sm:$0xff] }
 0x5ae   :  { %13841 = vmatpush1.bf16.msra.mxu1 %v19761_v15  ;;  %14088 = vmatprep.subr.bf16.mxu0 %v19388_v38  ;;  %v7248_v15 = vld [vmem:[#allocation13 + $0x1528] sm:$0xff]  ;;  %v19810_v38 = vcombine.high %v7627_v62, %v7631_v46 }
 0x5af   :  { %13842 = vmatprep.subr.bf16.mxu1 %v19770_v32  ;;  %v19419_v32 = vcombine.low %v7236_v1, %v7240_v28  ;;  %v19428_v23 = vcombine.high %v7244_v58, %v7248_v15  ;;  %v19427_v33 = vcombine.low %v7244_v58, %v7248_v15  ;;  %v7280_v1 = vld [vmem:[#allocation13 + $0x1628] sm:$0xff] }
 0x5b0   :  { %v7288_v58 = vld [vmem:[#allocation13 + $0x1668] sm:$0xff] }
 0x5b1   :  { %14089 = vmatpush1.bf16.msra.mxu0 %v19387_v8  ;;  %v19809_v8 = vcombine.low %v7627_v62, %v7631_v46  ;;  %v7671_v62 = vld [vmem:[#allocation13 + $0x2260] sm:$0xff]  ;;  %v7284_v46 = vld [vmem:[#allocation13 + $0x1648] sm:$0xff] }
 0x5b2   :  { %13843 = vmatpush1.bf16.msra.mxu1 %v19769_v56  ;;  %14099 = vmatprep.subr.bf16.mxu0 %v19396_v44  ;;  %v7256_v56 = vld [vmem:[#allocation13 + $0x1568] sm:$0xff] }
 0x5b3   :  { %13853 = vmatprep.subr.bf16.mxu1 %v19778_v13  ;;  %v19818_v13 = vcombine.high %v7635_v40, %v7639_v41  ;;  %v19436_v44 = vcombine.high %v7252_v52, %v7256_v56  ;;  %v7679_v40 = vld [vmem:[#allocation13 + $0x22a0] sm:$0xff]  ;;  %v7292_v41 = vld [vmem:[#allocation13 + $0x1688] sm:$0xff] }
 0x5b4   :  { %14091 = vmatmul.mubr.bf16.vlgmr.msra.gmra.mrb[60].mxu0 %v23109_v36 }
 0x5b5   :  { %13845 = vmatmul.mubr.bf16.vlgmr.msra.gmra.mrb[48].mxu1 %v23147_v4  ;;  %14100 = vmatpush1.bf16.msra.mxu0 %v19395_v11  ;;  %v19826_v11 = vcombine.high %v7643_v48, %v7647_v54  ;;  %v7687_v48 = vld [vmem:[#allocation13 + $0x22e0] sm:$0xff]  ;;  %v7300_v54 = vld [vmem:[#allocation13 + $0x16c8] sm:$0xff] }
 0x5b6   :  { %13854 = vmatpush1.bf16.msra.mxu1 %v19777_v59  ;;  %14101 = vmatprep.subr.bf16.mxu0 %v19404_v53  ;;  %v19435_v59 = vcombine.low %v7252_v52, %v7256_v56  ;;  %v7651_v53 = vld [vmem:[#allocation13 + $0x21c0] sm:$0xff]  ;;  %v7296_v52 = vld [vmem:[#allocation13 + $0x16a8] sm:$0xff] }
 0x5b7   :  { %13855 = vmatprep.subr.bf16.mxu1 %v19786_v0  ;;  %13885 = vmatprep.mubr.bf16.mxu1 %v23149_v47  ;;  %v19444_v0 = vcombine.high %v7260_v12, %v7264_v2  ;;  %v19833_v28 = vcombine.low %v7651_v53, %v7655_v42 }
 0x5b8   :  { %14131 = vmatprep.mubr.bf16.mxu0 %v23111_v25 }
 0x5b9   :  { %14102 = vmatpush1.bf16.msra.mxu0 %v19403_v6  ;;  %v19834_v6 = vcombine.high %v7651_v53, %v7655_v42  ;;  %v7695_v53 = vld [vmem:[#allocation13 + $0x2320] sm:$0xff]  ;;  %v7308_v42 = vld [vmem:[#allocation13 + $0x1708] sm:$0xff] }
 0x5ba   :  { %13856 = vmatpush1.bf16.msra.mxu1 %v19785_v9  ;;  %14103 = vmatprep.subr.bf16.mxu0 %v19412_v39  ;;  %v19443_v9 = vcombine.low %v7260_v12, %v7264_v2  ;;  %v7659_v39 = vld [vmem:[#allocation13 + $0x2200] sm:$0xff]  ;;  %v7304_v12 = vld [vmem:[#allocation13 + $0x16e8] sm:$0xff] }
 0x5bb   :  { %13857 = vmatprep.subr.bf16.mxu1 %v19794_v63  ;;  %v19452_v63 = vcombine.high %v7268_v18, %v7272_v24  ;;  %v19841_v15 = vcombine.low %v7659_v39, %v7663_v43 }
 0x5bd   :  { %14104 = vmatpush1.bf16.msra.mxu0 %v19411_v49  ;;  %v19842_v49 = vcombine.high %v7659_v39, %v7663_v43  ;;  %v7703_v39 = vld [vmem:[#allocation13 + $0x2360] sm:$0xff]  ;;  %v7316_v43 = vld [vmem:[#allocation13 + $0x1748] sm:$0xff] }
 0x5be   :  { %13858 = vmatpush1.bf16.msra.mxu1 %v19793_v31  ;;  %14105 = vmatprep.subr.bf16.mxu0 %v19420_v45  ;;  %v19451_v31 = vcombine.low %v7268_v18, %v7272_v24  ;;  %v7667_v45 = vld [vmem:[#allocation13 + $0x2240] sm:$0xff]  ;;  %v7312_v18 = vld [vmem:[#allocation13 + $0x1728] sm:$0xff] }
 0x5bf   :  { %13859 = vmatprep.subr.bf16.mxu1 %v19802_v26  ;;  %v19460_v26 = vcombine.high %v7276_v34, %v7280_v1  ;;  %v19849_v56 = vcombine.low %v7667_v45, %v7671_v62 }
 0x5c1   :  { %14106 = vmatpush1.bf16.msra.mxu0 %v19419_v32  ;;  %v19850_v32 = vcombine.high %v7667_v45, %v7671_v62  ;;  %v7711_v45 = vld [vmem:[#allocation13 + $0x23a0] sm:$0xff]  ;;  %v7324_v62 = vld [vmem:[#allocation13 + $0x1788] sm:$0xff] }
 0x5c2   :  { %13860 = vmatpush1.bf16.msra.mxu1 %v19801_v20  ;;  %14107 = vmatprep.subr.bf16.mxu0 %v19428_v23  ;;  %v19459_v20 = vcombine.low %v7276_v34, %v7280_v1  ;;  %v7675_v23 = vld [vmem:[#allocation13 + $0x2280] sm:$0xff]  ;;  %v7320_v34 = vld [vmem:[#allocation13 + $0x1768] sm:$0xff] }
 0x5c3   :  { %13861 = vmatprep.subr.bf16.mxu1 %v19810_v38  ;;  %v19468_v38 = vcombine.high %v7284_v46, %v7288_v58  ;;  %v19857_v2 = vcombine.low %v7675_v23, %v7679_v40 }
 0x5c5   :  { %14108 = vmatpush1.bf16.msra.mxu0 %v19427_v33  ;;  %v19858_v33 = vcombine.high %v7675_v23, %v7679_v40  ;;  %v7719_v23 = vld [vmem:[#allocation13 + $0x23e0] sm:$0xff]  ;;  %v7332_v40 = vld [vmem:[#allocation13 + $0x17c8] sm:$0xff] }
 0x5c6   :  { %13862 = vmatpush1.bf16.msra.mxu1 %v19809_v8  ;;  %14109 = vmatprep.subr.bf16.mxu0 %v19436_v44  ;;  %v19467_v8 = vcombine.low %v7284_v46, %v7288_v58  ;;  %v7683_v44 = vld [vmem:[#allocation13 + $0x22c0] sm:$0xff]  ;;  %v7328_v46 = vld [vmem:[#allocation13 + $0x17a8] sm:$0xff] }
 0x5c7   :  { %13863 = vmatprep.subr.bf16.mxu1 %v19818_v13  ;;  %v19476_v13 = vcombine.high %v7292_v41, %v7296_v52  ;;  %v19865_v24 = vcombine.low %v7683_v44, %v7687_v48 }
 0x5c9   :  { %14110 = vmatpush1.bf16.msra.mxu0 %v19435_v59  ;;  %v19866_v59 = vcombine.high %v7683_v44, %v7687_v48  ;;  %v7344_v44 = vld [vmem:[#allocation13 + $0x1828] sm:$0xff]  ;;  %v6573_v48 = vld [vmem:[#allocation13 + $0x10] sm:$0xff] }
 0x5ca   :  { %13864 = vmatpush1.bf16.msra.mxu1 %v19817_v16  ;;  %14111 = vmatprep.subr.bf16.mxu0 %v19444_v0  ;;  %v19475_v16 = vcombine.low %v7292_v41, %v7296_v52  ;;  %v7691_v0 = vld [vmem:[#allocation13 + $0x2300] sm:$0xff]  ;;  %v7336_v41 = vld [vmem:[#allocation13 + $0x17e8] sm:$0xff] }
 0x5cb   :  { %13865 = vmatprep.subr.bf16.mxu1 %v19826_v11  ;;  %v19484_v11 = vcombine.high %v7300_v54, %v7304_v12  ;;  %v19873_v1 = vcombine.low %v7691_v0, %v7695_v53 }
 0x5cd   :  { %14112 = vmatpush1.bf16.msra.mxu0 %v19443_v9  ;;  %v19874_v9 = vcombine.high %v7691_v0, %v7695_v53  ;;  %v7348_v0 = vld [vmem:[#allocation13 + $0x1848] sm:$0xff] }
 0x5ce   :  { %13866 = vmatpush1.bf16.msra.mxu1 %v19825_v22  ;;  %14113 = vmatprep.subr.bf16.mxu0 %v19452_v63  ;;  %v19483_v22 = vcombine.low %v7300_v54, %v7304_v12  ;;  %v7699_v63 = vld [vmem:[#allocation13 + $0x2340] sm:$0xff]  ;;  %v6577_v54 = vld [vmem:[#allocation13 + $0x30] sm:$0xff]  ;;  %v7352_v53 = vld [vmem:[#allocation13 + $0x1868] sm:$0xff] }
 0x5cf   :  { %13867 = vmatprep.subr.bf16.mxu1 %v19834_v6  ;;  %v19492_v6 = vcombine.high %v7308_v42, %v7312_v18  ;;  %v19881_v58 = vcombine.low %v7699_v63, %v7703_v39 }
 0x5d1   :  { %14114 = vmatpush1.bf16.msra.mxu0 %v19451_v31  ;;  %v19882_v31 = vcombine.high %v7699_v63, %v7703_v39  ;;  %v7356_v39 = vld [vmem:[#allocation13 + $0x1888] sm:$0xff] }
 0x5d2   :  { %13868 = vmatpush1.bf16.msra.mxu1 %v19833_v28  ;;  %14115 = vmatprep.subr.bf16.mxu0 %v19460_v26  ;;  %v19491_v28 = vcombine.low %v7308_v42, %v7312_v18  ;;  %v7707_v26 = vld [vmem:[#allocation13 + $0x2380] sm:$0xff]  ;;  %v6581_v42 = vld [vmem:[#allocation13 + $0x50] sm:$0xff] }
 0x5d3   :  { %13869 = vmatprep.subr.bf16.mxu1 %v19842_v49  ;;  %v19500_v49 = vcombine.high %v7316_v43, %v7320_v34  ;;  %v19889_v52 = vcombine.low %v7707_v26, %v7711_v45  ;;  %v6585_v18 = vld [vmem:[#allocation13 + $0x70] sm:$0xff] }
 0x5d4   :  { %v18766_v63 = vcombine.high %v6581_v42, %v6585_v18 }
 0x5d5   :  { %14116 = vmatpush1.bf16.msra.mxu0 %v19459_v20  ;;  %v19890_v20 = vcombine.high %v7707_v26, %v7711_v45  ;;  %v7364_v45 = vld [vmem:[#allocation13 + $0x18c8] sm:$0xff] }
 0x5d6   :  { %13870 = vmatpush1.bf16.msra.mxu1 %v19841_v15  ;;  %14117 = vmatprep.subr.bf16.mxu0 %v19468_v38  ;;  %v19499_v15 = vcombine.low %v7316_v43, %v7320_v34  ;;  %v7715_v38 = vld [vmem:[#allocation13 + $0x23c0] sm:$0xff]  ;;  %v7360_v43 = vld [vmem:[#allocation13 + $0x18a8] sm:$0xff]  ;;  %v6589_v34 = vld [vmem:[#allocation13 + $0x90] sm:$0xff] }
 0x5d7   :  { %13871 = vmatprep.subr.bf16.mxu1 %v19850_v32  ;;  %v19508_v32 = vcombine.high %v7324_v62, %v7328_v46  ;;  %v19897_v12 = vcombine.low %v7715_v38, %v7719_v23 }
 0x5d9   :  { %14118 = vmatpush1.bf16.msra.mxu0 %v19467_v8  ;;  %v19898_v8 = vcombine.high %v7715_v38, %v7719_v23  ;;  %v7372_v23 = vld [vmem:[#allocation13 + $0x1908] sm:$0xff] }
 0x5da   :  { %13872 = vmatpush1.bf16.msra.mxu1 %v19849_v56  ;;  %14119 = vmatprep.subr.bf16.mxu0 %v19476_v13  ;;  %v19507_v56 = vcombine.low %v7324_v62, %v7328_v46  ;;  %v7340_v13 = vld [vmem:[#allocation13 + $0x1808] sm:$0xff]  ;;  %v6597_v46 = vld [vmem:[#allocation13 + $0xd0] sm:$0xff] }
 0x5db   :  { %13873 = vmatprep.subr.bf16.mxu1 %v19858_v33  ;;  %v19516_v33 = vcombine.high %v7332_v40, %v7336_v41  ;;  %v7368_v62 = vld [vmem:[#allocation13 + $0x18e8] sm:$0xff] }
 0x5dd   :  { %14120 = vmatpush1.bf16.msra.mxu0 %v19475_v16  ;;  %v6551_v16 = vld [vmem:[#allocation8 + $0x80] sm:$0xff] }
 0x5de   :  { %13874 = vmatpush1.bf16.msra.mxu1 %v19857_v2  ;;  %14121 = vmatprep.subr.bf16.mxu0 %v19484_v11  ;;  %v19515_v2 = vcombine.low %v7332_v40, %v7336_v41  ;;  %v18758_v11 = vcombine.high %v6573_v48, %v6577_v54  ;;  %v7376_v40 = vld [vmem:[#allocation13 + $0x1928] sm:$0xff]  ;;  %v6605_v41 = vld [vmem:[#allocation13 + $0x110] sm:$0xff] }
 0x5df   :  { %13875 = vmatprep.subr.bf16.mxu1 %v19866_v59  ;;  %v19524_v59 = vcombine.high %v7340_v13, %v7344_v44 }
 0x5e1   :  { %14122 = vmatpush1.bf16.msra.mxu0 %v19483_v22  ;;  %v19523_v22 = vcombine.low %v7340_v13, %v7344_v44  ;;  %v7380_v44 = vld [vmem:[#allocation13 + $0x1948] sm:$0xff] }
 0x5e2   :  { %13876 = vmatpush1.bf16.msra.mxu1 %v19865_v24  ;;  %14123 = vmatprep.subr.bf16.mxu0 %v19492_v6  ;;  %v23155_v24 = vpack.c.bf16 %v6551_v16, %v6551_v16  ;;  %v19532_v6 = vcombine.high %v7348_v0, %v7352_v53 }
 0x5e3   :  { %13877 = vmatprep.subr.bf16.mxu1 %v19874_v9  ;;  %v18757_v9 = vcombine.low %v6573_v48, %v6577_v54  ;;  %v7384_v48 = vld [vmem:[#allocation13 + $0x1968] sm:$0xff]  ;;  %v6613_v54 = vld [vmem:[#allocation13 + $0x150] sm:$0xff] }
 0x5e5   :  { %14124 = vmatpush1.bf16.msra.mxu0 %v19491_v28  ;;  %v19531_v28 = vcombine.low %v7348_v0, %v7352_v53  ;;  %v7388_v0 = vld [vmem:[#allocation13 + $0x1988] sm:$0xff] }
 0x5e6   :  { %13878 = vmatpush1.bf16.msra.mxu1 %v19873_v1  ;;  %14125 = vmatprep.subr.bf16.mxu0 %v19500_v49  ;;  %v6593_v1 = vld [vmem:[#allocation13 + $0xb0] sm:$0xff]  ;;  %v19540_v49 = vcombine.high %v7356_v39, %v7360_v43  ;;  %v7392_v53 = vld [vmem:[#allocation13 + $0x19a8] sm:$0xff] }
 0x5e7   :  { %13879 = vmatprep.subr.bf16.mxu1 %v19882_v31  ;;  %v18765_v31 = vcombine.low %v6581_v42, %v6585_v18  ;;  %v18774_v26 = vcombine.high %v6589_v34, %v6593_v1  ;;  %v6621_v42 = vld [vmem:[#allocation13 + $0x190] sm:$0xff] }
 0x5e8   :  { %v6625_v18 = vld [vmem:[#allocation13 + $0x1b0] sm:$0xff] }
 0x5e9   :  { %14126 = vmatpush1.bf16.msra.mxu0 %v19499_v15  ;;  %v19539_v15 = vcombine.low %v7356_v39, %v7360_v43  ;;  %v7396_v39 = vld [vmem:[#allocation13 + $0x19c8] sm:$0xff] }
 0x5ea   :  { %13880 = vmatpush1.bf16.msra.mxu1 %v19881_v58  ;;  %14127 = vmatprep.subr.bf16.mxu0 %v19508_v32  ;;  %v6601_v58 = vld [vmem:[#allocation13 + $0xf0] sm:$0xff]  ;;  %v19548_v32 = vcombine.high %v7364_v45, %v7368_v62  ;;  %v7400_v43 = vld [vmem:[#allocation13 + $0x19e8] sm:$0xff] }
 0x5eb   :  { %13881 = vmatprep.subr.bf16.mxu1 %v19890_v20  ;;  %v18773_v20 = vcombine.low %v6589_v34, %v6593_v1  ;;  %v18782_v38 = vcombine.high %v6597_v46, %v6601_v58  ;;  %v6629_v34 = vld [vmem:[#allocation13 + $0x1d0] sm:$0xff] }
 0x5ec   :  { %v6633_v1 = vld [vmem:[#allocation13 + $0x1f0] sm:$0xff] }
 0x5ed   :  { %14128 = vmatpush1.bf16.msra.mxu0 %v19507_v56  ;;  %v19547_v56 = vcombine.low %v7364_v45, %v7368_v62  ;;  %v7404_v45 = vld [vmem:[#allocation13 + $0x1a08] sm:$0xff] }
 0x5ee   :  { %13882 = vmatpush1.bf16.msra.mxu1 %v19889_v52  ;;  %14129 = vmatprep.subr.bf16.mxu0 %v19516_v33  ;;  %v6609_v52 = vld [vmem:[#allocation13 + $0x130] sm:$0xff]  ;;  %v19556_v33 = vcombine.high %v7372_v23, %v7376_v40  ;;  %v7408_v62 = vld [vmem:[#allocation13 + $0x1a28] sm:$0xff] }
 0x5ef   :  { %13883 = vmatprep.subr.bf16.mxu1 %v19898_v8  ;;  %v18781_v8 = vcombine.low %v6597_v46, %v6601_v58  ;;  %v18790_v13 = vcombine.high %v6605_v41, %v6609_v52  ;;  %v18789_v16 = vcombine.low %v6605_v41, %v6609_v52  ;;  %v6637_v46 = vld [vmem:[#allocation13 + $0x210] sm:$0xff] }
 0x5f0   :  { %v6641_v58 = vld [vmem:[#allocation13 + $0x230] sm:$0xff] }
 0x5f1   :  { %14130 = vmatpush1.bf16.msra.mxu0 %v19515_v2  ;;  %v19555_v2 = vcombine.low %v7372_v23, %v7376_v40  ;;  %v7412_v23 = vld [vmem:[#allocation13 + $0x1a48] sm:$0xff]  ;;  %v6645_v41 = vld [vmem:[#allocation13 + $0x250] sm:$0xff] }
 0x5f2   :  { %13884 = vmatpush1.bf16.msra.mxu1 %v19897_v12  ;;  %14140 = vmatprep.subr.bf16.mxu0 %v19524_v59  ;;  %v6617_v12 = vld [vmem:[#allocation13 + $0x170] sm:$0xff]  ;;  %v19564_v59 = vcombine.high %v7380_v44, %v7384_v48  ;;  %v7416_v40 = vld [vmem:[#allocation13 + $0x1a68] sm:$0xff] }
 0x5f3   :  { %14263 = vmatprep.subr.bf16.mxu1 %v18758_v11  ;;  %v18798_v11 = vcombine.high %v6613_v54, %v6617_v12  ;;  %v6649_v52 = vld [vmem:[#allocation13 + $0x270] sm:$0xff] }
 0x5f4   :  { %14132 = vmatmul.mubr.bf16.vlgmr.msra.gmra.mrb[60].mxu0 %v23123_v50 }
 0x5f5   :  { %13886 = vmatmul.mubr.bf16.vlgmr.msra.gmra.mrb[48].mxu1 %v23155_v24  ;;  %14141 = vmatpush1.bf16.msra.mxu0 %v19523_v22  ;;  %v19563_v22 = vcombine.low %v7380_v44, %v7384_v48  ;;  %v7420_v44 = vld [vmem:[#allocation13 + $0x1a88] sm:$0xff] }
 0x5f6   :  { %14264 = vmatpush1.bf16.msra.mxu1 %v18757_v9  ;;  %14142 = vmatprep.subr.bf16.mxu0 %v19532_v6  ;;  %v18797_v9 = vcombine.low %v6613_v54, %v6617_v12  ;;  %v19572_v6 = vcombine.high %v7388_v0, %v7392_v53  ;;  %v7424_v48 = vld [vmem:[#allocation13 + $0x1aa8] sm:$0xff]  ;;  %v6653_v54 = vld [vmem:[#allocation13 + $0x290] sm:$0xff] }
 0x5f7   :  { %14265 = vmatprep.subr.bf16.mxu1 %v18766_v63  ;;  %14172 = vmatprep.mubr.bf16.mxu0 %v23125_v35  ;;  %v18806_v63 = vcombine.high %v6621_v42, %v6625_v18  ;;  %v6657_v12 = vld [vmem:[#allocation13 + $0x2b0] sm:$0xff] }
 0x5f8   :  { %14295 = vmatprep.mubr.bf16.mxu1 %v23017_v37 }
 0x5f9   :  { %14143 = vmatpush1.bf16.msra.mxu0 %v19531_v28  ;;  %v19571_v28 = vcombine.low %v7388_v0, %v7392_v53  ;;  %v7428_v0 = vld [vmem:[#allocation13 + $0x1ac8] sm:$0xff] }
 0x5fa   :  { %14266 = vmatpush1.bf16.msra.mxu1 %v18765_v31  ;;  %14144 = vmatprep.subr.bf16.mxu0 %v19540_v49  ;;  %v18805_v31 = vcombine.low %v6621_v42, %v6625_v18  ;;  %v19580_v49 = vcombine.high %v7396_v39, %v7400_v43  ;;  %v7432_v53 = vld [vmem:[#allocation13 + $0x1ae8] sm:$0xff]  ;;  %v6661_v42 = vld [vmem:[#allocation13 + $0x2d0] sm:$0xff] }
 0x5fb   :  { %14267 = vmatprep.subr.bf16.mxu1 %v18774_v26  ;;  %v18814_v26 = vcombine.high %v6629_v34, %v6633_v1  ;;  %v6665_v18 = vld [vmem:[#allocation13 + $0x2f0] sm:$0xff] }
 0x5fd   :  { %14145 = vmatpush1.bf16.msra.mxu0 %v19539_v15  ;;  %v19579_v15 = vcombine.low %v7396_v39, %v7400_v43  ;;  %v7436_v39 = vld [vmem:[#allocation13 + $0x1b08] sm:$0xff] }
 0x5fe   :  { %14268 = vmatpush1.bf16.msra.mxu1 %v18773_v20  ;;  %14146 = vmatprep.subr.bf16.mxu0 %v19548_v32  ;;  %v18813_v20 = vcombine.low %v6629_v34, %v6633_v1  ;;  %v19588_v32 = vcombine.high %v7404_v45, %v7408_v62  ;;  %v7440_v43 = vld [vmem:[#allocation13 + $0x1b28] sm:$0xff]  ;;  %v6669_v34 = vld [vmem:[#allocation13 + $0x310] sm:$0xff] }
 0x5ff   :  { %14269 = vmatprep.subr.bf16.mxu1 %v18782_v38  ;;  %v18822_v38 = vcombine.high %v6637_v46, %v6641_v58  ;;  %v6673_v1 = vld [vmem:[#allocation13 + $0x330] sm:$0xff] }
 0x601   :  { %14147 = vmatpush1.bf16.msra.mxu0 %v19547_v56  ;;  %v19587_v56 = vcombine.low %v7404_v45, %v7408_v62  ;;  %v7444_v45 = vld [vmem:[#allocation13 + $0x1b48] sm:$0xff] }
 0x602   :  { %14270 = vmatpush1.bf16.msra.mxu1 %v18781_v8  ;;  %14148 = vmatprep.subr.bf16.mxu0 %v19556_v33  ;;  %v18821_v8 = vcombine.low %v6637_v46, %v6641_v58  ;;  %v19596_v33 = vcombine.high %v7412_v23, %v7416_v40  ;;  %v7448_v62 = vld [vmem:[#allocation13 + $0x1b68] sm:$0xff]  ;;  %v6677_v46 = vld [vmem:[#allocation13 + $0x350] sm:$0xff] }
 0x603   :  { %14271 = vmatprep.subr.bf16.mxu1 %v18790_v13  ;;  %v18830_v13 = vcombine.high %v6645_v41, %v6649_v52  ;;  %v6681_v58 = vld [vmem:[#allocation13 + $0x370] sm:$0xff] }
 0x605   :  { %14149 = vmatpush1.bf16.msra.mxu0 %v19555_v2  ;;  %v19595_v2 = vcombine.low %v7412_v23, %v7416_v40  ;;  %v7452_v23 = vld [vmem:[#allocation13 + $0x1b88] sm:$0xff] }
 0x606   :  { %14272 = vmatpush1.bf16.msra.mxu1 %v18789_v16  ;;  %14150 = vmatprep.subr.bf16.mxu0 %v19564_v59  ;;  %v18829_v16 = vcombine.low %v6645_v41, %v6649_v52  ;;  %v19604_v59 = vcombine.high %v7420_v44, %v7424_v48  ;;  %v7456_v40 = vld [vmem:[#allocation13 + $0x1ba8] sm:$0xff]  ;;  %v6685_v41 = vld [vmem:[#allocation13 + $0x390] sm:$0xff] }
 0x607   :  { %14273 = vmatprep.subr.bf16.mxu1 %v18798_v11  ;;  %v18838_v11 = vcombine.high %v6653_v54, %v6657_v12  ;;  %v6689_v52 = vld [vmem:[#allocation13 + $0x3b0] sm:$0xff] }
 0x609   :  { %14151 = vmatpush1.bf16.msra.mxu0 %v19563_v22  ;;  %v19603_v22 = vcombine.low %v7420_v44, %v7424_v48  ;;  %v7460_v44 = vld [vmem:[#allocation13 + $0x1bc8] sm:$0xff] }
 0x60a   :  { %14274 = vmatpush1.bf16.msra.mxu1 %v18797_v9  ;;  %14152 = vmatprep.subr.bf16.mxu0 %v19572_v6  ;;  %v18837_v9 = vcombine.low %v6653_v54, %v6657_v12  ;;  %v19612_v6 = vcombine.high %v7428_v0, %v7432_v53  ;;  %v7464_v48 = vld [vmem:[#allocation13 + $0x1be8] sm:$0xff]  ;;  %v6693_v54 = vld [vmem:[#allocation13 + $0x3d0] sm:$0xff] }
 0x60b   :  { %14275 = vmatprep.subr.bf16.mxu1 %v18806_v63  ;;  %v18846_v63 = vcombine.high %v6661_v42, %v6665_v18  ;;  %v6697_v12 = vld [vmem:[#allocation13 + $0x3f0] sm:$0xff] }
 0x60d   :  { %14153 = vmatpush1.bf16.msra.mxu0 %v19571_v28  ;;  %v19611_v28 = vcombine.low %v7428_v0, %v7432_v53  ;;  %v7468_v0 = vld [vmem:[#allocation13 + $0x1c08] sm:$0xff] }
 0x60e   :  { %14276 = vmatpush1.bf16.msra.mxu1 %v18805_v31  ;;  %14154 = vmatprep.subr.bf16.mxu0 %v19580_v49  ;;  %v18845_v31 = vcombine.low %v6661_v42, %v6665_v18  ;;  %v19620_v49 = vcombine.high %v7436_v39, %v7440_v43  ;;  %v7472_v53 = vld [vmem:[#allocation13 + $0x1c28] sm:$0xff]  ;;  %v6701_v42 = vld [vmem:[#allocation13 + $0x410] sm:$0xff] }
 0x60f   :  { %14277 = vmatprep.subr.bf16.mxu1 %v18814_v26  ;;  %v18854_v26 = vcombine.high %v6669_v34, %v6673_v1  ;;  %v6705_v18 = vld [vmem:[#allocation13 + $0x430] sm:$0xff] }
 0x611   :  { %14155 = vmatpush1.bf16.msra.mxu0 %v19579_v15  ;;  %v19619_v15 = vcombine.low %v7436_v39, %v7440_v43  ;;  %v7476_v39 = vld [vmem:[#allocation13 + $0x1c48] sm:$0xff] }
 0x612   :  { %14278 = vmatpush1.bf16.msra.mxu1 %v18813_v20  ;;  %14156 = vmatprep.subr.bf16.mxu0 %v19588_v32  ;;  %v18853_v20 = vcombine.low %v6669_v34, %v6673_v1  ;;  %v19628_v32 = vcombine.high %v7444_v45, %v7448_v62  ;;  %v7480_v43 = vld [vmem:[#allocation13 + $0x1c68] sm:$0xff]  ;;  %v6709_v34 = vld [vmem:[#allocation13 + $0x450] sm:$0xff] }
 0x613   :  { %14279 = vmatprep.subr.bf16.mxu1 %v18822_v38  ;;  %v18862_v38 = vcombine.high %v6677_v46, %v6681_v58  ;;  %v6713_v1 = vld [vmem:[#allocation13 + $0x470] sm:$0xff] }
 0x615   :  { %14157 = vmatpush1.bf16.msra.mxu0 %v19587_v56  ;;  %v19627_v56 = vcombine.low %v7444_v45, %v7448_v62  ;;  %v7484_v45 = vld [vmem:[#allocation13 + $0x1c88] sm:$0xff] }
 0x616   :  { %14280 = vmatpush1.bf16.msra.mxu1 %v18821_v8  ;;  %14158 = vmatprep.subr.bf16.mxu0 %v19596_v33  ;;  %v18861_v8 = vcombine.low %v6677_v46, %v6681_v58  ;;  %v19636_v33 = vcombine.high %v7452_v23, %v7456_v40  ;;  %v7488_v62 = vld [vmem:[#allocation13 + $0x1ca8] sm:$0xff]  ;;  %v6717_v46 = vld [vmem:[#allocation13 + $0x490] sm:$0xff] }
 0x617   :  { %14281 = vmatprep.subr.bf16.mxu1 %v18830_v13  ;;  %v18870_v13 = vcombine.high %v6685_v41, %v6689_v52  ;;  %v6721_v58 = vld [vmem:[#allocation13 + $0x4b0] sm:$0xff] }
 0x619   :  { %14159 = vmatpush1.bf16.msra.mxu0 %v19595_v2  ;;  %v19635_v2 = vcombine.low %v7452_v23, %v7456_v40  ;;  %v7492_v23 = vld [vmem:[#allocation13 + $0x1cc8] sm:$0xff] }
 0x61a   :  { %14282 = vmatpush1.bf16.msra.mxu1 %v18829_v16  ;;  %14160 = vmatprep.subr.bf16.mxu0 %v19604_v59  ;;  %v18869_v16 = vcombine.low %v6685_v41, %v6689_v52  ;;  %v19644_v59 = vcombine.high %v7460_v44, %v7464_v48  ;;  %v7496_v40 = vld [vmem:[#allocation13 + $0x1ce8] sm:$0xff]  ;;  %v6725_v41 = vld [vmem:[#allocation13 + $0x4d0] sm:$0xff] }
 0x61b   :  { %14283 = vmatprep.subr.bf16.mxu1 %v18838_v11  ;;  %v18878_v11 = vcombine.high %v6693_v54, %v6697_v12  ;;  %v6729_v52 = vld [vmem:[#allocation13 + $0x4f0] sm:$0xff] }
 0x61d   :  { %14161 = vmatpush1.bf16.msra.mxu0 %v19603_v22  ;;  %v19643_v22 = vcombine.low %v7460_v44, %v7464_v48  ;;  %v7500_v44 = vld [vmem:[#allocation13 + $0x1d08] sm:$0xff] }
 0x61e   :  { %14284 = vmatpush1.bf16.msra.mxu1 %v18837_v9  ;;  %14162 = vmatprep.subr.bf16.mxu0 %v19612_v6  ;;  %v18877_v9 = vcombine.low %v6693_v54, %v6697_v12  ;;  %v19652_v6 = vcombine.high %v7468_v0, %v7472_v53  ;;  %v7504_v48 = vld [vmem:[#allocation13 + $0x1d28] sm:$0xff]  ;;  %v6733_v54 = vld [vmem:[#allocation13 + $0x510] sm:$0xff] }
 0x61f   :  { %14285 = vmatprep.subr.bf16.mxu1 %v18846_v63  ;;  %v18886_v63 = vcombine.high %v6701_v42, %v6705_v18  ;;  %v6737_v12 = vld [vmem:[#allocation13 + $0x530] sm:$0xff] }
 0x621   :  { %14163 = vmatpush1.bf16.msra.mxu0 %v19611_v28  ;;  %v19651_v28 = vcombine.low %v7468_v0, %v7472_v53  ;;  %v7508_v0 = vld [vmem:[#allocation13 + $0x1d48] sm:$0xff] }
 0x622   :  { %14286 = vmatpush1.bf16.msra.mxu1 %v18845_v31  ;;  %14164 = vmatprep.subr.bf16.mxu0 %v19620_v49  ;;  %v18885_v31 = vcombine.low %v6701_v42, %v6705_v18  ;;  %v19660_v49 = vcombine.high %v7476_v39, %v7480_v43  ;;  %v7512_v53 = vld [vmem:[#allocation13 + $0x1d68] sm:$0xff]  ;;  %v6741_v42 = vld [vmem:[#allocation13 + $0x550] sm:$0xff] }
 0x623   :  { %14287 = vmatprep.subr.bf16.mxu1 %v18854_v26  ;;  %v18894_v26 = vcombine.high %v6709_v34, %v6713_v1  ;;  %v6745_v18 = vld [vmem:[#allocation13 + $0x570] sm:$0xff] }
 0x625   :  { %14165 = vmatpush1.bf16.msra.mxu0 %v19619_v15  ;;  %v19659_v15 = vcombine.low %v7476_v39, %v7480_v43  ;;  %v7516_v39 = vld [vmem:[#allocation13 + $0x1d88] sm:$0xff] }
 0x626   :  { %14288 = vmatpush1.bf16.msra.mxu1 %v18853_v20  ;;  %14166 = vmatprep.subr.bf16.mxu0 %v19628_v32  ;;  %v18893_v20 = vcombine.low %v6709_v34, %v6713_v1  ;;  %v19668_v32 = vcombine.high %v7484_v45, %v7488_v62  ;;  %v7520_v43 = vld [vmem:[#allocation13 + $0x1da8] sm:$0xff]  ;;  %v6749_v34 = vld [vmem:[#allocation13 + $0x590] sm:$0xff] }
 0x627   :  { %14289 = vmatprep.subr.bf16.mxu1 %v18862_v38  ;;  %v18902_v38 = vcombine.high %v6717_v46, %v6721_v58  ;;  %v6753_v1 = vld [vmem:[#allocation13 + $0x5b0] sm:$0xff] }
 0x629   :  { %14167 = vmatpush1.bf16.msra.mxu0 %v19627_v56  ;;  %v19667_v56 = vcombine.low %v7484_v45, %v7488_v62  ;;  %v7524_v45 = vld [vmem:[#allocation13 + $0x1dc8] sm:$0xff] }
 0x62a   :  { %14290 = vmatpush1.bf16.msra.mxu1 %v18861_v8  ;;  %14168 = vmatprep.subr.bf16.mxu0 %v19636_v33  ;;  %v18901_v8 = vcombine.low %v6717_v46, %v6721_v58  ;;  %v19676_v33 = vcombine.high %v7492_v23, %v7496_v40  ;;  %v7528_v62 = vld [vmem:[#allocation13 + $0x1de8] sm:$0xff]  ;;  %v6757_v46 = vld [vmem:[#allocation13 + $0x5d0] sm:$0xff] }
 0x62b   :  { %14291 = vmatprep.subr.bf16.mxu1 %v18870_v13  ;;  %v18910_v13 = vcombine.high %v6725_v41, %v6729_v52  ;;  %v6761_v58 = vld [vmem:[#allocation13 + $0x5f0] sm:$0xff] }
 0x62d   :  { %14169 = vmatpush1.bf16.msra.mxu0 %v19635_v2  ;;  %v19675_v2 = vcombine.low %v7492_v23, %v7496_v40  ;;  %v7532_v23 = vld [vmem:[#allocation13 + $0x1e08] sm:$0xff] }
 0x62e   :  { %14292 = vmatpush1.bf16.msra.mxu1 %v18869_v16  ;;  %14170 = vmatprep.subr.bf16.mxu0 %v19644_v59  ;;  %v18909_v16 = vcombine.low %v6725_v41, %v6729_v52  ;;  %v19684_v59 = vcombine.high %v7500_v44, %v7504_v48  ;;  %v7536_v40 = vld [vmem:[#allocation13 + $0x1e28] sm:$0xff]  ;;  %v6765_v41 = vld [vmem:[#allocation13 + $0x610] sm:$0xff] }
 0x62f   :  { %14293 = vmatprep.subr.bf16.mxu1 %v18878_v11  ;;  %v18918_v11 = vcombine.high %v6733_v54, %v6737_v12  ;;  %v6769_v52 = vld [vmem:[#allocation13 + $0x630] sm:$0xff] }
 0x631   :  { %14171 = vmatpush1.bf16.msra.mxu0 %v19643_v22  ;;  %v19683_v22 = vcombine.low %v7500_v44, %v7504_v48  ;;  %v7540_v44 = vld [vmem:[#allocation13 + $0x1e48] sm:$0xff] }
 0x632   :  { %14294 = vmatpush1.bf16.msra.mxu1 %v18877_v9  ;;  %14181 = vmatprep.subr.bf16.mxu0 %v19652_v6  ;;  %v18917_v9 = vcombine.low %v6733_v54, %v6737_v12  ;;  %v19692_v6 = vcombine.high %v7508_v0, %v7512_v53  ;;  %v7544_v48 = vld [vmem:[#allocation13 + $0x1e68] sm:$0xff]  ;;  %v6773_v54 = vld [vmem:[#allocation13 + $0x650] sm:$0xff] }
 0x633   :  { %14304 = vmatprep.subr.bf16.mxu1 %v18886_v63  ;;  %v18926_v63 = vcombine.high %v6741_v42, %v6745_v18  ;;  %v6777_v12 = vld [vmem:[#allocation13 + $0x670] sm:$0xff] }
 0x634   :  { %14173 = vmatmul.mubr.bf16.vlgmr.msra.gmra.mrb[60].mxu0 %v23139_v27 }
 0x635   :  { %14296 = vmatmul.mubr.bf16.vlgmr.msra.gmra.mrb[52].mxu1 %v23033_v14  ;;  %14182 = vmatpush1.bf16.msra.mxu0 %v19651_v28  ;;  %v19691_v28 = vcombine.low %v7508_v0, %v7512_v53  ;;  %v7548_v0 = vld [vmem:[#allocation13 + $0x1e88] sm:$0xff] }
 0x636   :  { %14305 = vmatpush1.bf16.msra.mxu1 %v18885_v31  ;;  %14183 = vmatprep.subr.bf16.mxu0 %v19660_v49  ;;  %v18925_v31 = vcombine.low %v6741_v42, %v6745_v18  ;;  %v19700_v49 = vcombine.high %v7516_v39, %v7520_v43  ;;  %v7552_v53 = vld [vmem:[#allocation13 + $0x1ea8] sm:$0xff]  ;;  %v6781_v42 = vld [vmem:[#allocation13 + $0x690] sm:$0xff] }
 0x637   :  { %14306 = vmatprep.subr.bf16.mxu1 %v18894_v26  ;;  %14213 = vmatprep.mubr.bf16.mxu0 %v23141_v21  ;;  %v18934_v26 = vcombine.high %v6749_v34, %v6753_v1  ;;  %v6785_v18 = vld [vmem:[#allocation13 + $0x6b0] sm:$0xff] }
 0x638   :  { %14336 = vmatprep.mubr.bf16.mxu1 %v23035_v17 }
 0x639   :  { %14184 = vmatpush1.bf16.msra.mxu0 %v19659_v15  ;;  %v19699_v15 = vcombine.low %v7516_v39, %v7520_v43  ;;  %v7556_v39 = vld [vmem:[#allocation13 + $0x1ec8] sm:$0xff] }
 0x63a   :  { %14307 = vmatpush1.bf16.msra.mxu1 %v18893_v20  ;;  %14185 = vmatprep.subr.bf16.mxu0 %v19668_v32  ;;  %v18933_v20 = vcombine.low %v6749_v34, %v6753_v1  ;;  %v19708_v32 = vcombine.high %v7524_v45, %v7528_v62  ;;  %v7560_v43 = vld [vmem:[#allocation13 + $0x1ee8] sm:$0xff]  ;;  %v6789_v34 = vld [vmem:[#allocation13 + $0x6d0] sm:$0xff] }
 0x63b   :  { %14308 = vmatprep.subr.bf16.mxu1 %v18902_v38  ;;  %v18942_v38 = vcombine.high %v6757_v46, %v6761_v58  ;;  %v6793_v1 = vld [vmem:[#allocation13 + $0x6f0] sm:$0xff] }
 0x63d   :  { %14186 = vmatpush1.bf16.msra.mxu0 %v19667_v56  ;;  %v19707_v56 = vcombine.low %v7524_v45, %v7528_v62  ;;  %v7564_v45 = vld [vmem:[#allocation13 + $0x1f08] sm:$0xff] }
 0x63e   :  { %14309 = vmatpush1.bf16.msra.mxu1 %v18901_v8  ;;  %14187 = vmatprep.subr.bf16.mxu0 %v19676_v33  ;;  %v18941_v8 = vcombine.low %v6757_v46, %v6761_v58  ;;  %v19716_v33 = vcombine.high %v7532_v23, %v7536_v40  ;;  %v7568_v62 = vld [vmem:[#allocation13 + $0x1f28] sm:$0xff]  ;;  %v6797_v46 = vld [vmem:[#allocation13 + $0x710] sm:$0xff] }
 0x63f   :  { %14310 = vmatprep.subr.bf16.mxu1 %v18910_v13  ;;  %v18950_v13 = vcombine.high %v6765_v41, %v6769_v52  ;;  %v6801_v58 = vld [vmem:[#allocation13 + $0x730] sm:$0xff] }
 0x641   :  { %14188 = vmatpush1.bf16.msra.mxu0 %v19675_v2  ;;  %v19715_v2 = vcombine.low %v7532_v23, %v7536_v40  ;;  %v7572_v23 = vld [vmem:[#allocation13 + $0x1f48] sm:$0xff] }
 0x642   :  { %14311 = vmatpush1.bf16.msra.mxu1 %v18909_v16  ;;  %14189 = vmatprep.subr.bf16.mxu0 %v19684_v59  ;;  %v18949_v16 = vcombine.low %v6765_v41, %v6769_v52  ;;  %v19724_v59 = vcombine.high %v7540_v44, %v7544_v48  ;;  %v7576_v40 = vld [vmem:[#allocation13 + $0x1f68] sm:$0xff]  ;;  %v6805_v41 = vld [vmem:[#allocation13 + $0x750] sm:$0xff] }
 0x643   :  { %14312 = vmatprep.subr.bf16.mxu1 %v18918_v11  ;;  %v18958_v11 = vcombine.high %v6773_v54, %v6777_v12  ;;  %v6809_v52 = vld [vmem:[#allocation13 + $0x770] sm:$0xff] }
 0x645   :  { %14190 = vmatpush1.bf16.msra.mxu0 %v19683_v22  ;;  %v19723_v22 = vcombine.low %v7540_v44, %v7544_v48  ;;  %v7580_v44 = vld [vmem:[#allocation13 + $0x1f88] sm:$0xff] }
 0x646   :  { %14313 = vmatpush1.bf16.msra.mxu1 %v18917_v9  ;;  %14191 = vmatprep.subr.bf16.mxu0 %v19692_v6  ;;  %v18957_v9 = vcombine.low %v6773_v54, %v6777_v12  ;;  %v19732_v6 = vcombine.high %v7548_v0, %v7552_v53  ;;  %v7584_v48 = vld [vmem:[#allocation13 + $0x1fa8] sm:$0xff]  ;;  %v6813_v54 = vld [vmem:[#allocation13 + $0x790] sm:$0xff] }
 0x647   :  { %14314 = vmatprep.subr.bf16.mxu1 %v18926_v63  ;;  %v18966_v63 = vcombine.high %v6781_v42, %v6785_v18  ;;  %v6817_v12 = vld [vmem:[#allocation13 + $0x7b0] sm:$0xff] }
 0x649   :  { %14192 = vmatpush1.bf16.msra.mxu0 %v19691_v28  ;;  %v19731_v28 = vcombine.low %v7548_v0, %v7552_v53  ;;  %v7588_v0 = vld [vmem:[#allocation13 + $0x1fc8] sm:$0xff] }
 0x64a   :  { %14315 = vmatpush1.bf16.msra.mxu1 %v18925_v31  ;;  %14193 = vmatprep.subr.bf16.mxu0 %v19700_v49  ;;  %v18965_v31 = vcombine.low %v6781_v42, %v6785_v18  ;;  %v19740_v49 = vcombine.high %v7556_v39, %v7560_v43  ;;  %v7592_v53 = vld [vmem:[#allocation13 + $0x1fe8] sm:$0xff]  ;;  %v6821_v42 = vld [vmem:[#allocation13 + $0x7d0] sm:$0xff] }
 0x64b   :  { %14316 = vmatprep.subr.bf16.mxu1 %v18934_v26  ;;  %v18974_v26 = vcombine.high %v6789_v34, %v6793_v1  ;;  %v6825_v18 = vld [vmem:[#allocation13 + $0x7f0] sm:$0xff] }
 0x64d   :  { %14194 = vmatpush1.bf16.msra.mxu0 %v19699_v15  ;;  %v19739_v15 = vcombine.low %v7556_v39, %v7560_v43  ;;  %v7596_v39 = vld [vmem:[#allocation13 + $0x2008] sm:$0xff] }
 0x64e   :  { %14317 = vmatpush1.bf16.msra.mxu1 %v18933_v20  ;;  %14195 = vmatprep.subr.bf16.mxu0 %v19708_v32  ;;  %v18973_v20 = vcombine.low %v6789_v34, %v6793_v1  ;;  %v19748_v32 = vcombine.high %v7564_v45, %v7568_v62  ;;  %v7600_v43 = vld [vmem:[#allocation13 + $0x2028] sm:$0xff]  ;;  %v6829_v34 = vld [vmem:[#allocation13 + $0x810] sm:$0xff] }
 0x64f   :  { %14318 = vmatprep.subr.bf16.mxu1 %v18942_v38  ;;  %v18982_v38 = vcombine.high %v6797_v46, %v6801_v58  ;;  %v6833_v1 = vld [vmem:[#allocation13 + $0x830] sm:$0xff] }
 0x651   :  { %14196 = vmatpush1.bf16.msra.mxu0 %v19707_v56  ;;  %v19747_v56 = vcombine.low %v7564_v45, %v7568_v62  ;;  %v7604_v45 = vld [vmem:[#allocation13 + $0x2048] sm:$0xff] }
 0x652   :  { %14319 = vmatpush1.bf16.msra.mxu1 %v18941_v8  ;;  %14197 = vmatprep.subr.bf16.mxu0 %v19716_v33  ;;  %v18981_v8 = vcombine.low %v6797_v46, %v6801_v58  ;;  %v19756_v33 = vcombine.high %v7572_v23, %v7576_v40  ;;  %v7608_v62 = vld [vmem:[#allocation13 + $0x2068] sm:$0xff]  ;;  %v6837_v46 = vld [vmem:[#allocation13 + $0x850] sm:$0xff] }
 0x653   :  { %14320 = vmatprep.subr.bf16.mxu1 %v18950_v13  ;;  %v18990_v13 = vcombine.high %v6805_v41, %v6809_v52  ;;  %v6841_v58 = vld [vmem:[#allocation13 + $0x870] sm:$0xff] }
 0x655   :  { %14198 = vmatpush1.bf16.msra.mxu0 %v19715_v2  ;;  %v19755_v2 = vcombine.low %v7572_v23, %v7576_v40  ;;  %v7612_v23 = vld [vmem:[#allocation13 + $0x2088] sm:$0xff] }
 0x656   :  { %14321 = vmatpush1.bf16.msra.mxu1 %v18949_v16  ;;  %14199 = vmatprep.subr.bf16.mxu0 %v19724_v59  ;;  %v18989_v16 = vcombine.low %v6805_v41, %v6809_v52  ;;  %v19764_v59 = vcombine.high %v7580_v44, %v7584_v48  ;;  %v7616_v40 = vld [vmem:[#allocation13 + $0x20a8] sm:$0xff]  ;;  %v6845_v41 = vld [vmem:[#allocation13 + $0x890] sm:$0xff] }
 0x657   :  { %14322 = vmatprep.subr.bf16.mxu1 %v18958_v11  ;;  %v18998_v11 = vcombine.high %v6813_v54, %v6817_v12  ;;  %v6849_v52 = vld [vmem:[#allocation13 + $0x8b0] sm:$0xff] }
 0x659   :  { %14200 = vmatpush1.bf16.msra.mxu0 %v19723_v22  ;;  %v19763_v22 = vcombine.low %v7580_v44, %v7584_v48  ;;  %v7620_v44 = vld [vmem:[#allocation13 + $0x20c8] sm:$0xff] }
 0x65a   :  { %14323 = vmatpush1.bf16.msra.mxu1 %v18957_v9  ;;  %14201 = vmatprep.subr.bf16.mxu0 %v19732_v6  ;;  %v18997_v9 = vcombine.low %v6813_v54, %v6817_v12  ;;  %v19772_v6 = vcombine.high %v7588_v0, %v7592_v53  ;;  %v7624_v48 = vld [vmem:[#allocation13 + $0x20e8] sm:$0xff]  ;;  %v6853_v54 = vld [vmem:[#allocation13 + $0x8d0] sm:$0xff] }
 0x65b   :  { %14324 = vmatprep.subr.bf16.mxu1 %v18966_v63  ;;  %v19006_v63 = vcombine.high %v6821_v42, %v6825_v18  ;;  %v6857_v12 = vld [vmem:[#allocation13 + $0x8f0] sm:$0xff] }
 0x65d   :  { %14202 = vmatpush1.bf16.msra.mxu0 %v19731_v28  ;;  %v19771_v28 = vcombine.low %v7588_v0, %v7592_v53  ;;  %v7628_v0 = vld [vmem:[#allocation13 + $0x2108] sm:$0xff] }
 0x65e   :  { %14325 = vmatpush1.bf16.msra.mxu1 %v18965_v31  ;;  %14203 = vmatprep.subr.bf16.mxu0 %v19740_v49  ;;  %v19005_v31 = vcombine.low %v6821_v42, %v6825_v18  ;;  %v19780_v49 = vcombine.high %v7596_v39, %v7600_v43  ;;  %v7632_v53 = vld [vmem:[#allocation13 + $0x2128] sm:$0xff]  ;;  %v6861_v42 = vld [vmem:[#allocation13 + $0x910] sm:$0xff] }
 0x65f   :  { %14326 = vmatprep.subr.bf16.mxu1 %v18974_v26  ;;  %v19014_v26 = vcombine.high %v6829_v34, %v6833_v1  ;;  %v6865_v18 = vld [vmem:[#allocation13 + $0x930] sm:$0xff] }
 0x661   :  { %14204 = vmatpush1.bf16.msra.mxu0 %v19739_v15  ;;  %v19779_v15 = vcombine.low %v7596_v39, %v7600_v43  ;;  %v7636_v39 = vld [vmem:[#allocation13 + $0x2148] sm:$0xff] }
 0x662   :  { %14327 = vmatpush1.bf16.msra.mxu1 %v18973_v20  ;;  %14205 = vmatprep.subr.bf16.mxu0 %v19748_v32  ;;  %v19013_v20 = vcombine.low %v6829_v34, %v6833_v1  ;;  %v19788_v32 = vcombine.high %v7604_v45, %v7608_v62  ;;  %v7640_v43 = vld [vmem:[#allocation13 + $0x2168] sm:$0xff]  ;;  %v6869_v34 = vld [vmem:[#allocation13 + $0x950] sm:$0xff] }
 0x663   :  { %14328 = vmatprep.subr.bf16.mxu1 %v18982_v38  ;;  %v19022_v38 = vcombine.high %v6837_v46, %v6841_v58  ;;  %v6873_v1 = vld [vmem:[#allocation13 + $0x970] sm:$0xff] }
 0x665   :  { %14206 = vmatpush1.bf16.msra.mxu0 %v19747_v56  ;;  %v19787_v56 = vcombine.low %v7604_v45, %v7608_v62  ;;  %v7644_v45 = vld [vmem:[#allocation13 + $0x2188] sm:$0xff] }
 0x666   :  { %14329 = vmatpush1.bf16.msra.mxu1 %v18981_v8  ;;  %14207 = vmatprep.subr.bf16.mxu0 %v19756_v33  ;;  %v19021_v8 = vcombine.low %v6837_v46, %v6841_v58  ;;  %v19796_v33 = vcombine.high %v7612_v23, %v7616_v40  ;;  %v7648_v62 = vld [vmem:[#allocation13 + $0x21a8] sm:$0xff]  ;;  %v6877_v46 = vld [vmem:[#allocation13 + $0x990] sm:$0xff] }
 0x667   :  { %14330 = vmatprep.subr.bf16.mxu1 %v18990_v13  ;;  %v19030_v13 = vcombine.high %v6845_v41, %v6849_v52  ;;  %v6881_v58 = vld [vmem:[#allocation13 + $0x9b0] sm:$0xff] }
 0x669   :  { %14208 = vmatpush1.bf16.msra.mxu0 %v19755_v2  ;;  %v19795_v2 = vcombine.low %v7612_v23, %v7616_v40  ;;  %v7652_v23 = vld [vmem:[#allocation13 + $0x21c8] sm:$0xff] }
 0x66a   :  { %14331 = vmatpush1.bf16.msra.mxu1 %v18989_v16  ;;  %14209 = vmatprep.subr.bf16.mxu0 %v19764_v59  ;;  %v19029_v16 = vcombine.low %v6845_v41, %v6849_v52  ;;  %v19804_v59 = vcombine.high %v7620_v44, %v7624_v48  ;;  %v7656_v40 = vld [vmem:[#allocation13 + $0x21e8] sm:$0xff]  ;;  %v6885_v41 = vld [vmem:[#allocation13 + $0x9d0] sm:$0xff] }
 0x66b   :  { %14332 = vmatprep.subr.bf16.mxu1 %v18998_v11  ;;  %v19038_v11 = vcombine.high %v6853_v54, %v6857_v12  ;;  %v6889_v52 = vld [vmem:[#allocation13 + $0x9f0] sm:$0xff] }
 0x66d   :  { %14210 = vmatpush1.bf16.msra.mxu0 %v19763_v22  ;;  %v19803_v22 = vcombine.low %v7620_v44, %v7624_v48  ;;  %v7660_v44 = vld [vmem:[#allocation13 + $0x2208] sm:$0xff] }
 0x66e   :  { %14333 = vmatpush1.bf16.msra.mxu1 %v18997_v9  ;;  %14211 = vmatprep.subr.bf16.mxu0 %v19772_v6  ;;  %v19037_v9 = vcombine.low %v6853_v54, %v6857_v12  ;;  %v19812_v6 = vcombine.high %v7628_v0, %v7632_v53  ;;  %v7664_v48 = vld [vmem:[#allocation13 + $0x2228] sm:$0xff]  ;;  %v6893_v54 = vld [vmem:[#allocation13 + $0xa10] sm:$0xff] }
 0x66f   :  { %14334 = vmatprep.subr.bf16.mxu1 %v19006_v63  ;;  %v19046_v63 = vcombine.high %v6861_v42, %v6865_v18  ;;  %v6897_v12 = vld [vmem:[#allocation13 + $0xa30] sm:$0xff] }
 0x671   :  { %14212 = vmatpush1.bf16.msra.mxu0 %v19771_v28  ;;  %v19811_v28 = vcombine.low %v7628_v0, %v7632_v53  ;;  %v7668_v0 = vld [vmem:[#allocation13 + $0x2248] sm:$0xff] }
 0x672   :  { %14335 = vmatpush1.bf16.msra.mxu1 %v19005_v31  ;;  %14222 = vmatprep.subr.bf16.mxu0 %v19780_v49  ;;  %v19045_v31 = vcombine.low %v6861_v42, %v6865_v18  ;;  %v19820_v49 = vcombine.high %v7636_v39, %v7640_v43  ;;  %v7672_v53 = vld [vmem:[#allocation13 + $0x2268] sm:$0xff]  ;;  %v6901_v42 = vld [vmem:[#allocation13 + $0xa50] sm:$0xff] }
 0x673   :  { %14345 = vmatprep.subr.bf16.mxu1 %v19014_v26  ;;  %v19054_v26 = vcombine.high %v6869_v34, %v6873_v1  ;;  %v6905_v18 = vld [vmem:[#allocation13 + $0xa70] sm:$0xff] }
 0x674   :  { %14214 = vmatmul.mubr.bf16.vlgmr.msra.gmra.mrb[60].mxu0 %v23147_v4 }
 0x675   :  { %14337 = vmatmul.mubr.bf16.vlgmr.msra.gmra.mrb[52].mxu1 %v23053_v61  ;;  %14223 = vmatpush1.bf16.msra.mxu0 %v19779_v15  ;;  %v19819_v15 = vcombine.low %v7636_v39, %v7640_v43  ;;  %v7676_v39 = vld [vmem:[#allocation13 + $0x2288] sm:$0xff] }
 0x676   :  { %14346 = vmatpush1.bf16.msra.mxu1 %v19013_v20  ;;  %14224 = vmatprep.subr.bf16.mxu0 %v19788_v32  ;;  %v19053_v20 = vcombine.low %v6869_v34, %v6873_v1  ;;  %v19828_v32 = vcombine.high %v7644_v45, %v7648_v62  ;;  %v7680_v43 = vld [vmem:[#allocation13 + $0x22a8] sm:$0xff]  ;;  %v6909_v34 = vld [vmem:[#allocation13 + $0xa90] sm:$0xff] }
 0x677   :  { %14347 = vmatprep.subr.bf16.mxu1 %v19022_v38  ;;  %14254 = vmatprep.mubr.bf16.mxu0 %v23149_v47  ;;  %v19062_v38 = vcombine.high %v6877_v46, %v6881_v58  ;;  %v6913_v1 = vld [vmem:[#allocation13 + $0xab0] sm:$0xff] }
 0x678   :  { %14377 = vmatprep.mubr.bf16.mxu1 %v23055_v30 }
 0x679   :  { %14225 = vmatpush1.bf16.msra.mxu0 %v19787_v56  ;;  %v19827_v56 = vcombine.low %v7644_v45, %v7648_v62  ;;  %v7684_v45 = vld [vmem:[#allocation13 + $0x22c8] sm:$0xff] }
 0x67a   :  { %14348 = vmatpush1.bf16.msra.mxu1 %v19021_v8  ;;  %14226 = vmatprep.subr.bf16.mxu0 %v19796_v33  ;;  %v19061_v8 = vcombine.low %v6877_v46, %v6881_v58  ;;  %v19836_v33 = vcombine.high %v7652_v23, %v7656_v40  ;;  %v7688_v62 = vld [vmem:[#allocation13 + $0x22e8] sm:$0xff]  ;;  %v6917_v46 = vld [vmem:[#allocation13 + $0xad0] sm:$0xff] }
 0x67b   :  { %14349 = vmatprep.subr.bf16.mxu1 %v19030_v13  ;;  %v19070_v13 = vcombine.high %v6885_v41, %v6889_v52  ;;  %v6921_v58 = vld [vmem:[#allocation13 + $0xaf0] sm:$0xff] }
 0x67d   :  { %14227 = vmatpush1.bf16.msra.mxu0 %v19795_v2  ;;  %v19835_v2 = vcombine.low %v7652_v23, %v7656_v40  ;;  %v7692_v23 = vld [vmem:[#allocation13 + $0x2308] sm:$0xff] }
 0x67e   :  { %14350 = vmatpush1.bf16.msra.mxu1 %v19029_v16  ;;  %14228 = vmatprep.subr.bf16.mxu0 %v19804_v59  ;;  %v19069_v16 = vcombine.low %v6885_v41, %v6889_v52  ;;  %v19844_v59 = vcombine.high %v7660_v44, %v7664_v48  ;;  %v7696_v40 = vld [vmem:[#allocation13 + $0x2328] sm:$0xff]  ;;  %v6925_v41 = vld [vmem:[#allocation13 + $0xb10] sm:$0xff] }
 0x67f   :  { %14351 = vmatprep.subr.bf16.mxu1 %v19038_v11  ;;  %v19078_v11 = vcombine.high %v6893_v54, %v6897_v12  ;;  %v6929_v52 = vld [vmem:[#allocation13 + $0xb30] sm:$0xff] }
 0x681   :  { %14229 = vmatpush1.bf16.msra.mxu0 %v19803_v22  ;;  %v19843_v22 = vcombine.low %v7660_v44, %v7664_v48  ;;  %v7700_v44 = vld [vmem:[#allocation13 + $0x2348] sm:$0xff] }
 0x682   :  { %14352 = vmatpush1.bf16.msra.mxu1 %v19037_v9  ;;  %14230 = vmatprep.subr.bf16.mxu0 %v19812_v6  ;;  %v19077_v9 = vcombine.low %v6893_v54, %v6897_v12  ;;  %v19852_v6 = vcombine.high %v7668_v0, %v7672_v53  ;;  %v7704_v48 = vld [vmem:[#allocation13 + $0x2368] sm:$0xff]  ;;  %v6933_v54 = vld [vmem:[#allocation13 + $0xb50] sm:$0xff] }
 0x683   :  { %14353 = vmatprep.subr.bf16.mxu1 %v19046_v63  ;;  %v19086_v63 = vcombine.high %v6901_v42, %v6905_v18  ;;  %v6937_v12 = vld [vmem:[#allocation13 + $0xb70] sm:$0xff] }
 0x685   :  { %14231 = vmatpush1.bf16.msra.mxu0 %v19811_v28  ;;  %v19851_v28 = vcombine.low %v7668_v0, %v7672_v53  ;;  %v7708_v0 = vld [vmem:[#allocation13 + $0x2388] sm:$0xff] }
 0x686   :  { %14354 = vmatpush1.bf16.msra.mxu1 %v19045_v31  ;;  %14232 = vmatprep.subr.bf16.mxu0 %v19820_v49  ;;  %v19085_v31 = vcombine.low %v6901_v42, %v6905_v18  ;;  %v19860_v49 = vcombine.high %v7676_v39, %v7680_v43  ;;  %v7712_v53 = vld [vmem:[#allocation13 + $0x23a8] sm:$0xff]  ;;  %v6941_v42 = vld [vmem:[#allocation13 + $0xb90] sm:$0xff] }
 0x687   :  { %14355 = vmatprep.subr.bf16.mxu1 %v19054_v26  ;;  %v19094_v26 = vcombine.high %v6909_v34, %v6913_v1  ;;  %v6945_v18 = vld [vmem:[#allocation13 + $0xbb0] sm:$0xff] }
 0x689   :  { %14233 = vmatpush1.bf16.msra.mxu0 %v19819_v15  ;;  %v19859_v15 = vcombine.low %v7676_v39, %v7680_v43  ;;  %v7716_v39 = vld [vmem:[#allocation13 + $0x23c8] sm:$0xff] }
 0x68a   :  { %14356 = vmatpush1.bf16.msra.mxu1 %v19053_v20  ;;  %14234 = vmatprep.subr.bf16.mxu0 %v19828_v32  ;;  %v19093_v20 = vcombine.low %v6909_v34, %v6913_v1  ;;  %v19868_v32 = vcombine.high %v7684_v45, %v7688_v62  ;;  %v7720_v43 = vld [vmem:[#allocation13 + $0x23e8] sm:$0xff]  ;;  %v6949_v34 = vld [vmem:[#allocation13 + $0xbd0] sm:$0xff] }
 0x68b   :  { %14357 = vmatprep.subr.bf16.mxu1 %v19062_v38  ;;  %v19102_v38 = vcombine.high %v6917_v46, %v6921_v58  ;;  %v6953_v1 = vld [vmem:[#allocation13 + $0xbf0] sm:$0xff] }
 0x68d   :  { %14235 = vmatpush1.bf16.msra.mxu0 %v19827_v56  ;;  %v19867_v56 = vcombine.low %v7684_v45, %v7688_v62  ;;  %v6957_v45 = vld [vmem:[#allocation13 + $0xc10] sm:$0xff] }
 0x68e   :  { %14358 = vmatpush1.bf16.msra.mxu1 %v19061_v8  ;;  %14236 = vmatprep.subr.bf16.mxu0 %v19836_v33  ;;  %v19101_v8 = vcombine.low %v6917_v46, %v6921_v58  ;;  %v19876_v33 = vcombine.high %v7692_v23, %v7696_v40  ;;  %v6961_v62 = vld [vmem:[#allocation13 + $0xc30] sm:$0xff]  ;;  %v6574_v46 = vld [vmem:[#allocation13 + $0x18] sm:$0xff] }
 0x68f   :  { %14359 = vmatprep.subr.bf16.mxu1 %v19070_v13  ;;  %v19110_v13 = vcombine.high %v6925_v41, %v6929_v52  ;;  %v6578_v58 = vld [vmem:[#allocation13 + $0x38] sm:$0xff] }
 0x691   :  { %14237 = vmatpush1.bf16.msra.mxu0 %v19835_v2  ;;  %v19875_v2 = vcombine.low %v7692_v23, %v7696_v40  ;;  %v6965_v23 = vld [vmem:[#allocation13 + $0xc50] sm:$0xff] }
 0x692   :  { %14360 = vmatpush1.bf16.msra.mxu1 %v19069_v16  ;;  %14238 = vmatprep.subr.bf16.mxu0 %v19844_v59  ;;  %v19109_v16 = vcombine.low %v6925_v41, %v6929_v52  ;;  %v19884_v59 = vcombine.high %v7700_v44, %v7704_v48  ;;  %v6969_v40 = vld [vmem:[#allocation13 + $0xc70] sm:$0xff]  ;;  %v6582_v41 = vld [vmem:[#allocation13 + $0x58] sm:$0xff] }
 0x693   :  { %14361 = vmatprep.subr.bf16.mxu1 %v19078_v11  ;;  %v19118_v11 = vcombine.high %v6933_v54, %v6937_v12  ;;  %v6586_v52 = vld [vmem:[#allocation13 + $0x78] sm:$0xff] }
 0x695   :  { %14239 = vmatpush1.bf16.msra.mxu0 %v19843_v22  ;;  %v19883_v22 = vcombine.low %v7700_v44, %v7704_v48  ;;  %v6973_v44 = vld [vmem:[#allocation13 + $0xc90] sm:$0xff] }
 0x696   :  { %14362 = vmatpush1.bf16.msra.mxu1 %v19077_v9  ;;  %14240 = vmatprep.subr.bf16.mxu0 %v19852_v6  ;;  %v19117_v9 = vcombine.low %v6933_v54, %v6937_v12  ;;  %v19892_v6 = vcombine.high %v7708_v0, %v7712_v53  ;;  %v6977_v48 = vld [vmem:[#allocation13 + $0xcb0] sm:$0xff]  ;;  %v6590_v54 = vld [vmem:[#allocation13 + $0x98] sm:$0xff] }
 0x697   :  { %14363 = vmatprep.subr.bf16.mxu1 %v19086_v63  ;;  %v19126_v63 = vcombine.high %v6941_v42, %v6945_v18  ;;  %v6594_v12 = vld [vmem:[#allocation13 + $0xb8] sm:$0xff] }
 0x699   :  { %14241 = vmatpush1.bf16.msra.mxu0 %v19851_v28  ;;  %v19891_v28 = vcombine.low %v7708_v0, %v7712_v53  ;;  %v6981_v0 = vld [vmem:[#allocation13 + $0xcd0] sm:$0xff] }
 0x69a   :  { %14364 = vmatpush1.bf16.msra.mxu1 %v19085_v31  ;;  %14242 = vmatprep.subr.bf16.mxu0 %v19860_v49  ;;  %v19125_v31 = vcombine.low %v6941_v42, %v6945_v18  ;;  %v19900_v49 = vcombine.high %v7716_v39, %v7720_v43  ;;  %v6985_v53 = vld [vmem:[#allocation13 + $0xcf0] sm:$0xff]  ;;  %v6598_v42 = vld [vmem:[#allocation13 + $0xd8] sm:$0xff] }
 0x69b   :  { %14365 = vmatprep.subr.bf16.mxu1 %v19094_v26  ;;  %v19134_v26 = vcombine.high %v6949_v34, %v6953_v1  ;;  %v6602_v18 = vld [vmem:[#allocation13 + $0xf8] sm:$0xff] }
 0x69d   :  { %14243 = vmatpush1.bf16.msra.mxu0 %v19859_v15  ;;  %v19899_v15 = vcombine.low %v7716_v39, %v7720_v43  ;;  %v6989_v39 = vld [vmem:[#allocation13 + $0xd10] sm:$0xff] }
 0x69e   :  { %14366 = vmatpush1.bf16.msra.mxu1 %v19093_v20  ;;  %14244 = vmatprep.subr.bf16.mxu0 %v19868_v32  ;;  %v19133_v20 = vcombine.low %v6949_v34, %v6953_v1  ;;  %v19142_v32 = vcombine.high %v6957_v45, %v6961_v62  ;;  %v6993_v43 = vld [vmem:[#allocation13 + $0xd30] sm:$0xff]  ;;  %v6606_v34 = vld [vmem:[#allocation13 + $0x118] sm:$0xff] }
 0x69f   :  { %14367 = vmatprep.subr.bf16.mxu1 %v19102_v38  ;;  %v18760_v38 = vcombine.high %v6574_v46, %v6578_v58  ;;  %v6610_v1 = vld [vmem:[#allocation13 + $0x138] sm:$0xff] }
 0x6a1   :  { %14245 = vmatpush1.bf16.msra.mxu0 %v19867_v56  ;;  %v19141_v56 = vcombine.low %v6957_v45, %v6961_v62  ;;  %v7001_v45 = vld [vmem:[#allocation13 + $0xd70] sm:$0xff]  ;;  %v6614_v62 = vld [vmem:[#allocation13 + $0x158] sm:$0xff] }
 0x6a2   :  { %14368 = vmatpush1.bf16.msra.mxu1 %v19101_v8  ;;  %14246 = vmatprep.subr.bf16.mxu0 %v19876_v33  ;;  %v18759_v8 = vcombine.low %v6574_v46, %v6578_v58  ;;  %v19150_v33 = vcombine.high %v6965_v23, %v6969_v40  ;;  %v6618_v46 = vld [vmem:[#allocation13 + $0x178] sm:$0xff]  ;;  %v19173_v58 = vcombine.low %v6989_v39, %v6993_v43 }
 0x6a3   :  { %14369 = vmatprep.subr.bf16.mxu1 %v19110_v13  ;;  %v18768_v13 = vcombine.high %v6582_v41, %v6586_v52 }
 0x6a5   :  { %14247 = vmatpush1.bf16.msra.mxu0 %v19875_v2  ;;  %v19149_v2 = vcombine.low %v6965_v23, %v6969_v40  ;;  %v7009_v23 = vld [vmem:[#allocation13 + $0xdb0] sm:$0xff]  ;;  %v6622_v40 = vld [vmem:[#allocation13 + $0x198] sm:$0xff] }
 0x6a6   :  { %14370 = vmatpush1.bf16.msra.mxu1 %v19109_v16  ;;  %14248 = vmatprep.subr.bf16.mxu0 %v19884_v59  ;;  %v18767_v16 = vcombine.low %v6582_v41, %v6586_v52  ;;  %v19158_v59 = vcombine.high %v6973_v44, %v6977_v48  ;;  %v6626_v41 = vld [vmem:[#allocation13 + $0x1b8] sm:$0xff] }
 0x6a7   :  { %14371 = vmatprep.subr.bf16.mxu1 %v19118_v11  ;;  %v18776_v11 = vcombine.high %v6590_v54, %v6594_v12 }
 0x6a9   :  { %14249 = vmatpush1.bf16.msra.mxu0 %v19883_v22  ;;  %v19157_v22 = vcombine.low %v6973_v44, %v6977_v48  ;;  %v7017_v48 = vld [vmem:[#allocation13 + $0xdf0] sm:$0xff] }
 0x6aa   :  { %14372 = vmatpush1.bf16.msra.mxu1 %v19117_v9  ;;  %14250 = vmatprep.subr.bf16.mxu0 %v19892_v6  ;;  %v18775_v9 = vcombine.low %v6590_v54, %v6594_v12  ;;  %v19166_v6 = vcombine.high %v6981_v0, %v6985_v53  ;;  %v6630_v54 = vld [vmem:[#allocation13 + $0x1d8] sm:$0xff] }
 0x6ab   :  { %14373 = vmatprep.subr.bf16.mxu1 %v19126_v63  ;;  %v18784_v63 = vcombine.high %v6598_v42, %v6602_v18  ;;  %v6634_v12 = vld [vmem:[#allocation13 + $0x1f8] sm:$0xff] }
 0x6ad   :  { %14251 = vmatpush1.bf16.msra.mxu0 %v19891_v28  ;;  %v19165_v28 = vcombine.low %v6981_v0, %v6985_v53 }
 0x6ae   :  { %14374 = vmatpush1.bf16.msra.mxu1 %v19125_v31  ;;  %14252 = vmatprep.subr.bf16.mxu0 %v19900_v49  ;;  %v18783_v31 = vcombine.low %v6598_v42, %v6602_v18  ;;  %v19174_v49 = vcombine.high %v6989_v39, %v6993_v43  ;;  %v18816_v42 = vcombine.high %v6630_v54, %v6634_v12  ;;  %v7021_v18 = vld [vmem:[#allocation13 + $0xe10] sm:$0xff] }
 0x6af   :  { %14375 = vmatprep.subr.bf16.mxu1 %v19134_v26  ;;  %v6997_v26 = vld [vmem:[#allocation13 + $0xd50] sm:$0xff]  ;;  %v18815_v39 = vcombine.low %v6630_v54, %v6634_v12 }
 0x6b0   :  { %v19181_v52 = vcombine.low %v6997_v26, %v7001_v45  ;;  %v7053_v12 = vld [vmem:[#allocation13 + $0xf10] sm:$0xff] }
 0x6b1   :  { %14253 = vmatpush1.bf16.msra.mxu0 %v19899_v15  ;;  %v18791_v15 = vcombine.low %v6606_v34, %v6610_v1 }
 0x6b2   :  { %14376 = vmatpush1.bf16.msra.mxu1 %v19133_v20  ;;  %14632 = vmatprep.subr.bf16.mxu0 %v18760_v38  ;;  %v19182_v20 = vcombine.high %v6997_v26, %v7001_v45  ;;  %v7005_v38 = vld [vmem:[#allocation13 + $0xd90] sm:$0xff] }
 0x6b3   :  { %14386 = vmatprep.subr.bf16.mxu1 %v19142_v32  ;;  %v18800_v32 = vcombine.high %v6614_v62, %v6618_v46 }
 0x6b4   :  { %14255 = vmatmul.mubr.bf16.vlgmr.msra.gmra.mrb[60].mxu0 %v23155_v24 }
 0x6b5   :  { %14378 = vmatmul.mubr.bf16.vlgmr.msra.gmra.mrb[52].mxu1 %v23071_v60  ;;  %14633 = vmatpush1.bf16.msra.mxu0 %v18759_v8  ;;  %v19190_v8 = vcombine.high %v7005_v38, %v7009_v23 }
 0x6b6   :  { %14387 = vmatpush1.bf16.msra.mxu1 %v19141_v56  ;;  %14634 = vmatprep.subr.bf16.mxu0 %v18768_v13  ;;  %v18799_v56 = vcombine.low %v6614_v62, %v6618_v46  ;;  %v7013_v13 = vld [vmem:[#allocation13 + $0xdd0] sm:$0xff] }
 0x6b7   :  { %14388 = vmatprep.subr.bf16.mxu1 %v19150_v33  ;;  %14418 = vmatprep.mubr.bf16.mxu1 %v23073_v51  ;;  %v18808_v33 = vcombine.high %v6622_v40, %v6626_v41  ;;  %v19198_v53 = vcombine.high %v7013_v13, %v7017_v48  ;;  %v7037_v46 = vld [vmem:[#allocation13 + $0xe90] sm:$0xff] }
 0x6b8   :  { %14664 = vmatprep.mubr.bf16.mxu0 %v23017_v37  ;;  %v18792_v37 = vcombine.high %v6606_v34, %v6610_v1  ;;  %v7029_v1 = vld [vmem:[#allocation13 + $0xe50] sm:$0xff] }
 0x6b9   :  { %14635 = vmatpush1.bf16.msra.mxu0 %v18767_v16 }
 0x6ba   :  { %14389 = vmatpush1.bf16.msra.mxu1 %v19149_v2  ;;  %14636 = vmatprep.subr.bf16.mxu0 %v18776_v11  ;;  %v18807_v11 = vcombine.low %v6622_v40, %v6626_v41  ;;  %v7045_v41 = vld [vmem:[#allocation13 + $0xed0] sm:$0xff] }
 0x6bb   :  { %14390 = vmatprep.subr.bf16.mxu1 %v19158_v59  ;;  %v19189_v59 = vcombine.low %v7005_v38, %v7009_v23 }
 0x6bd   :  { %14637 = vmatpush1.bf16.msra.mxu0 %v18775_v9  ;;  %v6638_v9 = vld [vmem:[#allocation13 + $0x218] sm:$0xff] }
 0x6be   :  { %14391 = vmatpush1.bf16.msra.mxu1 %v19157_v22  ;;  %14638 = vmatprep.subr.bf16.mxu0 %v18784_v63  ;;  %v7025_v22 = vld [vmem:[#allocation13 + $0xe30] sm:$0xff]  ;;  %v19197_v63 = vcombine.low %v7013_v13, %v7017_v48 }
 0x6bf   :  { %14392 = vmatprep.subr.bf16.mxu1 %v19166_v6  ;;  %v6642_v6 = vld [vmem:[#allocation13 + $0x238] sm:$0xff]  ;;  %v19206_v43 = vcombine.high %v7021_v18, %v7025_v22 }
 0x6c0   :  { %v18824_v34 = vcombine.high %v6638_v9, %v6642_v6  ;;  %v18823_v26 = vcombine.low %v6638_v9, %v6642_v6  ;;  %v7065_v9 = vld [vmem:[#allocation13 + $0xf70] sm:$0xff]  ;;  %v6678_v6 = vld [vmem:[#allocation13 + $0x358] sm:$0xff] }
 0x6c1   :  { %14639 = vmatpush1.bf16.msra.mxu0 %v18783_v31  ;;  %v6646_v31 = vld [vmem:[#allocation13 + $0x258] sm:$0xff] }
 0x6c2   :  { %14393 = vmatpush1.bf16.msra.mxu1 %v19165_v28  ;;  %14640 = vmatprep.subr.bf16.mxu0 %v18792_v37  ;;  %v7033_v28 = vld [vmem:[#allocation13 + $0xe70] sm:$0xff]  ;;  %v19205_v37 = vcombine.low %v7021_v18, %v7025_v22 }
 0x6c3   :  { %14394 = vmatprep.subr.bf16.mxu1 %v19174_v49  ;;  %v6650_v49 = vld [vmem:[#allocation13 + $0x278] sm:$0xff]  ;;  %v19214_v45 = vcombine.high %v7029_v1, %v7033_v28  ;;  %v7061_v22 = vld [vmem:[#allocation13 + $0xf50] sm:$0xff] }
 0x6c4   :  { %v18832_v62 = vcombine.high %v6646_v31, %v6650_v49  ;;  %v18831_v38 = vcombine.low %v6646_v31, %v6650_v49  ;;  %v7073_v31 = vld [vmem:[#allocation13 + $0xfb0] sm:$0xff]  ;;  %v6686_v49 = vld [vmem:[#allocation13 + $0x398] sm:$0xff] }
 0x6c5   :  { %14641 = vmatpush1.bf16.msra.mxu0 %v18791_v15  ;;  %v6654_v15 = vld [vmem:[#allocation13 + $0x298] sm:$0xff] }
 0x6c6   :  { %14395 = vmatpush1.bf16.msra.mxu1 %v19173_v58  ;;  %14642 = vmatprep.subr.bf16.mxu0 %v18800_v32  ;;  %v7041_v58 = vld [vmem:[#allocation13 + $0xeb0] sm:$0xff]  ;;  %v19213_v32 = vcombine.low %v7029_v1, %v7033_v28 }
 0x6c7   :  { %14396 = vmatprep.subr.bf16.mxu1 %v19182_v20  ;;  %v6658_v20 = vld [vmem:[#allocation13 + $0x2b8] sm:$0xff]  ;;  %v19222_v23 = vcombine.high %v7037_v46, %v7041_v58  ;;  %v7069_v28 = vld [vmem:[#allocation13 + $0xf90] sm:$0xff] }
 0x6c8   :  { %v23173_v44 = vpop.f32.mrb[48].mxu1  ;;  %v18840_v40 = vcombine.high %v6654_v15, %v6658_v20  ;;  %v18839_v13 = vcombine.low %v6654_v15, %v6658_v20  ;;  %v7081_v15 = vld [vmem:[#allocation13 + $0xff0] sm:$0xff]  ;;  %v6694_v20 = vld [vmem:[#allocation13 + $0x3d8] sm:$0xff] }
 0x6c9   :  { %v23175_v2 = vpop.f32.mrb[49].mxu1  ;;  %14643 = vmatpush1.bf16.msra.mxu0 %v18799_v56  ;;  %v6662_v56 = vld [vmem:[#allocation13 + $0x2d8] sm:$0xff] }
 0x6ca   :  { %v13891_v16 = vpop.f32.mrb[50].mxu1  ;;  %14397 = vmatpush1.bf16.msra.mxu1 %v19181_v52  ;;  %14644 = vmatprep.subr.bf16.mxu0 %v18808_v33  ;;  %v7049_v52 = vld [vmem:[#allocation13 + $0xef0] sm:$0xff]  ;;  %v19221_v33 = vcombine.low %v7037_v46, %v7041_v58 }
 0x6cb   :  { %v13892_v0 = vpop.f32.mrb[51].mxu1  ;;  %14398 = vmatprep.subr.bf16.mxu1 %v19190_v8  ;;  %v6666_v8 = vld [vmem:[#allocation13 + $0x2f8] sm:$0xff]  ;;  %v19230_v48 = vcombine.high %v7045_v41, %v7049_v52  ;;  %v7057_v16 = vld [vmem:[#allocation13 + $0xf30] sm:$0xff] }
 0x6cc   :  { %v18848_v54 = vcombine.high %v6662_v56, %v6666_v8  ;;  %v19229_v0 = vcombine.low %v7045_v41, %v7049_v52  ;;  %v7077_v58 = vld [vmem:[#allocation13 + $0xfd0] sm:$0xff] }
 0x6cd   :  { %14645 = vmatpush1.bf16.msra.mxu0 %v18807_v11  ;;  %v6674_v11 = vld [vmem:[#allocation13 + $0x338] sm:$0xff]  ;;  %v7085_v52 = vld [vmem:[#allocation13 + $0x1010] sm:$0xff] }
 0x6ce   :  { %14399 = vmatpush1.bf16.msra.mxu1 %v19189_v59  ;;  %14646 = vmatprep.subr.bf16.mxu0 %v18816_v42  ;;  %v6670_v59 = vld [vmem:[#allocation13 + $0x318] sm:$0xff]  ;;  %v19238_v42 = vcombine.high %v7053_v12, %v7057_v16 }
 0x6cf   :  { %14400 = vmatprep.subr.bf16.mxu1 %v19198_v53  ;;  %v18847_v53 = vcombine.low %v6662_v56, %v6666_v8  ;;  %v18856_v18 = vcombine.high %v6670_v59, %v6674_v11  ;;  %v7089_v56 = vld [vmem:[#allocation13 + $0x1030] sm:$0xff]  ;;  %v6702_v8 = vld [vmem:[#allocation13 + $0x418] sm:$0xff] }
 0x6d1   :  { %14647 = vmatpush1.bf16.msra.mxu0 %v18815_v39  ;;  %v19237_v39 = vcombine.low %v7053_v12, %v7057_v16  ;;  %v7093_v16 = vld [vmem:[#allocation13 + $0x1050] sm:$0xff] }
 0x6d2   :  { %14401 = vmatpush1.bf16.msra.mxu1 %v19197_v63  ;;  %14648 = vmatprep.subr.bf16.mxu0 %v18824_v34  ;;  %v6682_v63 = vld [vmem:[#allocation13 + $0x378] sm:$0xff]  ;;  %v19246_v34 = vcombine.high %v7061_v22, %v7065_v9 }
 0x6d3   :  { %14402 = vmatprep.subr.bf16.mxu1 %v19206_v43  ;;  %v18855_v43 = vcombine.low %v6670_v59, %v6674_v11  ;;  %v18864_v1 = vcombine.high %v6678_v6, %v6682_v63  ;;  %v7097_v59 = vld [vmem:[#allocation13 + $0x1070] sm:$0xff]  ;;  %v6710_v11 = vld [vmem:[#allocation13 + $0x458] sm:$0xff] }
 0x6d5   :  { %14649 = vmatpush1.bf16.msra.mxu0 %v18823_v26  ;;  %v19245_v26 = vcombine.low %v7061_v22, %v7065_v9  ;;  %v7101_v9 = vld [vmem:[#allocation13 + $0x1090] sm:$0xff] }
 0x6d6   :  { %14403 = vmatpush1.bf16.msra.mxu1 %v19205_v37  ;;  %14650 = vmatprep.subr.bf16.mxu0 %v18832_v62  ;;  %v6690_v37 = vld [vmem:[#allocation13 + $0x3b8] sm:$0xff]  ;;  %v19254_v62 = vcombine.high %v7069_v28, %v7073_v31 }
 0x6d7   :  { %14404 = vmatprep.subr.bf16.mxu1 %v19214_v45  ;;  %v18863_v45 = vcombine.low %v6678_v6, %v6682_v63  ;;  %v18872_v46 = vcombine.high %v6686_v49, %v6690_v37  ;;  %v7105_v6 = vld [vmem:[#allocation13 + $0x10b0] sm:$0xff]  ;;  %v6718_v63 = vld [vmem:[#allocation13 + $0x498] sm:$0xff] }
 0x6d9   :  { %14651 = vmatpush1.bf16.msra.mxu0 %v18831_v38  ;;  %v19253_v38 = vcombine.low %v7069_v28, %v7073_v31  ;;  %v7109_v31 = vld [vmem:[#allocation13 + $0x10d0] sm:$0xff] }
 0x6da   :  { %14405 = vmatpush1.bf16.msra.mxu1 %v19213_v32  ;;  %14652 = vmatprep.subr.bf16.mxu0 %v18840_v40  ;;  %v6698_v32 = vld [vmem:[#allocation13 + $0x3f8] sm:$0xff]  ;;  %v19262_v40 = vcombine.high %v7077_v58, %v7081_v15 }
 0x6db   :  { %14406 = vmatprep.subr.bf16.mxu1 %v19222_v23  ;;  %v18871_v23 = vcombine.low %v6686_v49, %v6690_v37  ;;  %v18880_v41 = vcombine.high %v6694_v20, %v6698_v32  ;;  %v7113_v49 = vld [vmem:[#allocation13 + $0x10f0] sm:$0xff]  ;;  %v6726_v37 = vld [vmem:[#allocation13 + $0x4d8] sm:$0xff] }
 0x6dd   :  { %14653 = vmatpush1.bf16.msra.mxu0 %v18839_v13  ;;  %v19261_v13 = vcombine.low %v7077_v58, %v7081_v15  ;;  %v7117_v58 = vld [vmem:[#allocation13 + $0x1110] sm:$0xff] }
 0x6de   :  { %14407 = vmatpush1.bf16.msra.mxu1 %v19221_v33  ;;  %14654 = vmatprep.subr.bf16.mxu0 %v18848_v54  ;;  %v6706_v33 = vld [vmem:[#allocation13 + $0x438] sm:$0xff]  ;;  %v19270_v54 = vcombine.high %v7085_v52, %v7089_v56  ;;  %v7121_v15 = vld [vmem:[#allocation13 + $0x1130] sm:$0xff] }
 0x6df   :  { %14408 = vmatprep.subr.bf16.mxu1 %v19230_v48  ;;  %v18879_v48 = vcombine.low %v6694_v20, %v6698_v32  ;;  %v18888_v12 = vcombine.high %v6702_v8, %v6706_v33  ;;  %v6734_v20 = vld [vmem:[#allocation13 + $0x518] sm:$0xff] }
 0x6e0   :  { %v6738_v32 = vld [vmem:[#allocation13 + $0x538] sm:$0xff] }
 0x6e1   :  { %14655 = vmatpush1.bf16.msra.mxu0 %v18847_v53  ;;  %v19269_v53 = vcombine.low %v7085_v52, %v7089_v56  ;;  %v7129_v52 = vld [vmem:[#allocation13 + $0x1170] sm:$0xff]  ;;  %v6742_v56 = vld [vmem:[#allocation13 + $0x558] sm:$0xff] }
 0x6e2   :  { %14409 = vmatpush1.bf16.msra.mxu1 %v19229_v0  ;;  %14656 = vmatprep.subr.bf16.mxu0 %v18856_v18  ;;  %v6714_v0 = vld [vmem:[#allocation13 + $0x478] sm:$0xff]  ;;  %v19278_v18 = vcombine.high %v7093_v16, %v7097_v59 }
 0x6e3   :  { %14410 = vmatprep.subr.bf16.mxu1 %v19238_v42  ;;  %v18887_v42 = vcombine.low %v6702_v8, %v6706_v33  ;;  %v18896_v22 = vcombine.high %v6710_v11, %v6714_v0  ;;  %v6746_v8 = vld [vmem:[#allocation13 + $0x578] sm:$0xff]  ;;  %v19301_v33 = vcombine.low %v7117_v58, %v7121_v15 }
 0x6e5   :  { %14657 = vmatpush1.bf16.msra.mxu0 %v18855_v43  ;;  %v19277_v43 = vcombine.low %v7093_v16, %v7097_v59  ;;  %v7137_v16 = vld [vmem:[#allocation13 + $0x11b0] sm:$0xff]  ;;  %v6750_v59 = vld [vmem:[#allocation13 + $0x598] sm:$0xff] }
 0x6e6   :  { %14411 = vmatpush1.bf16.msra.mxu1 %v19237_v39  ;;  %14658 = vmatprep.subr.bf16.mxu0 %v18864_v1  ;;  %v6722_v39 = vld [vmem:[#allocation13 + $0x4b8] sm:$0xff]  ;;  %v19286_v1 = vcombine.high %v7101_v9, %v7105_v6 }
 0x6e7   :  { %14412 = vmatprep.subr.bf16.mxu1 %v19246_v34  ;;  %v18895_v34 = vcombine.low %v6710_v11, %v6714_v0  ;;  %v18904_v28 = vcombine.high %v6718_v63, %v6722_v39  ;;  %v6754_v11 = vld [vmem:[#allocation13 + $0x5b8] sm:$0xff] }
 0x6e9   :  { %14659 = vmatpush1.bf16.msra.mxu0 %v18863_v45  ;;  %v19285_v45 = vcombine.low %v7101_v9, %v7105_v6  ;;  %v7145_v9 = vld [vmem:[#allocation13 + $0x11f0] sm:$0xff]  ;;  %v6758_v6 = vld [vmem:[#allocation13 + $0x5d8] sm:$0xff] }
 0x6ea   :  { %14413 = vmatpush1.bf16.msra.mxu1 %v19245_v26  ;;  %14660 = vmatprep.subr.bf16.mxu0 %v18872_v46  ;;  %v6730_v26 = vld [vmem:[#allocation13 + $0x4f8] sm:$0xff] }
 0x6eb   :  { %14414 = vmatprep.subr.bf16.mxu1 %v19254_v62  ;;  %v19294_v62 = vcombine.high %v7109_v31, %v7113_v49  ;;  %v18912_v46 = vcombine.high %v6726_v37, %v6730_v26 }
 0x6ed   :  { %14661 = vmatpush1.bf16.msra.mxu0 %v18871_v23  ;;  %v18911_v23 = vcombine.low %v6726_v37, %v6730_v26  ;;  %v6770_v37 = vld [vmem:[#allocation13 + $0x638] sm:$0xff] }
 0x6ee   :  { %14415 = vmatpush1.bf16.msra.mxu1 %v19253_v38  ;;  %14662 = vmatprep.subr.bf16.mxu0 %v18880_v41  ;;  %v19293_v38 = vcombine.low %v7109_v31, %v7113_v49  ;;  %v7125_v41 = vld [vmem:[#allocation13 + $0x1150] sm:$0xff]  ;;  %v6766_v49 = vld [vmem:[#allocation13 + $0x618] sm:$0xff] }
 0x6ef   :  { %14416 = vmatprep.subr.bf16.mxu1 %v19262_v40  ;;  %v19302_v40 = vcombine.high %v7117_v58, %v7121_v15  ;;  %v19309_v0 = vcombine.low %v7125_v41, %v7129_v52  ;;  %v7153_v31 = vld [vmem:[#allocation13 + $0x1230] sm:$0xff]  ;;  %v6774_v15 = vld [vmem:[#allocation13 + $0x658] sm:$0xff] }
 0x6f0   :  { %v7161_v58 = vld [vmem:[#allocation13 + $0x1270] sm:$0xff] }
 0x6f1   :  { %14663 = vmatpush1.bf16.msra.mxu0 %v18879_v48  ;;  %v19310_v48 = vcombine.high %v7125_v41, %v7129_v52  ;;  %v7169_v41 = vld [vmem:[#allocation13 + $0x12b0] sm:$0xff]  ;;  %v6782_v52 = vld [vmem:[#allocation13 + $0x698] sm:$0xff] }
 0x6f2   :  { %14417 = vmatpush1.bf16.msra.mxu1 %v19261_v13  ;;  %14673 = vmatprep.subr.bf16.mxu0 %v18888_v12  ;;  %v18919_v13 = vcombine.low %v6734_v20, %v6738_v32  ;;  %v7133_v12 = vld [vmem:[#allocation13 + $0x1190] sm:$0xff] }
 0x6f3   :  { %14427 = vmatprep.subr.bf16.mxu1 %v19270_v54  ;;  %v18928_v54 = vcombine.high %v6742_v56, %v6746_v8 }
 0x6f4   :  { %14665 = vmatmul.mubr.bf16.vlgmr.msra.gmra.mrb[64].mxu0 %v23033_v14  ;;  %v18903_v14 = vcombine.low %v6718_v63, %v6722_v39  ;;  %v6762_v63 = vld [vmem:[#allocation13 + $0x5f8] sm:$0xff]  ;;  %v19317_v39 = vcombine.low %v7133_v12, %v7137_v16 }
 0x6f5   :  { %14419 = vmatmul.mubr.bf16.vlgmr.msra.gmra.mrb[52].mxu1 %v23091_v55  ;;  %14674 = vmatpush1.bf16.msra.mxu0 %v18887_v42  ;;  %v19318_v42 = vcombine.high %v7133_v12, %v7137_v16  ;;  %v7177_v12 = vld [vmem:[#allocation13 + $0x12f0] sm:$0xff]  ;;  %v6790_v16 = vld [vmem:[#allocation13 + $0x6d8] sm:$0xff] }
 0x6f6   :  { %14428 = vmatpush1.bf16.msra.mxu1 %v19269_v53  ;;  %14675 = vmatprep.subr.bf16.mxu0 %v18896_v22  ;;  %v18927_v53 = vcombine.low %v6742_v56, %v6746_v8  ;;  %v7141_v22 = vld [vmem:[#allocation13 + $0x11d0] sm:$0xff]  ;;  %v6786_v56 = vld [vmem:[#allocation13 + $0x6b8] sm:$0xff] }
 0x6f7   :  { %14429 = vmatprep.subr.bf16.mxu1 %v19278_v18  ;;  %14459 = vmatprep.mubr.bf16.mxu1 %v23093_v7  ;;  %v18936_v18 = vcombine.high %v6750_v59, %v6754_v11  ;;  %v19325_v26 = vcombine.low %v7141_v22, %v7145_v9 }
 0x6f8   :  { %14705 = vmatprep.mubr.bf16.mxu0 %v23035_v17  ;;  %v18920_v17 = vcombine.high %v6734_v20, %v6738_v32  ;;  %v6778_v20 = vld [vmem:[#allocation13 + $0x678] sm:$0xff] }
 0x6f9   :  { %14676 = vmatpush1.bf16.msra.mxu0 %v18895_v34  ;;  %v19326_v34 = vcombine.high %v7141_v22, %v7145_v9  ;;  %v7185_v22 = vld [vmem:[#allocation13 + $0x1330] sm:$0xff]  ;;  %v6798_v9 = vld [vmem:[#allocation13 + $0x718] sm:$0xff] }
 0x6fa   :  { %14430 = vmatpush1.bf16.msra.mxu1 %v19277_v43  ;;  %14677 = vmatprep.subr.bf16.mxu0 %v18904_v28  ;;  %v18935_v43 = vcombine.low %v6750_v59, %v6754_v11  ;;  %v7149_v28 = vld [vmem:[#allocation13 + $0x1210] sm:$0xff]  ;;  %v6794_v59 = vld [vmem:[#allocation13 + $0x6f8] sm:$0xff] }
 0x6fb   :  { %14431 = vmatprep.subr.bf16.mxu1 %v19286_v1  ;;  %v18944_v1 = vcombine.high %v6758_v6, %v6762_v63  ;;  %v19333_v32 = vcombine.low %v7149_v28, %v7153_v31 }
 0x6fd   :  { %14678 = vmatpush1.bf16.msra.mxu0 %v18903_v14  ;;  %v19334_v14 = vcombine.high %v7149_v28, %v7153_v31  ;;  %v7193_v28 = vld [vmem:[#allocation13 + $0x1370] sm:$0xff]  ;;  %v6806_v31 = vld [vmem:[#allocation13 + $0x758] sm:$0xff] }
 0x6fe   :  { %14432 = vmatpush1.bf16.msra.mxu1 %v19285_v45  ;;  %14679 = vmatprep.subr.bf16.mxu0 %v18912_v46  ;;  %v18943_v45 = vcombine.low %v6758_v6, %v6762_v63  ;;  %v7157_v46 = vld [vmem:[#allocation13 + $0x1250] sm:$0xff]  ;;  %v6802_v6 = vld [vmem:[#allocation13 + $0x738] sm:$0xff] }
 0x6ff   :  { %14433 = vmatprep.subr.bf16.mxu1 %v19294_v62  ;;  %v18952_v62 = vcombine.high %v6766_v49, %v6770_v37  ;;  %v19341_v8 = vcombine.low %v7157_v46, %v7161_v58 }
 0x701   :  { %14680 = vmatpush1.bf16.msra.mxu0 %v18911_v23  ;;  %v19342_v23 = vcombine.high %v7157_v46, %v7161_v58  ;;  %v7201_v46 = vld [vmem:[#allocation13 + $0x13b0] sm:$0xff]  ;;  %v6814_v58 = vld [vmem:[#allocation13 + $0x798] sm:$0xff] }
 0x702   :  { %14434 = vmatpush1.bf16.msra.mxu1 %v19293_v38  ;;  %14681 = vmatprep.subr.bf16.mxu0 %v18920_v17  ;;  %v18951_v38 = vcombine.low %v6766_v49, %v6770_v37  ;;  %v7165_v17 = vld [vmem:[#allocation13 + $0x1290] sm:$0xff]  ;;  %v6810_v49 = vld [vmem:[#allocation13 + $0x778] sm:$0xff] }
 0x703   :  { %14435 = vmatprep.subr.bf16.mxu1 %v19302_v40  ;;  %v18960_v40 = vcombine.high %v6774_v15, %v6778_v20  ;;  %v19349_v11 = vcombine.low %v7165_v17, %v7169_v41 }
 0x705   :  { %14682 = vmatpush1.bf16.msra.mxu0 %v18919_v13  ;;  %v19350_v13 = vcombine.high %v7165_v17, %v7169_v41  ;;  %v7209_v17 = vld [vmem:[#allocation13 + $0x13f0] sm:$0xff]  ;;  %v6822_v41 = vld [vmem:[#allocation13 + $0x7d8] sm:$0xff] }
 0x706   :  { %14436 = vmatpush1.bf16.msra.mxu1 %v19301_v33  ;;  %14683 = vmatprep.subr.bf16.mxu0 %v18928_v54  ;;  %v18959_v33 = vcombine.low %v6774_v15, %v6778_v20  ;;  %v7173_v54 = vld [vmem:[#allocation13 + $0x12d0] sm:$0xff]  ;;  %v6818_v15 = vld [vmem:[#allocation13 + $0x7b8] sm:$0xff] }
 0x707   :  { %14437 = vmatprep.subr.bf16.mxu1 %v19310_v48  ;;  %v18968_v48 = vcombine.high %v6782_v52, %v6786_v56  ;;  %v19357_v63 = vcombine.low %v7173_v54, %v7177_v12 }
 0x709   :  { %14684 = vmatpush1.bf16.msra.mxu0 %v18927_v53  ;;  %v19358_v53 = vcombine.high %v7173_v54, %v7177_v12  ;;  %v7217_v54 = vld [vmem:[#allocation13 + $0x1430] sm:$0xff]  ;;  %v6830_v12 = vld [vmem:[#allocation13 + $0x818] sm:$0xff] }
 0x70a   :  { %14438 = vmatpush1.bf16.msra.mxu1 %v19309_v0  ;;  %14685 = vmatprep.subr.bf16.mxu0 %v18936_v18  ;;  %v18967_v0 = vcombine.low %v6782_v52, %v6786_v56  ;;  %v7181_v18 = vld [vmem:[#allocation13 + $0x1310] sm:$0xff]  ;;  %v6826_v52 = vld [vmem:[#allocation13 + $0x7f8] sm:$0xff] }
 0x70b   :  { %14439 = vmatprep.subr.bf16.mxu1 %v19318_v42  ;;  %v18976_v42 = vcombine.high %v6790_v16, %v6794_v59  ;;  %v19365_v37 = vcombine.low %v7181_v18, %v7185_v22 }
 0x70d   :  { %14686 = vmatpush1.bf16.msra.mxu0 %v18935_v43  ;;  %v19366_v43 = vcombine.high %v7181_v18, %v7185_v22  ;;  %v7225_v18 = vld [vmem:[#allocation13 + $0x1470] sm:$0xff]  ;;  %v6838_v22 = vld [vmem:[#allocation13 + $0x858] sm:$0xff] }
 0x70e   :  { %14440 = vmatpush1.bf16.msra.mxu1 %v19317_v39  ;;  %14687 = vmatprep.subr.bf16.mxu0 %v18944_v1  ;;  %v18975_v39 = vcombine.low %v6790_v16, %v6794_v59  ;;  %v7189_v1 = vld [vmem:[#allocation13 + $0x1350] sm:$0xff]  ;;  %v6834_v16 = vld [vmem:[#allocation13 + $0x838] sm:$0xff] }
 0x70f   :  { %14441 = vmatprep.subr.bf16.mxu1 %v19326_v34  ;;  %v18984_v34 = vcombine.high %v6798_v9, %v6802_v6  ;;  %v19373_v20 = vcombine.low %v7189_v1, %v7193_v28 }
 0x711   :  { %14688 = vmatpush1.bf16.msra.mxu0 %v18943_v45  ;;  %v19374_v45 = vcombine.high %v7189_v1, %v7193_v28  ;;  %v7233_v1 = vld [vmem:[#allocation13 + $0x14b0] sm:$0xff]  ;;  %v6846_v28 = vld [vmem:[#allocation13 + $0x898] sm:$0xff] }
 0x712   :  { %14442 = vmatpush1.bf16.msra.mxu1 %v19325_v26  ;;  %14689 = vmatprep.subr.bf16.mxu0 %v18952_v62  ;;  %v18983_v26 = vcombine.low %v6798_v9, %v6802_v6  ;;  %v7197_v62 = vld [vmem:[#allocation13 + $0x1390] sm:$0xff]  ;;  %v6842_v9 = vld [vmem:[#allocation13 + $0x878] sm:$0xff] }
 0x713   :  { %14443 = vmatprep.subr.bf16.mxu1 %v19334_v14  ;;  %v18992_v14 = vcombine.high %v6806_v31, %v6810_v49  ;;  %v19381_v56 = vcombine.low %v7197_v62, %v7201_v46 }
 0x715   :  { %14690 = vmatpush1.bf16.msra.mxu0 %v18951_v38  ;;  %v19382_v38 = vcombine.high %v7197_v62, %v7201_v46  ;;  %v7241_v62 = vld [vmem:[#allocation13 + $0x14f0] sm:$0xff]  ;;  %v6854_v46 = vld [vmem:[#allocation13 + $0x8d8] sm:$0xff] }
 0x716   :  { %14444 = vmatpush1.bf16.msra.mxu1 %v19333_v32  ;;  %14691 = vmatprep.subr.bf16.mxu0 %v18960_v40  ;;  %v18991_v32 = vcombine.low %v6806_v31, %v6810_v49  ;;  %v7205_v40 = vld [vmem:[#allocation13 + $0x13d0] sm:$0xff]  ;;  %v6850_v31 = vld [vmem:[#allocation13 + $0x8b8] sm:$0xff] }
 0x717   :  { %14445 = vmatprep.subr.bf16.mxu1 %v19342_v23  ;;  %v19000_v23 = vcombine.high %v6814_v58, %v6818_v15  ;;  %v19389_v59 = vcombine.low %v7205_v40, %v7209_v17 }
 0x719   :  { %14692 = vmatpush1.bf16.msra.mxu0 %v18959_v33  ;;  %v19390_v33 = vcombine.high %v7205_v40, %v7209_v17  ;;  %v6862_v40 = vld [vmem:[#allocation13 + $0x918] sm:$0xff] }
 0x71a   :  { %14446 = vmatpush1.bf16.msra.mxu1 %v19341_v8  ;;  %14693 = vmatprep.subr.bf16.mxu0 %v18968_v48  ;;  %v18999_v8 = vcombine.low %v6814_v58, %v6818_v15  ;;  %v7213_v48 = vld [vmem:[#allocation13 + $0x1410] sm:$0xff]  ;;  %v6858_v58 = vld [vmem:[#allocation13 + $0x8f8] sm:$0xff] }
 0x71b   :  { %14447 = vmatprep.subr.bf16.mxu1 %v19350_v13  ;;  %v19008_v13 = vcombine.high %v6822_v41, %v6826_v52  ;;  %v19397_v6 = vcombine.low %v7213_v48, %v7217_v54  ;;  %v6866_v17 = vld [vmem:[#allocation13 + $0x938] sm:$0xff] }
 0x71d   :  { %14694 = vmatpush1.bf16.msra.mxu0 %v18967_v0  ;;  %v19398_v0 = vcombine.high %v7213_v48, %v7217_v54  ;;  %v6874_v48 = vld [vmem:[#allocation13 + $0x978] sm:$0xff] }
 0x71e   :  { %14448 = vmatpush1.bf16.msra.mxu1 %v19349_v11  ;;  %14695 = vmatprep.subr.bf16.mxu0 %v18976_v42  ;;  %v19007_v11 = vcombine.low %v6822_v41, %v6826_v52  ;;  %v7221_v42 = vld [vmem:[#allocation13 + $0x1450] sm:$0xff]  ;;  %v19039_v52 = vcombine.low %v6854_v46, %v6858_v58 }
 0x71f   :  { %14449 = vmatprep.subr.bf16.mxu1 %v19358_v53  ;;  %v19016_v53 = vcombine.high %v6830_v12, %v6834_v16  ;;  %v19405_v49 = vcombine.low %v7221_v42, %v7225_v18 }
 0x721   :  { %14696 = vmatpush1.bf16.msra.mxu0 %v18975_v39  ;;  %v19406_v39 = vcombine.high %v7221_v42, %v7225_v18  ;;  %v6882_v42 = vld [vmem:[#allocation13 + $0x9b8] sm:$0xff] }
 0x722   :  { %14450 = vmatpush1.bf16.msra.mxu1 %v19357_v63  ;;  %14697 = vmatprep.subr.bf16.mxu0 %v18984_v34  ;;  %v19015_v63 = vcombine.low %v6830_v12, %v6834_v16  ;;  %v7229_v34 = vld [vmem:[#allocation13 + $0x1490] sm:$0xff]  ;;  %v19047_v12 = vcombine.low %v6862_v40, %v6866_v17 }
 0x723   :  { %14451 = vmatprep.subr.bf16.mxu1 %v19366_v43  ;;  %v19024_v43 = vcombine.high %v6838_v22, %v6842_v9  ;;  %v19413_v15 = vcombine.low %v7229_v34, %v7233_v1 }
 0x725   :  { %14698 = vmatpush1.bf16.msra.mxu0 %v18983_v26  ;;  %v19414_v26 = vcombine.high %v7229_v34, %v7233_v1  ;;  %v6890_v34 = vld [vmem:[#allocation13 + $0x9f8] sm:$0xff] }
 0x726   :  { %14452 = vmatpush1.bf16.msra.mxu1 %v19365_v37  ;;  %14699 = vmatprep.subr.bf16.mxu0 %v18992_v14  ;;  %v19023_v37 = vcombine.low %v6838_v22, %v6842_v9  ;;  %v7237_v14 = vld [vmem:[#allocation13 + $0x14d0] sm:$0xff] }
 0x727   :  { %14453 = vmatprep.subr.bf16.mxu1 %v19374_v45  ;;  %v19032_v45 = vcombine.high %v6846_v28, %v6850_v31  ;;  %v19421_v41 = vcombine.low %v7237_v14, %v7241_v62 }
 0x729   :  { %14700 = vmatpush1.bf16.msra.mxu0 %v18991_v32  ;;  %v19040_v32 = vcombine.high %v6854_v46, %v6858_v58 }
 0x72a   :  { %14454 = vmatpush1.bf16.msra.mxu1 %v19373_v20  ;;  %14701 = vmatprep.subr.bf16.mxu0 %v19000_v23  ;;  %v19422_v20 = vcombine.high %v7237_v14, %v7241_v62  ;;  %v7249_v23 = vld [vmem:[#allocation13 + $0x1530] sm:$0xff]  ;;  %v6898_v14 = vld [vmem:[#allocation13 + $0xa38] sm:$0xff] }
 0x72b   :  { %14455 = vmatprep.subr.bf16.mxu1 %v19382_v38  ;;  %v7245_v38 = vld [vmem:[#allocation13 + $0x1510] sm:$0xff] }
 0x72c   :  { %v19429_v54 = vcombine.low %v7245_v38, %v7249_v23 }
 0x72d   :  { %14702 = vmatpush1.bf16.msra.mxu0 %v18999_v8  ;;  %v7253_v8 = vld [vmem:[#allocation13 + $0x1550] sm:$0xff] }
 0x72e   :  { %14456 = vmatpush1.bf16.msra.mxu1 %v19381_v56  ;;  %14703 = vmatprep.subr.bf16.mxu0 %v19008_v13  ;;  %v19430_v56 = vcombine.high %v7245_v38, %v7249_v23  ;;  %v6870_v13 = vld [vmem:[#allocation13 + $0x958] sm:$0xff] }
 0x72f   :  { %14457 = vmatprep.subr.bf16.mxu1 %v19390_v33  ;;  %v7257_v33 = vld [vmem:[#allocation13 + $0x1570] sm:$0xff]  ;;  %v19055_v22 = vcombine.low %v6870_v13, %v6874_v48  ;;  %v6906_v38 = vld [vmem:[#allocation13 + $0xa78] sm:$0xff] }
 0x730   :  { %v19438_v16 = vcombine.high %v7253_v8, %v7257_v33  ;;  %v19437_v18 = vcombine.low %v7253_v8, %v7257_v33  ;;  %v6914_v8 = vld [vmem:[#allocation13 + $0xab8] sm:$0xff] }
 0x731   :  { %14704 = vmatpush1.bf16.msra.mxu0 %v19007_v11  ;;  %v7261_v11 = vld [vmem:[#allocation13 + $0x1590] sm:$0xff] }
 0x732   :  { %14458 = vmatpush1.bf16.msra.mxu1 %v19389_v59  ;;  %14714 = vmatprep.subr.bf16.mxu0 %v19016_v53  ;;  %v19056_v59 = vcombine.high %v6870_v13, %v6874_v48  ;;  %v6878_v53 = vld [vmem:[#allocation13 + $0x998] sm:$0xff] }
 0x733   :  { %14468 = vmatprep.subr.bf16.mxu1 %v19398_v0  ;;  %v7265_v0 = vld [vmem:[#allocation13 + $0x15b0] sm:$0xff] }
 0x734   :  { %14706 = vmatmul.mubr.bf16.vlgmr.msra.gmra.mrb[64].mxu0 %v23053_v61  ;;  %v19031_v61 = vcombine.low %v6846_v28, %v6850_v31  ;;  %v19446_v9 = vcombine.high %v7261_v11, %v7265_v0  ;;  %v19445_v1 = vcombine.low %v7261_v11, %v7265_v0  ;;  %v19063_v28 = vcombine.low %v6878_v53, %v6882_v42  ;;  %v6922_v11 = vld [vmem:[#allocation13 + $0xaf8] sm:$0xff] }
 0x735   :  { %14460 = vmatmul.mubr.bf16.vlgmr.msra.gmra.mrb[52].mxu1 %v23109_v36  ;;  %14715 = vmatpush1.bf16.msra.mxu0 %v19015_v63  ;;  %v7269_v63 = vld [vmem:[#allocation13 + $0x15d0] sm:$0xff] }
 0x736   :  { %14469 = vmatpush1.bf16.msra.mxu1 %v19397_v6  ;;  %14716 = vmatprep.subr.bf16.mxu0 %v19024_v43  ;;  %v19064_v6 = vcombine.high %v6878_v53, %v6882_v42  ;;  %v6886_v43 = vld [vmem:[#allocation13 + $0x9d8] sm:$0xff] }
 0x737   :  { %14470 = vmatprep.subr.bf16.mxu1 %v19406_v39  ;;  %14500 = vmatprep.mubr.bf16.mxu1 %v23111_v25  ;;  %v7273_v39 = vld [vmem:[#allocation13 + $0x15f0] sm:$0xff]  ;;  %v19071_v46 = vcombine.low %v6886_v43, %v6890_v34 }
 0x738   :  { %14746 = vmatprep.mubr.bf16.mxu0 %v23055_v30  ;;  %v19048_v30 = vcombine.high %v6862_v40, %v6866_v17  ;;  %v19454_v31 = vcombine.high %v7269_v63, %v7273_v39  ;;  %v19453_v62 = vcombine.low %v7269_v63, %v7273_v39  ;;  %v6930_v63 = vld [vmem:[#allocation13 + $0xb38] sm:$0xff] }
 0x739   :  { %14717 = vmatpush1.bf16.msra.mxu0 %v19023_v37  ;;  %v7277_v37 = vld [vmem:[#allocation13 + $0x1610] sm:$0xff] }
 0x73a   :  { %14471 = vmatpush1.bf16.msra.mxu1 %v19405_v49  ;;  %14718 = vmatprep.subr.bf16.mxu0 %v19032_v45  ;;  %v19072_v49 = vcombine.high %v6886_v43, %v6890_v34  ;;  %v6894_v45 = vld [vmem:[#allocation13 + $0xa18] sm:$0xff] }
 0x73b   :  { %14472 = vmatprep.subr.bf16.mxu1 %v19414_v26  ;;  %v7281_v26 = vld [vmem:[#allocation13 + $0x1630] sm:$0xff]  ;;  %v19079_v40 = vcombine.low %v6894_v45, %v6898_v14 }
 0x73c   :  { %v19462_v58 = vcombine.high %v7277_v37, %v7281_v26  ;;  %v19461_v23 = vcombine.low %v7277_v37, %v7281_v26  ;;  %v6938_v37 = vld [vmem:[#allocation13 + $0xb78] sm:$0xff] }
 0x73d   :  { %14719 = vmatpush1.bf16.msra.mxu0 %v19031_v61  ;;  %v7285_v61 = vld [vmem:[#allocation13 + $0x1650] sm:$0xff] }
 0x73e   :  { %14473 = vmatpush1.bf16.msra.mxu1 %v19413_v15  ;;  %14720 = vmatprep.subr.bf16.mxu0 %v19040_v32  ;;  %v19080_v15 = vcombine.high %v6894_v45, %v6898_v14  ;;  %v6902_v32 = vld [vmem:[#allocation13 + $0xa58] sm:$0xff] }
 0x73f   :  { %14474 = vmatprep.subr.bf16.mxu1 %v19422_v20  ;;  %v7289_v20 = vld [vmem:[#allocation13 + $0x1670] sm:$0xff]  ;;  %v19087_v13 = vcombine.low %v6902_v32, %v6906_v38 }
 0x740   :  { %v19470_v17 = vcombine.high %v7285_v61, %v7289_v20  ;;  %v19469_v33 = vcombine.low %v7285_v61, %v7289_v20  ;;  %v6946_v61 = vld [vmem:[#allocation13 + $0xbb8] sm:$0xff] }
 0x741   :  { %14721 = vmatpush1.bf16.msra.mxu0 %v19039_v52  ;;  %v7293_v52 = vld [vmem:[#allocation13 + $0x1690] sm:$0xff] }
 0x742   :  { %14475 = vmatpush1.bf16.msra.mxu1 %v19421_v41  ;;  %14722 = vmatprep.subr.bf16.mxu0 %v19048_v30  ;;  %v19088_v41 = vcombine.high %v6902_v32, %v6906_v38  ;;  %v6910_v30 = vld [vmem:[#allocation13 + $0xa98] sm:$0xff] }
 0x743   :  { %14476 = vmatprep.subr.bf16.mxu1 %v19430_v56  ;;  %v7297_v56 = vld [vmem:[#allocation13 + $0x16b0] sm:$0xff]  ;;  %v19095_v53 = vcombine.low %v6910_v30, %v6914_v8 }
 0x744   :  { %v19478_v48 = vcombine.high %v7293_v52, %v7297_v56  ;;  %v19477_v0 = vcombine.low %v7293_v52, %v7297_v56  ;;  %v6954_v52 = vld [vmem:[#allocation13 + $0xbf8] sm:$0xff] }
 0x745   :  { %14723 = vmatpush1.bf16.msra.mxu0 %v19047_v12  ;;  %v7301_v12 = vld [vmem:[#allocation13 + $0x16d0] sm:$0xff] }
 0x746   :  { %14477 = vmatpush1.bf16.msra.mxu1 %v19429_v54  ;;  %14724 = vmatprep.subr.bf16.mxu0 %v19056_v59  ;;  %v19096_v54 = vcombine.high %v6910_v30, %v6914_v8  ;;  %v6918_v59 = vld [vmem:[#allocation13 + $0xad8] sm:$0xff] }
 0x747   :  { %14478 = vmatprep.subr.bf16.mxu1 %v19438_v16  ;;  %v7305_v16 = vld [vmem:[#allocation13 + $0x16f0] sm:$0xff]  ;;  %v19103_v43 = vcombine.low %v6918_v59, %v6922_v11 }
 0x748   :  { %v19486_v42 = vcombine.high %v7301_v12, %v7305_v16  ;;  %v19485_v39 = vcombine.low %v7301_v12, %v7305_v16  ;;  %v6962_v12 = vld [vmem:[#allocation13 + $0xc38] sm:$0xff] }
 0x749   :  { %14725 = vmatpush1.bf16.msra.mxu0 %v19055_v22  ;;  %v7309_v22 = vld [vmem:[#allocation13 + $0x1710] sm:$0xff] }
 0x74a   :  { %14479 = vmatpush1.bf16.msra.mxu1 %v19437_v18  ;;  %14726 = vmatprep.subr.bf16.mxu0 %v19064_v6  ;;  %v19104_v18 = vcombine.high %v6918_v59, %v6922_v11  ;;  %v6926_v6 = vld [vmem:[#allocation13 + $0xb18] sm:$0xff] }
 0x74b   :  { %14480 = vmatprep.subr.bf16.mxu1 %v19446_v9  ;;  %v7313_v9 = vld [vmem:[#allocation13 + $0x1730] sm:$0xff]  ;;  %v19111_v45 = vcombine.low %v6926_v6, %v6930_v63 }
 0x74c   :  { %v19494_v34 = vcombine.high %v7309_v22, %v7313_v9  ;;  %v19493_v26 = vcombine.low %v7309_v22, %v7313_v9  ;;  %v6970_v22 = vld [vmem:[#allocation13 + $0xc78] sm:$0xff] }
 0x74d   :  { %14727 = vmatpush1.bf16.msra.mxu0 %v19063_v28  ;;  %v7317_v28 = vld [vmem:[#allocation13 + $0x1750] sm:$0xff] }
 0x74e   :  { %14481 = vmatpush1.bf16.msra.mxu1 %v19445_v1  ;;  %14728 = vmatprep.subr.bf16.mxu0 %v19072_v49  ;;  %v19112_v1 = vcombine.high %v6926_v6, %v6930_v63  ;;  %v6934_v49 = vld [vmem:[#allocation13 + $0xb58] sm:$0xff] }
 0x74f   :  { %14482 = vmatprep.subr.bf16.mxu1 %v19454_v31  ;;  %v7321_v31 = vld [vmem:[#allocation13 + $0x1770] sm:$0xff]  ;;  %v19119_v32 = vcombine.low %v6934_v49, %v6938_v37 }
 0x750   :  { %v19502_v14 = vcombine.high %v7317_v28, %v7321_v31  ;;  %v19501_v20 = vcombine.low %v7317_v28, %v7321_v31  ;;  %v6978_v28 = vld [vmem:[#allocation13 + $0xcb8] sm:$0xff] }
 0x751   :  { %14729 = vmatpush1.bf16.msra.mxu0 %v19071_v46  ;;  %v7325_v46 = vld [vmem:[#allocation13 + $0x1790] sm:$0xff] }
 0x752   :  { %14483 = vmatpush1.bf16.msra.mxu1 %v19453_v62  ;;  %14730 = vmatprep.subr.bf16.mxu0 %v19080_v15  ;;  %v19120_v62 = vcombine.high %v6934_v49, %v6938_v37  ;;  %v6942_v15 = vld [vmem:[#allocation13 + $0xb98] sm:$0xff] }
 0x753   :  { %14484 = vmatprep.subr.bf16.mxu1 %v19462_v58  ;;  %v7329_v58 = vld [vmem:[#allocation13 + $0x17b0] sm:$0xff]  ;;  %v19127_v30 = vcombine.low %v6942_v15, %v6946_v61 }
 0x754   :  { %v19510_v38 = vcombine.high %v7325_v46, %v7329_v58  ;;  %v19509_v56 = vcombine.low %v7325_v46, %v7329_v58  ;;  %v6986_v46 = vld [vmem:[#allocation13 + $0xcf8] sm:$0xff] }
 0x755   :  { %14731 = vmatpush1.bf16.msra.mxu0 %v19079_v40  ;;  %v7333_v40 = vld [vmem:[#allocation13 + $0x17d0] sm:$0xff] }
 0x756   :  { %14485 = vmatpush1.bf16.msra.mxu1 %v19461_v23  ;;  %14732 = vmatprep.subr.bf16.mxu0 %v19088_v41  ;;  %v19128_v23 = vcombine.high %v6942_v15, %v6946_v61  ;;  %v6950_v41 = vld [vmem:[#allocation13 + $0xbd8] sm:$0xff] }
 0x757   :  { %14486 = vmatprep.subr.bf16.mxu1 %v19470_v17  ;;  %v7337_v17 = vld [vmem:[#allocation13 + $0x17f0] sm:$0xff]  ;;  %v19135_v59 = vcombine.low %v6950_v41, %v6954_v52 }
 0x758   :  { %v19518_v8 = vcombine.high %v7333_v40, %v7337_v17  ;;  %v19517_v16 = vcombine.low %v7333_v40, %v7337_v17 }
 0x759   :  { %14733 = vmatpush1.bf16.msra.mxu0 %v19087_v13  ;;  %v7341_v13 = vld [vmem:[#allocation13 + $0x1810] sm:$0xff] }
 0x75a   :  { %14487 = vmatpush1.bf16.msra.mxu1 %v19469_v33  ;;  %14734 = vmatprep.subr.bf16.mxu0 %v19096_v54  ;;  %v19136_v33 = vcombine.high %v6950_v41, %v6954_v52  ;;  %v6958_v54 = vld [vmem:[#allocation13 + $0xc18] sm:$0xff]  ;;  %v7381_v52 = vld [vmem:[#allocation13 + $0x1950] sm:$0xff] }
 0x75b   :  { %14488 = vmatprep.subr.bf16.mxu1 %v19478_v48  ;;  %v7345_v48 = vld [vmem:[#allocation13 + $0x1830] sm:$0xff]  ;;  %v19143_v6 = vcombine.low %v6958_v54, %v6962_v12 }
 0x75c   :  { %v19526_v11 = vcombine.high %v7341_v13, %v7345_v48  ;;  %v19525_v9 = vcombine.low %v7341_v13, %v7345_v48 }
 0x75d   :  { %14735 = vmatpush1.bf16.msra.mxu0 %v19095_v53  ;;  %v7349_v53 = vld [vmem:[#allocation13 + $0x1850] sm:$0xff] }
 0x75e   :  { %14489 = vmatpush1.bf16.msra.mxu1 %v19477_v0  ;;  %14736 = vmatprep.subr.bf16.mxu0 %v19104_v18  ;;  %v19144_v0 = vcombine.high %v6958_v54, %v6962_v12  ;;  %v6966_v18 = vld [vmem:[#allocation13 + $0xc58] sm:$0xff]  ;;  %v7389_v12 = vld [vmem:[#allocation13 + $0x1990] sm:$0xff] }
 0x75f   :  { %14490 = vmatprep.subr.bf16.mxu1 %v19486_v42  ;;  %v7353_v42 = vld [vmem:[#allocation13 + $0x1870] sm:$0xff]  ;;  %v19151_v49 = vcombine.low %v6966_v18, %v6970_v22 }
 0x760   :  { %v19534_v63 = vcombine.high %v7349_v53, %v7353_v42  ;;  %v19533_v31 = vcombine.low %v7349_v53, %v7353_v42 }
 0x761   :  { %14737 = vmatpush1.bf16.msra.mxu0 %v19103_v43  ;;  %v7357_v43 = vld [vmem:[#allocation13 + $0x1890] sm:$0xff] }
 0x762   :  { %14491 = vmatpush1.bf16.msra.mxu1 %v19485_v39  ;;  %14738 = vmatprep.subr.bf16.mxu0 %v19112_v1  ;;  %v19152_v39 = vcombine.high %v6966_v18, %v6970_v22  ;;  %v6974_v1 = vld [vmem:[#allocation13 + $0xc98] sm:$0xff]  ;;  %v7397_v22 = vld [vmem:[#allocation13 + $0x19d0] sm:$0xff] }
 0x763   :  { %14492 = vmatprep.subr.bf16.mxu1 %v19494_v34  ;;  %v7361_v34 = vld [vmem:[#allocation13 + $0x18b0] sm:$0xff] }
 0x764   :  { %v19542_v37 = vcombine.high %v7357_v43, %v7361_v34  ;;  %v19541_v58 = vcombine.low %v7357_v43, %v7361_v34 }
 0x765   :  { %14739 = vmatpush1.bf16.msra.mxu0 %v19111_v45  ;;  %v7365_v45 = vld [vmem:[#allocation13 + $0x18d0] sm:$0xff] }
 0x766   :  { %14493 = vmatpush1.bf16.msra.mxu1 %v19493_v26  ;;  %14740 = vmatprep.subr.bf16.mxu0 %v19120_v62  ;;  %v19160_v26 = vcombine.high %v6974_v1, %v6978_v28  ;;  %v6982_v62 = vld [vmem:[#allocation13 + $0xcd8] sm:$0xff] }
 0x767   :  { %14494 = vmatprep.subr.bf16.mxu1 %v19502_v14  ;;  %v7369_v14 = vld [vmem:[#allocation13 + $0x18f0] sm:$0xff]  ;;  %v19168_v61 = vcombine.high %v6982_v62, %v6986_v46  ;;  %v19167_v17 = vcombine.low %v6982_v62, %v6986_v46  ;;  %v7026_v62 = vld [vmem:[#allocation13 + $0xe38] sm:$0xff] }
 0x768   :  { %v19550_v15 = vcombine.high %v7365_v45, %v7369_v14  ;;  %v19549_v40 = vcombine.low %v7365_v45, %v7369_v14  ;;  %v7409_v45 = vld [vmem:[#allocation13 + $0x1a30] sm:$0xff]  ;;  %v7022_v14 = vld [vmem:[#allocation13 + $0xe18] sm:$0xff] }
 0x769   :  { %14741 = vmatpush1.bf16.msra.mxu0 %v19119_v32  ;;  %v7377_v32 = vld [vmem:[#allocation13 + $0x1930] sm:$0xff] }
 0x76a   :  { %14495 = vmatpush1.bf16.msra.mxu1 %v19501_v20  ;;  %14742 = vmatprep.subr.bf16.mxu0 %v19128_v23  ;;  %v7373_v20 = vld [vmem:[#allocation13 + $0x1910] sm:$0xff]  ;;  %v6994_v23 = vld [vmem:[#allocation13 + $0xd38] sm:$0xff] }
 0x76b   :  { %14496 = vmatprep.subr.bf16.mxu1 %v19510_v38  ;;  %v6990_v38 = vld [vmem:[#allocation13 + $0xd18] sm:$0xff]  ;;  %v19558_v41 = vcombine.high %v7373_v20, %v7377_v32 }
 0x76c   :  { %v19175_v13 = vcombine.low %v6990_v38, %v6994_v23 }
 0x76d   :  { %14743 = vmatpush1.bf16.msra.mxu0 %v19127_v30  ;;  %v6998_v30 = vld [vmem:[#allocation13 + $0xd58] sm:$0xff] }
 0x76e   :  { %14497 = vmatpush1.bf16.msra.mxu1 %v19509_v56  ;;  %14744 = vmatprep.subr.bf16.mxu0 %v19136_v33  ;;  %v7385_v56 = vld [vmem:[#allocation13 + $0x1970] sm:$0xff]  ;;  %v19557_v33 = vcombine.low %v7373_v20, %v7377_v32  ;;  %v7030_v32 = vld [vmem:[#allocation13 + $0xe58] sm:$0xff] }
 0x76f   :  { %14498 = vmatprep.subr.bf16.mxu1 %v19518_v8  ;;  %v7002_v8 = vld [vmem:[#allocation13 + $0xd78] sm:$0xff]  ;;  %v19566_v48 = vcombine.high %v7381_v52, %v7385_v56  ;;  %v7417_v20 = vld [vmem:[#allocation13 + $0x1a70] sm:$0xff] }
 0x770   :  { %v19184_v54 = vcombine.high %v6998_v30, %v7002_v8  ;;  %v19183_v53 = vcombine.low %v6998_v30, %v7002_v8  ;;  %v7042_v30 = vld [vmem:[#allocation13 + $0xeb8] sm:$0xff] }
 0x771   :  { %14745 = vmatpush1.bf16.msra.mxu0 %v19135_v59  ;;  %v7006_v59 = vld [vmem:[#allocation13 + $0xd98] sm:$0xff] }
 0x772   :  { %14499 = vmatpush1.bf16.msra.mxu1 %v19517_v16  ;;  %14755 = vmatprep.subr.bf16.mxu0 %v19144_v0  ;;  %v7393_v16 = vld [vmem:[#allocation13 + $0x19b0] sm:$0xff]  ;;  %v19565_v0 = vcombine.low %v7381_v52, %v7385_v56  ;;  %v7038_v56 = vld [vmem:[#allocation13 + $0xe98] sm:$0xff] }
 0x773   :  { %14509 = vmatprep.subr.bf16.mxu1 %v19526_v11  ;;  %v7010_v11 = vld [vmem:[#allocation13 + $0xdb8] sm:$0xff]  ;;  %v19574_v42 = vcombine.high %v7389_v12, %v7393_v16  ;;  %v7425_v52 = vld [vmem:[#allocation13 + $0x1ab0] sm:$0xff] }
 0x774   :  { %14747 = vmatmul.mubr.bf16.vlgmr.msra.gmra.mrb[64].mxu0 %v23071_v60  ;;  %v19159_v60 = vcombine.low %v6974_v1, %v6978_v28  ;;  %v19192_v18 = vcombine.high %v7006_v59, %v7010_v11  ;;  %v19573_v1 = vcombine.low %v7389_v12, %v7393_v16  ;;  %v19191_v28 = vcombine.low %v7006_v59, %v7010_v11  ;;  %v7433_v12 = vld [vmem:[#allocation13 + $0x1af0] sm:$0xff]  ;;  %v7046_v16 = vld [vmem:[#allocation13 + $0xed8] sm:$0xff] }
 0x775   :  { %14501 = vmatmul.mubr.bf16.vlgmr.msra.gmra.mrb[52].mxu1 %v23123_v50  ;;  %14756 = vmatpush1.bf16.msra.mxu0 %v19143_v6  ;;  %v7401_v6 = vld [vmem:[#allocation13 + $0x19f0] sm:$0xff]  ;;  %v7050_v59 = vld [vmem:[#allocation13 + $0xef8] sm:$0xff] }
 0x776   :  { %14510 = vmatpush1.bf16.msra.mxu1 %v19525_v9  ;;  %14757 = vmatprep.subr.bf16.mxu0 %v19152_v39  ;;  %v7018_v39 = vld [vmem:[#allocation13 + $0xdf8] sm:$0xff]  ;;  %v19581_v46 = vcombine.low %v7397_v22, %v7401_v6 }
 0x777   :  { %14511 = vmatprep.subr.bf16.mxu1 %v19534_v63  ;;  %14541 = vmatprep.mubr.bf16.mxu1 %v23125_v35  ;;  %v7014_v63 = vld [vmem:[#allocation13 + $0xdd8] sm:$0xff] }
 0x778   :  { %14787 = vmatprep.mubr.bf16.mxu0 %v23073_v51  ;;  %v19176_v51 = vcombine.high %v6990_v38, %v6994_v23  ;;  %v7034_v38 = vld [vmem:[#allocation13 + $0xe78] sm:$0xff] }
 0x779   :  { %14758 = vmatpush1.bf16.msra.mxu0 %v19151_v49  ;;  %v19582_v49 = vcombine.high %v7397_v22, %v7401_v6  ;;  %v7441_v22 = vld [vmem:[#allocation13 + $0x1b30] sm:$0xff]  ;;  %v7054_v6 = vld [vmem:[#allocation13 + $0xf18] sm:$0xff] }
 0x77a   :  { %14512 = vmatpush1.bf16.msra.mxu1 %v19533_v31  ;;  %14759 = vmatprep.subr.bf16.mxu0 %v19160_v26  ;;  %v7405_v26 = vld [vmem:[#allocation13 + $0x1a10] sm:$0xff] }
 0x77b   :  { %14513 = vmatprep.subr.bf16.mxu1 %v19542_v37  ;;  %v19200_v37 = vcombine.high %v7014_v63, %v7018_v39  ;;  %v19589_v23 = vcombine.low %v7405_v26, %v7409_v45 }
 0x77d   :  { %14760 = vmatpush1.bf16.msra.mxu0 %v19159_v60  ;;  %v19590_v60 = vcombine.high %v7405_v26, %v7409_v45  ;;  %v7066_v26 = vld [vmem:[#allocation13 + $0xf78] sm:$0xff] }
 0x77e   :  { %14514 = vmatpush1.bf16.msra.mxu1 %v19541_v58  ;;  %14761 = vmatprep.subr.bf16.mxu0 %v19168_v61  ;;  %v19199_v58 = vcombine.low %v7014_v63, %v7018_v39  ;;  %v7413_v61 = vld [vmem:[#allocation13 + $0x1a50] sm:$0xff]  ;;  %v7058_v63 = vld [vmem:[#allocation13 + $0xf38] sm:$0xff] }
 0x77f   :  { %14515 = vmatprep.subr.bf16.mxu1 %v19550_v15  ;;  %v19208_v15 = vcombine.high %v7022_v14, %v7026_v62  ;;  %v19597_v8 = vcombine.low %v7413_v61, %v7417_v20 }
 0x781   :  { %14762 = vmatpush1.bf16.msra.mxu0 %v19167_v17  ;;  %v19598_v17 = vcombine.high %v7413_v61, %v7417_v20  ;;  %v7074_v61 = vld [vmem:[#allocation13 + $0xfb8] sm:$0xff] }
 0x782   :  { %14516 = vmatpush1.bf16.msra.mxu1 %v19549_v40  ;;  %14763 = vmatprep.subr.bf16.mxu0 %v19176_v51  ;;  %v19207_v40 = vcombine.low %v7022_v14, %v7026_v62  ;;  %v7421_v51 = vld [vmem:[#allocation13 + $0x1a90] sm:$0xff]  ;;  %v19239_v14 = vcombine.low %v7054_v6, %v7058_v63 }
 0x783   :  { %14517 = vmatprep.subr.bf16.mxu1 %v19558_v41  ;;  %v19216_v41 = vcombine.high %v7030_v32, %v7034_v38  ;;  %v19605_v11 = vcombine.low %v7421_v51, %v7425_v52 }
 0x785   :  { %14764 = vmatpush1.bf16.msra.mxu0 %v19175_v13  ;;  %v19606_v13 = vcombine.high %v7421_v51, %v7425_v52  ;;  %v7082_v51 = vld [vmem:[#allocation13 + $0xff8] sm:$0xff] }
 0x786   :  { %14518 = vmatpush1.bf16.msra.mxu1 %v19557_v33  ;;  %14765 = vmatprep.subr.bf16.mxu0 %v19184_v54  ;;  %v19215_v33 = vcombine.low %v7030_v32, %v7034_v38  ;;  %v7429_v54 = vld [vmem:[#allocation13 + $0x1ad0] sm:$0xff] }
 0x787   :  { %14519 = vmatprep.subr.bf16.mxu1 %v19566_v48  ;;  %v23189_v9 = vpop.f32.mrb[60].mxu0  ;;  %v19224_v48 = vcombine.high %v7038_v56, %v7042_v30  ;;  %v19613_v39 = vcombine.low %v7429_v54, %v7433_v12 }
 0x788   :  { %v23191_v43 = vpop.f32.mrb[61].mxu0 }
 0x789   :  { %v14260_v34 = vpop.f32.mrb[62].mxu0  ;;  %14766 = vmatpush1.bf16.msra.mxu0 %v19183_v53  ;;  %v19614_v53 = vcombine.high %v7429_v54, %v7433_v12  ;;  %v7090_v54 = vld [vmem:[#allocation13 + $0x1038] sm:$0xff] }
 0x78a   :  { %14520 = vmatpush1.bf16.msra.mxu1 %v19565_v0  ;;  %v14261_v31 = vpop.f32.mrb[63].mxu0  ;;  %14767 = vmatprep.subr.bf16.mxu0 %v19192_v18  ;;  %v19223_v0 = vcombine.low %v7038_v56, %v7042_v30  ;;  %v7437_v18 = vld [vmem:[#allocation13 + $0x1b10] sm:$0xff]  ;;  %v19231_v34 = vcombine.low %v7046_v16, %v7050_v59 }
 0x78b   :  { %14521 = vmatprep.subr.bf16.mxu1 %v19574_v42  ;;  %v19232_v42 = vcombine.high %v7046_v16, %v7050_v59  ;;  %v7445_v31 = vld [vmem:[#allocation13 + $0x1b50] sm:$0xff]  ;;  %v19621_v45 = vcombine.low %v7437_v18, %v7441_v22 }
 0x78d   :  { %14768 = vmatpush1.bf16.msra.mxu0 %v19191_v28  ;;  %v19240_v28 = vcombine.high %v7054_v6, %v7058_v63 }
 0x78e   :  { %14522 = vmatpush1.bf16.msra.mxu1 %v19573_v1  ;;  %14769 = vmatprep.subr.bf16.mxu0 %v19200_v37  ;;  %v19622_v1 = vcombine.high %v7437_v18, %v7441_v22  ;;  %v7062_v37 = vld [vmem:[#allocation13 + $0xf58] sm:$0xff] }
 0x78f   :  { %14523 = vmatprep.subr.bf16.mxu1 %v19582_v49  ;;  %v7449_v49 = vld [vmem:[#allocation13 + $0x1b70] sm:$0xff]  ;;  %v19247_v32 = vcombine.low %v7062_v37, %v7066_v26  ;;  %v7098_v18 = vld [vmem:[#allocation13 + $0x1078] sm:$0xff] }
 0x790   :  { %v19630_v62 = vcombine.high %v7445_v31, %v7449_v49  ;;  %v19629_v20 = vcombine.low %v7445_v31, %v7449_v49  ;;  %v7106_v31 = vld [vmem:[#allocation13 + $0x10b8] sm:$0xff] }
 0x791   :  { %14770 = vmatpush1.bf16.msra.mxu0 %v19199_v58  ;;  %v7453_v58 = vld [vmem:[#allocation13 + $0x1b90] sm:$0xff] }
 0x792   :  { %14524 = vmatpush1.bf16.msra.mxu1 %v19581_v46  ;;  %14771 = vmatprep.subr.bf16.mxu0 %v19208_v15  ;;  %v19248_v46 = vcombine.high %v7062_v37, %v7066_v26  ;;  %v7070_v15 = vld [vmem:[#allocation13 + $0xf98] sm:$0xff] }
 0x793   :  { %14525 = vmatprep.subr.bf16.mxu1 %v19590_v60  ;;  %v7457_v60 = vld [vmem:[#allocation13 + $0x1bb0] sm:$0xff]  ;;  %v19255_v56 = vcombine.low %v7070_v15, %v7074_v61 }
 0x794   :  { %v19638_v38 = vcombine.high %v7453_v58, %v7457_v60  ;;  %v19637_v52 = vcombine.low %v7453_v58, %v7457_v60  ;;  %v7114_v58 = vld [vmem:[#allocation13 + $0x10f8] sm:$0xff] }
 0x795   :  { %14772 = vmatpush1.bf16.msra.mxu0 %v19207_v40  ;;  %v7461_v40 = vld [vmem:[#allocation13 + $0x1bd0] sm:$0xff] }
 0x796   :  { %14526 = vmatpush1.bf16.msra.mxu1 %v19589_v23  ;;  %14773 = vmatprep.subr.bf16.mxu0 %v19216_v41  ;;  %v19256_v23 = vcombine.high %v7070_v15, %v7074_v61  ;;  %v7078_v41 = vld [vmem:[#allocation13 + $0xfd8] sm:$0xff] }
 0x797   :  { %14527 = vmatprep.subr.bf16.mxu1 %v19598_v17  ;;  %v7465_v17 = vld [vmem:[#allocation13 + $0x1bf0] sm:$0xff]  ;;  %v19263_v16 = vcombine.low %v7078_v41, %v7082_v51 }
 0x798   :  { %v19646_v30 = vcombine.high %v7461_v40, %v7465_v17  ;;  %v19645_v12 = vcombine.low %v7461_v40, %v7465_v17 }
 0x799   :  { %14774 = vmatpush1.bf16.msra.mxu0 %v19215_v33  ;;  %v7469_v33 = vld [vmem:[#allocation13 + $0x1c10] sm:$0xff] }
 0x79a   :  { %14528 = vmatpush1.bf16.msra.mxu1 %v19597_v8  ;;  %14775 = vmatprep.subr.bf16.mxu0 %v19224_v48  ;;  %v19264_v8 = vcombine.high %v7078_v41, %v7082_v51  ;;  %v7086_v48 = vld [vmem:[#allocation13 + $0x1018] sm:$0xff]  ;;  %v7509_v51 = vld [vmem:[#allocation13 + $0x1d50] sm:$0xff] }
 0x79b   :  { %14529 = vmatprep.subr.bf16.mxu1 %v19606_v13  ;;  %v7473_v13 = vld [vmem:[#allocation13 + $0x1c30] sm:$0xff]  ;;  %v19271_v6 = vcombine.low %v7086_v48, %v7090_v54 }
 0x79c   :  { %v19654_v59 = vcombine.high %v7469_v33, %v7473_v13  ;;  %v19653_v22 = vcombine.low %v7469_v33, %v7473_v13 }
 0x79d   :  { %14776 = vmatpush1.bf16.msra.mxu0 %v19223_v0  ;;  %v7477_v0 = vld [vmem:[#allocation13 + $0x1c50] sm:$0xff] }
 0x79e   :  { %14530 = vmatpush1.bf16.msra.mxu1 %v19605_v11  ;;  %14777 = vmatprep.subr.bf16.mxu0 %v19232_v42  ;;  %v19272_v11 = vcombine.high %v7086_v48, %v7090_v54  ;;  %v7094_v42 = vld [vmem:[#allocation13 + $0x1058] sm:$0xff]  ;;  %v7517_v54 = vld [vmem:[#allocation13 + $0x1d90] sm:$0xff] }
 0x79f   :  { %14531 = vmatprep.subr.bf16.mxu1 %v19614_v53  ;;  %v7481_v53 = vld [vmem:[#allocation13 + $0x1c70] sm:$0xff]  ;;  %v19279_v37 = vcombine.low %v7094_v42, %v7098_v18 }
 0x7a0   :  { %v19662_v63 = vcombine.high %v7477_v0, %v7481_v53  ;;  %v19661_v49 = vcombine.low %v7477_v0, %v7481_v53 }
 0x7a1   :  { %14778 = vmatpush1.bf16.msra.mxu0 %v19231_v34  ;;  %v7485_v34 = vld [vmem:[#allocation13 + $0x1c90] sm:$0xff] }
 0x7a2   :  { %14532 = vmatpush1.bf16.msra.mxu1 %v19613_v39  ;;  %14779 = vmatprep.subr.bf16.mxu0 %v19240_v28  ;;  %v19280_v39 = vcombine.high %v7094_v42, %v7098_v18  ;;  %v7102_v28 = vld [vmem:[#allocation13 + $0x1098] sm:$0xff]  ;;  %v7525_v18 = vld [vmem:[#allocation13 + $0x1dd0] sm:$0xff] }
 0x7a3   :  { %14533 = vmatprep.subr.bf16.mxu1 %v19622_v1  ;;  %v7489_v1 = vld [vmem:[#allocation13 + $0x1cb0] sm:$0xff] }
 0x7a4   :  { %v19670_v26 = vcombine.high %v7485_v34, %v7489_v1  ;;  %v19669_v60 = vcombine.low %v7485_v34, %v7489_v1 }
 0x7a5   :  { %14780 = vmatpush1.bf16.msra.mxu0 %v19239_v14  ;;  %v7493_v14 = vld [vmem:[#allocation13 + $0x1cd0] sm:$0xff] }
 0x7a6   :  { %14534 = vmatpush1.bf16.msra.mxu1 %v19621_v45  ;;  %14781 = vmatprep.subr.bf16.mxu0 %v19248_v46  ;;  %v19288_v45 = vcombine.high %v7102_v28, %v7106_v31  ;;  %v7110_v46 = vld [vmem:[#allocation13 + $0x10d8] sm:$0xff] }
 0x7a7   :  { %14535 = vmatprep.subr.bf16.mxu1 %v19630_v62  ;;  %v7497_v62 = vld [vmem:[#allocation13 + $0x1cf0] sm:$0xff]  ;;  %v19296_v61 = vcombine.high %v7110_v46, %v7114_v58  ;;  %v19295_v17 = vcombine.low %v7110_v46, %v7114_v58 }
 0x7a8   :  { %v19678_v15 = vcombine.high %v7493_v14, %v7497_v62  ;;  %v19677_v40 = vcombine.low %v7493_v14, %v7497_v62  ;;  %v7541_v58 = vld [vmem:[#allocation13 + $0x1e50] sm:$0xff] }
 0x7a9   :  { %14782 = vmatpush1.bf16.msra.mxu0 %v19247_v32  ;;  %v7505_v32 = vld [vmem:[#allocation13 + $0x1d30] sm:$0xff] }
 0x7aa   :  { %14536 = vmatpush1.bf16.msra.mxu1 %v19629_v20  ;;  %14783 = vmatprep.subr.bf16.mxu0 %v19256_v23  ;;  %v7501_v20 = vld [vmem:[#allocation13 + $0x1d10] sm:$0xff]  ;;  %v7122_v23 = vld [vmem:[#allocation13 + $0x1138] sm:$0xff] }
 0x7ab   :  { %14537 = vmatprep.subr.bf16.mxu1 %v19638_v38  ;;  %v7118_v38 = vld [vmem:[#allocation13 + $0x1118] sm:$0xff]  ;;  %v19686_v41 = vcombine.high %v7501_v20, %v7505_v32 }
 0x7ac   :  { %v19303_v33 = vcombine.low %v7118_v38, %v7122_v23 }
 0x7ad   :  { %14784 = vmatpush1.bf16.msra.mxu0 %v19255_v56  ;;  %v7126_v56 = vld [vmem:[#allocation13 + $0x1158] sm:$0xff] }
 0x7ae   :  { %14538 = vmatpush1.bf16.msra.mxu1 %v19637_v52  ;;  %14785 = vmatprep.subr.bf16.mxu0 %v19264_v8  ;;  %v7513_v52 = vld [vmem:[#allocation13 + $0x1d70] sm:$0xff]  ;;  %v19685_v8 = vcombine.low %v7501_v20, %v7505_v32 }
 0x7af   :  { %14539 = vmatprep.subr.bf16.mxu1 %v19646_v30  ;;  %v7130_v30 = vld [vmem:[#allocation13 + $0x1178] sm:$0xff]  ;;  %v19694_v13 = vcombine.high %v7509_v51, %v7513_v52 }
 0x7b0   :  { %v19312_v48 = vcombine.high %v7126_v56, %v7130_v30  ;;  %v19311_v0 = vcombine.low %v7126_v56, %v7130_v30  ;;  %v7557_v30 = vld [vmem:[#allocation13 + $0x1ed0] sm:$0xff] }
 0x7b1   :  { %14786 = vmatpush1.bf16.msra.mxu0 %v19263_v16  ;;  %v7134_v16 = vld [vmem:[#allocation13 + $0x1198] sm:$0xff] }
 0x7b2   :  { %14540 = vmatpush1.bf16.msra.mxu1 %v19645_v12  ;;  %14796 = vmatprep.subr.bf16.mxu0 %v19272_v11  ;;  %v7521_v12 = vld [vmem:[#allocation13 + $0x1db0] sm:$0xff]  ;;  %v19693_v11 = vcombine.low %v7509_v51, %v7513_v52 }
 0x7b3   :  { %14550 = vmatprep.subr.bf16.mxu1 %v19654_v59  ;;  %v7138_v59 = vld [vmem:[#allocation13 + $0x11b8] sm:$0xff]  ;;  %v19702_v53 = vcombine.high %v7517_v54, %v7521_v12 }
 0x7b4   :  { %14788 = vmatmul.mubr.bf16.vlgmr.msra.gmra.mrb[64].mxu0 %v23091_v55  ;;  %v19287_v55 = vcombine.low %v7102_v28, %v7106_v31  ;;  %v19320_v42 = vcombine.high %v7134_v16, %v7138_v59  ;;  %v19319_v34 = vcombine.low %v7134_v16, %v7138_v59  ;;  %v7533_v31 = vld [vmem:[#allocation13 + $0x1e10] sm:$0xff] }
 0x7b5   :  { %14542 = vmatmul.mubr.bf16.vlgmr.msra.gmra.mrb[52].mxu1 %v23139_v27  ;;  %14797 = vmatpush1.bf16.msra.mxu0 %v19271_v6  ;;  %v7142_v6 = vld [vmem:[#allocation13 + $0x11d8] sm:$0xff]  ;;  %v7565_v59 = vld [vmem:[#allocation13 + $0x1f10] sm:$0xff] }
 0x7b6   :  { %14551 = vmatpush1.bf16.msra.mxu1 %v19653_v22  ;;  %14798 = vmatprep.subr.bf16.mxu0 %v19280_v39  ;;  %v7529_v22 = vld [vmem:[#allocation13 + $0x1df0] sm:$0xff]  ;;  %v19701_v39 = vcombine.low %v7517_v54, %v7521_v12 }
 0x7b7   :  { %14552 = vmatprep.subr.bf16.mxu1 %v19662_v63  ;;  %14582 = vmatprep.mubr.bf16.mxu1 %v23141_v21  ;;  %v7146_v63 = vld [vmem:[#allocation13 + $0x11f8] sm:$0xff]  ;;  %v19710_v1 = vcombine.high %v7525_v18, %v7529_v22 }
 0x7b8   :  { %14828 = vmatprep.mubr.bf16.mxu0 %v23093_v7  ;;  %v19304_v7 = vcombine.high %v7118_v38, %v7122_v23  ;;  %v19328_v28 = vcombine.high %v7142_v6, %v7146_v63  ;;  %v19327_v14 = vcombine.low %v7142_v6, %v7146_v63  ;;  %v7549_v23 = vld [vmem:[#allocation13 + $0x1e90] sm:$0xff] }
 0x7b9   :  { %14799 = vmatpush1.bf16.msra.mxu0 %v19279_v37  ;;  %v7150_v37 = vld [vmem:[#allocation13 + $0x1218] sm:$0xff]  ;;  %v7573_v63 = vld [vmem:[#allocation13 + $0x1f50] sm:$0xff] }
 0x7ba   :  { %14553 = vmatpush1.bf16.msra.mxu1 %v19661_v49  ;;  %14800 = vmatprep.subr.bf16.mxu0 %v19288_v45  ;;  %v7537_v49 = vld [vmem:[#allocation13 + $0x1e30] sm:$0xff]  ;;  %v19709_v45 = vcombine.low %v7525_v18, %v7529_v22 }
 0x7bb   :  { %14554 = vmatprep.subr.bf16.mxu1 %v19670_v26  ;;  %v7154_v26 = vld [vmem:[#allocation13 + $0x1238] sm:$0xff]  ;;  %v19718_v62 = vcombine.high %v7533_v31, %v7537_v49 }
 0x7bc   :  { %v19336_v46 = vcombine.high %v7150_v37, %v7154_v26  ;;  %v19335_v20 = vcombine.low %v7150_v37, %v7154_v26  ;;  %v7581_v26 = vld [vmem:[#allocation13 + $0x1f90] sm:$0xff] }
 0x7bd   :  { %14801 = vmatpush1.bf16.msra.mxu0 %v19287_v55  ;;  %v7158_v55 = vld [vmem:[#allocation13 + $0x1258] sm:$0xff] }
 0x7be   :  { %14555 = vmatpush1.bf16.msra.mxu1 %v19669_v60  ;;  %14802 = vmatprep.subr.bf16.mxu0 %v19296_v61  ;;  %v7545_v60 = vld [vmem:[#allocation13 + $0x1e70] sm:$0xff]  ;;  %v19717_v61 = vcombine.low %v7533_v31, %v7537_v49 }
 0x7bf   :  { %14556 = vmatprep.subr.bf16.mxu1 %v19678_v15  ;;  %v7162_v15 = vld [vmem:[#allocation13 + $0x1278] sm:$0xff]  ;;  %v19726_v32 = vcombine.high %v7541_v58, %v7545_v60 }
 0x7c0   :  { %v19344_v38 = vcombine.high %v7158_v55, %v7162_v15  ;;  %v19343_v51 = vcombine.low %v7158_v55, %v7162_v15  ;;  %v7589_v15 = vld [vmem:[#allocation13 + $0x1fd0] sm:$0xff] }
 0x7c1   :  { %14803 = vmatpush1.bf16.msra.mxu0 %v19295_v17  ;;  %v7166_v17 = vld [vmem:[#allocation13 + $0x1298] sm:$0xff] }
 0x7c2   :  { %14557 = vmatpush1.bf16.msra.mxu1 %v19677_v40  ;;  %14804 = vmatprep.subr.bf16.mxu0 %v19304_v7  ;;  %v7553_v40 = vld [vmem:[#allocation13 + $0x1eb0] sm:$0xff]  ;;  %v19725_v7 = vcombine.low %v7541_v58, %v7545_v60 }
 0x7c3   :  { %14558 = vmatprep.subr.bf16.mxu1 %v19686_v41  ;;  %v7170_v41 = vld [vmem:[#allocation13 + $0x12b8] sm:$0xff]  ;;  %v19734_v52 = vcombine.high %v7549_v23, %v7553_v40 }
 0x7c4   :  { %v19352_v56 = vcombine.high %v7166_v17, %v7170_v41  ;;  %v19351_v54 = vcombine.low %v7166_v17, %v7170_v41  ;;  %v7597_v41 = vld [vmem:[#allocation13 + $0x2010] sm:$0xff] }
 0x7c5   :  { %14805 = vmatpush1.bf16.msra.mxu0 %v19303_v33  ;;  %v7174_v33 = vld [vmem:[#allocation13 + $0x12d8] sm:$0xff] }
 0x7c6   :  { %14559 = vmatpush1.bf16.msra.mxu1 %v19685_v8  ;;  %14806 = vmatprep.subr.bf16.mxu0 %v19312_v48  ;;  %v7561_v8 = vld [vmem:[#allocation13 + $0x1ef0] sm:$0xff]  ;;  %v19733_v48 = vcombine.low %v7549_v23, %v7553_v40 }
 0x7c7   :  { %14560 = vmatprep.subr.bf16.mxu1 %v19694_v13  ;;  %v7178_v13 = vld [vmem:[#allocation13 + $0x12f8] sm:$0xff]  ;;  %v19742_v12 = vcombine.high %v7557_v30, %v7561_v8 }
 0x7c8   :  { %v19360_v16 = vcombine.high %v7174_v33, %v7178_v13  ;;  %v19359_v18 = vcombine.low %v7174_v33, %v7178_v13  ;;  %v7605_v13 = vld [vmem:[#allocation13 + $0x2050] sm:$0xff] }
 0x7c9   :  { %14807 = vmatpush1.bf16.msra.mxu0 %v19311_v0  ;;  %v7182_v0 = vld [vmem:[#allocation13 + $0x1318] sm:$0xff] }
 0x7ca   :  { %14561 = vmatpush1.bf16.msra.mxu1 %v19693_v11  ;;  %14808 = vmatprep.subr.bf16.mxu0 %v19320_v42  ;;  %v7569_v11 = vld [vmem:[#allocation13 + $0x1f30] sm:$0xff]  ;;  %v19741_v42 = vcombine.low %v7557_v30, %v7561_v8 }
 0x7cb   :  { %14562 = vmatprep.subr.bf16.mxu1 %v19702_v53  ;;  %v7186_v53 = vld [vmem:[#allocation13 + $0x1338] sm:$0xff]  ;;  %v19750_v22 = vcombine.high %v7565_v59, %v7569_v11 }
 0x7cc   :  { %v19368_v6 = vcombine.high %v7182_v0, %v7186_v53  ;;  %v19367_v31 = vcombine.low %v7182_v0, %v7186_v53  ;;  %v7613_v53 = vld [vmem:[#allocation13 + $0x2090] sm:$0xff] }
 0x7cd   :  { %14809 = vmatpush1.bf16.msra.mxu0 %v19319_v34  ;;  %v7190_v34 = vld [vmem:[#allocation13 + $0x1358] sm:$0xff] }
 0x7ce   :  { %14563 = vmatpush1.bf16.msra.mxu1 %v19701_v39  ;;  %14810 = vmatprep.subr.bf16.mxu0 %v19328_v28  ;;  %v7577_v39 = vld [vmem:[#allocation13 + $0x1f70] sm:$0xff]  ;;  %v19749_v28 = vcombine.low %v7565_v59, %v7569_v11 }
 0x7cf   :  { %14564 = vmatprep.subr.bf16.mxu1 %v19710_v1  ;;  %v7194_v1 = vld [vmem:[#allocation13 + $0x1378] sm:$0xff]  ;;  %v19758_v49 = vcombine.high %v7573_v63, %v7577_v39 }
 0x7d0   :  { %v19376_v37 = vcombine.high %v7190_v34, %v7194_v1  ;;  %v19375_v58 = vcombine.low %v7190_v34, %v7194_v1  ;;  %v7621_v1 = vld [vmem:[#allocation13 + $0x20d0] sm:$0xff] }
 0x7d1   :  { %14811 = vmatpush1.bf16.msra.mxu0 %v19327_v14  ;;  %v7198_v14 = vld [vmem:[#allocation13 + $0x1398] sm:$0xff] }
 0x7d2   :  { %14565 = vmatpush1.bf16.msra.mxu1 %v19709_v45  ;;  %14812 = vmatprep.subr.bf16.mxu0 %v19336_v46  ;;  %v7585_v45 = vld [vmem:[#allocation13 + $0x1fb0] sm:$0xff]  ;;  %v19757_v46 = vcombine.low %v7573_v63, %v7577_v39 }
 0x7d3   :  { %14566 = vmatprep.subr.bf16.mxu1 %v19718_v62  ;;  %v7202_v62 = vld [vmem:[#allocation13 + $0x13b8] sm:$0xff]  ;;  %v19766_v60 = vcombine.high %v7581_v26, %v7585_v45 }
 0x7d4   :  { %v19384_v55 = vcombine.high %v7198_v14, %v7202_v62  ;;  %v19383_v23 = vcombine.low %v7198_v14, %v7202_v62  ;;  %v7629_v14 = vld [vmem:[#allocation13 + $0x2110] sm:$0xff] }
 0x7d5   :  { %14813 = vmatpush1.bf16.msra.mxu0 %v19335_v20  ;;  %v7206_v20 = vld [vmem:[#allocation13 + $0x13d8] sm:$0xff]  ;;  %v7633_v62 = vld [vmem:[#allocation13 + $0x2130] sm:$0xff] }
 0x7d6   :  { %14567 = vmatpush1.bf16.msra.mxu1 %v19717_v61  ;;  %14814 = vmatprep.subr.bf16.mxu0 %v19344_v38  ;;  %v7593_v61 = vld [vmem:[#allocation13 + $0x1ff0] sm:$0xff]  ;;  %v19765_v38 = vcombine.low %v7581_v26, %v7585_v45 }
 0x7d7   :  { %14568 = vmatprep.subr.bf16.mxu1 %v19726_v32  ;;  %v7210_v32 = vld [vmem:[#allocation13 + $0x13f8] sm:$0xff]  ;;  %v19774_v40 = vcombine.high %v7589_v15, %v7593_v61 }
 0x7d8   :  { %v19392_v17 = vcombine.high %v7206_v20, %v7210_v32  ;;  %v19391_v30 = vcombine.low %v7206_v20, %v7210_v32  ;;  %v7641_v20 = vld [vmem:[#allocation13 + $0x2170] sm:$0xff]  ;;  %v7254_v32 = vld [vmem:[#allocation13 + $0x1558] sm:$0xff] }
 0x7d9   :  { %14815 = vmatpush1.bf16.msra.mxu0 %v19343_v51  ;;  %v7214_v51 = vld [vmem:[#allocation13 + $0x1418] sm:$0xff] }
 0x7da   :  { %14569 = vmatpush1.bf16.msra.mxu1 %v19725_v7  ;;  %14816 = vmatprep.subr.bf16.mxu0 %v19352_v56  ;;  %v7601_v7 = vld [vmem:[#allocation13 + $0x2030] sm:$0xff]  ;;  %v19773_v56 = vcombine.low %v7589_v15, %v7593_v61  ;;  %v19814_v15 = vcombine.high %v7629_v14, %v7633_v62 }
 0x7db   :  { %14570 = vmatprep.subr.bf16.mxu1 %v19734_v52  ;;  %v7218_v52 = vld [vmem:[#allocation13 + $0x1438] sm:$0xff]  ;;  %v19782_v8 = vcombine.high %v7597_v41, %v7601_v7  ;;  %v7637_v61 = vld [vmem:[#allocation13 + $0x2150] sm:$0xff] }
 0x7dc   :  { %v19400_v33 = vcombine.high %v7214_v51, %v7218_v52  ;;  %v19399_v59 = vcombine.low %v7214_v51, %v7218_v52  ;;  %v7649_v51 = vld [vmem:[#allocation13 + $0x21b0] sm:$0xff]  ;;  %v7262_v52 = vld [vmem:[#allocation13 + $0x1598] sm:$0xff] }
 0x7dd   :  { %14817 = vmatpush1.bf16.msra.mxu0 %v19351_v54  ;;  %v7222_v54 = vld [vmem:[#allocation13 + $0x1458] sm:$0xff] }
 0x7de   :  { %14571 = vmatpush1.bf16.msra.mxu1 %v19733_v48  ;;  %14818 = vmatprep.subr.bf16.mxu0 %v19360_v16  ;;  %v7609_v48 = vld [vmem:[#allocation13 + $0x2070] sm:$0xff]  ;;  %v19781_v16 = vcombine.low %v7597_v41, %v7601_v7 }
 0x7df   :  { %14572 = vmatprep.subr.bf16.mxu1 %v19742_v12  ;;  %v7226_v12 = vld [vmem:[#allocation13 + $0x1478] sm:$0xff]  ;;  %v19790_v11 = vcombine.high %v7605_v13, %v7609_v48  ;;  %v7645_v7 = vld [vmem:[#allocation13 + $0x2190] sm:$0xff] }
 0x7e0   :  { %v19408_v0 = vcombine.high %v7222_v54, %v7226_v12  ;;  %v19407_v63 = vcombine.low %v7222_v54, %v7226_v12  ;;  %v7657_v54 = vld [vmem:[#allocation13 + $0x21f0] sm:$0xff]  ;;  %v7270_v12 = vld [vmem:[#allocation13 + $0x15d8] sm:$0xff] }
 0x7e1   :  { %14819 = vmatpush1.bf16.msra.mxu0 %v19359_v18  ;;  %v7230_v18 = vld [vmem:[#allocation13 + $0x1498] sm:$0xff] }
 0x7e2   :  { %14573 = vmatpush1.bf16.msra.mxu1 %v19741_v42  ;;  %14820 = vmatprep.subr.bf16.mxu0 %v19368_v6  ;;  %v7617_v42 = vld [vmem:[#allocation13 + $0x20b0] sm:$0xff]  ;;  %v19789_v6 = vcombine.low %v7605_v13, %v7609_v48 }
 0x7e3   :  { %14574 = vmatprep.subr.bf16.mxu1 %v19750_v22  ;;  %v7234_v22 = vld [vmem:[#allocation13 + $0x14b8] sm:$0xff]  ;;  %v19798_v39 = vcombine.high %v7613_v53, %v7617_v42  ;;  %v7653_v48 = vld [vmem:[#allocation13 + $0x21d0] sm:$0xff] }
 0x7e4   :  { %v19416_v34 = vcombine.high %v7230_v18, %v7234_v22 }
 0x7e5   :  { %14821 = vmatpush1.bf16.msra.mxu0 %v19367_v31  ;;  %v7238_v31 = vld [vmem:[#allocation13 + $0x14d8] sm:$0xff] }
 0x7e6   :  { %14575 = vmatpush1.bf16.msra.mxu1 %v19749_v28  ;;  %14822 = vmatprep.subr.bf16.mxu0 %v19376_v37  ;;  %v7625_v28 = vld [vmem:[#allocation13 + $0x20f0] sm:$0xff]  ;;  %v19797_v37 = vcombine.low %v7613_v53, %v7617_v42 }
 0x7e7   :  { %14576 = vmatprep.subr.bf16.mxu1 %v19758_v49  ;;  %v7242_v49 = vld [vmem:[#allocation13 + $0x14f8] sm:$0xff]  ;;  %v19806_v26 = vcombine.high %v7621_v1, %v7625_v28  ;;  %v7661_v42 = vld [vmem:[#allocation13 + $0x2210] sm:$0xff] }
 0x7e8   :  { %v19424_v45 = vcombine.high %v7238_v31, %v7242_v49 }
 0x7e9   :  { %14823 = vmatpush1.bf16.msra.mxu0 %v19375_v58  ;;  %v7250_v58 = vld [vmem:[#allocation13 + $0x1538] sm:$0xff] }
 0x7ea   :  { %14577 = vmatpush1.bf16.msra.mxu1 %v19757_v46  ;;  %14824 = vmatprep.subr.bf16.mxu0 %v19384_v55  ;;  %v7246_v46 = vld [vmem:[#allocation13 + $0x1518] sm:$0xff]  ;;  %v19423_v55 = vcombine.low %v7238_v31, %v7242_v49  ;;  %v7673_v31 = vld [vmem:[#allocation13 + $0x2270] sm:$0xff] }
 0x7eb   :  { %14578 = vmatprep.subr.bf16.mxu1 %v19766_v60  ;;  %v19805_v60 = vcombine.low %v7621_v1, %v7625_v28  ;;  %v7669_v28 = vld [vmem:[#allocation13 + $0x2250] sm:$0xff]  ;;  %v7286_v49 = vld [vmem:[#allocation13 + $0x1658] sm:$0xff] }
 0x7ed   :  { %14825 = vmatpush1.bf16.msra.mxu0 %v19383_v23  ;;  %v19813_v23 = vcombine.low %v7629_v14, %v7633_v62  ;;  %v7677_v62 = vld [vmem:[#allocation13 + $0x2290] sm:$0xff] }
 0x7ee   :  { %14579 = vmatpush1.bf16.msra.mxu1 %v19765_v38  ;;  %14826 = vmatprep.subr.bf16.mxu0 %v19392_v17  ;;  %v7258_v38 = vld [vmem:[#allocation13 + $0x1578] sm:$0xff]  ;;  %v19822_v17 = vcombine.high %v7637_v61, %v7641_v20 }
 0x7ef   :  { %14580 = vmatprep.subr.bf16.mxu1 %v19774_v40  ;;  %v19431_v40 = vcombine.low %v7246_v46, %v7250_v58  ;;  %v19440_v41 = vcombine.high %v7254_v32, %v7258_v38 }
 0x7f1   :  { %14827 = vmatpush1.bf16.msra.mxu0 %v19391_v30  ;;  %v19821_v30 = vcombine.low %v7637_v61, %v7641_v20 }
 0x7f2   :  { %14581 = vmatpush1.bf16.msra.mxu1 %v19773_v56  ;;  %14837 = vmatprep.subr.bf16.mxu0 %v19400_v33  ;;  %v7266_v56 = vld [vmem:[#allocation13 + $0x15b8] sm:$0xff]  ;;  %v19830_v33 = vcombine.high %v7645_v7, %v7649_v51 }
 0x7f3   :  { %14591 = vmatprep.subr.bf16.mxu1 %v19782_v8  ;;  %v19439_v8 = vcombine.low %v7254_v32, %v7258_v38  ;;  %v19448_v13 = vcombine.high %v7262_v52, %v7266_v56  ;;  %v7685_v32 = vld [vmem:[#allocation13 + $0x22d0] sm:$0xff] }
 0x7f4   :  { %14829 = vmatmul.mubr.bf16.vlgmr.msra.gmra.mrb[64].mxu0 %v23109_v36  ;;  %v19415_v36 = vcombine.low %v7230_v18, %v7234_v22  ;;  %v7665_v18 = vld [vmem:[#allocation13 + $0x2230] sm:$0xff]  ;;  %v7278_v22 = vld [vmem:[#allocation13 + $0x1618] sm:$0xff] }
 0x7f5   :  { %14583 = vmatmul.mubr.bf16.vlgmr.msra.gmra.mrb[52].mxu1 %v23147_v4  ;;  %14838 = vmatpush1.bf16.msra.mxu0 %v19399_v59  ;;  %v19829_v59 = vcombine.low %v7645_v7, %v7649_v51  ;;  %v7689_v38 = vld [vmem:[#allocation13 + $0x22f0] sm:$0xff] }
 0x7f6   :  { %14592 = vmatpush1.bf16.msra.mxu1 %v19781_v16  ;;  %14839 = vmatprep.subr.bf16.mxu0 %v19408_v0  ;;  %v7274_v16 = vld [vmem:[#allocation13 + $0x15f8] sm:$0xff]  ;;  %v19838_v0 = vcombine.high %v7653_v48, %v7657_v54  ;;  %v19870_v51 = vcombine.high %v7685_v32, %v7689_v38 }
 0x7f7   :  { %14593 = vmatprep.subr.bf16.mxu1 %v19790_v11  ;;  %14623 = vmatprep.mubr.bf16.mxu1 %v23149_v47  ;;  %v19447_v11 = vcombine.low %v7262_v52, %v7266_v56  ;;  %v19456_v53 = vcombine.high %v7270_v12, %v7274_v16  ;;  %v7693_v56 = vld [vmem:[#allocation13 + $0x2310] sm:$0xff] }
 0x7f8   :  { %14869 = vmatprep.mubr.bf16.mxu0 %v23111_v25  ;;  %v19432_v25 = vcombine.high %v7246_v46, %v7250_v58  ;;  %v7681_v46 = vld [vmem:[#allocation13 + $0x22b0] sm:$0xff]  ;;  %v7294_v58 = vld [vmem:[#allocation13 + $0x1698] sm:$0xff] }
 0x7f9   :  { %14840 = vmatpush1.bf16.msra.mxu0 %v19407_v63  ;;  %v19837_v63 = vcombine.low %v7653_v48, %v7657_v54  ;;  %v19862_v61 = vcombine.high %v7677_v62, %v7681_v46  ;;  %v19869_v54 = vcombine.low %v7685_v32, %v7689_v38 }
 0x7fa   :  { %14594 = vmatpush1.bf16.msra.mxu1 %v19789_v6  ;;  %14841 = vmatprep.subr.bf16.mxu0 %v19416_v34  ;;  %v7282_v6 = vld [vmem:[#allocation13 + $0x1638] sm:$0xff]  ;;  %v19846_v34 = vcombine.high %v7661_v42, %v7665_v18 }
 0x7fb   :  { %14595 = vmatprep.subr.bf16.mxu1 %v19798_v39  ;;  %v19455_v39 = vcombine.low %v7270_v12, %v7274_v16  ;;  %v19464_v1 = vcombine.high %v7278_v22, %v7282_v6 }
 0x7fd   :  { %14842 = vmatpush1.bf16.msra.mxu0 %v19415_v36  ;;  %v19845_v36 = vcombine.low %v7661_v42, %v7665_v18  ;;  %v7318_v42 = vld [vmem:[#allocation13 + $0x1758] sm:$0xff] }
 0x7fe   :  { %14596 = vmatpush1.bf16.msra.mxu1 %v19797_v37  ;;  %14843 = vmatprep.subr.bf16.mxu0 %v19424_v45  ;;  %v7290_v37 = vld [vmem:[#allocation13 + $0x1678] sm:$0xff]  ;;  %v19854_v45 = vcombine.high %v7669_v28, %v7673_v31 }
 0x7ff   :  { %14597 = vmatprep.subr.bf16.mxu1 %v19806_v26  ;;  %v19463_v26 = vcombine.low %v7278_v22, %v7282_v6  ;;  %v19472_v14 = vcombine.high %v7286_v49, %v7290_v37  ;;  %v7322_v18 = vld [vmem:[#allocation13 + $0x1778] sm:$0xff] }
 0x801   :  { %14844 = vmatpush1.bf16.msra.mxu0 %v19423_v55  ;;  %v6493_v55 = vlaneseq }
 0x802   :  { %14598 = vmatpush1.bf16.msra.mxu1 %v19805_v60  ;;  %14845 = vmatprep.subr.bf16.mxu0 %v19432_v25  ;;  %v7298_v60 = vld [vmem:[#allocation13 + $0x16b8] sm:$0xff]  ;;  %v19471_v25 = vcombine.low %v7286_v49, %v7290_v37 }
 0x803   :  { %14599 = vmatprep.subr.bf16.mxu1 %v19814_v15  ;;  %v19853_v15 = vcombine.low %v7669_v28, %v7673_v31  ;;  %v19480_v20 = vcombine.high %v7294_v58, %v7298_v60  ;;  %v19479_v7 = vcombine.low %v7294_v58, %v7298_v60  ;;  %v7713_v28 = vld [vmem:[#allocation13 + $0x23b0] sm:$0xff]  ;;  %v7326_v31 = vld [vmem:[#allocation13 + $0x1798] sm:$0xff] }
 0x804   :  { %v7330_v49 = vld [vmem:[#allocation13 + $0x17b8] sm:$0xff] }
 0x805   :  { %14846 = vmatpush1.bf16.msra.mxu0 %v19431_v40  ;;  %v7306_v40 = vld [vmem:[#allocation13 + $0x16f8] sm:$0xff] }
 0x806   :  { %14600 = vmatpush1.bf16.msra.mxu1 %v19813_v23  ;;  %14847 = vmatprep.subr.bf16.mxu0 %v19440_v41  ;;  %v7302_v23 = vld [vmem:[#allocation13 + $0x16d8] sm:$0xff]  ;;  %v19861_v41 = vcombine.low %v7677_v62, %v7681_v46  ;;  %v7721_v62 = vld [vmem:[#allocation13 + $0x23f0] sm:$0xff] }
 0x807   :  { %14601 = vmatprep.subr.bf16.mxu1 %v19822_v17  ;;  %v23201_v17 = vshrl.u32 %v6493_v55, 7  ;;  %v19488_v52 = vcombine.high %v7302_v23, %v7306_v40  ;;  %v19487_v12 = vcombine.low %v7302_v23, %v7306_v40  ;;  %v7334_v46 = vld [vmem:[#allocation13 + $0x17d8] sm:$0xff]  ;;  %v21780_v23 = vld [vmem:[#allocation16 + $0x4] ss:$24 sps:$4 sm:$0xff]  }
 0x808   :  { %v7338_v58 = vld [vmem:[#allocation13 + $0x17f8] sm:$0xff] }
 0x809   :  { %14848 = vmatpush1.bf16.msra.mxu0 %v19439_v8  ;;  %v7310_v8 = vld [vmem:[#allocation13 + $0x1718] sm:$0xff]  ;;  %v23206_v48 = vsub.s32 1, %v23201_v17  ;;  %v19519_v32 = vcombine.low %v7334_v46, %v7338_v58 }
 0x80a   :  { %14602 = vmatpush1.bf16.msra.mxu1 %v19821_v30  ;;  %14849 = vmatprep.subr.bf16.mxu0 %v19448_v13  ;;  %v7697_v30 = vld [vmem:[#allocation13 + $0x2330] sm:$0xff]  ;;  %v23203_v13 = vld [vmem:[#allocation14] sm:$0xff]  ;;  %v7350_v40 = vld [vmem:[#allocation13 + $0x1858] sm:$0xff] }
 0x80b   :  { %14603 = vmatprep.subr.bf16.mxu1 %v19830_v33  ;;  %v7314_v33 = vld [vmem:[#allocation13 + $0x1738] sm:$0xff]  ;;  %v19878_v16 = vcombine.high %v7693_v56, %v7697_v30  ;;  %v19877_v22 = vcombine.low %v7693_v56, %v7697_v30 }
 0x80c   :  { %v19495_v6 = vcombine.low %v7310_v8, %v7314_v33  ;;  %v21783_v30 = vld [vmem:[#allocation16 + $0x34] ss:$24 sps:$4 sm:$0xff]  }
 0x80d   :  { %14850 = vmatpush1.bf16.msra.mxu0 %v19447_v11  ;;  %v7701_v11 = vld [vmem:[#allocation13 + $0x2350] sm:$0xff] }
 0x80e   :  { %14604 = vmatpush1.bf16.msra.mxu1 %v19829_v59  ;;  %14851 = vmatprep.subr.bf16.mxu0 %v19456_v53  ;;  %v19496_v59 = vcombine.high %v7310_v8, %v7314_v33  ;;  %v7705_v53 = vld [vmem:[#allocation13 + $0x2370] sm:$0xff]  ;;  %v7358_v8 = vld [vmem:[#allocation13 + $0x1898] sm:$0xff] }
 0x80f   :  { %14605 = vmatprep.subr.bf16.mxu1 %v19838_v0  ;;  %v7732_v0 = vrot.slane %v23203_v13, %v23206_v48  ;;  %v19885_v37 = vcombine.low %v7701_v11, %v7705_v53  ;;  %v7362_v33 = vld [vmem:[#allocation13 + $0x18b8] sm:$0xff] }
 0x811   :  { %14852 = vmatpush1.bf16.msra.mxu0 %v19455_v39  ;;  %v19504_v39 = vcombine.high %v7318_v42, %v7322_v18 }
 0x812   :  { %14606 = vmatpush1.bf16.msra.mxu1 %v19837_v63  ;;  %14853 = vmatprep.subr.bf16.mxu0 %v19464_v1  ;;  %v19886_v63 = vcombine.high %v7701_v11, %v7705_v53  ;;  %v20290_v1 = vadd.f32 %v23175_v2, %v7732_v0  ;;  %v19511_v2 = vcombine.low %v7326_v31, %v7330_v49  ;;  %v21786_v11 = vld [vmem:[#allocation16 + $0x64] ss:$24 sps:$4 sm:$0xff]   ;;  %v7366_v0 = vld [vmem:[#allocation13 + $0x18d8] sm:$0xff] }
 0x813   :  { %14607 = vmatprep.subr.bf16.mxu1 %v19846_v34  ;;  %v7709_v34 = vld [vmem:[#allocation13 + $0x2390] sm:$0xff]  ;;  %v7370_v53 = vld [vmem:[#allocation13 + $0x18f8] sm:$0xff] }
 0x814   :  { %22354 = vtanh.f32 %v20290_v1  ;;  %v19893_v60 = vcombine.low %v7709_v34, %v7713_v28 }
 0x815   :  { %14854 = vmatpush1.bf16.msra.mxu0 %v19463_v26  ;;  %v19894_v26 = vcombine.high %v7709_v34, %v7713_v28  ;;  %v21787_v34 = vld [vmem:[#allocation16 + $0x90] ss:$24 sps:$4 sm:$0xff]   ;;  %v21792_v28 = vld [vmem:[#allocation16 + $0xc4] ss:$24 sps:$4 sm:$0xff]  }
 0x816   :  { %14608 = vmatpush1.bf16.msra.mxu1 %v19845_v36  ;;  %14855 = vmatprep.subr.bf16.mxu0 %v19472_v14  ;;  %v19503_v36 = vcombine.low %v7318_v42, %v7322_v18  ;;  %v7717_v14 = vld [vmem:[#allocation13 + $0x23d0] sm:$0xff]  ;;  %v19543_v42 = vcombine.low %v7358_v8, %v7362_v33  ;;  %v21784_v18 = vld [vmem:[#allocation16 + $0x60] ss:$24 sps:$4 sm:$0xff]  }
 0x817   :  { %14609 = vmatprep.subr.bf16.mxu1 %v19854_v45  ;;  %v19512_v45 = vcombine.high %v7326_v31, %v7330_v49  ;;  %v19902_v55 = vcombine.high %v7717_v14, %v7721_v62  ;;  %v7382_v31 = vld [vmem:[#allocation13 + $0x1958] sm:$0xff] }
 0x819   :  { %14856 = vmatpush1.bf16.msra.mxu0 %v19471_v25  ;;  %v7342_v25 = vld [vmem:[#allocation13 + $0x1818] sm:$0xff] }
 0x81a   :  { %14610 = vmatpush1.bf16.msra.mxu1 %v19853_v15  ;;  %14857 = vmatprep.subr.bf16.mxu0 %v19480_v20  ;;  %v19520_v15 = vcombine.high %v7334_v46, %v7338_v58  ;;  %v19901_v20 = vcombine.low %v7717_v14, %v7721_v62  ;;  %v7394_v14 = vld [vmem:[#allocation13 + $0x19b8] sm:$0xff] }
 0x81b   :  { %14611 = vmatprep.subr.bf16.mxu1 %v19862_v61  ;;  %v7346_v61 = vld [vmem:[#allocation13 + $0x1838] sm:$0xff] }
 0x81c   :  { %v19528_v38 = vcombine.high %v7342_v25, %v7346_v61  ;;  %v21793_v46 = vld [vmem:[#allocation16 + $0xf0] ss:$24 sps:$4 sm:$0xff]  }
 0x81d   :  { %14858 = vmatpush1.bf16.msra.mxu0 %v19479_v7 }
 0x81e   :  { %14612 = vmatpush1.bf16.msra.mxu1 %v19861_v41  ;;  %14859 = vmatprep.subr.bf16.mxu0 %v19488_v52  ;;  %v7354_v41 = vld [vmem:[#allocation13 + $0x1878] sm:$0xff]  ;;  %v22355_v7 = vpop.eup %22354  ;;  %v21778_v52 = vld [vmem:[#allocation16] ss:$24 sps:$4 sm:$0xff]  }
 0x81f   :  { %14613 = vmatprep.subr.bf16.mxu1 %v19870_v51  ;;  %v19527_v51 = vcombine.low %v7342_v25, %v7346_v61  ;;  %v19536_v56 = vcombine.high %v7350_v40, %v7354_v41  ;;  %v21796_v25 = vld [vmem:[#allocation16 + $0x120] ss:$24 sps:$4 sm:$0xff]  }
 0x821   :  { %14860 = vmatpush1.bf16.msra.mxu0 %v19487_v12  ;;  %v19535_v12 = vcombine.low %v7350_v40, %v7354_v41  ;;  %v21799_v40 = vld [vmem:[#allocation16 + $0x150] ss:$24 sps:$4 sm:$0xff]  }
 0x822   :  { %14614 = vmatpush1.bf16.msra.mxu1 %v19869_v54  ;;  %14861 = vmatprep.subr.bf16.mxu0 %v19496_v59  ;;  %v23211_v54 = vpack.c.bf16 %v22355_v7, %v22355_v7  ;;  %v19544_v59 = vcombine.high %v7358_v8, %v7362_v33  ;;  %v21804_v7 = vld [vmem:[#allocation16 + $0x184] ss:$24 sps:$4 sm:$0xff]   ;;  %v21807_v33 = vld [vmem:[#allocation16 + $0x1b4] ss:$24 sps:$4 sm:$0xff]  }
 0x823   :  { %14615 = vmatprep.subr.bf16.mxu1 %v19878_v16  ;;  %v21781_v16 = vld [vmem:[#allocation16 + $0x30] ss:$24 sps:$4 sm:$0xff]  }
 0x825   :  { %14862 = vmatpush1.bf16.msra.mxu0 %v19495_v6  ;;  %v7374_v6 = vld [vmem:[#allocation13 + $0x1918] sm:$0xff] }
 0x826   :  { %14616 = vmatpush1.bf16.msra.mxu1 %v19877_v22  ;;  %14863 = vmatprep.subr.bf16.mxu0 %v19504_v39  ;;  %v21789_v22 = vld [vmem:[#allocation16 + $0x94] ss:$24 sps:$4 sm:$0xff]   ;;  %v19551_v39 = vcombine.low %v7366_v0, %v7370_v53 }
 0x827   :  { %14617 = vmatprep.subr.bf16.mxu1 %v19886_v63  ;;  %v7378_v63 = vld [vmem:[#allocation13 + $0x1938] sm:$0xff] }
 0x828   :  { %v19560_v1 = vcombine.high %v7374_v6, %v7378_v63  ;;  %v19559_v49 = vcombine.low %v7374_v6, %v7378_v63  ;;  %v21813_v63 = vld [vmem:[#allocation16 + $0x214] ss:$24 sps:$4 sm:$0xff]  }
 0x829   :  { %14864 = vmatpush1.bf16.msra.mxu0 %v19503_v36 }
 0x82a   :  { %14618 = vmatpush1.bf16.msra.mxu1 %v19885_v37  ;;  %14865 = vmatprep.subr.bf16.mxu0 %v19512_v45  ;;  %v21790_v37 = vld [vmem:[#allocation16 + $0xc0] ss:$24 sps:$4 sm:$0xff]   ;;  %v7390_v45 = vld [vmem:[#allocation13 + $0x1998] sm:$0xff] }
 0x82b   :  { %14619 = vmatprep.subr.bf16.mxu1 %v19894_v26  ;;  %v21795_v26 = vld [vmem:[#allocation16 + $0xf4] ss:$24 sps:$4 sm:$0xff]   ;;  %v19576_v58 = vcombine.high %v7390_v45, %v7394_v14 }
 0x82d   :  { %14866 = vmatpush1.bf16.msra.mxu0 %v19511_v2  ;;  %v7398_v2 = vld [vmem:[#allocation13 + $0x19d8] sm:$0xff] }
 0x82e   :  { %14620 = vmatpush1.bf16.msra.mxu1 %v19893_v60  ;;  %14867 = vmatprep.subr.bf16.mxu0 %v19520_v15  ;;  %v21798_v60 = vld [vmem:[#allocation16 + $0x124] ss:$24 sps:$4 sm:$0xff]   ;;  %v19575_v15 = vcombine.low %v7390_v45, %v7394_v14  ;;  %v7446_v45 = vld [vmem:[#allocation13 + $0x1b58] sm:$0xff] }
 0x82f   :  { %14621 = vmatprep.subr.bf16.mxu1 %v19902_v55  ;;  %v7402_v55 = vld [vmem:[#allocation13 + $0x19f8] sm:$0xff] }
 0x830   :  { %v19584_v61 = vcombine.high %v7398_v2, %v7402_v55  ;;  %v7450_v14 = vld [vmem:[#allocation13 + $0x1b78] sm:$0xff] }
 0x831   :  { %14868 = vmatpush1.bf16.msra.mxu0 %v19519_v32  ;;  %v7406_v32 = vld [vmem:[#allocation13 + $0x1a18] sm:$0xff] }
 0x832   :  { %14622 = vmatpush1.bf16.msra.mxu1 %v19901_v20  ;;  %14878 = vmatprep.subr.bf16.mxu0 %v19528_v38  ;;  %v21801_v20 = vld [vmem:[#allocation16 + $0x154] ss:$24 sps:$4 sm:$0xff]  }
 0x833   :  { %17353 = vmatprep.subr.bf16.mxu1 %v21780_v23  ;;  %v7410_v38 = vld [vmem:[#allocation13 + $0x1a38] sm:$0xff]  ;;  %v19583_v23 = vcombine.low %v7398_v2, %v7402_v55 }
 0x834   :  { %14870 = vmatmul.mubr.bf16.vlgmr.msra.gmra.mrb[64].mxu0 %v23123_v50  ;;  %v19552_v50 = vcombine.high %v7366_v0, %v7370_v53  ;;  %v19592_v41 = vcombine.high %v7406_v32, %v7410_v38  ;;  %v21810_v53 = vld [vmem:[#allocation16 + $0x1e4] ss:$24 sps:$4 sm:$0xff]   ;;  %v21819_v2 = vld [vmem:[#allocation16 + $0x274] ss:$24 sps:$4 sm:$0xff]  }
 0x835   :  { %14624 = vmatmul.mubr.bf16.vlgmr.msra.gmra.mrb[52].mxu1 %v23155_v24  ;;  %14879 = vmatpush1.bf16.msra.mxu0 %v19527_v51  ;;  %v7414_v51 = vld [vmem:[#allocation13 + $0x1a58] sm:$0xff] }
 0x836   :  { %17354 = vmatpush1.bf16.msra.mxu1 %v21778_v52  ;;  %17385 = vmatprep.mubr.bf16.mxu1 %v23211_v54  ;;  %v7418_v52 = vld [vmem:[#allocation13 + $0x1a78] sm:$0xff] }
 0x837   :  { %14880 = vmatprep.subr.bf16.mxu0 %v19536_v56  ;;  %17355 = vmatprep.subr.bf16.mxu1 %v21783_v30  ;;  %v19591_v56 = vcombine.low %v7406_v32, %v7410_v38  ;;  %v21802_v30 = vld [vmem:[#allocation16 + $0x180] ss:$24 sps:$4 sm:$0xff]   ;;  %v19600_v8 = vcombine.high %v7414_v51, %v7418_v52  ;;  %v21822_v32 = vld [vmem:[#allocation16 + $0x2a4] ss:$24 sps:$4 sm:$0xff]   ;;  %v7462_v38 = vld [vmem:[#allocation13 + $0x1bd8] sm:$0xff] }
 0x838   :  { %14910 = vmatprep.mubr.bf16.mxu0 %v23125_v35  ;;  %v7386_v35 = vld [vmem:[#allocation13 + $0x1978] sm:$0xff] }
 0x839   :  { %14881 = vmatpush1.bf16.msra.mxu0 %v19535_v12  ;;  %v19568_v36 = vcombine.high %v7382_v31, %v7386_v35  ;;  %v19567_v62 = vcombine.low %v7382_v31, %v7386_v35  ;;  %v7422_v12 = vld [vmem:[#allocation13 + $0x1a98] sm:$0xff] }
 0x83a   :  { %17356 = vmatpush1.bf16.msra.mxu1 %v21781_v16  ;;  %14882 = vmatprep.subr.bf16.mxu0 %v19544_v59  ;;  %v7426_v16 = vld [vmem:[#allocation13 + $0x1ab8] sm:$0xff]  ;;  %v19599_v59 = vcombine.low %v7414_v51, %v7418_v52 }
 0x83b   :  { %17357 = vmatprep.subr.bf16.mxu1 %v21786_v11  ;;  %v21805_v11 = vld [vmem:[#allocation16 + $0x1b0] ss:$24 sps:$4 sm:$0xff]   ;;  %v19608_v0 = vcombine.high %v7422_v12, %v7426_v16 }
 0x83c   :  { %v7470_v51 = vld [vmem:[#allocation13 + $0x1c18] sm:$0xff] }
 0x83d   :  { %14883 = vmatpush1.bf16.msra.mxu0 %v19543_v42  ;;  %v7430_v42 = vld [vmem:[#allocation13 + $0x1ad8] sm:$0xff] }
 0x83e   :  { %17358 = vmatpush1.bf16.msra.mxu1 %v21784_v18  ;;  %14884 = vmatprep.subr.bf16.mxu0 %v19552_v50  ;;  %v7434_v18 = vld [vmem:[#allocation13 + $0x1af8] sm:$0xff]  ;;  %v19607_v50 = vcombine.low %v7422_v12, %v7426_v16 }
 0x83f   :  { %17359 = vmatprep.subr.bf16.mxu1 %v21789_v22  ;;  %v21808_v22 = vld [vmem:[#allocation16 + $0x1e0] ss:$24 sps:$4 sm:$0xff]   ;;  %v19616_v6 = vcombine.high %v7430_v42, %v7434_v18  ;;  %v19615_v35 = vcombine.low %v7430_v42, %v7434_v18  ;;  %v7474_v52 = vld [vmem:[#allocation13 + $0x1c38] sm:$0xff] }
 0x840   :  { %v7478_v16 = vld [vmem:[#allocation13 + $0x1c58] sm:$0xff] }
 0x841   :  { %14885 = vmatpush1.bf16.msra.mxu0 %v19551_v39  ;;  %v23218_v39 = vsub.s32 0, %v23201_v17 }
 0x842   :  { %17360 = vmatpush1.bf16.msra.mxu1 %v21787_v34  ;;  %14886 = vmatprep.subr.bf16.mxu0 %v19560_v1  ;;  %v7438_v34 = vld [vmem:[#allocation13 + $0x1b18] sm:$0xff] }
 0x843   :  { %17361 = vmatprep.subr.bf16.mxu1 %v21792_v28  ;;  %v7442_v1 = vld [vmem:[#allocation13 + $0x1b38] sm:$0xff]  ;;  %v23221_v28 = vsub.s32 3, %v23201_v17  ;;  %v7728_v31 = vrot.slane %v23203_v13, %v23218_v39 }
 0x845   :  { %14887 = vmatpush1.bf16.msra.mxu0 %v19559_v49  ;;  %v21811_v49 = vld [vmem:[#allocation16 + $0x210] ss:$24 sps:$4 sm:$0xff]  }
 0x846   :  { %17362 = vmatpush1.bf16.msra.mxu1 %v21790_v37  ;;  %14888 = vmatprep.subr.bf16.mxu0 %v19568_v36  ;;  %v19624_v37 = vcombine.high %v7438_v34, %v7442_v1  ;;  %v21816_v36 = vld [vmem:[#allocation16 + $0x244] ss:$24 sps:$4 sm:$0xff]  }
 0x847   :  { %17363 = vmatprep.subr.bf16.mxu1 %v21795_v26  ;;  %v7740_v26 = vrot.slane %v23203_v13, %v23221_v28 }
 0x849   :  { %14889 = vmatpush1.bf16.msra.mxu0 %v19567_v62  ;;  %v20289_v62 = vadd.f32 %v23173_v44, %v7728_v31  ;;  %v20292_v55 = vadd.f32 %v23191_v43, %v7740_v26  ;;  %v21832_v26 = vld [vmem:[#allocation16 + $0x360] ss:$24 sps:$4 sm:$0xff]  }
 0x84a   :  { %17364 = vmatpush1.bf16.msra.mxu1 %v21793_v46  ;;  %14890 = vmatprep.subr.bf16.mxu0 %v19576_v58  ;;  %v19623_v46 = vcombine.low %v7438_v34, %v7442_v1  ;;  %v21814_v58 = vld [vmem:[#allocation16 + $0x240] ss:$24 sps:$4 sm:$0xff]   ;;  %v21829_v1 = vld [vmem:[#allocation16 + $0x330] ss:$24 sps:$4 sm:$0xff]  }
 0x84b   :  { %17365 = vmatprep.subr.bf16.mxu1 %v21798_v60  ;;  %v19632_v60 = vcombine.high %v7446_v45, %v7450_v14  ;;  %22356 = vtanh.f32 %v20289_v62  ;;  %v7506_v62 = vld [vmem:[#allocation13 + $0x1d38] sm:$0xff] }
 0x84c   :  { %22358 = vtanh.f32 %v20292_v55  ;;  %v7510_v55 = vld [vmem:[#allocation13 + $0x1d58] sm:$0xff] }
 0x84d   :  { %14891 = vmatpush1.bf16.msra.mxu0 %v19575_v15  ;;  %v7454_v15 = vld [vmem:[#allocation13 + $0x1b98] sm:$0xff] }
 0x84e   :  { %17366 = vmatpush1.bf16.msra.mxu1 %v21796_v25  ;;  %14892 = vmatprep.subr.bf16.mxu0 %v19584_v61  ;;  %v7458_v25 = vld [vmem:[#allocation13 + $0x1bb8] sm:$0xff]  ;;  %v19631_v61 = vcombine.low %v7446_v45, %v7450_v14 }
 0x84f   :  { %17367 = vmatprep.subr.bf16.mxu1 %v21801_v20  ;;  %v21817_v20 = vld [vmem:[#allocation16 + $0x270] ss:$24 sps:$4 sm:$0xff]   ;;  %v19640_v44 = vcombine.high %v7454_v15, %v7458_v25  ;;  %v21837_v45 = vld [vmem:[#allocation16 + $0x394] ss:$24 sps:$4 sm:$0xff]  }
 0x850   :  { %v7502_v14 = vld [vmem:[#allocation13 + $0x1d18] sm:$0xff] }
 0x851   :  { %14893 = vmatpush1.bf16.msra.mxu0 %v19583_v23  ;;  %v7466_v23 = vld [vmem:[#allocation13 + $0x1bf8] sm:$0xff] }
 0x852   :  { %17368 = vmatpush1.bf16.msra.mxu1 %v21799_v40  ;;  %14894 = vmatprep.subr.bf16.mxu0 %v19592_v41  ;;  %v19639_v40 = vcombine.low %v7454_v15, %v7458_v25  ;;  %v21820_v41 = vld [vmem:[#allocation16 + $0x2a0] ss:$24 sps:$4 sm:$0xff]   ;;  %v19648_v43 = vcombine.high %v7462_v38, %v7466_v23  ;;  %v19687_v15 = vcombine.low %v7502_v14, %v7506_v62 }
 0x853   :  { %17369 = vmatprep.subr.bf16.mxu1 %v21804_v7  ;;  %v21825_v7 = vld [vmem:[#allocation16 + $0x2d4] ss:$24 sps:$4 sm:$0xff]   ;;  %v21838_v25 = vld [vmem:[#allocation16 + $0x3c0] ss:$24 sps:$4 sm:$0xff]  }
 0x855   :  { %14895 = vmatpush1.bf16.msra.mxu0 %v19591_v56  ;;  %v19647_v56 = vcombine.low %v7462_v38, %v7466_v23  ;;  %v22357_v12 = vpop.eup %22356  ;;  %v21841_v23 = vld [vmem:[#allocation16 + $0x3f0] ss:$24 sps:$4 sm:$0xff]  }
 0x856   :  { %17370 = vmatpush1.bf16.msra.mxu1 %v21802_v30  ;;  %14896 = vmatprep.subr.bf16.mxu0 %v19600_v8  ;;  %v21823_v30 = vld [vmem:[#allocation16 + $0x2d0] ss:$24 sps:$4 sm:$0xff]   ;;  %v19656_v8 = vcombine.high %v7470_v51, %v7474_v52  ;;  %v23229_v42 = vpack.c.bf16 %v22357_v12, %v22357_v12 }
 0x857   :  { %17371 = vmatprep.subr.bf16.mxu1 %v21807_v33  ;;  %v21828_v33 = vld [vmem:[#allocation16 + $0x304] ss:$24 sps:$4 sm:$0xff]  }
 0x859   :  { %14897 = vmatpush1.bf16.msra.mxu0 %v19599_v59  ;;  %v7482_v59 = vld [vmem:[#allocation13 + $0x1c78] sm:$0xff] }
 0x85a   :  { %17372 = vmatpush1.bf16.msra.mxu1 %v21805_v11  ;;  %14898 = vmatprep.subr.bf16.mxu0 %v19608_v0  ;;  %v22359_v11 = vpop.eup %22358  ;;  %v19655_v0 = vcombine.low %v7470_v51, %v7474_v52  ;;  %v19664_v18 = vcombine.high %v7478_v16, %v7482_v59  ;;  %v19663_v34 = vcombine.low %v7478_v16, %v7482_v59  ;;  %v21844_v52 = vld [vmem:[#allocation16 + $0x420] ss:$24 sps:$4 sm:$0xff]   ;;  %v21847_v16 = vld [vmem:[#allocation16 + $0x450] ss:$24 sps:$4 sm:$0xff]  }
 0x85b   :  { %17373 = vmatprep.subr.bf16.mxu1 %v21810_v53  ;;  %v21826_v53 = vld [vmem:[#allocation16 + $0x300] ss:$24 sps:$4 sm:$0xff]  }
 0x85d   :  { %14899 = vmatpush1.bf16.msra.mxu0 %v19607_v50  ;;  %v21831_v50 = vld [vmem:[#allocation16 + $0x334] ss:$24 sps:$4 sm:$0xff]  }
 0x85e   :  { %17374 = vmatpush1.bf16.msra.mxu1 %v21808_v22  ;;  %14900 = vmatprep.subr.bf16.mxu0 %v19616_v6  ;;  %v7486_v22 = vld [vmem:[#allocation13 + $0x1c98] sm:$0xff] }
 0x85f   :  { %17375 = vmatprep.subr.bf16.mxu1 %v21813_v63  ;;  %v7490_v6 = vld [vmem:[#allocation13 + $0x1cb8] sm:$0xff]  ;;  %v23231_v63 = vpack.c.bf16 %v22359_v11, %v22359_v11  ;;  %v21852_v11 = vld [vmem:[#allocation16 + $0x484] ss:$24 sps:$4 sm:$0xff]  }
 0x860   :  { %v19672_v31 = vcombine.high %v7486_v22, %v7490_v6 }
 0x861   :  { %14901 = vmatpush1.bf16.msra.mxu0 %v19615_v35  ;;  %v21834_v35 = vld [vmem:[#allocation16 + $0x364] ss:$24 sps:$4 sm:$0xff]  }
 0x862   :  { %17376 = vmatpush1.bf16.msra.mxu1 %v21811_v49  ;;  %14902 = vmatprep.subr.bf16.mxu0 %v19624_v37  ;;  %v7494_v49 = vld [vmem:[#allocation13 + $0x1cd8] sm:$0xff] }
 0x863   :  { %17377 = vmatprep.subr.bf16.mxu1 %v21816_v36  ;;  %v7498_v37 = vld [vmem:[#allocation13 + $0x1cf8] sm:$0xff]  ;;  %v19671_v36 = vcombine.low %v7486_v22, %v7490_v6 }
 0x864   :  { %v21855_v6 = vld [vmem:[#allocation16 + $0x4b4] ss:$24 sps:$4 sm:$0xff]  }
 0x865   :  { %14903 = vmatpush1.bf16.msra.mxu0 %v19623_v46  ;;  %v19679_v46 = vcombine.low %v7494_v49, %v7498_v37 }
 0x866   :  { %17378 = vmatpush1.bf16.msra.mxu1 %v21814_v58  ;;  %14904 = vmatprep.subr.bf16.mxu0 %v19632_v60  ;;  %v21835_v58 = vld [vmem:[#allocation16 + $0x390] ss:$24 sps:$4 sm:$0xff]   ;;  %v19688_v60 = vcombine.high %v7502_v14, %v7506_v62  ;;  %v21861_v62 = vld [vmem:[#allocation16 + $0x514] ss:$24 sps:$4 sm:$0xff]  }
 0x867   :  { %17379 = vmatprep.subr.bf16.mxu1 %v21819_v2  ;;  %v21840_v2 = vld [vmem:[#allocation16 + $0x3c4] ss:$24 sps:$4 sm:$0xff]  }
 0x869   :  { %14905 = vmatpush1.bf16.msra.mxu0 %v19631_v61 }
 0x86a   :  { %17380 = vmatpush1.bf16.msra.mxu1 %v21817_v20  ;;  %14906 = vmatprep.subr.bf16.mxu0 %v19640_v44  ;;  %v21843_v20 = vld [vmem:[#allocation16 + $0x3f4] ss:$24 sps:$4 sm:$0xff]  }
 0x86b   :  { %17381 = vmatprep.subr.bf16.mxu1 %v21822_v32  ;;  %v7518_v44 = vld [vmem:[#allocation13 + $0x1d98] sm:$0xff] }
 0x86c   :  { %v7522_v32 = vld [vmem:[#allocation13 + $0x1db8] sm:$0xff] }
 0x86d   :  { %14907 = vmatpush1.bf16.msra.mxu0 %v19639_v40  ;;  %v19704_v40 = vcombine.high %v7518_v44, %v7522_v32  ;;  %v19703_v51 = vcombine.low %v7518_v44, %v7522_v32 }
 0x86e   :  { %17382 = vmatpush1.bf16.msra.mxu1 %v21820_v41  ;;  %14908 = vmatprep.subr.bf16.mxu0 %v19648_v43  ;;  %v21846_v41 = vld [vmem:[#allocation16 + $0x424] ss:$24 sps:$4 sm:$0xff]   ;;  %v7526_v43 = vld [vmem:[#allocation13 + $0x1dd8] sm:$0xff] }
 0x86f   :  { %17383 = vmatprep.subr.bf16.mxu1 %v21825_v7  ;;  %v7530_v7 = vld [vmem:[#allocation13 + $0x1df8] sm:$0xff] }
 0x870   :  { %v19711_v12 = vcombine.low %v7526_v43, %v7530_v7 }
 0x871   :  { %14909 = vmatpush1.bf16.msra.mxu0 %v19647_v56  ;;  %v19712_v56 = vcombine.high %v7526_v43, %v7530_v7  ;;  %v21865_v7 = vld [vmem:[#allocation16 + $0x570] ss:$24 sps:$4 sm:$0xff]  }
 0x872   :  { %17384 = vmatpush1.bf16.msra.mxu1 %v21823_v30  ;;  %14919 = vmatprep.subr.bf16.mxu0 %v19656_v8  ;;  %v21849_v30 = vld [vmem:[#allocation16 + $0x454] ss:$24 sps:$4 sm:$0xff]  }
 0x873   :  { %17394 = vmatprep.subr.bf16.mxu1 %v21828_v33  ;;  %v7534_v8 = vld [vmem:[#allocation13 + $0x1e18] sm:$0xff] }
 0x874   :  { %14911 = vmatmul.mubr.bf16.vlgmr.msra.gmra.mrb[64].mxu0 %v23139_v27  ;;  %v19680_v27 = vcombine.high %v7494_v49, %v7498_v37  ;;  %v7538_v33 = vld [vmem:[#allocation13 + $0x1e38] sm:$0xff]  ;;  %v21858_v37 = vld [vmem:[#allocation16 + $0x4e4] ss:$24 sps:$4 sm:$0xff]  }
 0x875   :  { %17386 = vmatmul.mubr.bf16.vlgmr.msra.gmra.mrb[56].mxu1 %v23229_v42  ;;  %14920 = vmatpush1.bf16.msra.mxu0 %v19655_v0  ;;  %v19720_v59 = vcombine.high %v7534_v8, %v7538_v33  ;;  %v7542_v0 = vld [vmem:[#allocation13 + $0x1e58] sm:$0xff] }
 0x876   :  { %17395 = vmatpush1.bf16.msra.mxu1 %v21826_v53  ;;  %17426 = vmatprep.mubr.bf16.mxu1 %v23231_v63  ;;  %v7546_v53 = vld [vmem:[#allocation13 + $0x1e78] sm:$0xff] }
 0x877   :  { %14921 = vmatprep.subr.bf16.mxu0 %v19664_v18  ;;  %17396 = vmatprep.subr.bf16.mxu1 %v21831_v50  ;;  %v19719_v18 = vcombine.low %v7534_v8, %v7538_v33  ;;  %v21850_v50 = vld [vmem:[#allocation16 + $0x480] ss:$24 sps:$4 sm:$0xff]   ;;  %v19728_v22 = vcombine.high %v7542_v0, %v7546_v53 }
 0x878   :  { %14951 = vmatprep.mubr.bf16.mxu0 %v23141_v21  ;;  %v7514_v21 = vld [vmem:[#allocation13 + $0x1d78] sm:$0xff]  ;;  %v21868_v8 = vld [vmem:[#allocation16 + $0x5a0] ss:$24 sps:$4 sm:$0xff]  }
 0x879   :  { %14922 = vmatpush1.bf16.msra.mxu0 %v19663_v34  ;;  %v19696_v61 = vcombine.high %v7510_v55, %v7514_v21  ;;  %v19695_v38 = vcombine.low %v7510_v55, %v7514_v21  ;;  %v7550_v34 = vld [vmem:[#allocation13 + $0x1e98] sm:$0xff] }
 0x87a   :  { %17397 = vmatpush1.bf16.msra.mxu1 %v21829_v1  ;;  %14923 = vmatprep.subr.bf16.mxu0 %v19672_v31  ;;  %v7554_v1 = vld [vmem:[#allocation13 + $0x1eb8] sm:$0xff]  ;;  %v19727_v31 = vcombine.low %v7542_v0, %v7546_v53 }
 0x87b   :  { %17398 = vmatprep.subr.bf16.mxu1 %v21834_v35  ;;  %v21853_v35 = vld [vmem:[#allocation16 + $0x4b0] ss:$24 sps:$4 sm:$0xff]   ;;  %v19736_v49 = vcombine.high %v7550_v34, %v7554_v1 }
 0x87c   :  { %v21859_v21 = vld [vmem:[#allocation16 + $0x510] ss:$24 sps:$4 sm:$0xff]  }
 0x87d   :  { %14924 = vmatpush1.bf16.msra.mxu0 %v19671_v36  ;;  %v7558_v36 = vld [vmem:[#allocation13 + $0x1ed8] sm:$0xff] }
 0x87e   :  { %17399 = vmatpush1.bf16.msra.mxu1 %v21832_v26  ;;  %14925 = vmatprep.subr.bf16.mxu0 %v19680_v27  ;;  %v7562_v26 = vld [vmem:[#allocation13 + $0x1ef8] sm:$0xff]  ;;  %v19735_v27 = vcombine.low %v7550_v34, %v7554_v1  ;;  %v21874_v1 = vld [vmem:[#allocation16 + $0x600] ss:$24 sps:$4 sm:$0xff]  }
 0x87f   :  { %17400 = vmatprep.subr.bf16.mxu1 %v21837_v45  ;;  %v21856_v45 = vld [vmem:[#allocation16 + $0x4e0] ss:$24 sps:$4 sm:$0xff]   ;;  %v19744_v14 = vcombine.high %v7558_v36, %v7562_v26  ;;  %v19743_v55 = vcombine.low %v7558_v36, %v7562_v26  ;;  %v21871_v0 = vld [vmem:[#allocation16 + $0x5d0] ss:$24 sps:$4 sm:$0xff]  }
 0x880   :  { %v7618_v36 = vld [vmem:[#allocation13 + $0x20b8] sm:$0xff] }
 0x881   :  { %14926 = vmatpush1.bf16.msra.mxu0 %v19679_v46  ;;  %v23238_v46 = vsub.s32 2, %v23201_v17 }
 0x882   :  { %17401 = vmatpush1.bf16.msra.mxu1 %v21835_v58  ;;  %14927 = vmatprep.subr.bf16.mxu0 %v19688_v60  ;;  %v7566_v58 = vld [vmem:[#allocation13 + $0x1f18] sm:$0xff] }
 0x883   :  { %17402 = vmatprep.subr.bf16.mxu1 %v21840_v2  ;;  %v7570_v60 = vld [vmem:[#allocation13 + $0x1f38] sm:$0xff]  ;;  %v7736_v2 = vrot.slane %v23203_v13, %v23238_v46 }
 0x884   :  { %v19751_v32 = vcombine.low %v7566_v58, %v7570_v60  ;;  %v21867_v13 = vld [vmem:[#allocation16 + $0x574] ss:$24 sps:$4 sm:$0xff]  }
 0x885   :  { %14928 = vmatpush1.bf16.msra.mxu0 %v19687_v15  ;;  %v19752_v15 = vcombine.high %v7566_v58, %v7570_v60  ;;  %v20291_v44 = vadd.f32 %v23189_v9, %v7736_v2  ;;  %v7590_v9 = vld [vmem:[#allocation13 + $0x1fd8] sm:$0xff]  ;;  %v21880_v2 = vld [vmem:[#allocation16 + $0x660] ss:$24 sps:$4 sm:$0xff]  }
 0x886   :  { %17403 = vmatpush1.bf16.msra.mxu1 %v21838_v25  ;;  %14929 = vmatprep.subr.bf16.mxu0 %v19696_v61  ;;  %v21864_v25 = vld [vmem:[#allocation16 + $0x544] ss:$24 sps:$4 sm:$0xff]   ;;  %v7574_v61 = vld [vmem:[#allocation13 + $0x1f58] sm:$0xff] }
 0x887   :  { %17404 = vmatprep.subr.bf16.mxu1 %v21843_v20  ;;  %v7578_v20 = vld [vmem:[#allocation13 + $0x1f78] sm:$0xff]  ;;  %22360 = vtanh.f32 %v20291_v44  ;;  %v21888_v44 = vld [vmem:[#allocation16 + $0x6c4] ss:$24 sps:$4 sm:$0xff]  }
 0x888   :  { %v19759_v43 = vcombine.low %v7574_v61, %v7578_v20  ;;  %v7626_v58 = vld [vmem:[#allocation13 + $0x20f8] sm:$0xff] }
 0x889   :  { %14930 = vmatpush1.bf16.msra.mxu0 %v19695_v38  ;;  %v21862_v38 = vld [vmem:[#allocation16 + $0x540] ss:$24 sps:$4 sm:$0xff]  }
 0x88a   :  { %17405 = vmatpush1.bf16.msra.mxu1 %v21841_v23  ;;  %14931 = vmatprep.subr.bf16.mxu0 %v19704_v40  ;;  %v19760_v23 = vcombine.high %v7574_v61, %v7578_v20  ;;  %v7582_v40 = vld [vmem:[#allocation13 + $0x1f98] sm:$0xff] }
 0x88b   :  { %17406 = vmatprep.subr.bf16.mxu1 %v21846_v41  ;;  %v7586_v41 = vld [vmem:[#allocation13 + $0x1fb8] sm:$0xff] }
 0x88c   :  { %v21883_v61 = vld [vmem:[#allocation16 + $0x690] ss:$24 sps:$4 sm:$0xff]  }
 0x88d   :  { %14932 = vmatpush1.bf16.msra.mxu0 %v19703_v51  ;;  %v19768_v51 = vcombine.high %v7582_v40, %v7586_v41 }
 0x88e   :  { %17407 = vmatpush1.bf16.msra.mxu1 %v21844_v52  ;;  %14933 = vmatprep.subr.bf16.mxu0 %v19712_v56  ;;  %v21870_v52 = vld [vmem:[#allocation16 + $0x5a4] ss:$24 sps:$4 sm:$0xff]   ;;  %v7594_v56 = vld [vmem:[#allocation13 + $0x1ff8] sm:$0xff] }
 0x88f   :  { %17408 = vmatprep.subr.bf16.mxu1 %v21849_v30  ;;  %v19767_v30 = vcombine.low %v7582_v40, %v7586_v41  ;;  %v19776_v33 = vcombine.high %v7590_v9, %v7594_v56  ;;  %v21891_v40 = vld [vmem:[#allocation16 + $0x6f4] ss:$24 sps:$4 sm:$0xff]  }
 0x890   :  { %v7646_v41 = vld [vmem:[#allocation13 + $0x2198] sm:$0xff] }
 0x891   :  { %14934 = vmatpush1.bf16.msra.mxu0 %v19711_v12  ;;  %v21873_v12 = vld [vmem:[#allocation16 + $0x5d4] ss:$24 sps:$4 sm:$0xff]  }
 0x892   :  { %17409 = vmatpush1.bf16.msra.mxu1 %v21847_v16  ;;  %14935 = vmatprep.subr.bf16.mxu0 %v19720_v59  ;;  %v7598_v16 = vld [vmem:[#allocation13 + $0x2018] sm:$0xff] }
 0x893   :  { %17410 = vmatprep.subr.bf16.mxu1 %v21852_v11  ;;  %v7602_v59 = vld [vmem:[#allocation13 + $0x2038] sm:$0xff]  ;;  %v19775_v11 = vcombine.low %v7590_v9, %v7594_v56  ;;  %v21894_v9 = vld [vmem:[#allocation16 + $0x724] ss:$24 sps:$4 sm:$0xff]  }
 0x894   :  { %v19784_v53 = vcombine.high %v7598_v16, %v7602_v59  ;;  %v19783_v34 = vcombine.low %v7598_v16, %v7602_v59  ;;  %v7654_v56 = vld [vmem:[#allocation13 + $0x21d8] sm:$0xff] }
 0x895   :  { %14936 = vmatpush1.bf16.msra.mxu0 %v19719_v18  ;;  %v21876_v18 = vld [vmem:[#allocation16 + $0x604] ss:$24 sps:$4 sm:$0xff]   ;;  %v21900_v16 = vld [vmem:[#allocation16 + $0x754] ss:$24 sps:$4 sm:$0xff]  }
 0x896   :  { %17411 = vmatpush1.bf16.msra.mxu1 %v21850_v50  ;;  %14937 = vmatprep.subr.bf16.mxu0 %v19728_v22  ;;  %v22361_v50 = vpop.eup %22360  ;;  %v7606_v22 = vld [vmem:[#allocation13 + $0x2058] sm:$0xff] }
 0x897   :  { %17412 = vmatprep.subr.bf16.mxu1 %v21855_v6  ;;  %v7610_v6 = vld [vmem:[#allocation13 + $0x2078] sm:$0xff] }
 0x898   :  { %v19791_v26 = vcombine.low %v7606_v22, %v7610_v6  ;;  %v7662_v59 = vld [vmem:[#allocation13 + $0x2218] sm:$0xff] }
 0x899   :  { %14938 = vmatpush1.bf16.msra.mxu0 %v19727_v31  ;;  %v23243_v31 = vpack.c.bf16 %v22361_v50, %v22361_v50  ;;  %v21906_v50 = vld [vmem:[#allocation16 + $0x784] ss:$24 sps:$4 sm:$0xff]  }
 0x89a   :  { %17413 = vmatpush1.bf16.msra.mxu1 %v21853_v35  ;;  %14939 = vmatprep.subr.bf16.mxu0 %v19736_v49  ;;  %v19792_v35 = vcombine.high %v7606_v22, %v7610_v6  ;;  %v21879_v49 = vld [vmem:[#allocation16 + $0x634] ss:$24 sps:$4 sm:$0xff]  }
 0x89b   :  { %17414 = vmatprep.subr.bf16.mxu1 %v21858_v37  ;;  %v7614_v37 = vld [vmem:[#allocation13 + $0x2098] sm:$0xff] }
 0x89c   :  { %v19799_v60 = vcombine.low %v7614_v37, %v7618_v36  ;;  %v7670_v22 = vld [vmem:[#allocation13 + $0x2258] sm:$0xff] }
 0x89d   :  { %14940 = vmatpush1.bf16.msra.mxu0 %v19735_v27  ;;  %v21877_v27 = vld [vmem:[#allocation16 + $0x630] ss:$24 sps:$4 sm:$0xff]  }
 0x89e   :  { %17415 = vmatpush1.bf16.msra.mxu1 %v21856_v45  ;;  %14941 = vmatprep.subr.bf16.mxu0 %v19744_v14  ;;  %v19800_v45 = vcombine.high %v7614_v37, %v7618_v36  ;;  %v21882_v14 = vld [vmem:[#allocation16 + $0x664] ss:$24 sps:$4 sm:$0xff]   ;;  %v7674_v6 = vld [vmem:[#allocation13 + $0x2278] sm:$0xff] }
 0x89f   :  { %17416 = vmatprep.subr.bf16.mxu1 %v21861_v62  ;;  %v7622_v62 = vld [vmem:[#allocation13 + $0x20d8] sm:$0xff] }
 0x8a0   :  { %v7678_v37 = vld [vmem:[#allocation13 + $0x2298] sm:$0xff] }
 0x8a1   :  { %14942 = vmatpush1.bf16.msra.mxu0 %v19743_v55  ;;  %v19808_v55 = vcombine.high %v7622_v62, %v7626_v58  ;;  %v7682_v36 = vld [vmem:[#allocation13 + $0x22b8] sm:$0xff] }
 0x8a2   :  { %17417 = vmatpush1.bf16.msra.mxu1 %v21859_v21  ;;  %14943 = vmatprep.subr.bf16.mxu0 %v19752_v15  ;;  %v7630_v21 = vld [vmem:[#allocation13 + $0x2118] sm:$0xff] }
 0x8a3   :  { %17418 = vmatprep.subr.bf16.mxu1 %v21864_v25  ;;  %v7634_v15 = vld [vmem:[#allocation13 + $0x2138] sm:$0xff]  ;;  %v19807_v25 = vcombine.low %v7622_v62, %v7626_v58 }
 0x8a4   :  { %v19816_v20 = vcombine.high %v7630_v21, %v7634_v15  ;;  %v7686_v62 = vld [vmem:[#allocation13 + $0x22d8] sm:$0xff] }
 0x8a5   :  { %14944 = vmatpush1.bf16.msra.mxu0 %v19751_v32  ;;  %v7638_v32 = vld [vmem:[#allocation13 + $0x2158] sm:$0xff] }
 0x8a6   :  { %17419 = vmatpush1.bf16.msra.mxu1 %v21862_v38  ;;  %14945 = vmatprep.subr.bf16.mxu0 %v19760_v23  ;;  %v19815_v38 = vcombine.low %v7630_v21, %v7634_v15  ;;  %v21886_v23 = vld [vmem:[#allocation16 + $0x6c0] ss:$24 sps:$4 sm:$0xff]   ;;  %v7690_v58 = vld [vmem:[#allocation13 + $0x22f8] sm:$0xff] }
 0x8a7   :  { %17420 = vmatprep.subr.bf16.mxu1 %v21867_v13  ;;  %v7694_v21 = vld [vmem:[#allocation13 + $0x2318] sm:$0xff] }
 0x8a8   :  { %v7698_v15 = vld [vmem:[#allocation13 + $0x2338] sm:$0xff] }
 0x8a9   :  { %14946 = vmatpush1.bf16.msra.mxu0 %v19759_v43  ;;  %v7650_v43 = vld [vmem:[#allocation13 + $0x21b8] sm:$0xff] }
 0x8aa   :  { %17421 = vmatpush1.bf16.msra.mxu1 %v21865_v7  ;;  %14947 = vmatprep.subr.bf16.mxu0 %v19768_v51  ;;  %v21889_v51 = vld [vmem:[#allocation16 + $0x6f0] ss:$24 sps:$4 sm:$0xff]  }
 0x8ab   :  { %17422 = vmatprep.subr.bf16.mxu1 %v21870_v52  ;;  %v19832_v52 = vcombine.high %v7646_v41, %v7650_v43 }
 0x8ad   :  { %14948 = vmatpush1.bf16.msra.mxu0 %v19767_v30  ;;  %v7658_v30 = vld [vmem:[#allocation13 + $0x21f8] sm:$0xff] }
 0x8ae   :  { %17423 = vmatpush1.bf16.msra.mxu1 %v21868_v8  ;;  %14949 = vmatprep.subr.bf16.mxu0 %v19776_v33  ;;  %v19831_v8 = vcombine.low %v7646_v41, %v7650_v43  ;;  %v21892_v33 = vld [vmem:[#allocation16 + $0x720] ss:$24 sps:$4 sm:$0xff]   ;;  %v7710_v41 = vld [vmem:[#allocation13 + $0x2398] sm:$0xff] }
 0x8af   :  { %17424 = vmatprep.subr.bf16.mxu1 %v21873_v12  ;;  %v19840_v12 = vcombine.high %v7654_v56, %v7658_v30  ;;  %v7714_v43 = vld [vmem:[#allocation13 + $0x23b8] sm:$0xff] }
 0x8b1   :  { %14950 = vmatpush1.bf16.msra.mxu0 %v19775_v11  ;;  %v7666_v11 = vld [vmem:[#allocation13 + $0x2238] sm:$0xff] }
 0x8b2   :  { %17425 = vmatpush1.bf16.msra.mxu1 %v21871_v0  ;;  %14960 = vmatprep.subr.bf16.mxu0 %v19784_v53  ;;  %v19839_v0 = vcombine.low %v7654_v56, %v7658_v30  ;;  %v21898_v53 = vld [vmem:[#allocation16 + $0x750] ss:$24 sps:$4 sm:$0xff]  }
 0x8b3   :  { %17435 = vmatprep.subr.bf16.mxu1 %v21876_v18  ;;  %v19848_v18 = vcombine.high %v7662_v59, %v7666_v11  ;;  %v7718_v56 = vld [vmem:[#allocation13 + $0x23d8] sm:$0xff] }
 0x8b4   :  { %14952 = vmatmul.mubr.bf16.vlgmr.msra.gmra.mrb[64].mxu0 %v23147_v4  ;;  %v21885_v4 = vld [vmem:[#allocation16 + $0x694] ss:$24 sps:$4 sm:$0xff]  }
 0x8b5   :  { %17427 = vmatmul.mubr.bf16.vlgmr.msra.gmra.mrb[56].mxu1 %v23243_v31  ;;  %14961 = vmatpush1.bf16.msra.mxu0 %v19783_v34  ;;  %v19847_v34 = vcombine.low %v7662_v59, %v7666_v11  ;;  %v7722_v30 = vld [vmem:[#allocation13 + $0x23f8] sm:$0xff] }
 0x8b6   :  { %17436 = vmatpush1.bf16.msra.mxu1 %v21874_v1  ;;  %14962 = vmatprep.subr.bf16.mxu0 %v19792_v35  ;;  %v21904_v1 = vld [vmem:[#allocation16 + $0x780] ss:$24 sps:$4 sm:$0xff]   ;;  %v19856_v35 = vcombine.high %v7670_v22, %v7674_v6  ;;  %v19903_v59 = vcombine.low %v7718_v56, %v7722_v30  ;;  %v21946_v11 = vld [vmem:[#allocation16 + $0x8d0] ss:$24 sps:$4 sm:$0xff]  }
 0x8b7   :  { %17437 = vmatprep.subr.bf16.mxu1 %v21879_v49  ;;  %14992 = vmatprep.mubr.bf16.mxu0 %v23149_v47  ;;  %v7642_v47 = vld [vmem:[#allocation13 + $0x2178] sm:$0xff] }
 0x8b8   :  { %v19824_v13 = vcombine.high %v7638_v32, %v7642_v47  ;;  %v19823_v7 = vcombine.low %v7638_v32, %v7642_v47  ;;  %v21912_v49 = vld [vmem:[#allocation16 + $0x7b4] ss:$24 sps:$4 sm:$0xff]  }
 0x8b9   :  { %14963 = vmatpush1.bf16.msra.mxu0 %v19791_v26  ;;  %v19855_v26 = vcombine.low %v7670_v22, %v7674_v6  ;;  %v7702_v32 = vld [vmem:[#allocation13 + $0x2358] sm:$0xff]  ;;  %v21909_v22 = vld [vmem:[#allocation16 + $0x6c] ss:$24 sps:$4 sm:$0xff]   ;;  %v21907_v6 = vld [vmem:[#allocation16 + $0x68] ss:$24 sps:$4 sm:$0xff]  }
 0x8ba   :  { %17438 = vmatpush1.bf16.msra.mxu1 %v21877_v27  ;;  %14964 = vmatprep.subr.bf16.mxu0 %v19800_v45  ;;  %v21910_v27 = vld [vmem:[#allocation16 + $0x7b0] ss:$24 sps:$4 sm:$0xff]   ;;  %v19864_v45 = vcombine.high %v7678_v37, %v7682_v36 }
 0x8bb   :  { %17439 = vmatprep.subr.bf16.mxu1 %v21882_v14  ;;  %v21918_v14 = vld [vmem:[#allocation16 + $0x7e4] ss:$24 sps:$4 sm:$0xff]   ;;  %v7706_v47 = vld [vmem:[#allocation13 + $0x2378] sm:$0xff] }
 0x8bd   :  { %14965 = vmatpush1.bf16.msra.mxu0 %v19799_v60  ;;  %v19863_v60 = vcombine.low %v7678_v37, %v7682_v36  ;;  %v23251_v37 = vsub.s32 4, %v23201_v17  ;;  %v23254_v36 = vsub.s32 5, %v23201_v17 }
 0x8be   :  { %17440 = vmatpush1.bf16.msra.mxu1 %v21880_v2  ;;  %14966 = vmatprep.subr.bf16.mxu0 %v19808_v55  ;;  %v21916_v2 = vld [vmem:[#allocation16 + $0x7e0] ss:$24 sps:$4 sm:$0xff]   ;;  %v19872_v55 = vcombine.high %v7686_v62, %v7690_v58 }
 0x8bf   :  { %17441 = vmatprep.subr.bf16.mxu1 %v21885_v4  ;;  %v21924_v4 = vld [vmem:[#allocation16 + $0x814] ss:$24 sps:$4 sm:$0xff]  }
 0x8c1   :  { %14967 = vmatpush1.bf16.msra.mxu0 %v19807_v25  ;;  %v19871_v25 = vcombine.low %v7686_v62, %v7690_v58  ;;  %v21933_v62 = vld [vmem:[#allocation16 + $0x12c] ss:$24 sps:$4 sm:$0xff]  }
 0x8c2   :  { %17442 = vmatpush1.bf16.msra.mxu1 %v21883_v61  ;;  %14968 = vmatprep.subr.bf16.mxu0 %v19816_v20  ;;  %v21922_v61 = vld [vmem:[#allocation16 + $0x810] ss:$24 sps:$4 sm:$0xff]   ;;  %v19880_v20 = vcombine.high %v7694_v21, %v7698_v15 }
 0x8c3   :  { %17443 = vmatprep.subr.bf16.mxu1 %v21888_v44  ;;  %v21930_v44 = vld [vmem:[#allocation16 + $0x844] ss:$24 sps:$4 sm:$0xff]  }
 0x8c5   :  { %14969 = vmatpush1.bf16.msra.mxu0 %v19815_v38  ;;  %v19879_v38 = vcombine.low %v7694_v21, %v7698_v15  ;;  %v21931_v21 = vld [vmem:[#allocation16 + $0x128] ss:$24 sps:$4 sm:$0xff]  }
 0x8c6   :  { %17444 = vmatpush1.bf16.msra.mxu1 %v21886_v23  ;;  %14970 = vmatprep.subr.bf16.mxu0 %v19824_v13  ;;  %v21928_v23 = vld [vmem:[#allocation16 + $0x840] ss:$24 sps:$4 sm:$0xff]   ;;  %v19888_v13 = vcombine.high %v7702_v32, %v7706_v47 }
 0x8c7   :  { %17445 = vmatprep.subr.bf16.mxu1 %v21891_v40  ;;  %v21936_v40 = vld [vmem:[#allocation16 + $0x874] ss:$24 sps:$4 sm:$0xff]  }
 0x8c9   :  { %14971 = vmatpush1.bf16.msra.mxu0 %v19823_v7  ;;  %v19887_v7 = vcombine.low %v7702_v32, %v7706_v47  ;;  %v21951_v32 = vld [vmem:[#allocation16 + $0x1bc] ss:$24 sps:$4 sm:$0xff]  }
 0x8ca   :  { %17446 = vmatpush1.bf16.msra.mxu1 %v21889_v51  ;;  %14972 = vmatprep.subr.bf16.mxu0 %v19832_v52  ;;  %v21934_v51 = vld [vmem:[#allocation16 + $0x870] ss:$24 sps:$4 sm:$0xff]   ;;  %v19896_v52 = vcombine.high %v7710_v41, %v7714_v43 }
 0x8cb   :  { %17447 = vmatprep.subr.bf16.mxu1 %v21894_v9  ;;  %v21942_v9 = vld [vmem:[#allocation16 + $0x8a4] ss:$24 sps:$4 sm:$0xff]  }
 0x8cd   :  { %14973 = vmatpush1.bf16.msra.mxu0 %v19831_v8  ;;  %v19895_v8 = vcombine.low %v7710_v41, %v7714_v43  ;;  %v21954_v41 = vld [vmem:[#allocation16 + $0x1ec] ss:$24 sps:$4 sm:$0xff]   ;;  %v22045_v43 = vld [vmem:[#allocation16 + $0x900] ss:$24 sps:$4 sm:$0xff]  }
 0x8ce   :  { %17448 = vmatpush1.bf16.msra.mxu1 %v21892_v33  ;;  %14974 = vmatprep.subr.bf16.mxu0 %v19840_v12  ;;  %v21940_v33 = vld [vmem:[#allocation16 + $0x8a0] ss:$24 sps:$4 sm:$0xff]   ;;  %v19904_v12 = vcombine.high %v7718_v56, %v7722_v30  ;;  %v22051_v56 = vld [vmem:[#allocation16 + $0x930] ss:$24 sps:$4 sm:$0xff]  }
 0x8cf   :  { %17449 = vmatprep.subr.bf16.mxu1 %v21900_v16  ;;  %v21948_v16 = vld [vmem:[#allocation16 + $0x8d4] ss:$24 sps:$4 sm:$0xff]   ;;  %v21955_v30 = vld [vmem:[#allocation16 + $0x218] ss:$24 sps:$4 sm:$0xff]  }
 0x8d1   :  { %14975 = vmatpush1.bf16.msra.mxu0 %v19839_v0  ;;  %v21897_v0 = vld [vmem:[#allocation16 + $0xc] ss:$24 sps:$4 sm:$0xff]  }
 0x8d2   :  { %17450 = vmatpush1.bf16.msra.mxu1 %v21898_v53  ;;  %14976 = vmatprep.subr.bf16.mxu0 %v19848_v18  ;;  %v21895_v53 = vld [vmem:[#allocation16 + $0x8] ss:$24 sps:$4 sm:$0xff]   ;;  %v21903_v18 = vld [vmem:[#allocation16 + $0x3c] ss:$24 sps:$4 sm:$0xff]  }
 0x8d3   :  { %17451 = vmatprep.subr.bf16.mxu1 %v21906_v50  ;;  %v21901_v50 = vld [vmem:[#allocation16 + $0x38] ss:$24 sps:$4 sm:$0xff]  }
 0x8d5   :  { %14977 = vmatpush1.bf16.msra.mxu0 %v19847_v34  ;;  %v21915_v34 = vld [vmem:[#allocation16 + $0x9c] ss:$24 sps:$4 sm:$0xff]  }
 0x8d6   :  { %17452 = vmatpush1.bf16.msra.mxu1 %v21904_v1  ;;  %14978 = vmatprep.subr.bf16.mxu0 %v19856_v35  ;;  %v21913_v1 = vld [vmem:[#allocation16 + $0x98] ss:$24 sps:$4 sm:$0xff]   ;;  %v21921_v35 = vld [vmem:[#allocation16 + $0xcc] ss:$24 sps:$4 sm:$0xff]  }
 0x8d7   :  { %17453 = vmatprep.subr.bf16.mxu1 %v21912_v49  ;;  %v21919_v49 = vld [vmem:[#allocation16 + $0xc8] ss:$24 sps:$4 sm:$0xff]  }
 0x8d9   :  { %14979 = vmatpush1.bf16.msra.mxu0 %v19855_v26  ;;  %v23256_v26 = vld [vmem:[#allocation14] sm:$0xff] }
 0x8da   :  { %17454 = vmatpush1.bf16.msra.mxu1 %v21910_v27  ;;  %14980 = vmatprep.subr.bf16.mxu0 %v19864_v45  ;;  %v7744_v27 = vrot.slane %v23256_v26, %v23251_v37  ;;  %v7748_v45 = vrot.slane %v23256_v26, %v23254_v36 }
 0x8db   :  { %17455 = vmatprep.subr.bf16.mxu1 %v21918_v14  ;;  %v21925_v14 = vld [vmem:[#allocation16 + $0xf8] ss:$24 sps:$4 sm:$0xff]  }
 0x8dd   :  { %14981 = vmatpush1.bf16.msra.mxu0 %v19863_v60 }
 0x8de   :  { %17456 = vmatpush1.bf16.msra.mxu1 %v21916_v2  ;;  %14982 = vmatprep.subr.bf16.mxu0 %v19872_v55 }
 0x8df   :  { %17457 = vmatprep.subr.bf16.mxu1 %v21924_v4 }
 0x8e1   :  { %14983 = vmatpush1.bf16.msra.mxu0 %v19871_v25  ;;  %v21939_v25 = vld [vmem:[#allocation16 + $0x15c] ss:$24 sps:$4 sm:$0xff]  }
 0x8e2   :  { %17458 = vmatpush1.bf16.msra.mxu1 %v21922_v61  ;;  %14984 = vmatprep.subr.bf16.mxu0 %v19880_v20  ;;  %v21937_v61 = vld [vmem:[#allocation16 + $0x158] ss:$24 sps:$4 sm:$0xff]   ;;  %v21945_v20 = vld [vmem:[#allocation16 + $0x18c] ss:$24 sps:$4 sm:$0xff]  }
 0x8e3   :  { %17459 = vmatprep.subr.bf16.mxu1 %v21930_v44  ;;  %v21943_v44 = vld [vmem:[#allocation16 + $0x188] ss:$24 sps:$4 sm:$0xff]  }
 0x8e5   :  { %14985 = vmatpush1.bf16.msra.mxu0 %v19879_v38 }
 0x8e6   :  { %17460 = vmatpush1.bf16.msra.mxu1 %v21928_v23  ;;  %14986 = vmatprep.subr.bf16.mxu0 %v19888_v13  ;;  %v21949_v23 = vld [vmem:[#allocation16 + $0x1b8] ss:$24 sps:$4 sm:$0xff]   ;;  %v22047_v13 = vld [vmem:[#allocation16 + $0x904] ss:$24 sps:$4 sm:$0xff]  }
 0x8e7   :  { %17461 = vmatprep.subr.bf16.mxu1 %v21936_v40 }
 0x8e9   :  { %14987 = vmatpush1.bf16.msra.mxu0 %v19887_v7 }
 0x8ea   :  { %17462 = vmatpush1.bf16.msra.mxu1 %v21934_v51  ;;  %14988 = vmatprep.subr.bf16.mxu0 %v19896_v52  ;;  %v21952_v51 = vld [vmem:[#allocation16 + $0x1e8] ss:$24 sps:$4 sm:$0xff]   ;;  %v22053_v52 = vld [vmem:[#allocation16 + $0x934] ss:$24 sps:$4 sm:$0xff]  }
 0x8eb   :  { %17463 = vmatprep.subr.bf16.mxu1 %v21942_v9  ;;  %v21957_v9 = vld [vmem:[#allocation16 + $0x21c] ss:$24 sps:$4 sm:$0xff]  }
 0x8ed   :  { %14989 = vmatpush1.bf16.msra.mxu0 %v19895_v8  ;;  %v22059_v8 = vld [vmem:[#allocation16 + $0x964] ss:$24 sps:$4 sm:$0xff]  }
 0x8ee   :  { %17464 = vmatpush1.bf16.msra.mxu1 %v21940_v33  ;;  %14990 = vmatprep.subr.bf16.mxu0 %v19904_v12  ;;  %v21960_v33 = vld [vmem:[#allocation16 + $0x24c] ss:$24 sps:$4 sm:$0xff]   ;;  %v22057_v12 = vld [vmem:[#allocation16 + $0x960] ss:$24 sps:$4 sm:$0xff]  }
 0x8ef   :  { %17465 = vmatprep.subr.bf16.mxu1 %v21948_v16  ;;  %v21958_v16 = vld [vmem:[#allocation16 + $0x248] ss:$24 sps:$4 sm:$0xff]  }
 0x8f1   :  { %14991 = vmatpush1.bf16.msra.mxu0 %v19903_v59  ;;  %v22065_v59 = vld [vmem:[#allocation16 + $0x994] ss:$24 sps:$4 sm:$0xff]  }
 0x8f2   :  { %17466 = vmatpush1.bf16.msra.mxu1 %v21946_v11  ;;  %17517 = vmatprep.subr.bf16.mxu0 %v21897_v0  ;;  %v21963_v11 = vld [vmem:[#allocation16 + $0x27c] ss:$24 sps:$4 sm:$0xff]   ;;  %v22063_v0 = vld [vmem:[#allocation16 + $0x990] ss:$24 sps:$4 sm:$0xff]  }
 0x8f3   :  { %17476 = vmatprep.subr.bf16.mxu1 %v22047_v13  ;;  %v22113_v13 = vld [vmem:[#allocation16 + $0xb14] ss:$24 sps:$4 sm:$0xff]  }
 0x8f4   :  { %14993 = vmatmul.mubr.bf16.vlgmr.msra.gmra.mrb[64].mxu0 %v23155_v24  ;;  %v21927_v24 = vld [vmem:[#allocation16 + $0xfc] ss:$24 sps:$4 sm:$0xff]  }
 0x8f5   :  { %17518 = vmatpush1.bf16.msra.mxu0 %v21895_v53  ;;  %17549 = vmatprep.mubr.bf16.mxu0 %v23211_v54  ;;  %v21961_v53 = vld [vmem:[#allocation16 + $0x278] ss:$24 sps:$4 sm:$0xff]  }
 0x8f6   :  { %17519 = vmatprep.subr.bf16.mxu0 %v21903_v18  ;;  %v22071_v18 = vld [vmem:[#allocation16 + $0x9c4] ss:$24 sps:$4 sm:$0xff]  }
 0x8f9   :  { %17520 = vmatpush1.bf16.msra.mxu0 %v21901_v50  ;;  %v21966_v50 = vld [vmem:[#allocation16 + $0x2ac] ss:$24 sps:$4 sm:$0xff]  }
 0x8fa   :  { %17521 = vmatprep.subr.bf16.mxu0 %v21909_v22  ;;  %v22069_v22 = vld [vmem:[#allocation16 + $0x9c0] ss:$24 sps:$4 sm:$0xff]  }
 0x8fd   :  { %17522 = vmatpush1.bf16.msra.mxu0 %v21907_v6  ;;  %v21964_v6 = vld [vmem:[#allocation16 + $0x2a8] ss:$24 sps:$4 sm:$0xff]  }
 0x8fe   :  { %17523 = vmatprep.subr.bf16.mxu0 %v21915_v34  ;;  %v22077_v34 = vld [vmem:[#allocation16 + $0x9f4] ss:$24 sps:$4 sm:$0xff]  }
 0x901   :  { %17524 = vmatpush1.bf16.msra.mxu0 %v21913_v1  ;;  %v21969_v1 = vld [vmem:[#allocation16 + $0x2dc] ss:$24 sps:$4 sm:$0xff]  }
 0x902   :  { %17525 = vmatprep.subr.bf16.mxu0 %v21921_v35  ;;  %v22075_v35 = vld [vmem:[#allocation16 + $0x9f0] ss:$24 sps:$4 sm:$0xff]  }
 0x905   :  { %17526 = vmatpush1.bf16.msra.mxu0 %v21919_v49  ;;  %v21967_v49 = vld [vmem:[#allocation16 + $0x2d8] ss:$24 sps:$4 sm:$0xff]  }
 0x906   :  { %17527 = vmatprep.subr.bf16.mxu0 %v21927_v24  ;;  %v22083_v24 = vld [vmem:[#allocation16 + $0xa24] ss:$24 sps:$4 sm:$0xff]  }
 0x908   :  { %v14625_v58 = vpop.f32.mrb[52].mxu1 }
 0x909   :  { %v20293_v60 = vadd.f32 %v14625_v58, %v7744_v27  ;;  %v14627_v2 = vpop.f32.mrb[53].mxu1  ;;  %17528 = vmatpush1.bf16.msra.mxu0 %v21925_v14  ;;  %v21972_v27 = vld [vmem:[#allocation16 + $0x30c] ss:$24 sps:$4 sm:$0xff]   ;;  %v21970_v14 = vld [vmem:[#allocation16 + $0x308] ss:$24 sps:$4 sm:$0xff]  }
 0x90a   :  { %v20294_v55 = vadd.f32 %v14627_v2, %v7748_v45  ;;  %v14629_v4 = vpop.f32.mrb[54].mxu1  ;;  %17529 = vmatprep.subr.bf16.mxu0 %v21933_v62  ;;  %v22081_v45 = vld [vmem:[#allocation16 + $0xa20] ss:$24 sps:$4 sm:$0xff]   ;;  %v22089_v62 = vld [vmem:[#allocation16 + $0xa54] ss:$24 sps:$4 sm:$0xff]  }
 0x90b   :  { %22362 = vtanh.f32 %v20293_v60  ;;  %v14630_v15 = vpop.f32.mrb[55].mxu1  ;;  %v21975_v58 = vld [vmem:[#allocation16 + $0x33c] ss:$24 sps:$4 sm:$0xff]   ;;  %v22087_v60 = vld [vmem:[#allocation16 + $0xa50] ss:$24 sps:$4 sm:$0xff]  }
 0x90c   :  { %22364 = vtanh.f32 %v20294_v55  ;;  %v21973_v2 = vld [vmem:[#allocation16 + $0x338] ss:$24 sps:$4 sm:$0xff]   ;;  %v22095_v55 = vld [vmem:[#allocation16 + $0xa84] ss:$24 sps:$4 sm:$0xff]   ;;  %v21976_v15 = vld [vmem:[#allocation16 + $0x368] ss:$24 sps:$4 sm:$0xff]  }
 0x90d   :  { %17530 = vmatpush1.bf16.msra.mxu0 %v21931_v21  ;;  %v21978_v4 = vld [vmem:[#allocation16 + $0x36c] ss:$24 sps:$4 sm:$0xff]   ;;  %v22093_v21 = vld [vmem:[#allocation16 + $0xa80] ss:$24 sps:$4 sm:$0xff]  }
 0x90e   :  { %17531 = vmatprep.subr.bf16.mxu0 %v21939_v25  ;;  %v22101_v25 = vld [vmem:[#allocation16 + $0xab4] ss:$24 sps:$4 sm:$0xff]  }
 0x911   :  { %17532 = vmatpush1.bf16.msra.mxu0 %v21937_v61  ;;  %v21981_v61 = vld [vmem:[#allocation16 + $0x39c] ss:$24 sps:$4 sm:$0xff]  }
 0x912   :  { %17533 = vmatprep.subr.bf16.mxu0 %v21945_v20  ;;  %v22099_v20 = vld [vmem:[#allocation16 + $0xab0] ss:$24 sps:$4 sm:$0xff]  }
 0x915   :  { %v22363_v47 = vpop.eup %22362  ;;  %17534 = vmatpush1.bf16.msra.mxu0 %v21943_v44  ;;  %v21979_v44 = vld [vmem:[#allocation16 + $0x398] ss:$24 sps:$4 sm:$0xff]  }
 0x916   :  { %v22365_v38 = vpop.eup %22364  ;;  %17535 = vmatprep.subr.bf16.mxu0 %v21951_v32  ;;  %v23264_v7 = vpack.c.bf16 %v22363_v47, %v22363_v47  ;;  %v22107_v32 = vld [vmem:[#allocation16 + $0xae4] ss:$24 sps:$4 sm:$0xff]  }
 0x917   :  { %v23262_v40 = vpack.c.bf16 %v22365_v38, %v22365_v38  ;;  %v21984_v47 = vld [vmem:[#allocation16 + $0x3cc] ss:$24 sps:$4 sm:$0xff]   ;;  %v22105_v38 = vld [vmem:[#allocation16 + $0xae0] ss:$24 sps:$4 sm:$0xff]  }
 0x919   :  { %17467 = vmatprep.mubr.bf16.mxu1 %v23262_v40  ;;  %17536 = vmatpush1.bf16.msra.mxu0 %v21949_v23  ;;  %v21982_v23 = vld [vmem:[#allocation16 + $0x3c8] ss:$24 sps:$4 sm:$0xff]  }
 0x91a   :  { %17468 = vmatmul.mubr.bf16.vlgmr.msra.gmra.mrb[56].mxu1 %v23264_v7  ;;  %17537 = vmatprep.subr.bf16.mxu0 %v21954_v41  ;;  %v21987_v41 = vld [vmem:[#allocation16 + $0x3fc] ss:$24 sps:$4 sm:$0xff]  }
 0x91b   :  { %17477 = vmatpush1.bf16.msra.mxu1 %v22045_v43  ;;  %v22111_v43 = vld [vmem:[#allocation16 + $0xb10] ss:$24 sps:$4 sm:$0xff]  }
 0x91c   :  { %17478 = vmatprep.subr.bf16.mxu1 %v22053_v52  ;;  %v21990_v52 = vld [vmem:[#allocation16 + $0x42c] ss:$24 sps:$4 sm:$0xff]  }
 0x91d   :  { %17538 = vmatpush1.bf16.msra.mxu0 %v21952_v51  ;;  %v21985_v51 = vld [vmem:[#allocation16 + $0x3f8] ss:$24 sps:$4 sm:$0xff]  }
 0x91e   :  { %17539 = vmatprep.subr.bf16.mxu0 %v21957_v9  ;;  %v22119_v9 = vld [vmem:[#allocation16 + $0xb44] ss:$24 sps:$4 sm:$0xff]  }
 0x91f   :  { %17479 = vmatpush1.bf16.msra.mxu1 %v22051_v56  ;;  %v22117_v56 = vld [vmem:[#allocation16 + $0xb40] ss:$24 sps:$4 sm:$0xff]  }
 0x920   :  { %17480 = vmatprep.subr.bf16.mxu1 %v22059_v8  ;;  %v21993_v8 = vld [vmem:[#allocation16 + $0x45c] ss:$24 sps:$4 sm:$0xff]  }
 0x921   :  { %17540 = vmatpush1.bf16.msra.mxu0 %v21955_v30  ;;  %v21988_v30 = vld [vmem:[#allocation16 + $0x428] ss:$24 sps:$4 sm:$0xff]  }
 0x922   :  { %17541 = vmatprep.subr.bf16.mxu0 %v21960_v33  ;;  %v22125_v33 = vld [vmem:[#allocation16 + $0xb74] ss:$24 sps:$4 sm:$0xff]  }
 0x923   :  { %17481 = vmatpush1.bf16.msra.mxu1 %v22057_v12  ;;  %v22123_v12 = vld [vmem:[#allocation16 + $0xb70] ss:$24 sps:$4 sm:$0xff]  }
 0x924   :  { %17482 = vmatprep.subr.bf16.mxu1 %v22065_v59  ;;  %v21996_v59 = vld [vmem:[#allocation16 + $0x48c] ss:$24 sps:$4 sm:$0xff]  }
 0x925   :  { %17542 = vmatpush1.bf16.msra.mxu0 %v21958_v16  ;;  %v21991_v16 = vld [vmem:[#allocation16 + $0x458] ss:$24 sps:$4 sm:$0xff]  }
 0x926   :  { %17543 = vmatprep.subr.bf16.mxu0 %v21963_v11  ;;  %v22131_v11 = vld [vmem:[#allocation16 + $0xba4] ss:$24 sps:$4 sm:$0xff]  }
 0x927   :  { %17483 = vmatpush1.bf16.msra.mxu1 %v22063_v0  ;;  %v22129_v0 = vld [vmem:[#allocation16 + $0xba0] ss:$24 sps:$4 sm:$0xff]  }
 0x928   :  { %17484 = vmatprep.subr.bf16.mxu1 %v22071_v18  ;;  %v21999_v18 = vld [vmem:[#allocation16 + $0x4bc] ss:$24 sps:$4 sm:$0xff]  }
 0x929   :  { %17544 = vmatpush1.bf16.msra.mxu0 %v21961_v53  ;;  %v21994_v53 = vld [vmem:[#allocation16 + $0x488] ss:$24 sps:$4 sm:$0xff]  }
 0x92a   :  { %17545 = vmatprep.subr.bf16.mxu0 %v21966_v50  ;;  %v22137_v50 = vld [vmem:[#allocation16 + $0xbd4] ss:$24 sps:$4 sm:$0xff]  }
 0x92b   :  { %17485 = vmatpush1.bf16.msra.mxu1 %v22069_v22  ;;  %v22135_v22 = vld [vmem:[#allocation16 + $0xbd0] ss:$24 sps:$4 sm:$0xff]  }
 0x92c   :  { %17486 = vmatprep.subr.bf16.mxu1 %v22077_v34  ;;  %v22002_v34 = vld [vmem:[#allocation16 + $0x4ec] ss:$24 sps:$4 sm:$0xff]  }
 0x92d   :  { %17546 = vmatpush1.bf16.msra.mxu0 %v21964_v6  ;;  %v21997_v6 = vld [vmem:[#allocation16 + $0x4b8] ss:$24 sps:$4 sm:$0xff]  }
 0x92e   :  { %17547 = vmatprep.subr.bf16.mxu0 %v21969_v1  ;;  %v22146_v1 = vld [vmem:[#allocation16 + $0x14] ss:$24 sps:$4 sm:$0xff]  }
 0x92f   :  { %17487 = vmatpush1.bf16.msra.mxu1 %v22075_v35  ;;  %v22000_v35 = vld [vmem:[#allocation16 + $0x4e8] ss:$24 sps:$4 sm:$0xff]  }
 0x930   :  { %17488 = vmatprep.subr.bf16.mxu1 %v22083_v24  ;;  %v22003_v24 = vld [vmem:[#allocation16 + $0x518] ss:$24 sps:$4 sm:$0xff]  }
 0x931   :  { %17548 = vmatpush1.bf16.msra.mxu0 %v21967_v49  ;;  %v22005_v49 = vld [vmem:[#allocation16 + $0x51c] ss:$24 sps:$4 sm:$0xff]  }
 0x932   :  { %17558 = vmatprep.subr.bf16.mxu0 %v21972_v27  ;;  %v22008_v27 = vld [vmem:[#allocation16 + $0x54c] ss:$24 sps:$4 sm:$0xff]  }
 0x933   :  { %17489 = vmatpush1.bf16.msra.mxu1 %v22081_v45  ;;  %v22006_v45 = vld [vmem:[#allocation16 + $0x548] ss:$24 sps:$4 sm:$0xff]  }
 0x934   :  { %17490 = vmatprep.subr.bf16.mxu1 %v22089_v62  ;;  %17550 = vmatmul.mubr.bf16.vlgmr.msra.gmra.mrb[68].mxu0 %v23229_v42  ;;  %v22009_v62 = vld [vmem:[#allocation16 + $0x578] ss:$24 sps:$4 sm:$0xff]  }
 0x935   :  { %17559 = vmatpush1.bf16.msra.mxu0 %v21970_v14  ;;  %17590 = vmatprep.mubr.bf16.mxu0 %v23231_v63  ;;  %v22011_v14 = vld [vmem:[#allocation16 + $0x57c] ss:$24 sps:$4 sm:$0xff]  }
 0x936   :  { %17560 = vmatprep.subr.bf16.mxu0 %v21975_v58  ;;  %v22014_v58 = vld [vmem:[#allocation16 + $0x5ac] ss:$24 sps:$4 sm:$0xff]  }
 0x937   :  { %17491 = vmatpush1.bf16.msra.mxu1 %v22087_v60  ;;  %v22012_v60 = vld [vmem:[#allocation16 + $0x5a8] ss:$24 sps:$4 sm:$0xff]  }
 0x938   :  { %17492 = vmatprep.subr.bf16.mxu1 %v22095_v55  ;;  %v22015_v55 = vld [vmem:[#allocation16 + $0x5d8] ss:$24 sps:$4 sm:$0xff]  }
 0x939   :  { %17561 = vmatpush1.bf16.msra.mxu0 %v21973_v2  ;;  %v22017_v2 = vld [vmem:[#allocation16 + $0x5dc] ss:$24 sps:$4 sm:$0xff]  }
 0x93a   :  { %17562 = vmatprep.subr.bf16.mxu0 %v21978_v4  ;;  %v22020_v4 = vld [vmem:[#allocation16 + $0x60c] ss:$24 sps:$4 sm:$0xff]  }
 0x93b   :  { %17493 = vmatpush1.bf16.msra.mxu1 %v22093_v21  ;;  %v22018_v21 = vld [vmem:[#allocation16 + $0x608] ss:$24 sps:$4 sm:$0xff]  }
 0x93c   :  { %17494 = vmatprep.subr.bf16.mxu1 %v22101_v25  ;;  %v22021_v25 = vld [vmem:[#allocation16 + $0x638] ss:$24 sps:$4 sm:$0xff]  }
 0x93d   :  { %17563 = vmatpush1.bf16.msra.mxu0 %v21976_v15  ;;  %v22023_v15 = vld [vmem:[#allocation16 + $0x63c] ss:$24 sps:$4 sm:$0xff]  }
 0x93e   :  { %17564 = vmatprep.subr.bf16.mxu0 %v21981_v61  ;;  %v22026_v61 = vld [vmem:[#allocation16 + $0x66c] ss:$24 sps:$4 sm:$0xff]  }
 0x93f   :  { %17495 = vmatpush1.bf16.msra.mxu1 %v22099_v20  ;;  %v22024_v20 = vld [vmem:[#allocation16 + $0x668] ss:$24 sps:$4 sm:$0xff]  }
 0x940   :  { %17496 = vmatprep.subr.bf16.mxu1 %v22107_v32  ;;  %v22027_v32 = vld [vmem:[#allocation16 + $0x698] ss:$24 sps:$4 sm:$0xff]  }
 0x941   :  { %17565 = vmatpush1.bf16.msra.mxu0 %v21979_v44  ;;  %v22029_v44 = vld [vmem:[#allocation16 + $0x69c] ss:$24 sps:$4 sm:$0xff]  }
 0x942   :  { %17566 = vmatprep.subr.bf16.mxu0 %v21984_v47  ;;  %v22032_v47 = vld [vmem:[#allocation16 + $0x6cc] ss:$24 sps:$4 sm:$0xff]  }
 0x943   :  { %17497 = vmatpush1.bf16.msra.mxu1 %v22105_v38  ;;  %v22030_v38 = vld [vmem:[#allocation16 + $0x6c8] ss:$24 sps:$4 sm:$0xff]  }
 0x944   :  { %17498 = vmatprep.subr.bf16.mxu1 %v22113_v13  ;;  %v22033_v13 = vld [vmem:[#allocation16 + $0x6f8] ss:$24 sps:$4 sm:$0xff]  }
 0x945   :  { %17567 = vmatpush1.bf16.msra.mxu0 %v21982_v23  ;;  %v22035_v23 = vld [vmem:[#allocation16 + $0x6fc] ss:$24 sps:$4 sm:$0xff]  }
 0x946   :  { %17568 = vmatprep.subr.bf16.mxu0 %v21987_v41  ;;  %v22038_v41 = vld [vmem:[#allocation16 + $0x72c] ss:$24 sps:$4 sm:$0xff]  }
 0x947   :  { %17499 = vmatpush1.bf16.msra.mxu1 %v22111_v43  ;;  %v22036_v43 = vld [vmem:[#allocation16 + $0x728] ss:$24 sps:$4 sm:$0xff]  }
 0x948   :  { %17500 = vmatprep.subr.bf16.mxu1 %v22119_v9  ;;  %v22044_v9 = vld [vmem:[#allocation16 + $0x78c] ss:$24 sps:$4 sm:$0xff]  }
 0x949   :  { %17569 = vmatpush1.bf16.msra.mxu0 %v21985_v51  ;;  %v22041_v51 = vld [vmem:[#allocation16 + $0x75c] ss:$24 sps:$4 sm:$0xff]  }
 0x94a   :  { %17570 = vmatprep.subr.bf16.mxu0 %v21990_v52  ;;  %v22039_v52 = vld [vmem:[#allocation16 + $0x758] ss:$24 sps:$4 sm:$0xff]  }
 0x94b   :  { %17501 = vmatpush1.bf16.msra.mxu1 %v22117_v56  ;;  %v22042_v56 = vld [vmem:[#allocation16 + $0x788] ss:$24 sps:$4 sm:$0xff]  }
 0x94c   :  { %17502 = vmatprep.subr.bf16.mxu1 %v22125_v33  ;;  %v22056_v33 = vld [vmem:[#allocation16 + $0x7ec] ss:$24 sps:$4 sm:$0xff]  }
 0x94d   :  { %17571 = vmatpush1.bf16.msra.mxu0 %v21988_v30  ;;  %v22050_v30 = vld [vmem:[#allocation16 + $0x7bc] ss:$24 sps:$4 sm:$0xff]  }
 0x94e   :  { %17572 = vmatprep.subr.bf16.mxu0 %v21993_v8  ;;  %v22048_v8 = vld [vmem:[#allocation16 + $0x7b8] ss:$24 sps:$4 sm:$0xff]  }
 0x94f   :  { %17503 = vmatpush1.bf16.msra.mxu1 %v22123_v12  ;;  %v22054_v12 = vld [vmem:[#allocation16 + $0x7e8] ss:$24 sps:$4 sm:$0xff]  }
 0x950   :  { %17504 = vmatprep.subr.bf16.mxu1 %v22131_v11  ;;  %v22068_v11 = vld [vmem:[#allocation16 + $0x84c] ss:$24 sps:$4 sm:$0xff]  }
 0x951   :  { %17573 = vmatpush1.bf16.msra.mxu0 %v21991_v16  ;;  %v22062_v16 = vld [vmem:[#allocation16 + $0x81c] ss:$24 sps:$4 sm:$0xff]  }
 0x952   :  { %17574 = vmatprep.subr.bf16.mxu0 %v21996_v59  ;;  %v22060_v59 = vld [vmem:[#allocation16 + $0x818] ss:$24 sps:$4 sm:$0xff]  }
 0x953   :  { %17505 = vmatpush1.bf16.msra.mxu1 %v22129_v0  ;;  %v22066_v0 = vld [vmem:[#allocation16 + $0x848] ss:$24 sps:$4 sm:$0xff]  }
 0x954   :  { %17506 = vmatprep.subr.bf16.mxu1 %v22137_v50  ;;  %v22080_v50 = vld [vmem:[#allocation16 + $0x8ac] ss:$24 sps:$4 sm:$0xff]  }
 0x955   :  { %17575 = vmatpush1.bf16.msra.mxu0 %v21994_v53  ;;  %v22074_v53 = vld [vmem:[#allocation16 + $0x87c] ss:$24 sps:$4 sm:$0xff]  }
 0x956   :  { %17576 = vmatprep.subr.bf16.mxu0 %v21999_v18  ;;  %v22072_v18 = vld [vmem:[#allocation16 + $0x878] ss:$24 sps:$4 sm:$0xff]  }
 0x957   :  { %17507 = vmatpush1.bf16.msra.mxu1 %v22135_v22  ;;  %v22078_v22 = vld [vmem:[#allocation16 + $0x8a8] ss:$24 sps:$4 sm:$0xff]  }
 0x958   :  { %17681 = vmatprep.subr.bf16.mxu1 %v22146_v1  ;;  %v22092_v1 = vld [vmem:[#allocation16 + $0x90c] ss:$24 sps:$4 sm:$0xff]  }
 0x959   :  { %17577 = vmatpush1.bf16.msra.mxu0 %v21997_v6  ;;  %v22086_v6 = vld [vmem:[#allocation16 + $0x8dc] ss:$24 sps:$4 sm:$0xff]  }
 0x95a   :  { %17578 = vmatprep.subr.bf16.mxu0 %v22002_v34  ;;  %v22084_v34 = vld [vmem:[#allocation16 + $0x8d8] ss:$24 sps:$4 sm:$0xff]  }
 0x95d   :  { %17579 = vmatpush1.bf16.msra.mxu0 %v22000_v35  ;;  %v22090_v35 = vld [vmem:[#allocation16 + $0x908] ss:$24 sps:$4 sm:$0xff]  }
 0x95e   :  { %17580 = vmatprep.subr.bf16.mxu0 %v22005_v49  ;;  %v22098_v49 = vld [vmem:[#allocation16 + $0x93c] ss:$24 sps:$4 sm:$0xff]  }
 0x961   :  { %17581 = vmatpush1.bf16.msra.mxu0 %v22003_v24  ;;  %v22096_v24 = vld [vmem:[#allocation16 + $0x938] ss:$24 sps:$4 sm:$0xff]  }
 0x962   :  { %17582 = vmatprep.subr.bf16.mxu0 %v22008_v27  ;;  %v22104_v27 = vld [vmem:[#allocation16 + $0x96c] ss:$24 sps:$4 sm:$0xff]  }
 0x965   :  { %17583 = vmatpush1.bf16.msra.mxu0 %v22006_v45  ;;  %v22102_v45 = vld [vmem:[#allocation16 + $0x968] ss:$24 sps:$4 sm:$0xff]  }
 0x966   :  { %17584 = vmatprep.subr.bf16.mxu0 %v22011_v14  ;;  %v22110_v14 = vld [vmem:[#allocation16 + $0x99c] ss:$24 sps:$4 sm:$0xff]  }
 0x969   :  { %17585 = vmatpush1.bf16.msra.mxu0 %v22009_v62  ;;  %v22108_v62 = vld [vmem:[#allocation16 + $0x998] ss:$24 sps:$4 sm:$0xff]  }
 0x96a   :  { %17586 = vmatprep.subr.bf16.mxu0 %v22014_v58  ;;  %v22116_v58 = vld [vmem:[#allocation16 + $0x9cc] ss:$24 sps:$4 sm:$0xff]  }
 0x96d   :  { %17587 = vmatpush1.bf16.msra.mxu0 %v22012_v60  ;;  %v7751_v60 = vsub.s32 6, %v23201_v17 }
 0x96e   :  { %17588 = vmatprep.subr.bf16.mxu0 %v22017_v2  ;;  %v22114_v2 = vld [vmem:[#allocation16 + $0x9c8] ss:$24 sps:$4 sm:$0xff]  }
 0x971   :  { %17589 = vmatpush1.bf16.msra.mxu0 %v22015_v55  ;;  %v7755_v55 = vsub.s32 7, %v23201_v17  ;;  %v22134_v17 = vld [vmem:[#allocation16 + $0xa5c] ss:$24 sps:$4 sm:$0xff]  }
 0x972   :  { %17599 = vmatprep.subr.bf16.mxu0 %v22020_v4  ;;  %v22122_v4 = vld [vmem:[#allocation16 + $0x9fc] ss:$24 sps:$4 sm:$0xff]  }
 0x974   :  { %17591 = vmatmul.mubr.bf16.vlgmr.msra.gmra.mrb[68].mxu0 %v23243_v31 }
 0x975   :  { %17600 = vmatpush1.bf16.msra.mxu0 %v22018_v21  ;;  %17631 = vmatprep.mubr.bf16.mxu0 %v23262_v40  ;;  %v7752_v21 = vrot.slane %v23256_v26, %v7751_v60  ;;  %v22182_v60 = vld [vmem:[#allocation16 + $0x134] ss:$24 sps:$4 sm:$0xff]  }
 0x976   :  { %17601 = vmatprep.subr.bf16.mxu0 %v22023_v15  ;;  %v7756_v15 = vrot.slane %v23256_v26, %v7755_v55  ;;  %v22138_v26 = vld [vmem:[#allocation16 + $0xa88] ss:$24 sps:$4 sm:$0xff]  }
 0x977   :  { %v22180_v55 = vld [vmem:[#allocation16 + $0x130] ss:$24 sps:$4 sm:$0xff]  }
 0x979   :  { %17602 = vmatpush1.bf16.msra.mxu0 %v22021_v25  ;;  %v22120_v25 = vld [vmem:[#allocation16 + $0x9f8] ss:$24 sps:$4 sm:$0xff]  }
 0x97a   :  { %17603 = vmatprep.subr.bf16.mxu0 %v22026_v61  ;;  %v22128_v61 = vld [vmem:[#allocation16 + $0xa2c] ss:$24 sps:$4 sm:$0xff]  }
 0x97d   :  { %17604 = vmatpush1.bf16.msra.mxu0 %v22024_v20 }
 0x97e   :  { %17605 = vmatprep.subr.bf16.mxu0 %v22029_v44 }
 0x981   :  { %17606 = vmatpush1.bf16.msra.mxu0 %v22027_v32 }
 0x982   :  { %17607 = vmatprep.subr.bf16.mxu0 %v22032_v47 }
 0x985   :  { %17608 = vmatpush1.bf16.msra.mxu0 %v22030_v38 }
 0x986   :  { %17609 = vmatprep.subr.bf16.mxu0 %v22035_v23  ;;  %v22126_v23 = vld [vmem:[#allocation16 + $0xa28] ss:$24 sps:$4 sm:$0xff]  }
 0x989   :  { %17610 = vmatpush1.bf16.msra.mxu0 %v22033_v13 }
 0x98a   :  { %17611 = vmatprep.subr.bf16.mxu0 %v22038_v41  ;;  %v22132_v41 = vld [vmem:[#allocation16 + $0xa58] ss:$24 sps:$4 sm:$0xff]  }
 0x98d   :  { %17612 = vmatpush1.bf16.msra.mxu0 %v22036_v43  ;;  %v22140_v43 = vld [vmem:[#allocation16 + $0xa8c] ss:$24 sps:$4 sm:$0xff]  }
 0x98e   :  { %17613 = vmatprep.subr.bf16.mxu0 %v22041_v51  ;;  %v22143_v51 = vld [vmem:[#allocation16 + $0xabc] ss:$24 sps:$4 sm:$0xff]  }
 0x991   :  { %17614 = vmatpush1.bf16.msra.mxu0 %v22039_v52 }
 0x992   :  { %17615 = vmatprep.subr.bf16.mxu0 %v22044_v9 }
 0x995   :  { %17616 = vmatpush1.bf16.msra.mxu0 %v22042_v56  ;;  %v22141_v56 = vld [vmem:[#allocation16 + $0xab8] ss:$24 sps:$4 sm:$0xff]  }
 0x996   :  { %17617 = vmatprep.subr.bf16.mxu0 %v22050_v30 }
 0x999   :  { %17618 = vmatpush1.bf16.msra.mxu0 %v22048_v8  ;;  %v22144_v8 = vld [vmem:[#allocation16 + $0x10] ss:$24 sps:$4 sm:$0xff]  }
 0x99a   :  { %17619 = vmatprep.subr.bf16.mxu0 %v22056_v33 }
 0x99d   :  { %17620 = vmatpush1.bf16.msra.mxu0 %v22054_v12  ;;  %v22149_v12 = vld [vmem:[#allocation16 + $0xaec] ss:$24 sps:$4 sm:$0xff]  }
 0x99e   :  { %17621 = vmatprep.subr.bf16.mxu0 %v22062_v16  ;;  %v22152_v16 = vld [vmem:[#allocation16 + $0x44] ss:$24 sps:$4 sm:$0xff]  }
 0x9a1   :  { %17622 = vmatpush1.bf16.msra.mxu0 %v22060_v59  ;;  %v22147_v59 = vld [vmem:[#allocation16 + $0xae8] ss:$24 sps:$4 sm:$0xff]  }
 0x9a2   :  { %17623 = vmatprep.subr.bf16.mxu0 %v22068_v11  ;;  %v22150_v11 = vld [vmem:[#allocation16 + $0x40] ss:$24 sps:$4 sm:$0xff]  }
 0x9a5   :  { %17624 = vmatpush1.bf16.msra.mxu0 %v22066_v0  ;;  %v22155_v0 = vld [vmem:[#allocation16 + $0xb1c] ss:$24 sps:$4 sm:$0xff]  }
 0x9a6   :  { %17625 = vmatprep.subr.bf16.mxu0 %v22074_v53  ;;  %v22158_v53 = vld [vmem:[#allocation16 + $0x74] ss:$24 sps:$4 sm:$0xff]  }
 0x9a9   :  { %17626 = vmatpush1.bf16.msra.mxu0 %v22072_v18  ;;  %v22153_v18 = vld [vmem:[#allocation16 + $0xb18] ss:$24 sps:$4 sm:$0xff]  }
 0x9aa   :  { %17627 = vmatprep.subr.bf16.mxu0 %v22080_v50  ;;  %v22156_v50 = vld [vmem:[#allocation16 + $0x70] ss:$24 sps:$4 sm:$0xff]  }
 0x9ad   :  { %17628 = vmatpush1.bf16.msra.mxu0 %v22078_v22  ;;  %v22161_v22 = vld [vmem:[#allocation16 + $0xb4c] ss:$24 sps:$4 sm:$0xff]  }
 0x9ae   :  { %17629 = vmatprep.subr.bf16.mxu0 %v22086_v6  ;;  %v22164_v6 = vld [vmem:[#allocation16 + $0xa4] ss:$24 sps:$4 sm:$0xff]  }
 0x9b1   :  { %17630 = vmatpush1.bf16.msra.mxu0 %v22084_v34  ;;  %v22159_v34 = vld [vmem:[#allocation16 + $0xb48] ss:$24 sps:$4 sm:$0xff]  }
 0x9b2   :  { %17640 = vmatprep.subr.bf16.mxu0 %v22092_v1  ;;  %v22162_v1 = vld [vmem:[#allocation16 + $0xa0] ss:$24 sps:$4 sm:$0xff]  }
 0x9b4   :  { %17632 = vmatmul.mubr.bf16.vlgmr.msra.gmra.mrb[68].mxu0 %v23264_v7 }
 0x9b5   :  { %17641 = vmatpush1.bf16.msra.mxu0 %v22090_v35  ;;  %v22167_v35 = vld [vmem:[#allocation16 + $0xb7c] ss:$24 sps:$4 sm:$0xff]  }
 0x9b6   :  { %17642 = vmatprep.subr.bf16.mxu0 %v22098_v49  ;;  %v22165_v49 = vld [vmem:[#allocation16 + $0xb78] ss:$24 sps:$4 sm:$0xff]  }
 0x9b9   :  { %17643 = vmatpush1.bf16.msra.mxu0 %v22096_v24  ;;  %v22168_v24 = vld [vmem:[#allocation16 + $0xd0] ss:$24 sps:$4 sm:$0xff]  }
 0x9ba   :  { %17644 = vmatprep.subr.bf16.mxu0 %v22104_v27  ;;  %v22173_v27 = vld [vmem:[#allocation16 + $0xbac] ss:$24 sps:$4 sm:$0xff]  }
 0x9bd   :  { %17645 = vmatpush1.bf16.msra.mxu0 %v22102_v45  ;;  %v22176_v45 = vld [vmem:[#allocation16 + $0x104] ss:$24 sps:$4 sm:$0xff]  }
 0x9be   :  { %17646 = vmatprep.subr.bf16.mxu0 %v22110_v14  ;;  %v22171_v14 = vld [vmem:[#allocation16 + $0xba8] ss:$24 sps:$4 sm:$0xff]  }
 0x9c1   :  { %17647 = vmatpush1.bf16.msra.mxu0 %v22108_v62  ;;  %v22174_v62 = vld [vmem:[#allocation16 + $0x100] ss:$24 sps:$4 sm:$0xff]  }
 0x9c2   :  { %17648 = vmatprep.subr.bf16.mxu0 %v22116_v58  ;;  %v22179_v58 = vld [vmem:[#allocation16 + $0xbdc] ss:$24 sps:$4 sm:$0xff]  }
 0x9c5   :  { %17649 = vmatpush1.bf16.msra.mxu0 %v22114_v2  ;;  %v22177_v2 = vld [vmem:[#allocation16 + $0xbd8] ss:$24 sps:$4 sm:$0xff]  }
 0x9c6   :  { %17650 = vmatprep.subr.bf16.mxu0 %v22122_v4  ;;  %v22185_v4 = vld [vmem:[#allocation16 + $0x164] ss:$24 sps:$4 sm:$0xff]  }
 0x9c7   :  { %v14994_v20 = vpop.f32.mrb[64].mxu0 }
 0x9c8   :  { %v20295_v44 = vadd.f32 %v14994_v20, %v7752_v21  ;;  %v14996_v32 = vpop.f32.mrb[65].mxu0  ;;  %v22183_v21 = vld [vmem:[#allocation16 + $0x160] ss:$24 sps:$4 sm:$0xff]  }
 0x9c9   :  { %v20296_v47 = vadd.f32 %v14996_v32, %v7756_v15  ;;  %v14998_v38 = vpop.f32.mrb[66].mxu0  ;;  %17651 = vmatpush1.bf16.msra.mxu0 %v22120_v25  ;;  %v22188_v15 = vld [vmem:[#allocation16 + $0x194] ss:$24 sps:$4 sm:$0xff]   ;;  %v22186_v25 = vld [vmem:[#allocation16 + $0x190] ss:$24 sps:$4 sm:$0xff]  }
 0x9ca   :  { %22366 = vtanh.f32 %v20295_v44  ;;  %v14999_v13 = vpop.f32.mrb[67].mxu0  ;;  %17652 = vmatprep.subr.bf16.mxu0 %v22128_v61  ;;  %v22191_v61 = vld [vmem:[#allocation16 + $0x1c4] ss:$24 sps:$4 sm:$0xff]   ;;  %v22189_v20 = vld [vmem:[#allocation16 + $0x1c0] ss:$24 sps:$4 sm:$0xff]  }
 0x9cb   :  { %22368 = vtanh.f32 %v20296_v47  ;;  %v22194_v44 = vld [vmem:[#allocation16 + $0x1f4] ss:$24 sps:$4 sm:$0xff]   ;;  %v22192_v32 = vld [vmem:[#allocation16 + $0x1f0] ss:$24 sps:$4 sm:$0xff]   ;;  %v22197_v47 = vld [vmem:[#allocation16 + $0x224] ss:$24 sps:$4 sm:$0xff]  }
 0x9cc   :  { %v22195_v38 = vld [vmem:[#allocation16 + $0x220] ss:$24 sps:$4 sm:$0xff]   ;;  %v22198_v13 = vld [vmem:[#allocation16 + $0x250] ss:$24 sps:$4 sm:$0xff]  }
 0x9cd   :  { %17653 = vmatpush1.bf16.msra.mxu0 %v22126_v23  ;;  %v22200_v23 = vld [vmem:[#allocation16 + $0x254] ss:$24 sps:$4 sm:$0xff]  }
 0x9ce   :  { %17654 = vmatprep.subr.bf16.mxu0 %v22134_v17  ;;  %v22203_v17 = vld [vmem:[#allocation16 + $0x284] ss:$24 sps:$4 sm:$0xff]  }
 0x9d1   :  { %17655 = vmatpush1.bf16.msra.mxu0 %v22132_v41  ;;  %v22201_v41 = vld [vmem:[#allocation16 + $0x280] ss:$24 sps:$4 sm:$0xff]  }
 0x9d2   :  { %17656 = vmatprep.subr.bf16.mxu0 %v22140_v43  ;;  %v22206_v43 = vld [vmem:[#allocation16 + $0x2b4] ss:$24 sps:$4 sm:$0xff]  }
 0x9d4   :  { %v22367_v52 = vpop.eup %22366 }
 0x9d5   :  { %v22369_v9 = vpop.eup %22368  ;;  %17657 = vmatpush1.bf16.msra.mxu0 %v22138_v26  ;;  %v23279_v33 = vpack.c.bf16 %v22367_v52, %v22367_v52  ;;  %v22204_v26 = vld [vmem:[#allocation16 + $0x2b0] ss:$24 sps:$4 sm:$0xff]   ;;  %v22207_v52 = vld [vmem:[#allocation16 + $0x2e0] ss:$24 sps:$4 sm:$0xff]  }
 0x9d6   :  { %v23277_v30 = vpack.c.bf16 %v22369_v9, %v22369_v9  ;;  %17658 = vmatprep.subr.bf16.mxu0 %v22143_v51  ;;  %v22209_v51 = vld [vmem:[#allocation16 + $0x2e4] ss:$24 sps:$4 sm:$0xff]   ;;  %v22212_v9 = vld [vmem:[#allocation16 + $0x314] ss:$24 sps:$4 sm:$0xff]  }
 0x9d8   :  { %17508 = vmatprep.mubr.bf16.mxu1 %v23277_v30  ;;  %17672 = vmatprep.mubr.bf16.mxu0 %v23277_v30 }
 0x9d9   :  { %17509 = vmatmul.mubr.bf16.vlgmr.msra.gmra.mrb[56].mxu1 %v23279_v33  ;;  %17659 = vmatpush1.bf16.msra.mxu0 %v22141_v56  ;;  %v22210_v56 = vld [vmem:[#allocation16 + $0x310] ss:$24 sps:$4 sm:$0xff]  }
 0x9da   :  { %17682 = vmatpush1.bf16.msra.mxu1 %v22144_v8  ;;  %17713 = vmatprep.mubr.bf16.mxu1 %v23211_v54  ;;  %v22170_v54 = vld [vmem:[#allocation16 + $0xd4] ss:$24 sps:$4 sm:$0xff]   ;;  %v22215_v8 = vld [vmem:[#allocation16 + $0x344] ss:$24 sps:$4 sm:$0xff]  }
 0x9db   :  { %17660 = vmatprep.subr.bf16.mxu0 %v22149_v12  ;;  %17683 = vmatprep.subr.bf16.mxu1 %v22152_v16  ;;  %v22213_v12 = vld [vmem:[#allocation16 + $0x340] ss:$24 sps:$4 sm:$0xff]   ;;  %v22218_v16 = vld [vmem:[#allocation16 + $0x374] ss:$24 sps:$4 sm:$0xff]  }
 0x9dd   :  { %17661 = vmatpush1.bf16.msra.mxu0 %v22147_v59  ;;  %v22216_v59 = vld [vmem:[#allocation16 + $0x370] ss:$24 sps:$4 sm:$0xff]  }
 0x9de   :  { %17684 = vmatpush1.bf16.msra.mxu1 %v22150_v11  ;;  %17662 = vmatprep.subr.bf16.mxu0 %v22155_v0  ;;  %v22221_v11 = vld [vmem:[#allocation16 + $0x3a4] ss:$24 sps:$4 sm:$0xff]   ;;  %v22219_v0 = vld [vmem:[#allocation16 + $0x3a0] ss:$24 sps:$4 sm:$0xff]  }
 0x9df   :  { %17685 = vmatprep.subr.bf16.mxu1 %v22158_v53  ;;  %v22224_v53 = vld [vmem:[#allocation16 + $0x3d4] ss:$24 sps:$4 sm:$0xff]  }
 0x9e1   :  { %17663 = vmatpush1.bf16.msra.mxu0 %v22153_v18  ;;  %v22222_v18 = vld [vmem:[#allocation16 + $0x3d0] ss:$24 sps:$4 sm:$0xff]  }
 0x9e2   :  { %17686 = vmatpush1.bf16.msra.mxu1 %v22156_v50  ;;  %17664 = vmatprep.subr.bf16.mxu0 %v22161_v22  ;;  %v22227_v50 = vld [vmem:[#allocation16 + $0x404] ss:$24 sps:$4 sm:$0xff]   ;;  %v22230_v22 = vld [vmem:[#allocation16 + $0x434] ss:$24 sps:$4 sm:$0xff]  }
 0x9e3   :  { %17687 = vmatprep.subr.bf16.mxu1 %v22164_v6  ;;  %v22233_v6 = vld [vmem:[#allocation16 + $0x464] ss:$24 sps:$4 sm:$0xff]  }
 0x9e5   :  { %17665 = vmatpush1.bf16.msra.mxu0 %v22159_v34  ;;  %v22231_v34 = vld [vmem:[#allocation16 + $0x460] ss:$24 sps:$4 sm:$0xff]  }
 0x9e6   :  { %17688 = vmatpush1.bf16.msra.mxu1 %v22162_v1  ;;  %17666 = vmatprep.subr.bf16.mxu0 %v22167_v35  ;;  %v22236_v1 = vld [vmem:[#allocation16 + $0x494] ss:$24 sps:$4 sm:$0xff]   ;;  %v22234_v35 = vld [vmem:[#allocation16 + $0x490] ss:$24 sps:$4 sm:$0xff]  }
 0x9e7   :  { %17689 = vmatprep.subr.bf16.mxu1 %v22170_v54  ;;  %v22239_v54 = vld [vmem:[#allocation16 + $0x4c4] ss:$24 sps:$4 sm:$0xff]  }
 0x9e9   :  { %17667 = vmatpush1.bf16.msra.mxu0 %v22165_v49  ;;  %v22237_v49 = vld [vmem:[#allocation16 + $0x4c0] ss:$24 sps:$4 sm:$0xff]  }
 0x9ea   :  { %17690 = vmatpush1.bf16.msra.mxu1 %v22168_v24  ;;  %17668 = vmatprep.subr.bf16.mxu0 %v22173_v27  ;;  %v22242_v24 = vld [vmem:[#allocation16 + $0x4f4] ss:$24 sps:$4 sm:$0xff]   ;;  %v22240_v27 = vld [vmem:[#allocation16 + $0x4f0] ss:$24 sps:$4 sm:$0xff]  }
 0x9eb   :  { %17691 = vmatprep.subr.bf16.mxu1 %v22176_v45  ;;  %v22245_v45 = vld [vmem:[#allocation16 + $0x524] ss:$24 sps:$4 sm:$0xff]  }
 0x9ed   :  { %17669 = vmatpush1.bf16.msra.mxu0 %v22171_v14  ;;  %v22243_v14 = vld [vmem:[#allocation16 + $0x520] ss:$24 sps:$4 sm:$0xff]  }
 0x9ee   :  { %17692 = vmatpush1.bf16.msra.mxu1 %v22174_v62  ;;  %17670 = vmatprep.subr.bf16.mxu0 %v22179_v58  ;;  %v22248_v62 = vld [vmem:[#allocation16 + $0x554] ss:$24 sps:$4 sm:$0xff]   ;;  %v22246_v58 = vld [vmem:[#allocation16 + $0x550] ss:$24 sps:$4 sm:$0xff]  }
 0x9ef   :  { %17693 = vmatprep.subr.bf16.mxu1 %v22182_v60  ;;  %v22251_v60 = vld [vmem:[#allocation16 + $0x584] ss:$24 sps:$4 sm:$0xff]  }
 0x9f1   :  { %17671 = vmatpush1.bf16.msra.mxu0 %v22177_v2  ;;  %v22249_v2 = vld [vmem:[#allocation16 + $0x580] ss:$24 sps:$4 sm:$0xff]  }
 0x9f2   :  { %17694 = vmatpush1.bf16.msra.mxu1 %v22180_v55  ;;  %v22254_v55 = vld [vmem:[#allocation16 + $0x5b4] ss:$24 sps:$4 sm:$0xff]  }
 0x9f3   :  { %17695 = vmatprep.subr.bf16.mxu1 %v22185_v4  ;;  %v22252_v4 = vld [vmem:[#allocation16 + $0x5b0] ss:$24 sps:$4 sm:$0xff]  }
 0x9f4   :  { %17673 = vmatmul.mubr.bf16.vlgmr.msra.gmra.mrb[68].mxu0 %v23279_v33 }
 0x9f6   :  { %17696 = vmatpush1.bf16.msra.mxu1 %v22183_v21  ;;  %v22257_v21 = vld [vmem:[#allocation16 + $0x5e4] ss:$24 sps:$4 sm:$0xff]  }
 0x9f7   :  { %17697 = vmatprep.subr.bf16.mxu1 %v22188_v15  ;;  %v22255_v15 = vld [vmem:[#allocation16 + $0x5e0] ss:$24 sps:$4 sm:$0xff]  }
 0x9fa   :  { %17698 = vmatpush1.bf16.msra.mxu1 %v22186_v25  ;;  %v22260_v25 = vld [vmem:[#allocation16 + $0x614] ss:$24 sps:$4 sm:$0xff]  }
 0x9fb   :  { %17699 = vmatprep.subr.bf16.mxu1 %v22191_v61  ;;  %v22258_v61 = vld [vmem:[#allocation16 + $0x610] ss:$24 sps:$4 sm:$0xff]  }
 0x9fe   :  { %17700 = vmatpush1.bf16.msra.mxu1 %v22189_v20  ;;  %v22263_v20 = vld [vmem:[#allocation16 + $0x644] ss:$24 sps:$4 sm:$0xff]  }
 0x9ff   :  { %17701 = vmatprep.subr.bf16.mxu1 %v22194_v44  ;;  %v22261_v44 = vld [vmem:[#allocation16 + $0x640] ss:$24 sps:$4 sm:$0xff]  }
 0xa02   :  { %17702 = vmatpush1.bf16.msra.mxu1 %v22192_v32  ;;  %v22266_v32 = vld [vmem:[#allocation16 + $0x674] ss:$24 sps:$4 sm:$0xff]  }
 0xa03   :  { %17703 = vmatprep.subr.bf16.mxu1 %v22197_v47  ;;  %v22264_v47 = vld [vmem:[#allocation16 + $0x670] ss:$24 sps:$4 sm:$0xff]  }
 0xa06   :  { %17704 = vmatpush1.bf16.msra.mxu1 %v22195_v38  ;;  %v22269_v38 = vld [vmem:[#allocation16 + $0x6a4] ss:$24 sps:$4 sm:$0xff]  }
 0xa07   :  { %17705 = vmatprep.subr.bf16.mxu1 %v22200_v23  ;;  %v22267_v23 = vld [vmem:[#allocation16 + $0x6a0] ss:$24 sps:$4 sm:$0xff]  }
 0xa0a   :  { %17706 = vmatpush1.bf16.msra.mxu1 %v22198_v13  ;;  %v22272_v13 = vld [vmem:[#allocation16 + $0x6d4] ss:$24 sps:$4 sm:$0xff]  }
 0xa0b   :  { %17707 = vmatprep.subr.bf16.mxu1 %v22203_v17  ;;  %v22270_v17 = vld [vmem:[#allocation16 + $0x6d0] ss:$24 sps:$4 sm:$0xff]  }
 0xa0e   :  { %17708 = vmatpush1.bf16.msra.mxu1 %v22201_v41  ;;  %v22275_v41 = vld [vmem:[#allocation16 + $0x704] ss:$24 sps:$4 sm:$0xff]  }
 0xa0f   :  { %17709 = vmatprep.subr.bf16.mxu1 %v22206_v43  ;;  %v22278_v43 = vld [vmem:[#allocation16 + $0x734] ss:$24 sps:$4 sm:$0xff]  }
 0xa12   :  { %17710 = vmatpush1.bf16.msra.mxu1 %v22204_v26  ;;  %v22281_v26 = vld [vmem:[#allocation16 + $0x764] ss:$24 sps:$4 sm:$0xff]  }
 0xa13   :  { %17711 = vmatprep.subr.bf16.mxu1 %v22209_v51  ;;  %v22279_v51 = vld [vmem:[#allocation16 + $0x760] ss:$24 sps:$4 sm:$0xff]  }
 0xa16   :  { %17712 = vmatpush1.bf16.msra.mxu1 %v22207_v52  ;;  %v22284_v52 = vld [vmem:[#allocation16 + $0x794] ss:$24 sps:$4 sm:$0xff]  }
 0xa17   :  { %17722 = vmatprep.subr.bf16.mxu1 %v22212_v9  ;;  %v22282_v9 = vld [vmem:[#allocation16 + $0x790] ss:$24 sps:$4 sm:$0xff]  }
 0xa19   :  { %17714 = vmatmul.mubr.bf16.vlgmr.msra.gmra.mrb[60].mxu1 %v23229_v42  ;;  %v22225_v42 = vld [vmem:[#allocation16 + $0x400] ss:$24 sps:$4 sm:$0xff]  }
 0xa1a   :  { %17723 = vmatpush1.bf16.msra.mxu1 %v22210_v56  ;;  %17754 = vmatprep.mubr.bf16.mxu1 %v23231_v63  ;;  %v22228_v63 = vld [vmem:[#allocation16 + $0x430] ss:$24 sps:$4 sm:$0xff]   ;;  %v22287_v56 = vld [vmem:[#allocation16 + $0x7c4] ss:$24 sps:$4 sm:$0xff]  }
 0xa1b   :  { %17724 = vmatprep.subr.bf16.mxu1 %v22215_v8  ;;  %v22285_v8 = vld [vmem:[#allocation16 + $0x7c0] ss:$24 sps:$4 sm:$0xff]  }
 0xa1e   :  { %17725 = vmatpush1.bf16.msra.mxu1 %v22213_v12  ;;  %v22290_v12 = vld [vmem:[#allocation16 + $0x7f4] ss:$24 sps:$4 sm:$0xff]  }
 0xa1f   :  { %17726 = vmatprep.subr.bf16.mxu1 %v22218_v16  ;;  %v22288_v16 = vld [vmem:[#allocation16 + $0x7f0] ss:$24 sps:$4 sm:$0xff]  }
 0xa22   :  { %17727 = vmatpush1.bf16.msra.mxu1 %v22216_v59  ;;  %v22293_v59 = vld [vmem:[#allocation16 + $0x824] ss:$24 sps:$4 sm:$0xff]  }
 0xa23   :  { %17728 = vmatprep.subr.bf16.mxu1 %v22221_v11  ;;  %v22291_v11 = vld [vmem:[#allocation16 + $0x820] ss:$24 sps:$4 sm:$0xff]  }
 0xa26   :  { %17729 = vmatpush1.bf16.msra.mxu1 %v22219_v0  ;;  %v22296_v0 = vld [vmem:[#allocation16 + $0x854] ss:$24 sps:$4 sm:$0xff]  }
 0xa27   :  { %17730 = vmatprep.subr.bf16.mxu1 %v22224_v53  ;;  %v22294_v53 = vld [vmem:[#allocation16 + $0x850] ss:$24 sps:$4 sm:$0xff]  }
 0xa2a   :  { %17731 = vmatpush1.bf16.msra.mxu1 %v22222_v18  ;;  %v22299_v18 = vld [vmem:[#allocation16 + $0x884] ss:$24 sps:$4 sm:$0xff]  }
 0xa2b   :  { %17732 = vmatprep.subr.bf16.mxu1 %v22227_v50  ;;  %v22297_v50 = vld [vmem:[#allocation16 + $0x880] ss:$24 sps:$4 sm:$0xff]  }
 0xa2e   :  { %17733 = vmatpush1.bf16.msra.mxu1 %v22225_v42  ;;  %v22302_v42 = vld [vmem:[#allocation16 + $0x8b4] ss:$24 sps:$4 sm:$0xff]  }
 0xa2f   :  { %17734 = vmatprep.subr.bf16.mxu1 %v22230_v22  ;;  %v22300_v22 = vld [vmem:[#allocation16 + $0x8b0] ss:$24 sps:$4 sm:$0xff]  }
 0xa32   :  { %17735 = vmatpush1.bf16.msra.mxu1 %v22228_v63  ;;  %v22305_v63 = vld [vmem:[#allocation16 + $0x8e4] ss:$24 sps:$4 sm:$0xff]  }
 0xa33   :  { %17736 = vmatprep.subr.bf16.mxu1 %v22233_v6  ;;  %v22303_v6 = vld [vmem:[#allocation16 + $0x8e0] ss:$24 sps:$4 sm:$0xff]  }
 0xa36   :  { %17737 = vmatpush1.bf16.msra.mxu1 %v22231_v34  ;;  %v22308_v34 = vld [vmem:[#allocation16 + $0x914] ss:$24 sps:$4 sm:$0xff]  }
 0xa37   :  { %17738 = vmatprep.subr.bf16.mxu1 %v22236_v1  ;;  %v22306_v1 = vld [vmem:[#allocation16 + $0x910] ss:$24 sps:$4 sm:$0xff]  }
 0xa3a   :  { %17739 = vmatpush1.bf16.msra.mxu1 %v22234_v35  ;;  %v22311_v35 = vld [vmem:[#allocation16 + $0x944] ss:$24 sps:$4 sm:$0xff]  }
 0xa3b   :  { %17740 = vmatprep.subr.bf16.mxu1 %v22239_v54  ;;  %v22309_v54 = vld [vmem:[#allocation16 + $0x940] ss:$24 sps:$4 sm:$0xff]  }
 0xa3e   :  { %17741 = vmatpush1.bf16.msra.mxu1 %v22237_v49  ;;  %v22314_v49 = vld [vmem:[#allocation16 + $0x974] ss:$24 sps:$4 sm:$0xff]  }
 0xa3f   :  { %17742 = vmatprep.subr.bf16.mxu1 %v22242_v24  ;;  %v22312_v24 = vld [vmem:[#allocation16 + $0x970] ss:$24 sps:$4 sm:$0xff]  }
 0xa42   :  { %17743 = vmatpush1.bf16.msra.mxu1 %v22240_v27  ;;  %v22317_v27 = vld [vmem:[#allocation16 + $0x9a4] ss:$24 sps:$4 sm:$0xff]  }
 0xa43   :  { %17744 = vmatprep.subr.bf16.mxu1 %v22245_v45  ;;  %v23292_v45 = vld [vmem:[#allocation11] sm:$0x3f] }
 0xa46   :  { %17745 = vmatpush1.bf16.msra.mxu1 %v22243_v14  ;;  %v22315_v14 = vld [vmem:[#allocation16 + $0x9a0] ss:$24 sps:$4 sm:$0xff]  }
 0xa47   :  { %17746 = vmatprep.subr.bf16.mxu1 %v22248_v62  ;;  %v22320_v62 = vld [vmem:[#allocation16 + $0x9d4] ss:$24 sps:$4 sm:$0xff]  }
 0xa4a   :  { %17747 = vmatpush1.bf16.msra.mxu1 %v22246_v58  ;;  %v6496_v58 = vrot.slane %v23292_v45, %v23218_v39 }
 0xa4b   :  { %17748 = vmatprep.subr.bf16.mxu1 %v22251_v60  ;;  %v23298_v60 = vld [vmem:[#allocation17] sm:$0x3f] }
 0xa4e   :  { %17749 = vmatpush1.bf16.msra.mxu1 %v22249_v2  ;;  %v22323_v2 = vld [vmem:[#allocation16 + $0xa04] ss:$24 sps:$4 sm:$0xff]  }
 0xa4f   :  { %17750 = vmatprep.subr.bf16.mxu1 %v22254_v55  ;;  %v6523_v55 = vadd.f32 %v6496_v58, %v23086_v3 }
 0xa51   :  { %22370 = vtanh.f32 %v6523_v55 }
 0xa52   :  { %17751 = vmatpush1.bf16.msra.mxu1 %v22252_v4  ;;  %v15406_v4 = vrot.slane %v23298_v60, %v23218_v39 }
 0xa53   :  { %17752 = vmatprep.subr.bf16.mxu1 %v22257_v21 }
 0xa56   :  { %17753 = vmatpush1.bf16.msra.mxu1 %v22255_v15  ;;  %v22321_v15 = vld [vmem:[#allocation16 + $0xa00] ss:$24 sps:$4 sm:$0xff]  }
 0xa57   :  { %17763 = vmatprep.subr.bf16.mxu1 %v22260_v25  ;;  %v15410_v25 = vrot.slane %v23298_v60, %v23206_v48 }
 0xa59   :  { %17755 = vmatmul.mubr.bf16.vlgmr.msra.gmra.mrb[60].mxu1 %v23243_v31  ;;  %v22273_v31 = vld [vmem:[#allocation16 + $0x700] ss:$24 sps:$4 sm:$0xff]  }
 0xa5a   :  { %17764 = vmatpush1.bf16.msra.mxu1 %v22258_v61  ;;  %17795 = vmatprep.mubr.bf16.mxu1 %v23262_v40  ;;  %v22276_v40 = vld [vmem:[#allocation16 + $0x730] ss:$24 sps:$4 sm:$0xff]   ;;  %v22326_v61 = vld [vmem:[#allocation16 + $0xa34] ss:$24 sps:$4 sm:$0xff]  }
 0xa5b   :  { %17765 = vmatprep.subr.bf16.mxu1 %v22263_v20 }
 0xa5e   :  { %17766 = vmatpush1.bf16.msra.mxu1 %v22261_v44 }
 0xa5f   :  { %17767 = vmatprep.subr.bf16.mxu1 %v22266_v32 }
 0xa62   :  { %17768 = vmatpush1.bf16.msra.mxu1 %v22264_v47 }
 0xa63   :  { %17769 = vmatprep.subr.bf16.mxu1 %v22269_v38  ;;  %v22324_v38 = vld [vmem:[#allocation16 + $0xa30] ss:$24 sps:$4 sm:$0xff]  }
 0xa66   :  { %17770 = vmatpush1.bf16.msra.mxu1 %v22267_v23  ;;  %v22327_v23 = vld [vmem:[#allocation16 + $0xa60] ss:$24 sps:$4 sm:$0xff]  }
 0xa67   :  { %17771 = vmatprep.subr.bf16.mxu1 %v22272_v13  ;;  %v22330_v13 = vld [vmem:[#allocation16 + $0xa90] ss:$24 sps:$4 sm:$0xff]  }
 0xa6a   :  { %17772 = vmatpush1.bf16.msra.mxu1 %v22270_v17  ;;  %v22371_v17 = vpop.eup %22370 }
 0xa6b   :  { %17773 = vmatprep.subr.bf16.mxu1 %v22275_v41  ;;  %v22335_v41 = vld [vmem:[#allocation16 + $0xac4] ss:$24 sps:$4 sm:$0xff]  }
 0xa6e   :  { %17774 = vmatpush1.bf16.msra.mxu1 %v22273_v31 }
 0xa6f   :  { %17775 = vmatprep.subr.bf16.mxu1 %v22278_v43 }
 0xa72   :  { %17776 = vmatpush1.bf16.msra.mxu1 %v22276_v40 }
 0xa73   :  { %17777 = vmatprep.subr.bf16.mxu1 %v22281_v26 }
 0xa76   :  { %17778 = vmatpush1.bf16.msra.mxu1 %v22279_v51  ;;  %v22333_v51 = vld [vmem:[#allocation16 + $0xac0] ss:$24 sps:$4 sm:$0xff]  }
 0xa77   :  { %17779 = vmatprep.subr.bf16.mxu1 %v22284_v52 }
 0xa7a   :  { %17780 = vmatpush1.bf16.msra.mxu1 %v22282_v9  ;;  %v22338_v9 = vld [vmem:[#allocation16 + $0xaf4] ss:$24 sps:$4 sm:$0xff]  }
 0xa7b   :  { %17781 = vmatprep.subr.bf16.mxu1 %v22287_v56 }
 0xa7e   :  { %17782 = vmatpush1.bf16.msra.mxu1 %v22285_v8 }
 0xa7f   :  { %17783 = vmatprep.subr.bf16.mxu1 %v22290_v12  ;;  %v22336_v12 = vld [vmem:[#allocation16 + $0xaf0] ss:$24 sps:$4 sm:$0xff]  }
 0xa82   :  { %17784 = vmatpush1.bf16.msra.mxu1 %v22288_v16  ;;  %v22341_v16 = vld [vmem:[#allocation16 + $0xb24] ss:$24 sps:$4 sm:$0xff]  }
 0xa83   :  { %17785 = vmatprep.subr.bf16.mxu1 %v22293_v59  ;;  %v6504_v59 = vrot.slane %v23292_v45, %v23238_v46 }
 0xa86   :  { %17786 = vmatpush1.bf16.msra.mxu1 %v22291_v11  ;;  %v6508_v11 = vrot.slane %v23292_v45, %v23221_v28 }
 0xa87   :  { %17787 = vmatprep.subr.bf16.mxu1 %v22296_v0  ;;  %v22339_v0 = vld [vmem:[#allocation16 + $0xb20] ss:$24 sps:$4 sm:$0xff]  }
 0xa8a   :  { %17788 = vmatpush1.bf16.msra.mxu1 %v22294_v53  ;;  %v22344_v53 = vld [vmem:[#allocation16 + $0xb54] ss:$24 sps:$4 sm:$0xff]  }
 0xa8b   :  { %17789 = vmatprep.subr.bf16.mxu1 %v22299_v18  ;;  %v6525_v18 = vadd.f32 %v6504_v59, %v23104_v5 }
 0xa8e   :  { %17790 = vmatpush1.bf16.msra.mxu1 %v22297_v50  ;;  %v15414_v50 = vrot.slane %v23298_v60, %v23238_v46  ;;  %v22345_v46 = vld [vmem:[#allocation16 + $0xb80] ss:$24 sps:$4 sm:$0xff]  }
 0xa8f   :  { %17791 = vmatprep.subr.bf16.mxu1 %v22302_v42  ;;  %v6526_v42 = vadd.f32 %v6508_v11, %v23107_v57  ;;  %v22350_v57 = vld [vmem:[#allocation16 + $0xbb4] ss:$24 sps:$4 sm:$0xff]  }
 0xa92   :  { %17792 = vmatpush1.bf16.msra.mxu1 %v22300_v22  ;;  %v15418_v22 = vrot.slane %v23298_v60, %v23221_v28  ;;  %v22348_v28 = vld [vmem:[#allocation16 + $0xbb0] ss:$24 sps:$4 sm:$0xff]  }
 0xa93   :  { %17793 = vmatprep.subr.bf16.mxu1 %v22305_v63  ;;  %v22342_v63 = vld [vmem:[#allocation16 + $0xb50] ss:$24 sps:$4 sm:$0xff]  }
 0xa96   :  { %17794 = vmatpush1.bf16.msra.mxu1 %v22303_v6 }
 0xa97   :  { %17804 = vmatprep.subr.bf16.mxu1 %v22308_v34  ;;  %v22347_v34 = vld [vmem:[#allocation16 + $0xb84] ss:$24 sps:$4 sm:$0xff]  }
 0xa99   :  { %17796 = vmatmul.mubr.bf16.vlgmr.msra.gmra.mrb[60].mxu1 %v23264_v7  ;;  %v6500_v7 = vrot.slane %v23292_v45, %v23206_v48  ;;  %v22332_v48 = vld [vmem:[#allocation16 + $0xa94] ss:$24 sps:$4 sm:$0xff]  }
 0xa9a   :  { %17805 = vmatpush1.bf16.msra.mxu1 %v22306_v1  ;;  %17836 = vmatprep.mubr.bf16.mxu1 %v23277_v30  ;;  %v22318_v30 = vld [vmem:[#allocation16 + $0x9d0] ss:$24 sps:$4 sm:$0xff]  }
 0xa9b   :  { %17806 = vmatprep.subr.bf16.mxu1 %v22311_v35  ;;  %v6524_v21 = vadd.f32 %v6500_v7, %v23089_v10  ;;  %v22329_v10 = vld [vmem:[#allocation16 + $0xa64] ss:$24 sps:$4 sm:$0xff]  }
 0xa9d   :  { %22372 = vtanh.f32 %v6524_v21 }
 0xa9e   :  { %17807 = vmatpush1.bf16.msra.mxu1 %v22309_v54 }
 0xa9f   :  { %17808 = vmatprep.subr.bf16.mxu1 %v22314_v49 }
 0xaa2   :  { %17809 = vmatpush1.bf16.msra.mxu1 %v22312_v24  ;;  %v22353_v24 = vld [vmem:[#allocation16 + $0xbe4] ss:$24 sps:$4 sm:$0xff]  }
 0xaa3   :  { %17810 = vmatprep.subr.bf16.mxu1 %v22317_v27 }
 0xaa6   :  { %17811 = vmatpush1.bf16.msra.mxu1 %v22315_v14  ;;  %v22351_v14 = vld [vmem:[#allocation16 + $0xbe0] ss:$24 sps:$4 sm:$0xff]  }
 0xaa7   :  { %17812 = vmatprep.subr.bf16.mxu1 %v22320_v62  ;;  %v22373_v31 = vpop.eup %22372 }
 0xaaa   :  { %17813 = vmatpush1.bf16.msra.mxu1 %v22318_v30 }
 0xaab   :  { %17814 = vmatprep.subr.bf16.mxu1 %v22323_v2 }
 0xaac   :  { %v17510_v20 = vpop.f32.mrb[56].mxu1 }
 0xaad   :  { %v20297_v44 = vadd.f32 %v17510_v20, %v15406_v4  ;;  %v17512_v32 = vpop.f32.mrb[57].mxu1 }
 0xaae   :  { %v20298_v47 = vadd.f32 %v17512_v32, %v15410_v25  ;;  %17815 = vmatpush1.bf16.msra.mxu1 %v22321_v15  ;;  %v17514_v3 = vpop.f32.mrb[58].mxu1  ;;  %v6516_v15 = vrot.slane %v23292_v45, %v23254_v36 }
 0xaaf   :  { %22374 = vtanh.f32 %v20297_v44  ;;  %v17515_v39 = vpop.f32.mrb[59].mxu1  ;;  %17816 = vmatprep.subr.bf16.mxu1 %v22326_v61  ;;  %v15422_v61 = vrot.slane %v23298_v60, %v23251_v37  ;;  %v15426_v44 = vrot.slane %v23298_v60, %v23254_v36 }
 0xab0   :  { %22376 = vtanh.f32 %v20298_v47  ;;  %v6528_v20 = vadd.f32 %v6516_v15, %v23137_v29 }
 0xab1   :  { %22378 = vtanh.f32 %v6525_v18 }
 0xab2   :  { %17817 = vmatpush1.bf16.msra.mxu1 %v22324_v38  ;;  %22380 = vtanh.f32 %v6526_v42 }
 0xab3   :  { %17818 = vmatprep.subr.bf16.mxu1 %v22329_v10 }
 0xab6   :  { %17819 = vmatpush1.bf16.msra.mxu1 %v22327_v23 }
 0xab7   :  { %17820 = vmatprep.subr.bf16.mxu1 %v22332_v48 }
 0xab9   :  { %v22375_v43 = vpop.eup %22374 }
 0xaba   :  { %v22377_v40 = vpop.eup %22376  ;;  %v17851_v26 = vmul.f32 %v22375_v43, %v22371_v17  ;;  %17821 = vmatpush1.bf16.msra.mxu1 %v22330_v13 }
 0xabb   :  { %v17852_v52 = vmul.f32 %v22377_v40, %v22373_v31  ;;  %17822 = vmatprep.subr.bf16.mxu1 %v22335_v41  ;;  %v22379_v27 = vpop.eup %22378 }
 0xabc   :  { %v17857_v56 = vadd.f32 %v17851_v26, %v6523_v55  ;;  %v22381_v62 = vpop.eup %22380 }
 0xabd   :  { %v17858_v8 = vadd.f32 %v17852_v52, %v6524_v21  ;;  %v6512_v21 = vrot.slane %v23292_v45, %v23251_v37 }
 0xabe   :  { %17863 = vst [vmem:[#allocation19] sm:$0xff] %v17857_v56  ;;  %17823 = vmatpush1.bf16.msra.mxu1 %v22333_v51 }
 0xabf   :  { %17864 = vst [vmem:[#allocation19 + $0x8] sm:$0xff] %v17858_v8  ;;  %17824 = vmatprep.subr.bf16.mxu1 %v22338_v9  ;;  %v6527_v25 = vadd.f32 %v6512_v21, %v23134_v19 }
 0xac2   :  { %17825 = vmatpush1.bf16.msra.mxu1 %v22336_v12 }
 0xac3   :  { %17826 = vmatprep.subr.bf16.mxu1 %v22341_v16 }
 0xac6   :  { %17827 = vmatpush1.bf16.msra.mxu1 %v22339_v0 }
 0xac7   :  { %v17674_v6 = vpop.f32.mrb[68].mxu0  ;;  %17828 = vmatprep.subr.bf16.mxu1 %v22344_v53 }
 0xac8   :  { %v20299_v1 = vadd.f32 %v17674_v6, %v15414_v50  ;;  %v17676_v35 = vpop.f32.mrb[69].mxu0 }
 0xac9   :  { %v20300_v54 = vadd.f32 %v17676_v35, %v15418_v22  ;;  %v17678_v49 = vpop.f32.mrb[70].mxu0 }
 0xaca   :  { %22382 = vtanh.f32 %v20299_v1  ;;  %17829 = vmatpush1.bf16.msra.mxu1 %v22342_v63  ;;  %v17679_v5 = vpop.f32.mrb[71].mxu0 }
 0xacb   :  { %22384 = vtanh.f32 %v20300_v54  ;;  %17830 = vmatprep.subr.bf16.mxu1 %v22347_v34 }
 0xacc   :  { %22386 = vtanh.f32 %v6527_v25 }
 0xacd   :  { %22388 = vtanh.f32 %v6528_v20 }
 0xace   :  { %17831 = vmatpush1.bf16.msra.mxu1 %v22345_v46 }
 0xacf   :  { %17832 = vmatprep.subr.bf16.mxu1 %v22350_v57 }
 0xad2   :  { %17833 = vmatpush1.bf16.msra.mxu1 %v22348_v28 }
 0xad3   :  { %17834 = vmatprep.subr.bf16.mxu1 %v22353_v24 }
 0xad4   :  { %v22383_v58 = vpop.eup %22382 }
 0xad5   :  { %v22385_v7 = vpop.eup %22384  ;;  %v17853_v30 = vmul.f32 %v22383_v58, %v22379_v27 }
 0xad6   :  { %v17854_v2 = vmul.f32 %v22385_v7, %v22381_v62  ;;  %17835 = vmatpush1.bf16.msra.mxu1 %v22351_v14  ;;  %v22387_v45 = vpop.eup %22386 }
 0xad7   :  { %v17859_v55 = vadd.f32 %v17853_v30, %v6525_v18  ;;  %v22389_v19 = vpop.eup %22388 }
 0xad8   :  { %v17860_v4 = vadd.f32 %v17854_v2, %v6526_v42 }
 0xad9   :  { %17865 = vst [vmem:[#allocation19 + $0x10] sm:$0xff] %v17859_v55  ;;  %17837 = vmatmul.mubr.bf16.vlgmr.msra.gmra.mrb[60].mxu1 %v23279_v33 }
 0xada   :  { %17866 = vst [vmem:[#allocation19 + $0x18] sm:$0xff] %v17860_v4 }
 0xbac   :  { %v17838_v32 = vpop.f32.mrb[60].mxu1 }
 0xbad   :  { %v20301_v33 = vadd.f32 %v17838_v32, %v15422_v61  ;;  %v17840_v47 = vpop.f32.mrb[61].mxu1 }
 0xbae   :  { %v20302_v3 = vadd.f32 %v17840_v47, %v15426_v44  ;;  %v17842_v38 = vpop.f32.mrb[62].mxu1 }
 0xbaf   :  { %22390 = vtanh.f32 %v20301_v33  ;;  %v17843_v39 = vpop.f32.mrb[63].mxu1 }
 0xbb0   :  { %22392 = vtanh.f32 %v20302_v3 }
 0xbb9   :  { %v22391_v10 = vpop.eup %22390 }
 0xbba   :  { %v22393_v23 = vpop.eup %22392  ;;  %v17855_v37 = vmul.f32 %v22391_v10, %v22387_v45 }
 0xbbb   :  { %v17856_v29 = vmul.f32 %v22393_v23, %v22389_v19 }
 0xbbc   :  { %v17861_v48 = vadd.f32 %v17855_v37, %v6527_v25 }
 0xbbd   :  { %v17862_v36 = vadd.f32 %v17856_v29, %v6528_v20 }
 0xbbe   :  { %17867 = vst [vmem:[#allocation19 + $0x20] sm:$0xff] %v17861_v48 }
 0xbbf   :  { %17868 = vst [vmem:[#allocation19 + $0x28] sm:$0xff] %v17862_v36 }
 0xbc0   :  { %22626 = shalt.err (!%p22623_p0)
}
 0xbc1   :  { %s22627_s17 = scalar_lea.hbm %s23349_s10, 768 }
 0xbc2   :  { %p22628_p1 = scmp.ne.s32.totalorder %s23349_s10, %s22627_s17  ;;  %p22631_p2 = scmp.lt.u32.totalorder %s22627_s17, %s23349_s10 }
 0xbc4   :  { %p22633_p3 = pnand %p22631_p2, %p22628_p1 }
 0xbc6   :  { %22636 = shalt.err (!%p22633_p3)
}
 0xbc7   :  { %17878 = dma.vmem_to_hbm [thread:$0]  %s17876_s22, 768, %s23349_s10, [#allocation4]  }
 0xbc8   :  { %22649 = dma.done.wait [#allocation4], 768  }
 0xbc9   :  { %22650 = vsyncadd [#allocation4], 4294966528 }
 0xbca   :  { %17882 = vsyncpa [#allocation3], 1 }
 0xbcb   :  { %17883 = vsyncpa [#allocation6], 1 }
 0xbcc   :  { %17884 = vsyncpa [#allocation9], 1 }
 0xbcd   :  { %17885 = vsyncpa [#allocation12], 1 }
 0xbce   :  { %17886 = vsyncpa [#allocation15], 1 }
 0xbcf   :  { %17887 = vsyncpa [#allocation18], 1 }
 0xbd0   :  { %17888 = vsyncpa [#allocation4], 1 }

</bundles_post_ra>
